<compile_context>
chip_gen: v6e
topology: v6e:2x2x1
jax: 0.10.0
libtpu: 0.0.40
codegen_flags: <defaults>
</compile_context>

<pallas_src>
from functools import partial

import jax
import jax.numpy as jnp
from jax.experimental import pallas as pl
from jax.experimental.pallas import tpu as pltpu


def _sigmoid(z):
    return 1.0 / (1.0 + jnp.exp(-z))


def srm_kernel(x_ref, w_ref, b_ref, wg_ref, o_ref, *, C, G, eps, gate):
    # x_ref : (1, C, TS)  lane-dense spatial tile of one batch element
    # w_ref : (C, 1)      GroupBatchnorm3d weight (per channel)
    # b_ref : (C, 1)      GroupBatchnorm3d bias   (per channel)
    # wg_ref: (C, 1)      weight / sum(weight)
    # o_ref : (1, C, TS)
    x = x_ref[0].astype(jnp.float32)                       # (C, TS)
    cg = C // G

    # Group norm over the channels-within-group axis, independently per lane
    # (spatial position).  torch.std default => unbiased (divide by cg - 1).
    parts = []
    for g in range(G):
        grp = x[g * cg:(g + 1) * cg, :]                    # (cg, TS)
        mean = jnp.mean(grp, axis=0, keepdims=True)        # (1, TS)
        cen = grp - mean
        var = jnp.sum(cen * cen, axis=0, keepdims=True) / float(cg - 1)
        std = jnp.sqrt(var)
        parts.append(cen / (std + eps))
    gn = jnp.concatenate(parts, axis=0)                    # (C, TS)

    # Per-channel affine (broadcast (C,1) over lanes).
    gn = gn * w_ref[...] + b_ref[...]

    # Gating + channel-half cross recombination.
    rew = _sigmoid(gn * wg_ref[...])
    info = rew >= gate
    x1 = jnp.where(info, gn, 0.0)                          # informative part
    x2 = jnp.where(info, 0.0, gn)                          # non-informative part

    half = C // 2
    x2_roll = jnp.concatenate([x2[half:, :], x2[:half, :]], axis=0)
    o_ref[0] = (x1 + x2_roll).astype(o_ref.dtype)


def _pick_spatial_tile(S, C, budget_bytes=2 << 20):
    """Largest 128-multiple divisor of S whose (C, TS) f32 tile fits the budget."""
    if S % 128 != 0:
        return S
    best = None
    t = 128
    while t <= S:
        if S % t == 0 and t * C * 4 <= budget_bytes:
            best = t
        t += 128
    return best if best is not None else S


def srblock(x, gn_weight, gn_bias, *, group_num=4, eps=1e-10, gate_threshold=0.5):
    """Forward of SRblock. x: (N, C, D, H, W); gn_weight/gn_bias: (C, 1, 1, 1)."""
    N, C, D, H, W = x.shape
    assert C % group_num == 0 and C % 2 == 0
    S = D * H * W
    TS = _pick_spatial_tile(S, C)

    # Free reshape only: NCDHW -> (N, C, S), spatial lane-dense. No transpose/pad.
    x2d = x.reshape(N, C, S).astype(jnp.float32)

    w = gn_weight.reshape(C, 1).astype(jnp.float32)
    b = gn_bias.reshape(C, 1).astype(jnp.float32)
    wg = w / jnp.sum(w)                                     # w_gamma (tiny, O(C))

    kern = partial(srm_kernel, C=C, G=group_num, eps=eps, gate=gate_threshold)

    out2d = pl.pallas_call(
        kern,
        out_shape=jax.ShapeDtypeStruct((N, C, S), jnp.float32),
        grid_spec=pltpu.PrefetchScalarGridSpec(
            num_scalar_prefetch=0,
            grid=(N, S // TS),
            in_specs=[
                pl.BlockSpec((1, C, TS), lambda n, s: (n, 0, s)),
                pl.BlockSpec((C, 1), lambda n, s: (0, 0)),
                pl.BlockSpec((C, 1), lambda n, s: (0, 0)),
                pl.BlockSpec((C, 1), lambda n, s: (0, 0)),
            ],
            out_specs=pl.BlockSpec((1, C, TS), lambda n, s: (n, 0, s)),
        ),
        compiler_params=pltpu.CompilerParams(
            dimension_semantics=("parallel", "parallel"),
            vmem_limit_bytes=32 * 1024 * 1024,
        ),
    )(x2d, w, b, wg)

    return out2d.reshape(N, C, D, H, W)


def srblock_reference(x, weight, bias, group_num=4, eps=1e-10, gate=0.5):
    """Pure-JAX reference matching SRblock.forward (SRM + GroupBatchnorm3d)."""
    N, C, D, H, W = x.shape
    G = group_num
    cg = C // G
    xg = x.reshape(N, G, cg, D, H, W)
    mean = jnp.mean(xg, axis=2, keepdims=True)
    var = jnp.sum((xg - mean) ** 2, axis=2, keepdims=True) / (cg - 1)  # unbiased
    std = jnp.sqrt(var)
    xn = ((xg - mean) / (std + eps)).reshape(N, C, D, H, W)
    gn = xn * weight.reshape(1, C, 1, 1, 1) + bias.reshape(1, C, 1, 1, 1)
    w_gamma = (weight / jnp.sum(weight)).reshape(1, C, 1, 1, 1)
    rew = _sigmoid(gn * w_gamma)
    info = rew >= gate
    x1 = jnp.where(info, gn, 0.0)
    x2 = jnp.where(info, 0.0, gn)
    half = C // 2
    return jnp.concatenate([x1[:, :half] + x2[:, half:],
                            x1[:, half:] + x2[:, :half]], axis=1)


if __name__ == "__main__":
    key = jax.random.PRNGKey(0)
    kx, kw = jax.random.split(key, 2)

    # SRblock(op_channel=8) defaults: group_num=4, gate_treshold=0.5.
    N, C, D, H, W = 2, 8, 16, 16, 16
    G = 4

    x = jax.random.normal(kx, (N, C, D, H, W), dtype=jnp.float32)
    # GroupBatchnorm3d params at init: weight ~ randn(C,1,1,1), bias = zeros.
    gn_weight = jax.random.normal(kw, (C, 1, 1, 1), dtype=jnp.float32)
    gn_bias = jnp.zeros((C, 1, 1, 1), dtype=jnp.float32)

    out = srblock(x, gn_weight, gn_bias, group_num=G, eps=1e-10,
                  gate_threshold=0.5)
    out = jax.block_until_ready(out)

    ref = srblock_reference(x, gn_weight, gn_bias, group_num=G, eps=1e-10,
                            gate=0.5)
    assert out.shape == (N, C, D, H, W)
    max_err = float(jnp.max(jnp.abs(out - ref)))
    assert jnp.allclose(out, ref, rtol=1e-4, atol=1e-4), max_err

    print("KERNEL_OK")
</pallas_src>

<mosaic_0001>
module attributes {stable_mosaic.version = 11 : i64} {
  func.func @srm_kernel(%arg0: i32, %arg1: i32, %arg2: memref<1x8x4096xf32, #tpu.memory_space<vmem>>, %arg3: memref<8x1xf32, #tpu.memory_space<vmem>>, %arg4: memref<8x1xf32, #tpu.memory_space<vmem>>, %arg5: memref<8x1xf32, #tpu.memory_space<vmem>>, %arg6: memref<1x8x4096xf32, #tpu.memory_space<vmem>>) attributes {dimension_semantics = [#tpu.dimension_semantics<parallel>, #tpu.dimension_semantics<parallel>], iteration_bounds = array<i64: 2, 1>, scalar_prefetch = 0 : i64, scratch_operands = 0 : i64, tpu.core_type = #tpu.core_type<tc>, window_params = [{transform_indices = @transform_0, window_bounds = array<i64: 1, 8, 4096>}, {pipeline_mode = #tpu.pipeline_mode<synchronous>, transform_indices = @transform_1, window_bounds = array<i64: 8, 1>}, {pipeline_mode = #tpu.pipeline_mode<synchronous>, transform_indices = @transform_2, window_bounds = array<i64: 8, 1>}, {pipeline_mode = #tpu.pipeline_mode<synchronous>, transform_indices = @transform_3, window_bounds = array<i64: 8, 1>}, {transform_indices = @transform_4, window_bounds = array<i64: 1, 8, 4096>}]} {
    %c0 = arith.constant 0 : index
    %c0_0 = arith.constant 0 : index
    %c0_1 = arith.constant 0 : index
    %0 = vector.load %arg2[%c0, %c0_0, %c0_1] : memref<1x8x4096xf32, #tpu.memory_space<vmem>>, vector<1x8x4096xf32>
    %1 = vector.shape_cast %0 : vector<1x8x4096xf32> to vector<8x4096xf32>
    %2 = vector.extract_strided_slice %1 {offsets = [0, 0], sizes = [2, 4096], strides = [1, 1]} : vector<8x4096xf32> to vector<2x4096xf32>
    %cst = arith.constant dense<0.000000e+00> : vector<4096xf32>
    %3 = vector.multi_reduction <add>, %2, %cst [0] : vector<2x4096xf32> to vector<4096xf32>
    %4 = vector.shape_cast %3 : vector<4096xf32> to vector<1x4096xf32>
    %cst_2 = arith.constant 2.000000e+00 : f32
    %5 = vector.broadcast %cst_2 : f32 to vector<1x4096xf32>
    %6 = arith.divf %4, %5 : vector<1x4096xf32>
    %7 = vector.broadcast %6 : vector<1x4096xf32> to vector<2x4096xf32>
    %8 = arith.subf %2, %7 : vector<2x4096xf32>
    %9 = arith.mulf %8, %8 : vector<2x4096xf32>
    %cst_3 = arith.constant dense<0.000000e+00> : vector<4096xf32>
    %10 = vector.multi_reduction <add>, %9, %cst_3 [0] : vector<2x4096xf32> to vector<4096xf32>
    %11 = vector.shape_cast %10 : vector<4096xf32> to vector<1x4096xf32>
    %cst_4 = arith.constant 1.000000e+00 : f32
    %12 = vector.broadcast %cst_4 : f32 to vector<1x4096xf32>
    %13 = arith.divf %11, %12 : vector<1x4096xf32>
    %14 = math.sqrt %13 : vector<1x4096xf32>
    %cst_5 = arith.constant 1.000000e-10 : f32
    %15 = vector.broadcast %cst_5 : f32 to vector<1x4096xf32>
    %16 = arith.addf %14, %15 : vector<1x4096xf32>
    %17 = vector.broadcast %16 : vector<1x4096xf32> to vector<2x4096xf32>
    %18 = arith.divf %8, %17 : vector<2x4096xf32>
    %19 = vector.extract_strided_slice %1 {offsets = [2, 0], sizes = [2, 4096], strides = [1, 1]} : vector<8x4096xf32> to vector<2x4096xf32>
    %cst_6 = arith.constant dense<0.000000e+00> : vector<4096xf32>
    %20 = vector.multi_reduction <add>, %19, %cst_6 [0] : vector<2x4096xf32> to vector<4096xf32>
    %21 = vector.shape_cast %20 : vector<4096xf32> to vector<1x4096xf32>
    %cst_7 = arith.constant 2.000000e+00 : f32
    %22 = vector.broadcast %cst_7 : f32 to vector<1x4096xf32>
    %23 = arith.divf %21, %22 : vector<1x4096xf32>
    %24 = vector.broadcast %23 : vector<1x4096xf32> to vector<2x4096xf32>
    %25 = arith.subf %19, %24 : vector<2x4096xf32>
    %26 = arith.mulf %25, %25 : vector<2x4096xf32>
    %cst_8 = arith.constant dense<0.000000e+00> : vector<4096xf32>
    %27 = vector.multi_reduction <add>, %26, %cst_8 [0] : vector<2x4096xf32> to vector<4096xf32>
    %28 = vector.shape_cast %27 : vector<4096xf32> to vector<1x4096xf32>
    %cst_9 = arith.constant 1.000000e+00 : f32
    %29 = vector.broadcast %cst_9 : f32 to vector<1x4096xf32>
    %30 = arith.divf %28, %29 : vector<1x4096xf32>
    %31 = math.sqrt %30 : vector<1x4096xf32>
    %cst_10 = arith.constant 1.000000e-10 : f32
    %32 = vector.broadcast %cst_10 : f32 to vector<1x4096xf32>
    %33 = arith.addf %31, %32 : vector<1x4096xf32>
    %34 = vector.broadcast %33 : vector<1x4096xf32> to vector<2x4096xf32>
    %35 = arith.divf %25, %34 : vector<2x4096xf32>
    %36 = vector.extract_strided_slice %1 {offsets = [4, 0], sizes = [2, 4096], strides = [1, 1]} : vector<8x4096xf32> to vector<2x4096xf32>
    %cst_11 = arith.constant dense<0.000000e+00> : vector<4096xf32>
    %37 = vector.multi_reduction <add>, %36, %cst_11 [0] : vector<2x4096xf32> to vector<4096xf32>
    %38 = vector.shape_cast %37 : vector<4096xf32> to vector<1x4096xf32>
    %cst_12 = arith.constant 2.000000e+00 : f32
    %39 = vector.broadcast %cst_12 : f32 to vector<1x4096xf32>
    %40 = arith.divf %38, %39 : vector<1x4096xf32>
    %41 = vector.broadcast %40 : vector<1x4096xf32> to vector<2x4096xf32>
    %42 = arith.subf %36, %41 : vector<2x4096xf32>
    %43 = arith.mulf %42, %42 : vector<2x4096xf32>
    %cst_13 = arith.constant dense<0.000000e+00> : vector<4096xf32>
    %44 = vector.multi_reduction <add>, %43, %cst_13 [0] : vector<2x4096xf32> to vector<4096xf32>
    %45 = vector.shape_cast %44 : vector<4096xf32> to vector<1x4096xf32>
    %cst_14 = arith.constant 1.000000e+00 : f32
    %46 = vector.broadcast %cst_14 : f32 to vector<1x4096xf32>
    %47 = arith.divf %45, %46 : vector<1x4096xf32>
    %48 = math.sqrt %47 : vector<1x4096xf32>
    %cst_15 = arith.constant 1.000000e-10 : f32
    %49 = vector.broadcast %cst_15 : f32 to vector<1x4096xf32>
    %50 = arith.addf %48, %49 : vector<1x4096xf32>
    %51 = vector.broadcast %50 : vector<1x4096xf32> to vector<2x4096xf32>
    %52 = arith.divf %42, %51 : vector<2x4096xf32>
    %53 = vector.extract_strided_slice %1 {offsets = [6, 0], sizes = [2, 4096], strides = [1, 1]} : vector<8x4096xf32> to vector<2x4096xf32>
    %cst_16 = arith.constant dense<0.000000e+00> : vector<4096xf32>
    %54 = vector.multi_reduction <add>, %53, %cst_16 [0] : vector<2x4096xf32> to vector<4096xf32>
    %55 = vector.shape_cast %54 : vector<4096xf32> to vector<1x4096xf32>
    %cst_17 = arith.constant 2.000000e+00 : f32
    %56 = vector.broadcast %cst_17 : f32 to vector<1x4096xf32>
    %57 = arith.divf %55, %56 : vector<1x4096xf32>
    %58 = vector.broadcast %57 : vector<1x4096xf32> to vector<2x4096xf32>
    %59 = arith.subf %53, %58 : vector<2x4096xf32>
    %60 = arith.mulf %59, %59 : vector<2x4096xf32>
    %cst_18 = arith.constant dense<0.000000e+00> : vector<4096xf32>
    %61 = vector.multi_reduction <add>, %60, %cst_18 [0] : vector<2x4096xf32> to vector<4096xf32>
    %62 = vector.shape_cast %61 : vector<4096xf32> to vector<1x4096xf32>
    %cst_19 = arith.constant 1.000000e+00 : f32
    %63 = vector.broadcast %cst_19 : f32 to vector<1x4096xf32>
    %64 = arith.divf %62, %63 : vector<1x4096xf32>
    %65 = math.sqrt %64 : vector<1x4096xf32>
    %cst_20 = arith.constant 1.000000e-10 : f32
    %66 = vector.broadcast %cst_20 : f32 to vector<1x4096xf32>
    %67 = arith.addf %65, %66 : vector<1x4096xf32>
    %68 = vector.broadcast %67 : vector<1x4096xf32> to vector<2x4096xf32>
    %69 = arith.divf %59, %68 : vector<2x4096xf32>
    %70 = tpu.concatenate %18, %35, %52, %69 in 0 : vector<2x4096xf32>, vector<2x4096xf32>, vector<2x4096xf32>, vector<2x4096xf32> -> vector<8x4096xf32>
    %c0_21 = arith.constant 0 : index
    %c0_22 = arith.constant 0 : index
    %71 = vector.load %arg3[%c0_21, %c0_22] : memref<8x1xf32, #tpu.memory_space<vmem>>, vector<8x1xf32>
    %72 = vector.broadcast %71 : vector<8x1xf32> to vector<8x4096xf32>
    %73 = arith.mulf %70, %72 : vector<8x4096xf32>
    %c0_23 = arith.constant 0 : index
    %c0_24 = arith.constant 0 : index
    %74 = vector.load %arg4[%c0_23, %c0_24] : memref<8x1xf32, #tpu.memory_space<vmem>>, vector<8x1xf32>
    %75 = vector.broadcast %74 : vector<8x1xf32> to vector<8x4096xf32>
    %76 = arith.addf %73, %75 : vector<8x4096xf32>
    %c0_25 = arith.constant 0 : index
    %c0_26 = arith.constant 0 : index
    %77 = vector.load %arg5[%c0_25, %c0_26] : memref<8x1xf32, #tpu.memory_space<vmem>>, vector<8x1xf32>
    %78 = vector.broadcast %77 : vector<8x1xf32> to vector<8x4096xf32>
    %79 = arith.mulf %76, %78 : vector<8x4096xf32>
    %cst_27 = arith.constant 0.000000e+00 : f32
    %80 = vector.broadcast %cst_27 : f32 to vector<8x4096xf32>
    %81 = arith.subf %80, %79 : vector<8x4096xf32>
    %82 = math.exp %81 : vector<8x4096xf32>
    %cst_28 = arith.constant 1.000000e+00 : f32
    %83 = vector.broadcast %cst_28 : f32 to vector<8x4096xf32>
    %84 = arith.addf %83, %82 : vector<8x4096xf32>
    %cst_29 = arith.constant 1.000000e+00 : f32
    %85 = vector.broadcast %cst_29 : f32 to vector<8x4096xf32>
    %86 = arith.divf %85, %84 : vector<8x4096xf32>
    %cst_30 = arith.constant 5.000000e-01 : f32
    %87 = vector.broadcast %cst_30 : f32 to vector<8x4096xf32>
    %88 = arith.cmpf oge, %86, %87 : vector<8x4096xf32>
    %cst_31 = arith.constant 0.000000e+00 : f32
    %89 = vector.broadcast %cst_31 : f32 to vector<8x4096xf32>
    %90 = arith.select %88, %76, %89 : vector<8x4096xi1>, vector<8x4096xf32>
    %cst_32 = arith.constant 0.000000e+00 : f32
    %91 = vector.broadcast %cst_32 : f32 to vector<8x4096xf32>
    %92 = arith.select %88, %91, %76 : vector<8x4096xi1>, vector<8x4096xf32>
    %93 = vector.extract_strided_slice %92 {offsets = [4, 0], sizes = [4, 4096], strides = [1, 1]} : vector<8x4096xf32> to vector<4x4096xf32>
    %94 = vector.extract_strided_slice %92 {offsets = [0, 0], sizes = [4, 4096], strides = [1, 1]} : vector<8x4096xf32> to vector<4x4096xf32>
    %95 = tpu.concatenate %93, %94 in 0 : vector<4x4096xf32>, vector<4x4096xf32> -> vector<8x4096xf32>
    %96 = arith.addf %90, %95 : vector<8x4096xf32>
    %c0_33 = arith.constant 0 : index
    %c0_34 = arith.constant 0 : index
    %c0_35 = arith.constant 0 : index
    %97 = vector.load %arg6[%c0_33, %c0_34, %c0_35] : memref<1x8x4096xf32, #tpu.memory_space<vmem>>, vector<1x8x4096xf32>
    %98 = vector.shape_cast %97 : vector<1x8x4096xf32> to vector<8x4096xf32>
    %99 = vector.shape_cast %96 : vector<8x4096xf32> to vector<1x8x4096xf32>
    tpu.vector_store %arg6[%c0_33, %c0_34, %c0_35], %99 {strides = array<i32>} : memref<1x8x4096xf32, #tpu.memory_space<vmem>>, vector<1x8x4096xf32>,
    return
  }
  func.func @transform_0(%arg0: i32, %arg1: i32) -> (i32, i32, i32) {
    %c0_i32 = arith.constant 0 : i32
    %c0_i32_0 = arith.constant 0 : i32
    return %arg0, %c0_i32, %arg1 : i32, i32, i32
  }
  func.func @transform_1(%arg0: i32, %arg1: i32) -> (i32, i32) {
    %c0_i32 = arith.constant 0 : i32
    %c0_i32_0 = arith.constant 0 : i32
    %c0_i32_1 = arith.constant 0 : i32
    return %c0_i32, %c0_i32_0 : i32, i32
  }
  func.func @transform_2(%arg0: i32, %arg1: i32) -> (i32, i32) {
    %c0_i32 = arith.constant 0 : i32
    %c0_i32_0 = arith.constant 0 : i32
    %c0_i32_1 = arith.constant 0 : i32
    return %c0_i32, %c0_i32_0 : i32, i32
  }
  func.func @transform_3(%arg0: i32, %arg1: i32) -> (i32, i32) {
    %c0_i32 = arith.constant 0 : i32
    %c0_i32_0 = arith.constant 0 : i32
    %c0_i32_1 = arith.constant 0 : i32
    return %c0_i32, %c0_i32_0 : i32, i32
  }
  func.func @transform_4(%arg0: i32, %arg1: i32) -> (i32, i32, i32) {
    %c0_i32 = arith.constant 0 : i32
    %c0_i32_0 = arith.constant 0 : i32
    return %arg0, %c0_i32, %arg1 : i32, i32, i32
  }
}

</mosaic_0001>

<bundles_post_ra>
// kernel: tpu_custom_call.1
= control target key start
LH: loop header
LB: loop body
LE: loop exit
PB: predicated region body
PF: predicated region fallthrough
CT: control target
= control target key end

     0   :  { %9 = vsyncpa [#allocation3], 0  ;;  %s11803_s0 = inlined_call_operand.hbm [shape: f32[2,8,4096], index: 0, kind: input, shape index: {}]   ;;  %s11804_s1 = inlined_call_operand.vmem [shape: f32[8,1], index: 1, kind: input, shape index: {}]   ;;  %s11805_s2 = inlined_call_operand.vmem [shape: f32[8,1], index: 2, kind: input, shape index: {}]   ;;  %s11806_s3 = inlined_call_operand.vmem [shape: f32[8,1], index: 3, kind: input, shape index: {}]   ;;  %s11807_s4 = inlined_call_operand.hbm [shape: f32[2,8,4096], index: 4, kind: output, shape index: {}]  }
   0x1   :  { %11 = vsyncpa [#allocation3 + $0x1], 0 }
   0x2   :  { %12 = vsyncpa [#allocation4], 0 }
   0x3   :  { %14 = vsyncpa [#allocation4 + $0x1], 0  ;;  %s5985_s15 = smov 0   ;;  %s5987_s16 = smov 0  }
   0x4   :  { %s5989_s17 = smov 0   ;;  %s5991_s18 = smov 0  }
   0x5   :  { %s5993_s19 = smov 0   ;;  %s5995_s20 = smov 0  }
   0x6 LB: > { %s5029_s21 = sadd.s32 4294967295, %s5955_s20   ;;  %s5030_s22 = sadd.s32 4294967294, %s5955_s20   ;;  %s5955_s20 = sphi %s5995_s20, %s20_s20   ;;  %s5951_s19 = sphi %s5993_s19, %s13245_s19   ;;  %s5947_s18 = sphi %s5991_s18, %s13244_s18   ;;  %s5943_s17 = sphi %s5989_s17, %s13243_s17   ;;  %s5939_s16 = sphi %s5987_s16, %s13242_s16   ;;  %s5935_s15 = sphi %s5985_s15, %s13241_s15  }
   0x7   : > { %s32_s23 = sadd.s32 1, %s5951_s19  ;;  %s41_s24 = sadd.s32 1, %s5943_s17 }
   0x8   : > { %p34_p0 = scmp.ge.s32.totalorder %s32_s23, 2  ;;  %p48_p1 = scmp.ne.s32.totalorder %s5943_s17, %s5939_s16 }
   0x9   : > { %p49_p2 = scmp.eq.s32.totalorder %s5955_s20, 0  ;;  %p54_p3 = scmp.ne.s32.totalorder %s5939_s16, %s5935_s15 }
   0xa   : > { %s13247_s23 = smov (%p34_p0, %s32_s23), 0  ;;  %p55_p5 = scmp.eq.s32.totalorder %s5029_s21, 0 }
   0xb   : > { %p6026_p4 = por %p49_p2, %p48_p1  ;;  %s36_s26 = ssub.s32 %s5951_s19, %s13247_s23 }
   0xc   : > { %p143_p6 = scmp.eq.s32.totalorder %s5029_s21, 1  ;;  %p39_p7 = scmp.eq.s32.totalorder %s36_s26, 0 }
   0xd   : > { %p6032_p8 = por %p55_p5, %p54_p3  ;;  %p149_p10 = scmp.eq.s32.totalorder %s5030_s22, 1 }
   0xe   : > { %p6036_p9 = por %p143_p6, %p48_p1  ;;  %p5058_p13 = scmp.lt.s32.totalorder %s5955_s20, 2 }
   0xf   : > { %s6041_s29 = scalar_select %p39_p7, %s5943_s17, %s41_s24  }
  0x10   : > { %p6043_p11 = por %p149_p10, %p54_p3  ;;  %s178_s5 = sand.u32 1, %s5943_s17  }
  0x11   : > { %s5033_s6 = sshll.u32 %s178_s5, 8  ;;  %s5044_s7 = sshll.u32 %s5951_s19, 12 }
  0x12   : > { %s12084_s30 = scalar_select %p6043_p11, 1, 0 }
  0x13   : > { %s190_s10 = scalar_lea.hbm %s11803_s0, %s5044_s7  ;;  %s182_s11 = scalar_lea.vmem [#allocation2], %s5033_s6 }
  0x14   : > { %s192_s12 = sshll.u32 %s182_s11, 4  ;;  %p6056_p0 = pnand %p5058_p13, %p6026_p4  ;;  %s193_s12 = int_to_ptr.vmem [resolvable:$true] %s192_s12 }
  0x15   : > { %p5036_p1 = scmp.ge.s32.totalorder %s5955_s20, 1  ;;  %p197_p2 = scmp.lt.s32.totalorder %s5955_s20, 3 }
  0x16   : > { %s179_s14 = scalar_lea.sflag [#allocation3], %s178_s5  ;;  %p5849_p3 = pneg %p6056_p0 }
  0x17   : > { %s5860_s21 = scalar_lea.vmem %s193_s12, 4096  ;;  %s5957_s22 = smov [#allocation2]  }
  0x18   : > { %p5861_p5 = scmp.ne.s32.totalorder %s193_s12, %s5860_s21  ;;  %s5865_s24 = sshll.u32 %s5957_s22, 4  ;;  %s5866_s24 = int_to_ptr.vmem [resolvable:$false] %s5865_s24 }
  0x19   : > { %s5867_s26 = scalar_lea.vmem %s5866_s24, 8192  ;;  %p5868_p10 = scmp.lt.s32.totalorder %s193_s12, %s5866_s24 }
  0x1a   : > { %p5863_p6 = pnand %p5861_p5, %p5849_p3  ;;  %p5869_p12 = scmp.lt.s32.totalorder %s5867_s26, %s5860_s21 }
  0x1c   : > { %p5864_p7 = pneg %p5863_p6  ;;  %p5870_p4 = por %p5869_p12, %p5868_p10 }
  0x1e   : > { %p5871_p13 = pnand %p5870_p4, %p5864_p7 }
  0x20   : > { %5874 = shalt.err (!%p5871_p13)
}
  0x21   : > { %5053 = dma.hbm_to_vmem [thread:$0]  (!%p6056_p0), %s190_s10, 4096, %s193_s12, %s179_s14  }
  0x22   : > { %p198_p11 = pnand %p5036_p1, %p197_p2 }
  0x24   : > { %201 = sbr.rel (%p198_p11) target bundleno = 1161 (0x489), region = 36 }
  0x29   : > { %s6071_s25 = sand.u32 1, %s5939_s16  }
  0x2a   : > { %s5037_s5 = sshll.u32 %s6071_s25, 8  ;;  %s204_s6 = scalar_lea.sflag [#allocation3], %s6071_s25 }
  0x2b   : > { %s6077_s7 = scalar_lea.vmem [#allocation2], %s5037_s5 }
  0x2c   : > { %5926 = dma.done.wait (%p6032_p8), %s204_s6, 4096  }
  0x2d   : > { %5928 = vsyncadd (%p6032_p8), %s204_s6, 4294963200  ;;  %v5958_v0 = vmov 0   ;;  %v4334_v1 = vld [vmem:[%s11804_s1] sm:$0xff]  ;;  %vm11870_vm0 = vcmask 1041408   ;;  %v6098_v6 = vld [vmem:[%s6077_s7 + $0x8] sm:$0xff]  ;;  %s11696_s13 = scalar_lea.vmem [#allocation5], %s5037_s5 }
  0x2e   : > { %5109 = vset.pattern.permute.xlu0 %v5958_v0  ;;  %5110 = vset.pattern.permute.xlu1 %v5958_v0  ;;  %v4410_v2 = vld [vmem:[%s11806_s3] sm:$0xff]  ;;  %12087 = vst [vmem:[#allocation9_spill] sm:$0xff] %v6098_v6  ;;  %v6101_v7 = vld [vmem:[%s6077_s7 + $0x10] sm:$0xff]  ;;  %v6104_v9 = vld [vmem:[%s6077_s7 + $0x18] sm:$0xff]  ;;  %v274_v10 = vsel %vm11870_vm0, %v6098_v6, 0.0  ;;  %s5045_s14 = sshll.u32 %s5947_s18, 12 }
  0x2f   : > { %4337 = vperm.xlu0 %5109, %v4334_v1   ;;  %4413 = vperm.xlu1 %5110, %v4410_v2   ;;  %v4372_v3 = vld [vmem:[%s11805_s2] sm:$0xff]  ;;  %12088 = vst [vmem:[#allocation10_spill] sm:$0xff] %v6101_v7  ;;  %12089 = vst [vmem:[#allocation11_spill] sm:$0xff] %v6104_v9  ;;  %v281_v11 = vsel %vm11870_vm0, %v6101_v7, 0.0  ;;  %v6114_v13 = vld [vmem:[%s6077_s7 + $0x28] sm:$0xff]  ;;  %v288_v14 = vsel %vm11870_vm0, %v6104_v9, 0.0  ;;  %s11747_s24 = scalar_lea.hbm %s11807_s4, %s5045_s14 }
  0x30   : > { %v6093_v4 = vld [vmem:[%s6077_s7] sm:$0xff]  ;;  %12091 = vst [vmem:[#allocation13_spill] sm:$0xff] %v6114_v13  ;;  %v6119_v15 = vld [vmem:[%s6077_s7 + $0x30] sm:$0xff]  ;;  %v302_v17 = vsel %vm11870_vm0, %v6114_v13, 0.0  ;;  %v6126_v18 = vld [vmem:[%s6077_s7 + $0x38] sm:$0xff]  ;;  %v275_v20 = vrot.slane %v274_v10, 4 }
  0x31   : > { %12086 = vst [vmem:[#allocation8_spill] sm:$0xff] %v6093_v4  ;;  %v267_v5 = vsel %vm11870_vm0, %v6093_v4, 0.0  ;;  %v6111_v12 = vld [vmem:[%s6077_s7 + $0x20] sm:$0xff]  ;;  %12092 = vst [vmem:[#allocation14_spill] sm:$0xff] %v6119_v15  ;;  %v282_v21 = vrot.slane %v281_v11, 4  ;;  %v309_v22 = vsel %vm11870_vm0, %v6119_v15, 0.0 }
  0x32   : > { %v268_v8 = vrot.slane %v267_v5, 4  ;;  %12090 = vst [vmem:[#allocation12_spill] sm:$0xff] %v6111_v12  ;;  %v295_v16 = vsel %vm11870_vm0, %v6111_v12, 0.0  ;;  %12093 = vst [vmem:[#allocation15_spill] sm:$0xff] %v6126_v18  ;;  %v6131_v23 = vld [vmem:[%s6077_s7 + $0x40] sm:$0xff]  ;;  %v6134_v24 = vld [vmem:[%s6077_s7 + $0x48] sm:$0xff]  ;;  %v276_v41 = vadd.f32 %v275_v20, %v274_v10 }
  0x33   : > { %4375 = vperm.xlu0 %5109, %v4372_v3   ;;  %12094 = vst [vmem:[#allocation16_spill] sm:$0xff] %v6131_v23  ;;  %12095 = vst [vmem:[#allocation17_spill] sm:$0xff] %v6134_v24  ;;  %v6137_v25 = vld [vmem:[%s6077_s7 + $0x50] sm:$0xff]  ;;  %v289_v26 = vrot.slane %v288_v14, 4  ;;  %v316_v27 = vsel %vm11870_vm0, %v6126_v18, 0.0  ;;  %v6142_v28 = vld [vmem:[%s6077_s7 + $0x58] sm:$0xff]  ;;  %v283_v42 = vadd.f32 %v282_v21, %v281_v11 }
  0x34   : > { %v269_v19 = vadd.f32 %v268_v8, %v267_v5  ;;  %12096 = vst [vmem:[#allocation18_spill] sm:$0xff] %v6137_v25  ;;  %12097 = vst [vmem:[#allocation19_spill] sm:$0xff] %v6142_v28  ;;  %v6145_v29 = vld [vmem:[%s6077_s7 + $0x60] sm:$0xff]  ;;  %v296_v30 = vrot.slane %v295_v16, 4  ;;  %v303_v31 = vrot.slane %v302_v17, 4  ;;  %v323_v32 = vsel %vm11870_vm0, %v6131_v23, 0.0 }
  0x35   : > { %12098 = vst [vmem:[#allocation20_spill] sm:$0xff] %v6145_v29  ;;  %v330_v33 = vsel %vm11870_vm0, %v6134_v24, 0.0  ;;  %v310_v34 = vrot.slane %v309_v22, 4  ;;  %v337_v35 = vsel %vm11870_vm0, %v6137_v25, 0.0  ;;  %v344_v36 = vsel %vm11870_vm0, %v6142_v28, 0.0  ;;  %v6158_v38 = vld [vmem:[%s6077_s7 + $0x68] sm:$0xff] }
  0x36   : > { %v351_v37 = vsel %vm11870_vm0, %v6145_v29, 0.0  ;;  %12099 = vst [vmem:[#allocation21_spill] sm:$0xff] %v6158_v38  ;;  %v6161_v39 = vld [vmem:[%s6077_s7 + $0x70] sm:$0xff]  ;;  %v270_v40 = vrot.slane %v269_v19, 2  ;;  %v317_v43 = vrot.slane %v316_v27, 4  ;;  %v324_v44 = vrot.slane %v323_v32, 4 }
  0x37   : > { %12100 = vst [vmem:[#allocation22_spill] sm:$0xff] %v6161_v39  ;;  %v331_v45 = vrot.slane %v330_v33, 4  ;;  %v358_v46 = vsel %vm11870_vm0, %v6158_v38, 0.0  ;;  %v365_v47 = vsel %vm11870_vm0, %v6161_v39, 0.0  ;;  %v338_v48 = vrot.slane %v337_v35, 4  ;;  %v6168_v59 = vld [vmem:[%s6077_s7 + $0x78] sm:$0xff] }
  0x38   : > { %v345_v49 = vrot.slane %v344_v36, 4  ;;  %v352_v50 = vrot.slane %v351_v37, 4  ;;  %v290_v51 = vadd.f32 %v289_v26, %v288_v14  ;;  %v297_v52 = vadd.f32 %v296_v30, %v295_v16  ;;  %12101 = vst [vmem:[#allocation23_spill] sm:$0xff] %v6168_v59  ;;  %s4945_s21 = sshll.u32 %s11696_s13, 4  ;;  %s4929_s26 = scalar_lea.sflag [#allocation4], %s6071_s25  ;;  %s11749_s21 = int_to_ptr.vmem [resolvable:$true] %s4945_s21 }
  0x39   : > { %v304_v53 = vadd.f32 %v303_v31, %v302_v17  ;;  %v311_v54 = vadd.f32 %v310_v34, %v309_v22  ;;  %v277_v55 = vrot.slane %v276_v41, 2  ;;  %v284_v56 = vrot.slane %v283_v42, 2  ;;  %s5875_s5 = scalar_lea.vmem %s11749_s21, 4096  ;;  %s5959_s6 = smov [#allocation5]  }
  0x3a   : > { %v359_v57 = vrot.slane %v358_v46, 4  ;;  %v366_v58 = vrot.slane %v365_v47, 4  ;;  %v271_v60 = vadd.f32 %v270_v40, %v269_v19  ;;  %v318_v61 = vadd.f32 %v317_v43, %v316_v27  ;;  %p5876_p8 = scmp.ne.s32.totalorder %s11749_s21, %s5875_s5 }
  0x3b   : > { %v325_v62 = vadd.f32 %v324_v44, %v323_v32  ;;  %v332_v63 = vadd.f32 %v331_v45, %v330_v33  ;;  %v339_v0 = vadd.f32 %v338_v48, %v337_v35  ;;  %v346_v1 = vadd.f32 %v345_v49, %v344_v36 }
  0x3c   : > { %v353_v2 = vadd.f32 %v352_v50, %v351_v37  ;;  %v372_v3 = vsel %vm11870_vm0, %v6168_v59, 0.0  ;;  %v291_v5 = vrot.slane %v290_v51, 2  ;;  %v298_v8 = vrot.slane %v297_v52, 2  ;;  %p5877_p11 = pnand %p5876_p8, %p6036_p9 }
  0x3d   : > { %v305_v10 = vrot.slane %v304_v53, 2  ;;  %v312_v11 = vrot.slane %v311_v54, 2  ;;  %v278_v14 = vadd.f32 %v277_v55, %v276_v41  ;;  %v285_v16 = vadd.f32 %v284_v56, %v283_v42 }
  0x3e   : > { %v360_v17 = vadd.f32 %v359_v57, %v358_v46  ;;  %v367_v20 = vadd.f32 %v366_v58, %v365_v47  ;;  %v319_v21 = vrot.slane %v318_v61, 2  ;;  %v326_v22 = vrot.slane %v325_v62, 2  ;;  %p5878_p12 = pneg %p5877_p11 }
  0x3f   : > { %v333_v19 = vrot.slane %v332_v63, 2  ;;  %v373_v26 = vrot.slane %v372_v3, 4  ;;  %v272_v27 = vrot.slane %v271_v60, 1  ;;  %v340_v30 = vrot.slane %v339_v0, 2 }
  0x40   : > { %v347_v31 = vrot.slane %v346_v1, 2  ;;  %v354_v32 = vrot.slane %v353_v2, 2  ;;  %v292_v33 = vadd.f32 %v291_v5, %v290_v51  ;;  %v299_v34 = vadd.f32 %v298_v8, %v297_v52  ;;  %v6184_v8 = vld [vmem:[%s6077_s7 + $0x88] sm:$0xff] }
  0x41   : > { %v306_v35 = vadd.f32 %v305_v10, %v304_v53  ;;  %v313_v36 = vadd.f32 %v312_v11, %v311_v54  ;;  %v279_v37 = vrot.slane %v278_v14, 1  ;;  %v286_v40 = vrot.slane %v285_v16, 1  ;;  %12103 = vst [vmem:[#allocation25_spill] sm:$0xff] %v6184_v8  ;;  %v6187_v10 = vld [vmem:[%s6077_s7 + $0x90] sm:$0xff] }
  0x42   : > { %v361_v43 = vrot.slane %v360_v17, 2  ;;  %v368_v44 = vrot.slane %v367_v20, 2  ;;  %v320_v41 = vadd.f32 %v319_v21, %v318_v61  ;;  %v327_v42 = vadd.f32 %v326_v22, %v325_v62  ;;  %v6179_v61 = vld [vmem:[%s6077_s7 + $0x80] sm:$0xff]  ;;  %12104 = vst [vmem:[#allocation26_spill] sm:$0xff] %v6187_v10 }
  0x43   : > { %v334_v45 = vadd.f32 %v333_v19, %v332_v63  ;;  %v374_v46 = vadd.f32 %v373_v26, %v372_v3  ;;  %v6172_v47 = vadd.f32 %v272_v27, %v271_v60  ;;  %v341_v48 = vadd.f32 %v340_v30, %v339_v0  ;;  %12102 = vst [vmem:[#allocation24_spill] sm:$0xff] %v6179_v61 }
  0x44   : > { %v348_v49 = vadd.f32 %v347_v31, %v346_v1  ;;  %v355_v50 = vadd.f32 %v354_v32, %v353_v2  ;;  %v293_v55 = vrot.slane %v292_v33, 1  ;;  %v300_v56 = vrot.slane %v299_v34, 1  ;;  %v6206_v32 = vld [vmem:[%s6077_s7 + $0x98] sm:$0xff] }
  0x45   : > { %v307_v51 = vrot.slane %v306_v35, 1  ;;  %v314_v52 = vrot.slane %v313_v36, 1  ;;  %v6174_v53 = vadd.f32 %v279_v37, %v278_v14  ;;  %v6176_v54 = vadd.f32 %v286_v40, %v285_v16  ;;  %12105 = vst [vmem:[#allocation27_spill] sm:$0xff] %v6206_v32  ;;  %v6220_v40 = vld [vmem:[%s6077_s7 + $0xa8] sm:$0xff] }
  0x46   : > { %v362_v57 = vadd.f32 %v361_v43, %v360_v17  ;;  %v369_v58 = vadd.f32 %v368_v44, %v367_v20  ;;  %v321_v62 = vrot.slane %v320_v41, 1  ;;  %v328_v60 = vrot.slane %v327_v42, 1  ;;  %12107 = vst [vmem:[#allocation29_spill] sm:$0xff] %v6220_v40  ;;  %v6223_v43 = vld [vmem:[%s6077_s7 + $0xb0] sm:$0xff] }
  0x47   : > { %v335_v63 = vrot.slane %v334_v45, 1  ;;  %v375_v0 = vrot.slane %v374_v46, 2  ;;  %v342_v1 = vrot.slane %v341_v48, 1  ;;  %v349_v2 = vrot.slane %v348_v49, 1  ;;  %12108 = vst [vmem:[#allocation30_spill] sm:$0xff] %v6223_v43 }
  0x48   : > { %v356_v3 = vrot.slane %v355_v50, 1  ;;  %v379_v5 = vsel %vm11870_vm0, %v6179_v61, 0.0  ;;  %v6189_v11 = vadd.f32 %v293_v55, %v292_v33  ;;  %v6191_v14 = vadd.f32 %v300_v56, %v299_v34  ;;  %v6209_v33 = vld [vmem:[%s6077_s7 + $0xa0] sm:$0xff] }
  0x49   : > { %v6193_v16 = vadd.f32 %v307_v51, %v306_v35  ;;  %v6195_v17 = vadd.f32 %v314_v52, %v313_v36  ;;  %v363_v20 = vrot.slane %v362_v57, 1  ;;  %v370_v21 = vrot.slane %v369_v58, 1  ;;  %12106 = vst [vmem:[#allocation28_spill] sm:$0xff] %v6209_v33  ;;  %v6244_v51 = vld [vmem:[%s6077_s7 + $0xc8] sm:$0xff]  ;;  %v6247_v52 = vld [vmem:[%s6077_s7 + $0xd0] sm:$0xff] }
  0x4a   : > { %v386_v22 = vsel %vm11870_vm0, %v6184_v8, 0.0  ;;  %v393_v19 = vsel %vm11870_vm0, %v6187_v10, 0.0  ;;  %v6201_v26 = vadd.f32 %v321_v62, %v320_v41  ;;  %v6203_v27 = vadd.f32 %v328_v60, %v327_v42  ;;  %12111 = vst [vmem:[#allocation33_spill] sm:$0xff] %v6244_v51  ;;  %12112 = vst [vmem:[#allocation34_spill] sm:$0xff] %v6247_v52 }
  0x4b   : > { %v376_v30 = vadd.f32 %v375_v0, %v374_v46  ;;  %v380_v31 = vrot.slane %v379_v5, 4  ;;  %v6211_v34 = vadd.f32 %v335_v63, %v334_v45  ;;  %v6213_v35 = vadd.f32 %v342_v1, %v341_v48  ;;  %v6230_v46 = vld [vmem:[%s6077_s7 + $0xb8] sm:$0xff]  ;;  %v6233_v48 = vld [vmem:[%s6077_s7 + $0xc0] sm:$0xff] }
  0x4c   : > { %v6215_v36 = vadd.f32 %v349_v2, %v348_v49  ;;  %v6217_v37 = vadd.f32 %v356_v3, %v355_v50  ;;  %v387_v44 = vrot.slane %v386_v22, 4  ;;  %v394_v41 = vrot.slane %v393_v19, 4  ;;  %12109 = vst [vmem:[#allocation31_spill] sm:$0xff] %v6230_v46  ;;  %12110 = vst [vmem:[#allocation32_spill] sm:$0xff] %v6233_v48  ;;  %v6254_v63 = vld [vmem:[%s6077_s7 + $0xd8] sm:$0xff]  ;;  %v6257_v0 = vld [vmem:[%s6077_s7 + $0xe0] sm:$0xff] }
  0x4d   : > { %v400_v42 = vsel %vm11870_vm0, %v6206_v32, 0.0  ;;  %v407_v45 = vsel %vm11870_vm0, %v6209_v33, 0.0  ;;  %v6235_v49 = vadd.f32 %v363_v20, %v362_v57  ;;  %v6237_v50 = vadd.f32 %v370_v21, %v369_v58  ;;  %12113 = vst [vmem:[#allocation35_spill] sm:$0xff] %v6254_v63  ;;  %12114 = vst [vmem:[#allocation36_spill] sm:$0xff] %v6257_v0 }
  0x4e   : > { %v414_v55 = vsel %vm11870_vm0, %v6220_v40, 0.0  ;;  %v421_v56 = vsel %vm11870_vm0, %v6223_v43, 0.0  ;;  %v377_v62 = vrot.slane %v376_v30, 1  ;;  %v381_v60 = vadd.f32 %v380_v31, %v379_v5  ;;  %v6271_v43 = vld [vmem:[%s6077_s7 + $0xf0] sm:$0xff] }
  0x4f   : > { %v428_v57 = vsel %vm11870_vm0, %v6230_v46, 0.0  ;;  %v435_v58 = vsel %vm11870_vm0, %v6233_v48, 0.0  ;;  %v401_v1 = vrot.slane %v400_v42, 4  ;;  %v408_v2 = vrot.slane %v407_v45, 4  ;;  %v6268_v46 = vld [vmem:[%s6077_s7 + $0xe8] sm:$0xff]  ;;  %12116 = vst [vmem:[#allocation38_spill] sm:$0xff] %v6271_v43 }
  0x50   : > { %v442_v3 = vsel %vm11870_vm0, %v6244_v51, 0.0  ;;  %v449_v20 = vsel %vm11870_vm0, %v6247_v52, 0.0  ;;  %v415_v5 = vrot.slane %v414_v55, 4  ;;  %v422_v21 = vrot.slane %v421_v56, 4  ;;  %12115 = vst [vmem:[#allocation37_spill] sm:$0xff] %v6268_v46 }
  0x51   : > { %v456_v31 = vsel %vm11870_vm0, %v6254_v63, 0.0  ;;  %v463_v48 = vsel %vm11870_vm0, %v6257_v0, 0.0  ;;  %v388_v40 = vadd.f32 %v387_v44, %v386_v22  ;;  %v395_v33 = vadd.f32 %v394_v41, %v393_v19  ;;  %v6278_v63 = vld [vmem:[%s6077_s7 + $0xf8] sm:$0xff] }
  0x52   : > { %v429_v32 = vrot.slane %v428_v57, 4  ;;  %v436_v51 = vrot.slane %v435_v58, 4  ;;  %v443_v10 = vrot.slane %v442_v3, 4  ;;  %v450_v8 = vrot.slane %v449_v20, 4  ;;  %12117 = vst [vmem:[#allocation39_spill] sm:$0xff] %v6278_v63 }
  0x53   : > { %v470_v52 = vsel %vm11870_vm0, %v6268_v46, 0.0  ;;  %v477_v61 = vsel %vm11870_vm0, %v6271_v43, 0.0  ;;  %v6280_v59 = vadd.f32 %v377_v62, %v376_v30  ;;  %v402_v0 = vadd.f32 %v401_v1, %v400_v42 }
  0x54   : > { %v457_v39 = vrot.slane %v456_v31, 4  ;;  %v464_v38 = vrot.slane %v463_v48, 4  ;;  %v409_v29 = vadd.f32 %v408_v2, %v407_v45  ;;  %v416_v22 = vadd.f32 %v415_v5, %v414_v55 }
  0x55   : > { %v423_v19 = vadd.f32 %v422_v21, %v421_v56  ;;  %v484_v44 = vsel %vm11870_vm0, %v6278_v63, 0.0  ;;  %v430_v41 = vadd.f32 %v429_v32, %v428_v57  ;;  %v437_v28 = vadd.f32 %v436_v51, %v435_v58 }
  0x56   : > { %v471_v25 = vrot.slane %v470_v52, 4  ;;  %v478_v46 = vrot.slane %v477_v61, 4  ;;  %v382_v24 = vrot.slane %v381_v60, 2  ;;  %v389_v23 = vrot.slane %v388_v40, 2 }
  0x57   : > { %v444_v43 = vadd.f32 %v443_v10, %v442_v3  ;;  %v451_v18 = vadd.f32 %v450_v8, %v449_v20  ;;  %v396_v15 = vrot.slane %v395_v33, 2  ;;  %v458_v30 = vadd.f32 %v457_v39, %v456_v31 }
  0x58   : > { %v465_v62 = vadd.f32 %v464_v38, %v463_v48  ;;  %v485_v42 = vrot.slane %v484_v44, 4  ;;  %v403_v1 = vrot.slane %v402_v0, 2  ;;  %v410_v13 = vrot.slane %v409_v29, 2 }
  0x59   : > { %v417_v45 = vrot.slane %v416_v22, 2  ;;  %v424_v55 = vrot.slane %v423_v19, 2  ;;  %v431_v56 = vrot.slane %v430_v41, 2  ;;  %v438_v2 = vrot.slane %v437_v28, 2 }
  0x5a   : > { %v472_v5 = vadd.f32 %v471_v25, %v470_v52  ;;  %v479_v21 = vadd.f32 %v478_v46, %v477_v61  ;;  %v383_v32 = vadd.f32 %v382_v24, %v381_v60  ;;  %v390_v51 = vadd.f32 %v389_v23, %v388_v40 }
  0x5b   : > { %v445_v57 = vrot.slane %v444_v43, 2  ;;  %v452_v58 = vrot.slane %v451_v18, 2  ;;  %v397_v63 = vadd.f32 %v396_v15, %v395_v33  ;;  %v459_v12 = vrot.slane %v458_v30, 2 }
  0x5c   : > { %v466_v10 = vrot.slane %v465_v62, 2  ;;  %v486_v8 = vadd.f32 %v485_v42, %v484_v44  ;;  %v404_v3 = vadd.f32 %v403_v1, %v402_v0  ;;  %v411_v39 = vadd.f32 %v410_v13, %v409_v29 }
  0x5d   : > { %v418_v38 = vadd.f32 %v417_v45, %v416_v22  ;;  %v425_v48 = vadd.f32 %v424_v55, %v423_v19  ;;  %v432_v20 = vadd.f32 %v431_v56, %v430_v41  ;;  %v439_v31 = vadd.f32 %v438_v2, %v437_v28 }
  0x5e   : > { %v473_v9 = vrot.slane %v472_v5, 2  ;;  %v480_v7 = vrot.slane %v479_v21, 2  ;;  %v384_v6 = vrot.slane %v383_v32, 1  ;;  %v391_v4 = vrot.slane %v390_v51, 1 }
  0x5f   : > { %v446_v25 = vadd.f32 %v445_v57, %v444_v43  ;;  %v453_v61 = vadd.f32 %v452_v58, %v451_v18  ;;  %v398_v24 = vrot.slane %v397_v63, 1  ;;  %v460_v23 = vadd.f32 %v459_v12, %v458_v30 }
  0x60   : > { %v467_v40 = vadd.f32 %v466_v10, %v465_v62  ;;  %v487_v46 = vrot.slane %v486_v8, 2  ;;  %v405_v15 = vrot.slane %v404_v3, 1  ;;  %v412_v33 = vrot.slane %v411_v39, 1 }
  0x61   : > { %v419_v52 = vrot.slane %v418_v38, 1  ;;  %v426_v60 = vrot.slane %v425_v48, 1  ;;  %v433_v0 = vrot.slane %v432_v20, 1  ;;  %v440_v13 = vrot.slane %v439_v31, 1 }
  0x62   : > { %v474_v29 = vadd.f32 %v473_v9, %v472_v5  ;;  %v481_v22 = vadd.f32 %v480_v7, %v479_v21  ;;  %v385_v19 = vadd.f32 %v384_v6, %v383_v32  ;;  %v392_v28 = vadd.f32 %v391_v4, %v390_v51 }
  0x63   : > { %v447_v44 = vrot.slane %v446_v25, 1  ;;  %v454_v41 = vrot.slane %v453_v61, 1  ;;  %v399_v42 = vadd.f32 %v398_v24, %v397_v63  ;;  %v461_v1 = vrot.slane %v460_v23, 1 }
  0x64   : > { %v468_v43 = vrot.slane %v467_v40, 1  ;;  %v488_v18 = vadd.f32 %v487_v46, %v486_v8  ;;  %v406_v45 = vadd.f32 %v405_v15, %v404_v3  ;;  %v413_v12 = vadd.f32 %v412_v33, %v411_v39 }
  0x65   : > { %v420_v30 = vadd.f32 %v419_v52, %v418_v38  ;;  %v427_v62 = vadd.f32 %v426_v60, %v425_v48  ;;  %v434_v55 = vadd.f32 %v433_v0, %v432_v20  ;;  %v441_v56 = vadd.f32 %v440_v13, %v439_v31  ;;  %v12118_v52 = vld [vmem:[#allocation8_spill] sm:$0xff]  ;;  %v12120_v0 = vld [vmem:[#allocation10_spill] sm:$0xff] }
  0x66   : > { %v475_v2 = vrot.slane %v474_v29, 1  ;;  %v482_v57 = vrot.slane %v481_v22, 1  ;;  %v448_v58 = vadd.f32 %v447_v44, %v446_v25  ;;  %v455_v10 = vadd.f32 %v454_v41, %v453_v61  ;;  %v12126_v44 = vld [vmem:[#allocation13_spill] sm:$0xff] }
  0x67   : > { %v492_v7 = vmul.f32 0.5, %v6172_v47  ;;  %v493_v4 = vmul.f32 0.5, %v6174_v53  ;;  %v462_v6 = vadd.f32 %v461_v1, %v460_v23  ;;  %v469_v9 = vadd.f32 %v468_v43, %v467_v40  ;;  %v12130_v43 = vld [vmem:[#allocation15_spill] sm:$0xff] }
  0x68   : > { %v489_v63 = vrot.slane %v488_v18, 1  ;;  %v494_v5 = vmul.f32 0.5, %v6176_v54  ;;  %v495_v21 = vmul.f32 0.5, %v6189_v11  ;;  %v496_v32 = vmul.f32 0.5, %v6191_v14 }
  0x69   : > { %v497_v51 = vmul.f32 0.5, %v6193_v16  ;;  %v498_v8 = vmul.f32 0.5, %v6195_v17  ;;  %v476_v3 = vadd.f32 %v475_v2, %v474_v29  ;;  %v483_v39 = vadd.f32 %v482_v57, %v481_v22  ;;  %v12122_v29 = vld [vmem:[#allocation11_spill] sm:$0xff] }
  0x6a   : > { %v499_v38 = vmul.f32 0.5, %v6201_v26  ;;  %v500_v47 = vmul.f32 0.5, %v6203_v27  ;;  %v501_v53 = vmul.f32 0.5, %v6211_v34  ;;  %v502_v48 = vmul.f32 0.5, %v6213_v35  ;;  %v12138_v2 = vld [vmem:[#allocation19_spill] sm:$0xff] }
  0x6b   : > { %v503_v54 = vmul.f32 0.5, %v6215_v36  ;;  %v504_v11 = vmul.f32 0.5, %v6217_v37  ;;  %v490_v20 = vadd.f32 %v489_v63, %v488_v18  ;;  %v505_v14 = vmul.f32 0.5, %v6235_v49  ;;  %v12146_v63 = vld [vmem:[#allocation23_spill] sm:$0xff] }
  0x6c   : > { %v506_v16 = vmul.f32 0.5, %v6237_v50  ;;  %v507_v17 = vmul.f32 0.5, %v6280_v59  ;;  %v508_v31 = vmul.f32 0.5, %v385_v19  ;;  %v509_v25 = vmul.f32 0.5, %v392_v28  ;;  %v12119_v59 = vld [vmem:[#allocation9_spill] sm:$0xff]  ;;  %v12124_v19 = vld [vmem:[#allocation12_spill] sm:$0xff] }
  0x6d   : > { %v510_v26 = vmul.f32 0.5, %v399_v42  ;;  %v511_v61 = vmul.f32 0.5, %v406_v45  ;;  %v512_v27 = vmul.f32 0.5, %v413_v12  ;;  %v513_v24 = vmul.f32 0.5, %v420_v30  ;;  %v12128_v42 = vld [vmem:[#allocation14_spill] sm:$0xff]  ;;  %v12132_v45 = vld [vmem:[#allocation16_spill] sm:$0xff] }
  0x6e   : > { %v514_v34 = vmul.f32 0.5, %v427_v62  ;;  %v515_v23 = vmul.f32 0.5, %v434_v55  ;;  %v516_v35 = vmul.f32 0.5, %v441_v56  ;;  %v517_v40 = vmul.f32 0.5, %v448_v58  ;;  %v12134_v30 = vld [vmem:[#allocation17_spill] sm:$0xff]  ;;  %v12136_v55 = vld [vmem:[#allocation18_spill] sm:$0xff] }
  0x6f   : > { %v518_v36 = vmul.f32 0.5, %v455_v10  ;;  %v519_v46 = vmul.f32 0.5, %v462_v6  ;;  %v520_v37 = vmul.f32 0.5, %v469_v9  ;;  %v521_v15 = vmul.f32 0.5, %v476_v3  ;;  %v12140_v58 = vld [vmem:[#allocation20_spill] sm:$0xff]  ;;  %v12144_v6 = vld [vmem:[#allocation22_spill] sm:$0xff] }
  0x70   : > { %v522_v33 = vmul.f32 0.5, %v483_v39  ;;  %v523_v49 = vmul.f32 0.5, %v490_v20  ;;  %v6301_v50 = vsub.f32 %v12118_v52, %v492_v7  ;;  %v6304_v60 = vsub.f32 %v12119_v59, %v493_v4  ;;  %v12142_v7 = vld [vmem:[#allocation21_spill] sm:$0xff]  ;;  %v12152_v3 = vld [vmem:[#allocation26_spill] sm:$0xff] }
  0x71   : > { %v6307_v13 = vsub.f32 %v12120_v0, %v494_v5  ;;  %v6310_v22 = vsub.f32 %v12122_v29, %v495_v21  ;;  %v6313_v28 = vsub.f32 %v12124_v19, %v496_v32  ;;  %v6316_v41 = vsub.f32 %v12126_v44, %v497_v51  ;;  %v12148_v21 = vld [vmem:[#allocation24_spill] sm:$0xff]  ;;  %v12150_v51 = vld [vmem:[#allocation25_spill] sm:$0xff]  ;;  %v12160_v20 = vld [vmem:[#allocation30_spill] sm:$0xff] }
  0x72   : > { %v6319_v1 = vsub.f32 %v12128_v42, %v498_v8  ;;  %v6322_v18 = vsub.f32 %v12130_v43, %v499_v38  ;;  %v6325_v12 = vsub.f32 %v12132_v45, %v500_v47  ;;  %v6328_v62 = vsub.f32 %v12134_v30, %v501_v53  ;;  %v12154_v38 = vld [vmem:[#allocation27_spill] sm:$0xff]  ;;  %v12156_v53 = vld [vmem:[#allocation28_spill] sm:$0xff]  ;;  %v12174_v19 = vld [vmem:[#allocation37_spill] sm:$0xff] }
  0x73   : > { %12121 = vst [vmem:[#allocation8_spill] sm:$0xff] %v6307_v13  ;;  %12123 = vst [vmem:[#allocation9_spill] sm:$0xff] %v6310_v22  ;;  %v6331_v56 = vsub.f32 %v12136_v55, %v502_v48  ;;  %v6334_v57 = vsub.f32 %v12138_v2, %v503_v54  ;;  %v6337_v10 = vsub.f32 %v12140_v58, %v504_v11  ;;  %v12158_v54 = vld [vmem:[#allocation29_spill] sm:$0xff]  ;;  %v12176_v42 = vld [vmem:[#allocation38_spill] sm:$0xff] }
  0x74   : > { %12125 = vst [vmem:[#allocation10_spill] sm:$0xff] %v6313_v28  ;;  %12127 = vst [vmem:[#allocation11_spill] sm:$0xff] %v6316_v41  ;;  %v6340_v4 = vsub.f32 %v12142_v7, %v505_v14  ;;  %v6343_v9 = vsub.f32 %v12144_v6, %v506_v16  ;;  %v6346_v5 = vsub.f32 %v12146_v63, %v507_v17  ;;  %v12162_v16 = vld [vmem:[#allocation31_spill] sm:$0xff] }
  0x75   : > { %12129 = vst [vmem:[#allocation12_spill] sm:$0xff] %v6319_v1  ;;  %12131 = vst [vmem:[#allocation13_spill] sm:$0xff] %v6322_v18  ;;  %v6349_v32 = vsub.f32 %v12148_v21, %v508_v31  ;;  %v6352_v8 = vsub.f32 %v12150_v51, %v509_v25  ;;  %v6355_v39 = vsub.f32 %v12152_v3, %v510_v26  ;;  %v12164_v31 = vld [vmem:[#allocation32_spill] sm:$0xff]  ;;  %v12166_v26 = vld [vmem:[#allocation33_spill] sm:$0xff] }
  0x76   : > { %12133 = vst [vmem:[#allocation14_spill] sm:$0xff] %v6325_v12  ;;  %12135 = vst [vmem:[#allocation15_spill] sm:$0xff] %v6328_v62  ;;  %v6358_v47 = vsub.f32 %v12154_v38, %v511_v61  ;;  %v6361_v48 = vsub.f32 %v12156_v53, %v512_v27  ;;  %v6364_v11 = vsub.f32 %v12158_v54, %v513_v24  ;;  %v12168_v24 = vld [vmem:[#allocation34_spill] sm:$0xff] }
  0x77   : > { %12137 = vst [vmem:[#allocation16_spill] sm:$0xff] %v6331_v56  ;;  %12139 = vst [vmem:[#allocation17_spill] sm:$0xff] %v6334_v57  ;;  %v6367_v14 = vsub.f32 %v12160_v20, %v514_v34  ;;  %v6370_v17 = vsub.f32 %v12162_v16, %v515_v23  ;;  %v6373_v25 = vsub.f32 %v12164_v31, %v516_v35  ;;  %v12170_v34 = vld [vmem:[#allocation35_spill] sm:$0xff] }
  0x78   : > { %12141 = vst [vmem:[#allocation18_spill] sm:$0xff] %v6337_v10  ;;  %12143 = vst [vmem:[#allocation19_spill] sm:$0xff] %v6340_v4  ;;  %v6376_v52 = vsub.f32 %v12166_v26, %v517_v40  ;;  %v556_v61 = vmul.f32 %v6301_v50, %v6301_v50  ;;  %v557_v27 = vmul.f32 %v6304_v60, %v6304_v60  ;;  %v12172_v40 = vld [vmem:[#allocation36_spill] sm:$0xff] }
  0x79   : > { %12145 = vst [vmem:[#allocation20_spill] sm:$0xff] %v6343_v9  ;;  %12147 = vst [vmem:[#allocation21_spill] sm:$0xff] %v6346_v5  ;;  %v6383_v59 = vsub.f32 %v12168_v24, %v518_v36  ;;  %v6386_v0 = vsub.f32 %v12170_v34, %v519_v46  ;;  %v558_v23 = vmul.f32 %v6307_v13, %v6307_v13  ;;  %v12178_v36 = vld [vmem:[#allocation39_spill] sm:$0xff] }
  0x7a   : > { %12149 = vst [vmem:[#allocation22_spill] sm:$0xff] %v6349_v32  ;;  %12151 = vst [vmem:[#allocation23_spill] sm:$0xff] %v6352_v8  ;;  %v559_v35 = vmul.f32 %v6310_v22, %v6310_v22  ;;  %v6393_v29 = vsub.f32 %v12172_v40, %v520_v37  ;;  %v6396_v44 = vsub.f32 %v12174_v19, %v521_v15  ;;  %v595_v2 = vsel %vm11870_vm0, %v557_v27, 0.0 }
  0x7b   : > { %12153 = vst [vmem:[#allocation24_spill] sm:$0xff] %v6355_v39  ;;  %12155 = vst [vmem:[#allocation25_spill] sm:$0xff] %v6358_v47  ;;  %v6399_v43 = vsub.f32 %v12176_v42, %v522_v33  ;;  %v6402_v45 = vsub.f32 %v12178_v36, %v523_v49  ;;  %v560_v46 = vmul.f32 %v6313_v28, %v6313_v28  ;;  %v588_v49 = vsel %vm11870_vm0, %v556_v61, 0.0 }
  0x7c   : > { %12157 = vst [vmem:[#allocation26_spill] sm:$0xff] %v6361_v48  ;;  %12159 = vst [vmem:[#allocation27_spill] sm:$0xff] %v6364_v11  ;;  %v561_v30 = vmul.f32 %v6316_v41, %v6316_v41  ;;  %v562_v55 = vmul.f32 %v6319_v1, %v6319_v1  ;;  %v563_v37 = vmul.f32 %v6322_v18, %v6322_v18  ;;  %v602_v6 = vsel %vm11870_vm0, %v558_v23, 0.0 }
  0x7d   : > { %12161 = vst [vmem:[#allocation28_spill] sm:$0xff] %v6367_v14  ;;  %12163 = vst [vmem:[#allocation29_spill] sm:$0xff] %v6370_v17  ;;  %v564_v15 = vmul.f32 %v6325_v12, %v6325_v12  ;;  %v565_v33 = vmul.f32 %v6328_v62, %v6328_v62  ;;  %v566_v58 = vmul.f32 %v6331_v56, %v6331_v56  ;;  %v609_v63 = vsel %vm11870_vm0, %v559_v35, 0.0 }
  0x7e   : > { %12165 = vst [vmem:[#allocation30_spill] sm:$0xff] %v6373_v25  ;;  %12167 = vst [vmem:[#allocation31_spill] sm:$0xff] %v6376_v52  ;;  %v567_v7 = vmul.f32 %v6334_v57, %v6334_v57  ;;  %v568_v21 = vmul.f32 %v6337_v10, %v6337_v10  ;;  %v569_v51 = vmul.f32 %v6340_v4, %v6340_v4  ;;  %v589_v20 = vrot.slane %v588_v49, 4 }
  0x7f   : > { %12169 = vst [vmem:[#allocation32_spill] sm:$0xff] %v6383_v59  ;;  %12171 = vst [vmem:[#allocation33_spill] sm:$0xff] %v6386_v0  ;;  %v570_v3 = vmul.f32 %v6343_v9, %v6343_v9  ;;  %v571_v38 = vmul.f32 %v6346_v5, %v6346_v5  ;;  %v6434_v53 = vmul.f32 %v6349_v32, %v6349_v32  ;;  %v596_v16 = vrot.slane %v595_v2, 4 }
  0x80   : > { %12173 = vst [vmem:[#allocation34_spill] sm:$0xff] %v6393_v29  ;;  %12175 = vst [vmem:[#allocation35_spill] sm:$0xff] %v6396_v44  ;;  %v6438_v54 = vmul.f32 %v6352_v8, %v6352_v8  ;;  %v6442_v31 = vmul.f32 %v6355_v39, %v6355_v39  ;;  %v6446_v26 = vmul.f32 %v6358_v47, %v6358_v47  ;;  %v603_v61 = vrot.slane %v602_v6, 4 }
  0x81   : > { %12177 = vst [vmem:[#allocation36_spill] sm:$0xff] %v6399_v43  ;;  %12179 = vst [vmem:[#allocation37_spill] sm:$0xff] %v6402_v45  ;;  %v610_v27 = vrot.slane %v609_v63, 4  ;;  %v6450_v24 = vmul.f32 %v6361_v48, %v6361_v48  ;;  %v6454_v34 = vmul.f32 %v6364_v11, %v6364_v11  ;;  %v6458_v23 = vmul.f32 %v6367_v14, %v6367_v14 }
  0x82   : > { %v6462_v35 = vmul.f32 %v6370_v17, %v6370_v17  ;;  %v6466_v40 = vmul.f32 %v6373_v25, %v6373_v25  ;;  %v6470_v19 = vmul.f32 %v6376_v52, %v6376_v52  ;;  %v616_v42 = vsel %vm11870_vm0, %v560_v46, 0.0 }
  0x83   : > { %v623_v36 = vsel %vm11870_vm0, %v561_v30, 0.0  ;;  %v590_v11 = vadd.f32 %v589_v20, %v588_v49  ;;  %v597_v48 = vadd.f32 %v596_v16, %v595_v2  ;;  %v630_v14 = vsel %vm11870_vm0, %v562_v55, 0.0 }
  0x84   : > { %v637_v47 = vsel %vm11870_vm0, %v563_v37, 0.0  ;;  %v6478_v17 = vmul.f32 %v6383_v59, %v6383_v59  ;;  %v6482_v25 = vmul.f32 %v6386_v0, %v6386_v0  ;;  %v604_v52 = vadd.f32 %v603_v61, %v602_v6 }
  0x85   : > { %v611_v39 = vadd.f32 %v610_v27, %v609_v63  ;;  %v617_v8 = vrot.slane %v616_v42, 4  ;;  %v624_v46 = vrot.slane %v623_v36, 4  ;;  %v644_v30 = vsel %vm11870_vm0, %v564_v15, 0.0 }
  0x86   : > { %v651_v49 = vsel %vm11870_vm0, %v565_v33, 0.0  ;;  %v6488_v55 = vmul.f32 %v6393_v29, %v6393_v29  ;;  %v6492_v37 = vmul.f32 %v6396_v44, %v6396_v44  ;;  %v631_v2 = vrot.slane %v630_v14, 4 }
  0x87   : > { %v638_v20 = vrot.slane %v637_v47, 4  ;;  %v6496_v6 = vmul.f32 %v6399_v43, %v6399_v43  ;;  %v6500_v63 = vmul.f32 %v6402_v45, %v6402_v45  ;;  %v591_v15 = vrot.slane %v590_v11, 2 }
  0x88   : > { %v598_v33 = vrot.slane %v597_v48, 2  ;;  %v645_v16 = vrot.slane %v644_v30, 4  ;;  %v652_v61 = vrot.slane %v651_v49, 4  ;;  %v658_v27 = vsel %vm11870_vm0, %v566_v58, 0.0 }
  0x89   : > { %v665_v29 = vsel %vm11870_vm0, %v567_v7, 0.0  ;;  %v605_v44 = vrot.slane %v604_v52, 2  ;;  %v612_v0 = vrot.slane %v611_v39, 2  ;;  %v618_v59 = vadd.f32 %v617_v8, %v616_v42 }
  0x8a   : > { %v625_v32 = vadd.f32 %v624_v46, %v623_v36  ;;  %v632_v5 = vadd.f32 %v631_v2, %v630_v14  ;;  %v639_v9 = vadd.f32 %v638_v20, %v637_v47  ;;  %v672_v43 = vsel %vm11870_vm0, %v568_v21, 0.0 }
  0x8b   : > { %v679_v4 = vsel %vm11870_vm0, %v569_v51, 0.0  ;;  %v659_v45 = vrot.slane %v658_v27, 4  ;;  %v666_v10 = vrot.slane %v665_v29, 4  ;;  %v686_v57 = vsel %vm11870_vm0, %v570_v3, 0.0 }
  0x8c   : > { %v693_v56 = vsel %vm11870_vm0, %v571_v38, 0.0  ;;  %v592_v62 = vadd.f32 %v591_v15, %v590_v11  ;;  %v599_v58 = vadd.f32 %v598_v33, %v597_v48  ;;  %v646_v12 = vadd.f32 %v645_v16, %v644_v30 }
  0x8d   : > { %v653_v7 = vadd.f32 %v652_v61, %v651_v49  ;;  %v606_v18 = vadd.f32 %v605_v44, %v604_v52  ;;  %v613_v1 = vadd.f32 %v612_v0, %v611_v39  ;;  %v673_v8 = vrot.slane %v672_v43, 4 }
  0x8e   : > { %v680_v42 = vrot.slane %v679_v4, 4  ;;  %v619_v14 = vrot.slane %v618_v59, 2  ;;  %v626_v47 = vrot.slane %v625_v32, 2  ;;  %v687_v36 = vrot.slane %v686_v57, 4 }
  0x8f   : > { %v694_v21 = vrot.slane %v693_v56, 4  ;;  %v633_v46 = vrot.slane %v632_v5, 2  ;;  %v640_v51 = vrot.slane %v639_v9, 2  ;;  %v660_v2 = vadd.f32 %v659_v45, %v658_v27 }
  0x90   : > { %v667_v20 = vadd.f32 %v666_v10, %v665_v29  ;;  %v593_v41 = vrot.slane %v592_v62, 1  ;;  %v600_v3 = vrot.slane %v599_v58, 1  ;;  %v647_v28 = vrot.slane %v646_v12, 2 }
  0x91   : > { %v654_v38 = vrot.slane %v653_v7, 2  ;;  %v607_v11 = vrot.slane %v606_v18, 1  ;;  %v614_v48 = vrot.slane %v613_v1, 1  ;;  %v674_v30 = vadd.f32 %v673_v8, %v672_v43 }
  0x92   : > { %v681_v49 = vadd.f32 %v680_v42, %v679_v4  ;;  %v620_v52 = vadd.f32 %v619_v14, %v618_v59  ;;  %v627_v39 = vadd.f32 %v626_v47, %v625_v32  ;;  %v688_v0 = vadd.f32 %v687_v36, %v686_v57 }
  0x93   : > { %v695_v44 = vadd.f32 %v694_v21, %v693_v56  ;;  %v634_v15 = vadd.f32 %v633_v46, %v632_v5  ;;  %v641_v33 = vadd.f32 %v640_v51, %v639_v9  ;;  %v661_v16 = vrot.slane %v660_v2, 2 }
  0x94   : > { %v668_v61 = vrot.slane %v667_v20, 2  ;;  %v6508_v22 = vadd.f32 %v593_v41, %v592_v62  ;;  %v6510_v45 = vadd.f32 %v600_v3, %v599_v58  ;;  %v648_v10 = vadd.f32 %v647_v28, %v646_v12 }
  0x95   : > { %v655_v29 = vadd.f32 %v654_v38, %v653_v7  ;;  %v6512_v27 = vadd.f32 %v607_v11, %v606_v18  ;;  %v6514_v13 = vadd.f32 %v614_v48, %v613_v1  ;;  %v675_v43 = vrot.slane %v674_v30, 2 }
  0x96   : > { %v682_v4 = vrot.slane %v681_v49, 2  ;;  %v621_v59 = vrot.slane %v620_v52, 1  ;;  %v628_v32 = vrot.slane %v627_v39, 1  ;;  %v689_v57 = vrot.slane %v688_v0, 2 }
  0x97   : > { %v696_v56 = vrot.slane %v695_v44, 2  ;;  %v635_v5 = vrot.slane %v634_v15, 1  ;;  %v642_v9 = vrot.slane %v641_v33, 1  ;;  %v662_v8 = vadd.f32 %v661_v16, %v660_v2 }
  0x98   : > { %v669_v42 = vadd.f32 %v668_v61, %v667_v20  ;;  %v649_v41 = vrot.slane %v648_v10, 1  ;;  %v656_v62 = vrot.slane %v655_v29, 1  ;;  %v700_v28 = vsel %vm11870_vm0, %v6434_v53, 0.0 }
  0x99   : > { %v707_v18 = vsel %vm11870_vm0, %v6438_v54, 0.0  ;;  %v676_v1 = vadd.f32 %v675_v43, %v674_v30  ;;  %v683_v12 = vadd.f32 %v682_v4, %v681_v49  ;;  %v714_v58 = vsel %vm11870_vm0, %v6442_v31, 0.0 }
  0x9a   : > { %v721_v7 = vsel %vm11870_vm0, %v6446_v26, 0.0  ;;  %v6524_v14 = vadd.f32 %v621_v59, %v620_v52  ;;  %v6526_v47 = vadd.f32 %v628_v32, %v627_v39  ;;  %v690_v36 = vadd.f32 %v689_v57, %v688_v0 }
  0x9b   : > { %v697_v21 = vadd.f32 %v696_v56, %v695_v44  ;;  %v6528_v46 = vadd.f32 %v635_v5, %v634_v15  ;;  %v663_v53 = vrot.slane %v662_v8, 1  ;;  %v701_v51 = vrot.slane %v700_v28, 4 }
  0x9c   : > { %v708_v2 = vrot.slane %v707_v18, 4  ;;  %v6530_v54 = vadd.f32 %v642_v9, %v641_v33  ;;  %v670_v20 = vrot.slane %v669_v42, 1  ;;  %v715_v3 = vrot.slane %v714_v58, 4 }
  0x9d   : > { %v722_v38 = vrot.slane %v721_v7, 4  ;;  %v6532_v31 = vadd.f32 %v649_v41, %v648_v10  ;;  %v6534_v11 = vadd.f32 %v656_v62, %v655_v29  ;;  %v677_v26 = vrot.slane %v676_v1, 1 }
  0x9e   : > { %v684_v48 = vrot.slane %v683_v12, 1  ;;  %v691_v30 = vrot.slane %v690_v36, 1  ;;  %v698_v49 = vrot.slane %v697_v21, 1  ;;  %v728_v52 = vsel %vm11870_vm0, %v6450_v24, 0.0 }
  0x9f   : > { %v735_v39 = vsel %vm11870_vm0, %v6454_v34, 0.0  ;;  %v6540_v0 = vadd.f32 %v663_v53, %v662_v8  ;;  %v702_v44 = vadd.f32 %v701_v51, %v700_v28  ;;  %v709_v15 = vadd.f32 %v708_v2, %v707_v18 }
  0xa0   : > { %v742_v33 = vsel %vm11870_vm0, %v6458_v23, 0.0  ;;  %v6544_v16 = vadd.f32 %v670_v20, %v669_v42  ;;  %v716_v61 = vadd.f32 %v715_v3, %v714_v58  ;;  %v723_v10 = vadd.f32 %v722_v38, %v721_v7 }
  0xa1   : > { %v749_v29 = vsel %vm11870_vm0, %v6462_v35, 0.0  ;;  %v6548_v43 = vadd.f32 %v677_v26, %v676_v1  ;;  %v6550_v24 = vadd.f32 %v684_v48, %v683_v12  ;;  %v729_v4 = vrot.slane %v728_v52, 4 }
  0xa2   : > { %v736_v34 = vrot.slane %v735_v39, 4  ;;  %v6552_v59 = vadd.f32 %v691_v30, %v690_v36  ;;  %v6554_v32 = vadd.f32 %v698_v49, %v697_v21  ;;  %v743_v57 = vrot.slane %v742_v33, 4 }
  0xa3   : > { %v756_v23 = vsel %vm11870_vm0, %v6466_v40, 0.0  ;;  %v703_v56 = vrot.slane %v702_v44, 2  ;;  %v710_v5 = vrot.slane %v709_v15, 2  ;;  %v750_v9 = vrot.slane %v749_v29, 4 }
  0xa4   : > { %v763_v35 = vsel %vm11870_vm0, %v6470_v19, 0.0  ;;  %v717_v8 = vrot.slane %v716_v61, 2  ;;  %v724_v42 = vrot.slane %v723_v10, 2  ;;  %v770_v41 = vsel %vm11870_vm0, %v6478_v17, 0.0 }
  0xa5   : > { %v777_v62 = vsel %vm11870_vm0, %v6482_v25, 0.0  ;;  %v730_v28 = vadd.f32 %v729_v4, %v728_v52  ;;  %v737_v18 = vadd.f32 %v736_v34, %v735_v39  ;;  %v757_v1 = vrot.slane %v756_v23, 4 }
  0xa6   : > { %v784_v40 = vsel %vm11870_vm0, %v6488_v55, 0.0  ;;  %v764_v12 = vrot.slane %v763_v35, 4  ;;  %v791_v58 = vsel %vm11870_vm0, %v6492_v37, 0.0  ;;  %v798_v19 = vsel %vm11870_vm0, %v6496_v6, 0.0 }
  0xa7   : > { %v805_v7 = vsel %vm11870_vm0, %v6500_v63, 0.0  ;;  %v744_v17 = vadd.f32 %v743_v57, %v742_v33  ;;  %v751_v36 = vadd.f32 %v750_v9, %v749_v29  ;;  %v771_v21 = vrot.slane %v770_v41, 4 }
  0xa8   : > { %v778_v25 = vrot.slane %v777_v62, 4  ;;  %v704_v53 = vadd.f32 %v703_v56, %v702_v44  ;;  %v711_v51 = vadd.f32 %v710_v5, %v709_v15  ;;  %v718_v2 = vadd.f32 %v717_v8, %v716_v61 }
  0xa9   : > { %v785_v20 = vrot.slane %v784_v40, 4  ;;  %v725_v3 = vadd.f32 %v724_v42, %v723_v10  ;;  %v792_v55 = vrot.slane %v791_v58, 4  ;;  %v799_v38 = vrot.slane %v798_v19, 4 }
  0xaa   : > { %v806_v26 = vrot.slane %v805_v7, 4  ;;  %v731_v48 = vrot.slane %v730_v28, 2  ;;  %v738_v37 = vrot.slane %v737_v18, 2  ;;  %v758_v30 = vadd.f32 %v757_v1, %v756_v23 }
  0xab   : > { %v765_v49 = vadd.f32 %v764_v12, %v763_v35  ;;  %v745_v6 = vrot.slane %v744_v17, 2  ;;  %v752_v52 = vrot.slane %v751_v36, 2  ;;  %v772_v39 = vadd.f32 %v771_v21, %v770_v41 }
  0xac   : > { %v779_v63 = vadd.f32 %v778_v25, %v777_v62  ;;  %v705_v33 = vrot.slane %v704_v53, 1  ;;  %v712_v29 = vrot.slane %v711_v51, 1  ;;  %v719_v4 = vrot.slane %v718_v2, 1 }
  0xad   : > { %v786_v34 = vadd.f32 %v785_v20, %v784_v40  ;;  %v726_v44 = vrot.slane %v725_v3, 1  ;;  %v793_v15 = vadd.f32 %v792_v55, %v791_v58  ;;  %v800_v61 = vadd.f32 %v799_v38, %v798_v19 }
  0xae   : > { %v807_v57 = vadd.f32 %v806_v26, %v805_v7  ;;  %v732_v10 = vadd.f32 %v731_v48, %v730_v28  ;;  %v739_v56 = vadd.f32 %v738_v37, %v737_v18  ;;  %v759_v5 = vrot.slane %v758_v30, 2 }
  0xaf   : > { %v766_v9 = vrot.slane %v765_v49, 2  ;;  %v746_v8 = vadd.f32 %v745_v6, %v744_v17  ;;  %v753_v42 = vadd.f32 %v752_v52, %v751_v36  ;;  %v773_v23 = vrot.slane %v772_v39, 2 }
  0xb0   : > { %v780_v35 = vrot.slane %v779_v63, 2  ;;  %v6572_v1 = vadd.f32 %v705_v33, %v704_v53  ;;  %v6574_v41 = vadd.f32 %v712_v29, %v711_v51  ;;  %v787_v62 = vrot.slane %v786_v34, 2 }
  0xb1   : > { %5111 = vrsqrt.f32 %v6508_v22  ;;  %v6577_v40 = vadd.f32 %v719_v4, %v718_v2  ;;  %v794_v12 = vrot.slane %v793_v15, 2  ;;  %v801_v58 = vrot.slane %v800_v61, 2 }
  0xb2   : > { %v808_v19 = vrot.slane %v807_v57, 2  ;;  %v6579_v28 = vadd.f32 %v726_v44, %v725_v3  ;;  %v760_v18 = vadd.f32 %v759_v5, %v758_v30  ;;  %v767_v7 = vadd.f32 %v766_v9, %v765_v49 }
  0xb3   : > { %5113 = vrsqrt.f32 %v6510_v45  ;;  %v733_v17 = vrot.slane %v732_v10, 1  ;;  %v774_v36 = vadd.f32 %v773_v23, %v772_v39  ;;  %v781_v21 = vadd.f32 %v780_v35, %v779_v63 }
  0xb4   : > { %5115 = vrsqrt.f32 %v6512_v27  ;;  %v740_v25 = vrot.slane %v739_v56, 1  ;;  %v747_v53 = vrot.slane %v746_v8, 1  ;;  %v788_v51 = vadd.f32 %v787_v62, %v786_v34 }
  0xb5   : > { %5117 = vrsqrt.f32 %v6514_v13  ;;  %v795_v2 = vadd.f32 %v794_v12, %v793_v15  ;;  %v802_v20 = vadd.f32 %v801_v58, %v800_v61  ;;  %v809_v55 = vadd.f32 %v808_v19, %v807_v57 }
  0xb6   : > { %5119 = vrsqrt.f32 %v6524_v14  ;;  %v754_v3 = vrot.slane %v753_v42, 1  ;;  %v761_v38 = vrot.slane %v760_v18, 1  ;;  %v768_v26 = vrot.slane %v767_v7, 1 }
  0xb7   : > { %5121 = vrsqrt.f32 %v6526_v47  ;;  %v6586_v48 = vadd.f32 %v733_v17, %v732_v10  ;;  %v775_v37 = vrot.slane %v774_v36, 1  ;;  %v782_v30 = vrot.slane %v781_v21, 1 }
  0xb8   : > { %5123 = vrsqrt.f32 %v6528_v46  ;;  %v6589_v49 = vadd.f32 %v740_v25, %v739_v56  ;;  %v6591_v6 = vadd.f32 %v747_v53, %v746_v8  ;;  %v789_v52 = vrot.slane %v788_v51, 1 }
  0xb9   : > { %5125 = vrsqrt.f32 %v6530_v54  ;;  %v796_v39 = vrot.slane %v795_v2, 1  ;;  %v803_v63 = vrot.slane %v802_v20, 1  ;;  %v810_v33 = vrot.slane %v809_v55, 1 }
  0xba   : > { %5127 = vrsqrt.f32 %v6532_v31  ;;  %v6595_v29 = vadd.f32 %v754_v3, %v753_v42  ;;  %v6597_v4 = vadd.f32 %v761_v38, %v760_v18  ;;  %v6599_v34 = vadd.f32 %v768_v26, %v767_v7 }
  0xbb   : > { %5129 = vrsqrt.f32 %v6534_v11  ;;  %v6602_v44 = vadd.f32 %v775_v37, %v774_v36  ;;  %v6604_v15 = vadd.f32 %v782_v30, %v781_v21  ;;  %vm814_vm1 = vcmp.eq.f32.partialorder %v6508_v22, inf }
  0xbc   : > { %5131 = vrsqrt.f32 %v6540_v0  ;;  %v6608_v61 = vadd.f32 %v789_v52, %v788_v51  ;;  %vm816_vm2 = vcmp.eq.f32.partialorder %v6508_v22, 0.0  ;;  %v817_v57 = vand.u32 2147483648, %v6508_v22 }
  0xbd   : > { %5133 = vrsqrt.f32 %v6544_v16  ;;  %v6613_v56 = vadd.f32 %v796_v39, %v795_v2  ;;  %v6615_v5 = vadd.f32 %v803_v63, %v802_v20  ;;  %v6617_v9 = vadd.f32 %v810_v33, %v809_v55 }
  0xbe   : > { %v5112_v10 = vpop.eup %5111  ;;  %5135 = vrsqrt.f32 %v6548_v43  ;;  %vm821_vm3 = vcmp.eq.f32.partialorder %v6510_v45, inf  ;;  %vm823_vm4 = vcmp.eq.f32.partialorder %v6510_v45, 0.0  ;;  %v824_v8 = vand.u32 2147483648, %v6510_v45 }
  0xbf   : > { %5137 = vrsqrt.f32 %v6550_v24  ;;  %vm828_vm5 = vcmp.eq.f32.partialorder %v6512_v27, inf  ;;  %v831_v23 = vand.u32 2147483648, %v6512_v27  ;;  %vm835_vm6 = vcmp.eq.f32.partialorder %v6514_v13, inf }
  0xc0   : > { %v5114_v42 = vpop.eup %5113  ;;  %5139 = vrsqrt.f32 %v6552_v59  ;;  %v813_v62 = vmul.f32 %v5112_v10, %v6508_v22  ;;  %vm830_vm7 = vcmp.eq.f32.partialorder %v6512_v27, 0.0  ;;  %vm837_vm8 = vcmp.eq.f32.partialorder %v6514_v13, 0.0 }
  0xc1   : > { %v5116_v35 = vpop.eup %5115  ;;  %v838_v12 = vand.u32 2147483648, %v6514_v13  ;;  %vm842_vm9 = vcmp.eq.f32.partialorder %v6524_v14, inf  ;;  %5141 = vrsqrt.f32 %v6554_v32  ;;  %v845_v19 = vand.u32 2147483648, %v6524_v14 }
  0xc2   : > { %v5118_v58 = vpop.eup %5117  ;;  %vm849_vm10 = vcmp.eq.f32.partialorder %v6526_v47, inf  ;;  %v852_v18 = vand.u32 2147483648, %v6526_v47  ;;  %vm856_vm11 = vcmp.eq.f32.partialorder %v6528_v46, inf  ;;  %v820_v17 = vmul.f32 %v5114_v42, %v6510_v45 }
  0xc3   : > { %v5120_v7 = vpop.eup %5119  ;;  %v859_v36 = vand.u32 2147483648, %v6528_v46  ;;  %5143 = vrsqrt.f32 %v6572_v1  ;;  %v827_v25 = vmul.f32 %v5116_v35, %v6512_v27  ;;  %v866_v53 = vand.u32 2147483648, %v6530_v54 }
  0xc4   : > { %v5122_v21 = vpop.eup %5121  ;;  %v873_v51 = vand.u32 2147483648, %v6532_v31  ;;  %v815_v20 = vsel %vm814_vm1, %v6508_v22, %v813_v62  ;;  %v834_v55 = vmul.f32 %v5118_v58, %v6514_v13  ;;  %vm858_vm0 = vcmp.eq.f32.partialorder %v6528_v46, 0.0 }
  0xc5   : > { %v5124_v2 = vpop.eup %5123  ;;  %vm865_vm13 = vcmp.eq.f32.partialorder %v6530_v54, 0.0  ;;  %vm877_vm12 = vcmp.eq.f32.partialorder %v6534_v11, inf  ;;  %v880_v3 = vand.u32 2147483648, %v6534_v11  ;;  %v887_v26 = vand.u32 2147483648, %v6540_v0 }
  0xc6   : > { %v5126_v38 = vpop.eup %5125  ;;  %v894_v37 = vand.u32 2147483648, %v6544_v16  ;;  %5145 = vrsqrt.f32 %v6574_v41  ;;  %v822_v52 = vsel %vm821_vm3, %v6510_v45, %v820_v17  ;;  %v841_v39 = vmul.f32 %v5120_v7, %v6524_v14 }
  0xc7   : > { %v5128_v30 = vpop.eup %5127  ;;  %v848_v63 = vmul.f32 %v5122_v21, %v6526_v47  ;;  %vm872_vm1 = vcmp.eq.f32.partialorder %v6532_v31, 0.0  ;;  %vm879_vm15 = vcmp.eq.f32.partialorder %v6534_v11, 0.0  ;;  %v901_v33 = vand.u32 2147483648, %v6548_v43 }
  0xc8   : > { %v5130_v10 = vpop.eup %5129  ;;  %v6671_v42 = vsel %vm816_vm2, %v817_v57, %v815_v20  ;;  %v829_v35 = vsel %vm828_vm5, %v6512_v27, %v827_v25  ;;  %vm898_vm3 = vcmp.eq.f32.partialorder %v6548_v43, inf  ;;  %v908_v62 = vand.u32 2147483648, %v6550_v24 }
  0xc9   : > { %v5132_v7 = vpop.eup %5131  ;;  %v836_v17 = vsel %vm835_vm6, %v6514_v13, %v834_v55  ;;  %v855_v22 = vmul.f32 %v5124_v2, %v6528_v46  ;;  %v862_v57 = vmul.f32 %v5126_v38, %v6530_v54  ;;  %vm886_vm2 = vcmp.eq.f32.partialorder %v6540_v0, 0.0 }
  0xca   : > { %5147 = vrsqrt.f32 %v6577_v40  ;;  %v5134_v21 = vpop.eup %5133  ;;  %v6692_v25 = vsel %vm823_vm4, %v824_v8, %v822_v52  ;;  %v869_v20 = vmul.f32 %v5128_v30, %v6532_v31  ;;  %vm912_vm6 = vcmp.eq.f32.partialorder %v6552_v59, inf }
  0xcb   : > { %vm919_vm14 = vcmp.eq.f32.partialorder %v6554_v32, inf  ;;  %v922_v2 = vand.u32 2147483648, %v6554_v32  ;;  %v5136_v55 = vpop.eup %5135  ;;  %v843_v38 = vsel %vm842_vm9, %v6524_v14, %v841_v39  ;;  %v850_v58 = vsel %vm849_vm10, %v6526_v47, %v848_v63 }
  0xcc   : > { %v876_v45 = vmul.f32 %v5130_v10, %v6534_v11  ;;  %vm900_vm4 = vcmp.eq.f32.partialorder %v6548_v43, 0.0  ;;  %vm907_vm5 = vcmp.eq.f32.partialorder %v6550_v24, 0.0  ;;  %5149 = vrsqrt.f32 %v6579_v28  ;;  %v5138_v8 = vpop.eup %5137 }
  0xcd   : > { %v6712_v30 = vsel %vm830_vm7, %v831_v23, %v829_v35  ;;  %v6718_v52 = vsel %vm837_vm8, %v838_v12, %v836_v17  ;;  %v929_v39 = vand.u32 2147483648, %v6572_v1  ;;  %v5140_v63 = vpop.eup %5139  ;;  %v857_v10 = vsel %vm856_vm11, %v6528_v46, %v855_v22 }
  0xce   : > { %vm12180_vm10 = vcmp.eq.f32.partialorder %v6530_v54, inf  ;;  %v883_v23 = vmul.f32 %v5132_v7, %v6540_v0  ;;  %v890_v35 = vmul.f32 %v5134_v21, %v6544_v16  ;;  %vm914_vm7 = vcmp.eq.f32.partialorder %v6552_v59, 0.0  ;;  %v5142_v13 = vpop.eup %5141 }
  0xcf   : > { %v864_v27 = vsel %vm12180_vm10, %v6530_v54, %v862_v57  ;;  %vm921_vm8 = vcmp.eq.f32.partialorder %v6554_v32, 0.0  ;;  %vm12181_vm9 = vcmp.eq.f32.partialorder %v6524_v14, 0.0  ;;  %vm12182_vm11 = vcmp.eq.f32.partialorder %v6526_v47, 0.0 }
  0xd0   : > { %v6736_v12 = vsel %vm12181_vm9, %v845_v19, %v843_v38  ;;  %v6742_v17 = vsel %vm12182_vm11, %v852_v18, %v850_v58  ;;  %vm12183_vm10 = vcmp.eq.f32.partialorder %v6532_v31, inf  ;;  %5151 = vrsqrt.f32 %v6586_v48  ;;  %v5144_v47 = vpop.eup %5143 }
  0xd1   : > { %v871_v7 = vsel %vm12183_vm10, %v6532_v31, %v869_v20  ;;  %v878_v22 = vsel %vm877_vm12, %v6534_v11, %v876_v45  ;;  %v897_v14 = vmul.f32 %v5136_v55, %v6548_v43  ;;  %v904_v19 = vmul.f32 %v5138_v8, %v6550_v24 }
  0xd2   : > { %vm928_vm9 = vcmp.eq.f32.partialorder %v6572_v1, 0.0  ;;  %5153 = vrsqrt.f32 %v6589_v49  ;;  %v6759_v18 = vsel %vm858_vm0, %v859_v36, %v857_v10  ;;  %v6765_v58 = vsel %vm865_vm13, %v866_v53, %v864_v27 }
  0xd3   : > { %vm933_vm12 = vcmp.eq.f32.partialorder %v6574_v41, inf  ;;  %5155 = vrsqrt.f32 %v6591_v6  ;;  %vm12184_vm11 = vcmp.eq.f32.partialorder %v6540_v0, inf  ;;  %vm12185_vm10 = vcmp.eq.f32.partialorder %v6544_v16, inf  ;;  %v5146_v55 = vpop.eup %5145 }
  0xd4   : > { %v885_v57 = vsel %vm12184_vm11, %v6540_v0, %v883_v23  ;;  %v892_v46 = vsel %vm12185_vm10, %v6544_v16, %v890_v35  ;;  %v911_v36 = vmul.f32 %v5140_v63, %v6552_v59  ;;  %v918_v21 = vmul.f32 %v5142_v13, %v6554_v32 }
  0xd5   : > { %v6781_v54 = vsel %vm872_vm1, %v873_v51, %v871_v7  ;;  %v6787_v53 = vsel %vm879_vm15, %v880_v3, %v878_v22  ;;  %vm935_vm0 = vcmp.eq.f32.partialorder %v6574_v41, 0.0  ;;  %v936_v20 = vand.u32 2147483648, %v6574_v41 }
  0xd6   : > { %5157 = vrsqrt.f32 %v6595_v29  ;;  %v899_v38 = vsel %vm898_vm3, %v6548_v43, %v897_v14  ;;  %vm12186_vm13 = vcmp.eq.f32.partialorder %v6550_v24, inf  ;;  %v925_v51 = vmul.f32 %v5144_v47, %v6572_v1 }
  0xd7   : > { %v906_v31 = vsel %vm12186_vm13, %v6550_v24, %v904_v19  ;;  %5159 = vrsqrt.f32 %v6597_v4  ;;  %v6804_v11 = vsel %vm886_vm2, %v887_v26, %v885_v57  ;;  %vm12187_vm15 = vcmp.eq.f32.partialorder %v6544_v16, 0.0  ;;  %v5148_v16 = vpop.eup %5147 }
  0xd8   : > { %v6810_v3 = vsel %vm12187_vm15, %v894_v37, %v892_v46  ;;  %vm940_vm1 = vcmp.eq.f32.partialorder %v6577_v40, inf  ;;  %5161 = vrsqrt.f32 %v6599_v34  ;;  %v913_v45 = vsel %vm912_vm6, %v6552_v59, %v911_v36 }
  0xd9   : > { %v920_v0 = vsel %vm919_vm14, %v6554_v32, %v918_v21  ;;  %vm942_vm3 = vcmp.eq.f32.partialorder %v6577_v40, 0.0  ;;  %v943_v26 = vand.u32 2147483648, %v6577_v40  ;;  %5163 = vrsqrt.f32 %v6602_v44  ;;  %v5150_v43 = vpop.eup %5149 }
  0xda   : > { %v6827_v37 = vsel %vm900_vm4, %v901_v33, %v899_v38  ;;  %v6833_v8 = vsel %vm907_vm5, %v908_v62, %v906_v31  ;;  %v932_v63 = vmul.f32 %v5146_v55, %v6574_v41  ;;  %5165 = vrsqrt.f32 %v6604_v15 }
  0xdb   : > { %vm12188_vm14 = vcmp.eq.f32.partialorder %v6572_v1, inf  ;;  %vm947_vm2 = vcmp.eq.f32.partialorder %v6579_v28, inf  ;;  %vm949_vm6 = vcmp.eq.f32.partialorder %v6579_v28, 0.0  ;;  %5167 = vrsqrt.f32 %v6608_v61 }
  0xdc   : > { %v927_v10 = vsel %vm12188_vm14, %v6572_v1, %v925_v51  ;;  %v12189_v33 = vand.u32 2147483648, %v6552_v59  ;;  %v6853_v62 = vsel %vm921_vm8, %v922_v2, %v920_v0  ;;  %v950_v27 = vand.u32 2147483648, %v6579_v28 }
  0xdd   : > { %5169 = vrsqrt.f32 %v6613_v56  ;;  %v939_v23 = vmul.f32 %v5148_v16, %v6577_v40  ;;  %vm954_vm5 = vcmp.eq.f32.partialorder %v6586_v48, inf  ;;  %v957_v35 = vand.u32 2147483648, %v6586_v48  ;;  %v5152_v2 = vpop.eup %5151 }
  0xde   : > { %v6847_v24 = vsel %vm914_vm7, %v12189_v33, %v913_v45  ;;  %5171 = vrsqrt.f32 %v6615_v5  ;;  %v6865_v59 = vsel %vm928_vm9, %v929_v39, %v927_v10  ;;  %v934_v32 = vsel %vm933_vm12, %v6574_v41, %v932_v63 }
  0xdf   : > { %vm956_vm4 = vcmp.eq.f32.partialorder %v6586_v48, 0.0  ;;  %vm961_vm7 = vcmp.eq.f32.partialorder %v6589_v49, inf  ;;  %5173 = vrsqrt.f32 %v6617_v9  ;;  %v946_v13 = vmul.f32 %v5150_v43, %v6579_v28  ;;  %v5154_v1 = vpop.eup %5153 }
  0xe0   : > { %vm963_vm8 = vcmp.eq.f32.partialorder %v6589_v49, 0.0  ;;  %v964_v7 = vand.u32 2147483648, %v6589_v49  ;;  %vm968_vm9 = vcmp.eq.f32.partialorder %v6591_v6, inf  ;;  %vm970_vm11 = vcmp.eq.f32.partialorder %v6591_v6, 0.0  ;;  %v5156_v14 = vpop.eup %5155 }
  0xe1   : > { %v971_v39 = vand.u32 2147483648, %v6591_v6  ;;  %vm975_vm12 = vcmp.eq.f32.partialorder %v6595_v29, inf  ;;  %v978_v22 = vand.u32 2147483648, %v6595_v29  ;;  %v6883_v19 = vsel %vm935_vm0, %v936_v20, %v934_v32 }
  0xe2   : > { %v941_v47 = vsel %vm940_vm1, %v6577_v40, %v939_v23  ;;  %vm982_vm10 = vcmp.eq.f32.partialorder %v6597_v4, inf  ;;  %v985_v57 = vand.u32 2147483648, %v6597_v4  ;;  %v953_v46 = vmul.f32 %v5152_v2, %v6586_v48 }
  0xe3   : > { %vm977_vm13 = vcmp.eq.f32.partialorder %v6595_v29, 0.0  ;;  %vm989_vm15 = vcmp.eq.f32.partialorder %v6599_v34, inf  ;;  %v992_v36 = vand.u32 2147483648, %v6599_v34  ;;  %v5158_v41 = vpop.eup %5157  ;;  %v948_v21 = vsel %vm947_vm2, %v6579_v28, %v946_v13 }
  0xe4   : > { %v960_v20 = vmul.f32 %v5154_v1, %v6589_v49  ;;  %v999_v55 = vand.u32 2147483648, %v6602_v44  ;;  %v5160_v38 = vpop.eup %5159  ;;  %v6904_v31 = vsel %vm942_vm3, %v943_v26, %v941_v47  ;;  %v967_v51 = vmul.f32 %v5156_v14, %v6591_v6 }
  0xe5   : > { %vm991_vm14 = vcmp.eq.f32.partialorder %v6599_v34, 0.0  ;;  %v1006_v45 = vand.u32 2147483648, %v6604_v15  ;;  %vm1010_vm2 = vcmp.eq.f32.partialorder %v6608_v61, inf  ;;  %v5162_v0 = vpop.eup %5161  ;;  %v1013_v16 = vand.u32 2147483648, %v6608_v61 }
  0xe6   : > { %v1020_v63 = vand.u32 2147483648, %v6613_v56  ;;  %v1027_v40 = vand.u32 2147483648, %v6615_v5  ;;  %v5164_v26 = vpop.eup %5163  ;;  %v6917_v10 = vsel %vm949_vm6, %v950_v27, %v948_v21  ;;  %v955_v43 = vsel %vm954_vm5, %v6586_v48, %v953_v46 }
  0xe7   : > { %v974_v33 = vmul.f32 %v5158_v41, %v6595_v29  ;;  %vm1005_vm3 = vcmp.eq.f32.partialorder %v6604_v15, 0.0  ;;  %vm1024_vm0 = vcmp.eq.f32.partialorder %v6615_v5, inf  ;;  %v1034_v23 = vand.u32 2147483648, %v6617_v9  ;;  %v5166_v32 = vpop.eup %5165 }
  0xe8   : > { %v962_v2 = vsel %vm961_vm7, %v6589_v49, %v960_v20  ;;  %v981_v28 = vmul.f32 %v5160_v38, %v6597_v4  ;;  %vm1012_vm6 = vcmp.eq.f32.partialorder %v6608_v61, 0.0  ;;  %vm1031_vm1 = vcmp.eq.f32.partialorder %v6617_v9, inf  ;;  %v5168_v1 = vpop.eup %5167 }
  0xe9   : > { %v6933_v27 = vadd.f32 1e-10, %v6671_v42  ;;  %v6936_v13 = vadd.f32 1e-10, %v6692_v25  ;;  %v969_v14 = vsel %vm968_vm9, %v6591_v6, %v967_v51  ;;  %v988_v47 = vmul.f32 %v5162_v0, %v6599_v34 }
  0xea   : > { %vm1019_vm5 = vcmp.eq.f32.partialorder %v6613_v56, 0.0  ;;  %v6944_v46 = vadd.f32 1e-10, %v6712_v30  ;;  %v6947_v41 = vadd.f32 1e-10, %v6718_v52  ;;  %v5170_v42 = vpop.eup %5169  ;;  %v958_v25 = vsel %vm956_vm4, %v957_v35, %v955_v43 }
  0xeb   : > { %v995_v21 = vmul.f32 %v5164_v26, %v6602_v44  ;;  %vm1026_vm7 = vcmp.eq.f32.partialorder %v6615_v5, 0.0  ;;  %v6956_v20 = vadd.f32 1e-10, %v6736_v12  ;;  %v6959_v38 = vadd.f32 1e-10, %v6742_v17  ;;  %v5172_v30 = vpop.eup %5171 }
  0xec   : > { %v965_v52 = vsel %vm963_vm8, %v964_v7, %v962_v2  ;;  %v976_v48 = vsel %vm975_vm12, %v6595_v29, %v974_v33  ;;  %v1002_v35 = vmul.f32 %v5166_v32, %v6604_v15  ;;  %vm1033_vm4 = vcmp.eq.f32.partialorder %v6617_v9, 0.0  ;;  %v5174_v51 = vpop.eup %5173 }
  0xed   : > { %v6971_v12 = vadd.f32 1e-10, %v6759_v18  ;;  %v972_v17 = vsel %vm970_vm11, %v971_v39, %v969_v14  ;;  %v983_v49 = vsel %vm982_vm10, %v6597_v4, %v981_v28  ;;  %v1009_v7 = vmul.f32 %v5168_v1, %v6608_v61 }
  0xee   : > { %v6982_v0 = vadd.f32 1e-10, %v6765_v58  ;;  %v990_v18 = vsel %vm989_vm15, %v6599_v34, %v988_v47  ;;  %v1016_v26 = vmul.f32 %v5170_v42, %v6613_v56  ;;  %v6989_v43 = vadd.f32 1e-10, %v6781_v54  ;;  %v7089_v47 = vld [vmem:[%s6077_s7 + $0x8] sm:$0xff] }
  0xef   : > { %v6992_v6 = vadd.f32 1e-10, %v6787_v53  ;;  %v979_v39 = vsel %vm977_vm13, %v978_v22, %v976_v48  ;;  %vm12190_vm8 = vcmp.eq.f32.partialorder %v6602_v44, inf  ;;  %v1023_v33 = vmul.f32 %v5172_v30, %v6615_v5  ;;  %12196 = vst [vmem:[#allocation39_spill] sm:$0xff] %v7089_v47  ;;  %v7120_v48 = vld [vmem:[%s6077_s7 + $0x18] sm:$0xff] }
  0xf0   : > { %v997_v58 = vsel %vm12190_vm8, %v6602_v44, %v995_v21  ;;  %v7003_v32 = vadd.f32 1e-10, %v6804_v11  ;;  %vm12191_vm9 = vcmp.eq.f32.partialorder %v6597_v4, 0.0  ;;  %vm12192_vm11 = vcmp.eq.f32.partialorder %v6604_v15, inf  ;;  %12199 = vst [vmem:[#allocation41_spill] sm:$0xff] %v7120_v48 }
  0xf1   : > { %v986_v54 = vsel %vm12191_vm9, %v985_v57, %v983_v49  ;;  %v1004_v53 = vsel %vm12192_vm11, %v6604_v15, %v1002_v35  ;;  %v1030_v29 = vmul.f32 %v5174_v51, %v6617_v9  ;;  %v7014_v22 = vadd.f32 1e-10, %v6810_v3 }
  0xf2   : > { %v993_v11 = vsel %vm991_vm14, %v992_v36, %v990_v18  ;;  %v1011_v2 = vsel %vm1010_vm2, %v6608_v61, %v1009_v7  ;;  %v7024_v4 = vadd.f32 1e-10, %v6827_v37  ;;  %v7027_v57 = vadd.f32 1e-10, %v6833_v8  ;;  %v7138_v18 = vld [vmem:[%s6077_s7 + $0x30] sm:$0xff]  ;;  %v7231_v7 = vld [vmem:[%s6077_s7 + $0xd8] sm:$0xff] }
  0xf3   : > { %vm12193_vm12 = vcmp.eq.f32.partialorder %v6602_v44, 0.0  ;;  %vm12194_vm10 = vcmp.eq.f32.partialorder %v6613_v56, inf  ;;  %v7037_v36 = vadd.f32 1e-10, %v6847_v24  ;;  %v7040_v28 = vadd.f32 1e-10, %v6853_v62 }
  0xf4   : > { %v1000_v3 = vsel %vm12193_vm12, %v999_v55, %v997_v58  ;;  %v1018_v34 = vsel %vm12194_vm10, %v6613_v56, %v1016_v26  ;;  %v1007_v37 = vsel %vm1005_vm3, %v1006_v45, %v1004_v53  ;;  %v1025_v44 = vsel %vm1024_vm0, %v6615_v5, %v1023_v33  ;;  %v7100_v5 = vld [vmem:[%s6077_s7 + $0x10] sm:$0xff]  ;;  %12204 = vst [vmem:[#allocation44_spill] sm:$0xff] %v7138_v18  ;;  %v7147_v33 = vld [vmem:[%s6077_s7 + $0x40] sm:$0xff]  ;;  %v7152_v53 = vld [vmem:[%s6077_s7 + $0x48] sm:$0xff] }
  0xf5   : > { %v7050_v8 = vadd.f32 1e-10, %v6865_v59  ;;  %v7053_v55 = vadd.f32 1e-10, %v6883_v19  ;;  %v1014_v24 = vsel %vm1012_vm6, %v1013_v16, %v1011_v2  ;;  %v1032_v15 = vsel %vm1031_vm1, %v6617_v9, %v1030_v29  ;;  %v7077_v16 = vld [vmem:[%s6077_s7] sm:$0xff]  ;;  %12197 = vst [vmem:[#allocation40_spill] sm:$0xff] %v7100_v5 }
  0xf6   : > { %v7063_v62 = vadd.f32 1e-10, %v6904_v31  ;;  %v7066_v45 = vadd.f32 1e-10, %v6917_v10  ;;  %v1021_v59 = vsel %vm1019_vm5, %v1020_v63, %v1018_v34  ;;  %v7072_v19 = vadd.f32 1e-10, %v958_v25 }
  0xf7   : > { %v7074_v61 = vadd.f32 1e-10, %v965_v52  ;;  %12195 = vst [vmem:[#allocation38_spill] sm:$0xff] %v7077_v16  ;;  %v1164_v1 = vrot.slane %v7077_v16, 2  ;;  %v1028_v31 = vsel %vm1026_vm7, %v1027_v40, %v1025_v44  ;;  %v7084_v10 = vadd.f32 1e-10, %v972_v17 }
  0xf8   : > { %v7086_v14 = vadd.f32 1e-10, %v979_v39  ;;  %v1165_v56 = vrot.slane %v7089_v47, 2  ;;  %v1035_v63 = vsel %vm1033_vm4, %v1034_v23, %v1032_v15  ;;  %v7096_v42 = vadd.f32 1e-10, %v986_v54  ;;  %v7128_v17 = vld [vmem:[%s6077_s7 + $0x20] sm:$0xff] }
  0xf9   : > { %5175 = vrcp.f32 %v6933_v27  ;;  %v1166_v40 = vrot.slane %v7100_v5, 2  ;;  %v7103_v25 = vadd.f32 1e-10, %v993_v11  ;;  %v7105_v21 = vadd.f32 1e-10, %v1000_v3  ;;  %12201 = vst [vmem:[#allocation42_spill] sm:$0xff] %v7128_v17 }
  0xfa   : > { %v7107_v30 = vadd.f32 1e-10, %v1007_v37  ;;  %5177 = vrcp.f32 %v6936_v13  ;;  %v7110_v9 = vadd.f32 1e-10, %v1014_v24  ;;  %v7112_v23 = vadd.f32 1e-10, %v1021_v59 }
  0xfb   : > { %5179 = vrcp.f32 %v6944_v46  ;;  %vm12198_vm13 = vcmask 1041408   ;;  %v7116_v52 = vadd.f32 1e-10, %v1028_v31  ;;  %v1167_v35 = vrot.slane %v7120_v48, 2  ;;  %v7143_v39 = vld [vmem:[%s6077_s7 + $0x38] sm:$0xff]  ;;  %12206 = vst [vmem:[#allocation46_spill] sm:$0xff] %v7147_v33 }
  0xfc   : > { %v1228_v27 = vsel %vm12198_vm13, %v1164_v1, 0.0  ;;  %5181 = vrcp.f32 %v6947_v41  ;;  %vm12200_vm15 = vmmov %vm12198_vm13  ;;  %v7124_v51 = vadd.f32 1e-10, %v1035_v63  ;;  %v7134_v41 = vld [vmem:[%s6077_s7 + $0x28] sm:$0xff]  ;;  %12205 = vst [vmem:[#allocation45_spill] sm:$0xff] %v7143_v39  ;;  %v7158_v2 = vld [vmem:[%s6077_s7 + $0x50] sm:$0xff] }
  0xfd   : > { %v1235_v13 = vsel %vm12200_vm15, %v1165_v56, 0.0  ;;  %5183 = vrcp.f32 %v6956_v20  ;;  %vm12202_vm14 = vmmov %vm12198_vm13  ;;  %12203 = vst [vmem:[#allocation43_spill] sm:$0xff] %v7134_v41  ;;  %v1229_v20 = vrot.slane %v1228_v27, 4  ;;  %v7162_v34 = vld [vmem:[%s6077_s7 + $0x58] sm:$0xff]  ;;  %v7171_v24 = vld [vmem:[%s6077_s7 + $0x68] sm:$0xff] }
  0xfe   : > { %v1242_v49 = vsel %vm12202_vm14, %v1166_v40, 0.0  ;;  %5185 = vrcp.f32 %v6959_v38  ;;  %v1236_v54 = vrot.slane %v1235_v13, 4  ;;  %12207 = vst [vmem:[#allocation47_spill] sm:$0xff] %v7152_v53  ;;  %vm12208_vm0 = vmmov %vm12198_vm13  ;;  %v7175_v15 = vld [vmem:[%s6077_s7 + $0x70] sm:$0xff]  ;;  %v7180_v31 = vld [vmem:[%s6077_s7 + $0x78] sm:$0xff] }
  0xff   : > { %5187 = vrcp.f32 %v6971_v12  ;;  %v1243_v11 = vrot.slane %v1242_v49, 4  ;;  %v1249_v12 = vsel %vm12208_vm0, %v1167_v35, 0.0  ;;  %12209 = vst [vmem:[#allocation48_spill] sm:$0xff] %v7158_v2  ;;  %12210 = vst [vmem:[#allocation49_spill] sm:$0xff] %v7162_v34  ;;  %v1230_v1 = vadd.f32 %v1229_v20, %v1228_v27  ;;  %v7184_v40 = vld [vmem:[%s6077_s7 + $0x80] sm:$0xff]  ;;  %v7192_v20 = vld [vmem:[%s6077_s7 + $0x90] sm:$0xff] }
 0x100   : > { %5189 = vrcp.f32 %v6982_v0  ;;  %v7166_v0 = vld [vmem:[%s6077_s7 + $0x60] sm:$0xff]  ;;  %12212 = vst [vmem:[#allocation51_spill] sm:$0xff] %v7171_v24  ;;  %12213 = vst [vmem:[#allocation52_spill] sm:$0xff] %v7175_v15  ;;  %v1237_v63 = vadd.f32 %v1236_v54, %v1235_v13  ;;  %v7197_v13 = vld [vmem:[%s6077_s7 + $0x98] sm:$0xff] }
 0x101   : > { %5191 = vrcp.f32 %v6989_v43  ;;  %12211 = vst [vmem:[#allocation50_spill] sm:$0xff] %v7166_v0  ;;  %12214 = vst [vmem:[#allocation53_spill] sm:$0xff] %v7180_v31  ;;  %v7188_v43 = vld [vmem:[%s6077_s7 + $0x88] sm:$0xff]  ;;  %v1244_v59 = vadd.f32 %v1243_v11, %v1242_v49  ;;  %v7201_v56 = vld [vmem:[%s6077_s7 + $0xa0] sm:$0xff]  ;;  %v1231_v35 = vrot.slane %v1230_v1, 2 }
 0x102   : > { %5193 = vrcp.f32 %v6992_v6  ;;  %v1250_v6 = vrot.slane %v1249_v12, 4  ;;  %12215 = vst [vmem:[#allocation54_spill] sm:$0xff] %v7184_v40  ;;  %12216 = vst [vmem:[#allocation55_spill] sm:$0xff] %v7188_v43  ;;  %v7205_v44 = vld [vmem:[%s6077_s7 + $0xa8] sm:$0xff]  ;;  %v7209_v3 = vld [vmem:[%s6077_s7 + $0xb0] sm:$0xff]  ;;  %v1238_v49 = vrot.slane %v1237_v63, 2 }
 0x103   : > { %5195 = vrcp.f32 %v7003_v32  ;;  %12217 = vst [vmem:[#allocation56_spill] sm:$0xff] %v7192_v20  ;;  %12218 = vst [vmem:[#allocation57_spill] sm:$0xff] %v7197_v13  ;;  %v7217_v54 = vld [vmem:[%s6077_s7 + $0xc0] sm:$0xff]  ;;  %v7222_v27 = vld [vmem:[%s6077_s7 + $0xc8] sm:$0xff]  ;;  %v1245_v46 = vrot.slane %v1244_v59, 2 }
 0x104   : > { %5197 = vrcp.f32 %v7014_v22  ;;  %12219 = vst [vmem:[#allocation58_spill] sm:$0xff] %v7201_v56  ;;  %12220 = vst [vmem:[#allocation59_spill] sm:$0xff] %v7205_v44  ;;  %v7213_v22 = vld [vmem:[%s6077_s7 + $0xb8] sm:$0xff]  ;;  %v1251_v58 = vadd.f32 %v1250_v6, %v1249_v12  ;;  %v7227_v11 = vld [vmem:[%s6077_s7 + $0xd0] sm:$0xff] }
 0x105   : > { %12221 = vst [vmem:[#allocation60_spill] sm:$0xff] %v7209_v3  ;;  %12222 = vst [vmem:[#allocation61_spill] sm:$0xff] %v7213_v22  ;;  %5199 = vrcp.f32 %v7024_v4  ;;  %v7236_v38 = vld [vmem:[%s6077_s7 + $0xe0] sm:$0xff]  ;;  %v7240_v6 = vld [vmem:[%s6077_s7 + $0xe8] sm:$0xff] }
 0x106   : > { %v5176_v37 = vpop.eup %5175  ;;  %12223 = vst [vmem:[#allocation62_spill] sm:$0xff] %v7217_v54  ;;  %12224 = vst [vmem:[#allocation63_spill] sm:$0xff] %v7222_v27  ;;  %5201 = vrcp.f32 %v7027_v57  ;;  %v7244_v5 = vld [vmem:[%s6077_s7 + $0xf0] sm:$0xff]  ;;  %v7249_v4 = vld [vmem:[%s6077_s7 + $0xf8] sm:$0xff]  ;;  %v1239_v57 = vadd.f32 %v1238_v49, %v1237_v63  ;;  %v1252_v32 = vrot.slane %v1251_v58, 2 }
 0x107   : > { %v5178_v29 = vpop.eup %5177  ;;  %12225 = vst [vmem:[#allocation64_spill] sm:$0xff] %v7227_v11  ;;  %12226 = vst [vmem:[#allocation65_spill] sm:$0xff] %v7231_v7  ;;  %5203 = vrcp.f32 %v7037_v36  ;;  %v1232_v36 = vadd.f32 %v1231_v35, %v1230_v1  ;;  %v12231_v7 = vrot.slane %v7128_v17, 2  ;;  %v7256_v11 = vmul.f32 %v5176_v37, %v6301_v50 }
 0x108   : > { %v5180_v26 = vpop.eup %5179  ;;  %12227 = vst [vmem:[#allocation66_spill] sm:$0xff] %v7236_v38  ;;  %12228 = vst [vmem:[#allocation67_spill] sm:$0xff] %v7240_v6  ;;  %5205 = vrcp.f32 %v7040_v28  ;;  %v7260_v28 = vmul.f32 %v5178_v29, %v6304_v60  ;;  %v12235_v6 = vld [vmem:[#allocation8_spill] sm:$0xff]  ;;  %v1246_v1 = vadd.f32 %v1245_v46, %v1244_v59  ;;  %v12241_v60 = vld [vmem:[#allocation10_spill] sm:$0xff]  ;;  %v12245_v59 = vrot.slane %v7138_v18, 2 }
 0x109   : > { %v5182_v48 = vpop.eup %5181  ;;  %12229 = vst [vmem:[#allocation68_spill] sm:$0xff] %v7244_v5  ;;  %12230 = vst [vmem:[#allocation69_spill] sm:$0xff] %v7249_v4  ;;  %5207 = vrcp.f32 %v7050_v8  ;;  %v7263_v27 = vmul.f32 %v5180_v26, %v12235_v6  ;;  %v12239_v8 = vrot.slane %v7134_v41, 2  ;;  %v12243_v26 = vld [vmem:[#allocation11_spill] sm:$0xff] }
 0x10a   : > { %v5184_v47 = vpop.eup %5183  ;;  %vm12232_vm1 = vmmov %vm12208_vm0  ;;  %12233 = vst [vmem:[#allocation70_spill] sm:$0xff] %v7256_v11  ;;  %5209 = vrcp.f32 %v7053_v55  ;;  %v1233_v55 = vrot.slane %v1232_v36, 1 }
 0x10b   : > { %v1256_v12 = vsel %vm12232_vm1, %v12231_v7, 0.0  ;;  %v5186_v38 = vpop.eup %5185  ;;  %12234 = vst [vmem:[#allocation71_spill] sm:$0xff] %v7260_v28  ;;  %12236 = vst [vmem:[#allocation8_spill] sm:$0xff] %v7263_v27  ;;  %v12237_v7 = vld [vmem:[#allocation9_spill] sm:$0xff]  ;;  %5211 = vrcp.f32 %v7063_v62  ;;  %v7274_v29 = vmul.f32 %v5184_v47, %v12241_v60  ;;  %v1253_v62 = vadd.f32 %v1252_v32, %v1251_v58  ;;  %v12253_v32 = vld [vmem:[#allocation15_spill] sm:$0xff] }
 0x10c   : > { %v5188_v5 = vpop.eup %5187  ;;  %v7267_v16 = vmul.f32 %v5182_v48, %v12237_v7  ;;  %v1257_v50 = vrot.slane %v1256_v12, 4  ;;  %vm12240_vm2 = vmmov %vm12208_vm0  ;;  %v7277_v49 = vmul.f32 %v5186_v38, %v12243_v26  ;;  %5213 = vrcp.f32 %v7066_v45  ;;  %v12249_v60 = vld [vmem:[#allocation13_spill] sm:$0xff]  ;;  %v12251_v26 = vld [vmem:[#allocation14_spill] sm:$0xff] }
 0x10d   : > { %v5190_v35 = vpop.eup %5189  ;;  %v1263_v37 = vsel %vm12240_vm2, %v12239_v8, 0.0  ;;  %12242 = vst [vmem:[#allocation10_spill] sm:$0xff] %v7274_v29  ;;  %5215 = vrcp.f32 %v7072_v19  ;;  %v1240_v48 = vrot.slane %v1239_v57, 1  ;;  %vm12246_vm3 = vmmov %vm12208_vm0  ;;  %v12247_v8 = vld [vmem:[#allocation12_spill] sm:$0xff]  ;;  %v1247_v47 = vrot.slane %v1246_v1, 1 }
 0x10e   : > { %12238 = vst [vmem:[#allocation9_spill] sm:$0xff] %v7267_v16  ;;  %v5192_v63 = vpop.eup %5191  ;;  %12244 = vst [vmem:[#allocation11_spill] sm:$0xff] %v7277_v49  ;;  %v1270_v6 = vsel %vm12246_vm3, %v12245_v59, 0.0  ;;  %v7285_v16 = vmul.f32 %v5188_v5, %v12247_v8  ;;  %5217 = vrcp.f32 %v7074_v61  ;;  %v1264_v38 = vrot.slane %v1263_v37, 4  ;;  %v12255_v8 = vld [vmem:[#allocation16_spill] sm:$0xff] }
 0x10f   : > { %v5194_v46 = vpop.eup %5193  ;;  %v7289_v45 = vmul.f32 %v5190_v35, %v12249_v60  ;;  %v7292_v49 = vmul.f32 %v5192_v63, %v12251_v26  ;;  %5219 = vrcp.f32 %v7084_v10  ;;  %v1258_v19 = vadd.f32 %v1257_v50, %v1256_v12  ;;  %vm12258_vm6 = vmmov %vm12208_vm0 }
 0x110   : > { %v5196_v7 = vpop.eup %5195  ;;  %12248 = vst [vmem:[#allocation12_spill] sm:$0xff] %v7285_v16  ;;  %v7296_v59 = vmul.f32 %v5194_v46, %v12253_v32  ;;  %5221 = vrcp.f32 %v7086_v14  ;;  %v7299_v5 = vadd.f32 %v1233_v55, %v1232_v36  ;;  %v1271_v61 = vrot.slane %v1270_v6, 4  ;;  %vm12260_vm5 = vmmov %vm12208_vm0 }
 0x111   : > { %12250 = vst [vmem:[#allocation13_spill] sm:$0xff] %v7289_v45  ;;  %12252 = vst [vmem:[#allocation14_spill] sm:$0xff] %v7292_v49  ;;  %v5198_v58 = vpop.eup %5197  ;;  %v7302_v16 = vmul.f32 %v5196_v7, %v12255_v8  ;;  %v7304_v35 = vadd.f32 %v1240_v48, %v1239_v57  ;;  %v1254_v60 = vrot.slane %v1253_v62, 1  ;;  %v12257_v63 = vrot.slane %v7143_v39, 2  ;;  %v12261_v7 = vld [vmem:[#allocation17_spill] sm:$0xff]  ;;  %v12275_v45 = vld [vmem:[#allocation20_spill] sm:$0xff] }
 0x112   : > { %12254 = vst [vmem:[#allocation15_spill] sm:$0xff] %v7296_v59  ;;  %v5200_v12 = vpop.eup %5199  ;;  %5223 = vrcp.f32 %v7096_v42  ;;  %v7310_v50 = vadd.f32 %v1247_v47, %v1246_v1  ;;  %v1265_v46 = vadd.f32 %v1264_v38, %v1263_v37  ;;  %v12259_v14 = vrot.slane %v7147_v33, 2  ;;  %vm12264_vm7 = vmmov %vm12208_vm0 }
 0x113   : > { %12256 = vst [vmem:[#allocation16_spill] sm:$0xff] %v7302_v16  ;;  %v1277_v10 = vsel %vm12258_vm6, %v12257_v63, 0.0  ;;  %v5202_v55 = vpop.eup %5201  ;;  %v7316_v26 = vmul.f32 %v5198_v58, %v12261_v7  ;;  %5225 = vrcp.f32 %v7103_v25  ;;  %v1259_v57 = vrot.slane %v1258_v19, 2  ;;  %vm12266_vm4 = vmmov %vm12208_vm0 }
 0x114   : > { %v1284_v36 = vsel %vm12260_vm5, %v12259_v14, 0.0  ;;  %v12263_v48 = vrot.slane %v7152_v53, 2  ;;  %v5204_v8 = vpop.eup %5203  ;;  %v1272_v42 = vadd.f32 %v1271_v61, %v1270_v6  ;;  %v1278_v1 = vrot.slane %v1277_v10, 4  ;;  %vm12268_vm8 = vmmov %vm12208_vm0  ;;  %v12269_v14 = vld [vmem:[#allocation18_spill] sm:$0xff] }
 0x115   : > { %12262 = vst [vmem:[#allocation17_spill] sm:$0xff] %v7316_v26  ;;  %v12265_v37 = vrot.slane %v7158_v2, 2  ;;  %v12267_v38 = vrot.slane %v7162_v34, 2  ;;  %v5206_v58 = vpop.eup %5205  ;;  %v7329_v7 = vmul.f32 %v5200_v12, %v12269_v14  ;;  %5227 = vrcp.f32 %v7105_v21  ;;  %vm12272_vm9 = vmmov %vm12208_vm0 }
 0x116   : > { %v1291_v32 = vsel %vm12264_vm7, %v12263_v48, 0.0  ;;  %v7332_v25 = vadd.f32 %v1254_v60, %v1253_v62  ;;  %v1285_v48 = vrot.slane %v1284_v36, 4  ;;  %v5208_v26 = vpop.eup %5207  ;;  %5229 = vrcp.f32 %v7107_v30  ;;  %vm12280_vm11 = vmmov %vm12208_vm0 }
 0x117   : > { %v1298_v47 = vsel %vm12266_vm4, %v12265_v37, 0.0  ;;  %v1305_v63 = vsel %vm12268_vm8, %v12267_v38, 0.0  ;;  %12270 = vst [vmem:[#allocation18_spill] sm:$0xff] %v7329_v7  ;;  %v1266_v6 = vrot.slane %v1265_v46, 2  ;;  %v1292_v61 = vrot.slane %v1291_v32, 4  ;;  %v5210_v59 = vpop.eup %5209  ;;  %v12273_v38 = vld [vmem:[#allocation19_spill] sm:$0xff]  ;;  %vm12282_vm12 = vmmov %vm12208_vm0 }
 0x118   : > { %v12271_v37 = vrot.slane %v7166_v0, 2  ;;  %v7339_v49 = vmul.f32 %v5202_v55, %v12273_v38  ;;  %5231 = vrcp.f32 %v7110_v9  ;;  %v1299_v12 = vrot.slane %v1298_v47, 4  ;;  %v5212_v62 = vpop.eup %5211  ;;  %v12277_v38 = vld [vmem:[#allocation21_spill] sm:$0xff]  ;;  %vm12298_vm10 = vmmov %vm12208_vm0 }
 0x119   : > { %v1306_v21 = vrot.slane %v1305_v63, 4  ;;  %5233 = vrcp.f32 %v7112_v23  ;;  %v1260_v60 = vadd.f32 %v1259_v57, %v1258_v19  ;;  %v1273_v14 = vrot.slane %v1272_v42, 2  ;;  %v5214_v7 = vpop.eup %5213  ;;  %vm12302_vm13 = vmmov %vm12208_vm0 }
 0x11a   : > { %v1312_v16 = vsel %vm12272_vm9, %v12271_v37, 0.0  ;;  %12274 = vst [vmem:[#allocation19_spill] sm:$0xff] %v7339_v49  ;;  %v1279_v30 = vadd.f32 %v1278_v1, %v1277_v10  ;;  %v7344_v29 = vmul.f32 %v5204_v8, %v12275_v45  ;;  %5235 = vrcp.f32 %v7116_v52  ;;  %v5216_v55 = vpop.eup %5215  ;;  %v12283_v1 = vld [vmem:[#allocation22_spill] sm:$0xff]  ;;  %vm12308_vm15 = vmmov %vm12208_vm0 }
 0x11b   : > { %v1286_v37 = vadd.f32 %v1285_v48, %v1284_v36  ;;  %v1313_v27 = vrot.slane %v1312_v16, 4  ;;  %v7348_v49 = vmul.f32 %v5206_v58, %v12277_v38  ;;  %5237 = vrcp.f32 %v7124_v51  ;;  %v5218_v23 = vpop.eup %5217  ;;  %vm12320_vm14 = vmmov %vm12208_vm0 }
 0x11c   : > { %12276 = vst [vmem:[#allocation20_spill] sm:$0xff] %v7344_v29  ;;  %v1267_v9 = vadd.f32 %v1266_v6, %v1265_v46  ;;  %v1293_v28 = vadd.f32 %v1292_v61, %v1291_v32  ;;  %v1300_v19 = vadd.f32 %v1299_v12, %v1298_v47  ;;  %v1307_v57 = vadd.f32 %v1306_v21, %v1305_v63  ;;  %v5220_v36 = vpop.eup %5219  ;;  %v12285_v32 = vld [vmem:[#allocation23_spill] sm:$0xff]  ;;  %v12287_v47 = vld [vmem:[#allocation24_spill] sm:$0xff]  ;;  %v12289_v21 = vld [vmem:[#allocation25_spill] sm:$0xff] }
 0x11d   : > { %12278 = vst [vmem:[#allocation21_spill] sm:$0xff] %v7348_v49  ;;  %v12279_v10 = vrot.slane %v7171_v24, 2  ;;  %v12281_v8 = vrot.slane %v7175_v15, 2  ;;  %v7358_v48 = vmul.f32 %v5208_v26, %v12283_v1  ;;  %v1261_v58 = vrot.slane %v1260_v60, 1  ;;  %v5222_v46 = vpop.eup %5221  ;;  %v12291_v1 = vld [vmem:[#allocation26_spill] sm:$0xff]  ;;  %vm12325_vm1 = vmmov %vm12208_vm0 }
 0x11e   : > { %v1274_v38 = vadd.f32 %v1273_v14, %v1272_v42  ;;  %v1280_v51 = vrot.slane %v1279_v30, 2  ;;  %v7361_v6 = vmul.f32 %v5210_v59, %v12285_v32  ;;  %v7364_v63 = vmul.f32 %v5212_v62, %v12287_v47  ;;  %v12293_v32 = vld [vmem:[#allocation27_spill] sm:$0xff]  ;;  %vm12327_vm2 = vmmov %vm12208_vm0 }
 0x11f   : > { %v1319_v45 = vsel %vm12280_vm11, %v12279_v10, 0.0  ;;  %v1326_v52 = vsel %vm12282_vm12, %v12281_v8, 0.0  ;;  %12284 = vst [vmem:[#allocation22_spill] sm:$0xff] %v7358_v48  ;;  %v1287_v61 = vrot.slane %v1286_v37, 2  ;;  %v1314_v12 = vadd.f32 %v1313_v27, %v1312_v16  ;;  %v5224_v26 = vpop.eup %5223  ;;  %vm12329_vm3 = vmmov %vm12208_vm0 }
 0x120   : > { %12286 = vst [vmem:[#allocation23_spill] sm:$0xff] %v7361_v6  ;;  %12288 = vst [vmem:[#allocation24_spill] sm:$0xff] %v7364_v63  ;;  %v7367_v10 = vmul.f32 %v5214_v7, %v12289_v21  ;;  %v1268_v8 = vrot.slane %v1267_v9, 1  ;;  %v1320_v49 = vrot.slane %v1319_v45, 4  ;;  %v1327_v29 = vrot.slane %v1326_v52, 4  ;;  %v5226_v59 = vpop.eup %5225  ;;  %v12295_v7 = vld [vmem:[#allocation28_spill] sm:$0xff] }
 0x121   : > { %v7370_v48 = vmul.f32 %v5216_v55, %v12291_v1  ;;  %v1294_v42 = vrot.slane %v1293_v28, 2  ;;  %v1301_v14 = vrot.slane %v1300_v19, 2  ;;  %v1308_v11 = vrot.slane %v1307_v57, 2  ;;  %vm12331_vm6 = vmmov %vm12208_vm0 }
 0x122   : > { %12290 = vst [vmem:[#allocation25_spill] sm:$0xff] %v7367_v10  ;;  %v7373_v6 = vmul.f32 %v5218_v23, %v12293_v32  ;;  %v7375_v62 = vadd.f32 %v1261_v58, %v1260_v60  ;;  %v1275_v16 = vrot.slane %v1274_v38, 1  ;;  %v1281_v27 = vadd.f32 %v1280_v51, %v1279_v30  ;;  %v5228_v1 = vpop.eup %5227  ;;  %vm12333_vm5 = vmmov %vm12208_vm0 }
 0x123   : > { %12292 = vst [vmem:[#allocation26_spill] sm:$0xff] %v7370_v48  ;;  %v7378_v47 = vmul.f32 %v5220_v36, %v12295_v7  ;;  %v1288_v21 = vadd.f32 %v1287_v61, %v1286_v37  ;;  %v1315_v10 = vrot.slane %v1314_v12, 2  ;;  %v12297_v63 = vrot.slane %v7180_v31, 2  ;;  %v12299_v48 = vld [vmem:[#allocation29_spill] sm:$0xff]  ;;  %v5230_v58 = vpop.eup %5229  ;;  %v12303_v7 = vld [vmem:[#allocation30_spill] sm:$0xff]  ;;  %vm12336_vm7 = vmmov %vm12208_vm0 }
 0x124   : > { %12294 = vst [vmem:[#allocation27_spill] sm:$0xff] %v7373_v6  ;;  %v7384_v15 = vmul.f32 %v5222_v46, %v12299_v48  ;;  %v7386_v24 = vadd.f32 %v1268_v8, %v1267_v9  ;;  %v1321_v23 = vadd.f32 %v1320_v49, %v1319_v45  ;;  %v1328_v60 = vadd.f32 %v1327_v29, %v1326_v52  ;;  %v12305_v8 = vld [vmem:[#allocation31_spill] sm:$0xff]  ;;  %v12309_v45 = vld [vmem:[#allocation32_spill] sm:$0xff]  ;;  %vm12339_vm4 = vmmov %vm12208_vm0 }
 0x125   : > { %12296 = vst [vmem:[#allocation28_spill] sm:$0xff] %v7378_v47  ;;  %v1333_v55 = vsel %vm12298_vm10, %v12297_v63, 0.0  ;;  %v1295_v32 = vadd.f32 %v1294_v42, %v1293_v28  ;;  %v1302_v30 = vadd.f32 %v1301_v14, %v1300_v19  ;;  %v1309_v51 = vadd.f32 %v1308_v11, %v1307_v57  ;;  %v5232_v61 = vpop.eup %5231  ;;  %vm12342_vm8 = vmmov %vm12208_vm0 }
 0x126   : > { %12300 = vst [vmem:[#allocation29_spill] sm:$0xff] %v7384_v15  ;;  %v12301_v36 = vrot.slane %v7184_v40, 2  ;;  %v7392_v47 = vmul.f32 %v5224_v26, %v12303_v7  ;;  %v7394_v63 = vadd.f32 %v1275_v16, %v1274_v38  ;;  %v1282_v48 = vrot.slane %v1281_v27, 1  ;;  %v5234_v9 = vpop.eup %5233  ;;  %v12311_v16 = vld [vmem:[#allocation33_spill] sm:$0xff]  ;;  %v12315_v15 = vld [vmem:[#allocation35_spill] sm:$0xff]  ;;  %vm12345_vm9 = vmmov %vm12208_vm0 }
 0x127   : > { %v1334_v46 = vrot.slane %v1333_v55, 4  ;;  %v7397_v49 = vmul.f32 %v5226_v59, %v12305_v8  ;;  %v1289_v29 = vrot.slane %v1288_v21, 1  ;;  %v1316_v28 = vadd.f32 %v1315_v10, %v1314_v12  ;;  %v5236_v57 = vpop.eup %5235  ;;  %vm12348_vm11 = vmmov %vm12208_vm0 }
 0x128   : > { %v1340_v37 = vsel %vm12302_vm13, %v12301_v36, 0.0  ;;  %12304 = vst [vmem:[#allocation30_spill] sm:$0xff] %v7392_v47  ;;  %v12307_v11 = vrot.slane %v7188_v43, 2  ;;  %v7403_v52 = vmul.f32 %v5228_v1, %v12309_v45  ;;  %v1322_v26 = vrot.slane %v1321_v23, 2  ;;  %v5238_v14 = vpop.eup %5237  ;;  %v12317_v45 = vld [vmem:[#allocation36_spill] sm:$0xff]  ;;  %vm12351_vm12 = vmmov %vm12208_vm0 }
 0x129   : > { %12306 = vst [vmem:[#allocation31_spill] sm:$0xff] %v7397_v49  ;;  %v1329_v42 = vrot.slane %v1328_v60, 2  ;;  %v1341_v38 = vrot.slane %v1340_v37, 4  ;;  %v7406_v36 = vmul.f32 %v5230_v58, %v12311_v16  ;;  %v1296_v7 = vrot.slane %v1295_v32, 1  ;;  %v12313_v49 = vld [vmem:[#allocation34_spill] sm:$0xff]  ;;  %vm12353_vm10 = vmmov %vm12208_vm0 }
 0x12a   : > { %v1347_v19 = vsel %vm12308_vm15, %v12307_v11, 0.0  ;;  %12310 = vst [vmem:[#allocation32_spill] sm:$0xff] %v7403_v52  ;;  %v1303_v59 = vrot.slane %v1302_v30, 1  ;;  %v1310_v8 = vrot.slane %v1309_v51, 1  ;;  %v7409_v12 = vmul.f32 %v5232_v61, %v12313_v49  ;;  %vm12418_vm13 = vmmov %vm12208_vm0 }
 0x12b   : > { %12312 = vst [vmem:[#allocation33_spill] sm:$0xff] %v7406_v36  ;;  %v7411_v10 = vadd.f32 %v1282_v48, %v1281_v27  ;;  %v1335_v11 = vadd.f32 %v1334_v46, %v1333_v55  ;;  %v1348_v47 = vrot.slane %v1347_v19, 4  ;;  %v7414_v1 = vmul.f32 %v5234_v9, %v12315_v15  ;;  %v12321_v27 = vld [vmem:[#allocation37_spill] sm:$0xff]  ;;  %vm12419_vm15 = vmmov %vm12208_vm0 }
 0x12c   : > { %12314 = vst [vmem:[#allocation34_spill] sm:$0xff] %v7409_v12  ;;  %v7417_v52 = vmul.f32 %v5236_v57, %v12317_v45  ;;  %v7419_v6 = vadd.f32 %v1289_v29, %v1288_v21  ;;  %v1317_v58 = vrot.slane %v1316_v28, 1  ;;  %v1323_v16 = vadd.f32 %v1322_v26, %v1321_v23 }
 0x12d   : > { %12316 = vst [vmem:[#allocation35_spill] sm:$0xff] %v7414_v1  ;;  %v1330_v36 = vadd.f32 %v1329_v42, %v1328_v60  ;;  %v1342_v43 = vadd.f32 %v1341_v38, %v1340_v37  ;;  %v12319_v40 = vrot.slane %v7192_v20, 2  ;;  %v7425_v48 = vmul.f32 %v5238_v14, %v12321_v27 }
 0x12e   : > { %12318 = vst [vmem:[#allocation36_spill] sm:$0xff] %v7417_v52  ;;  %v7427_v55 = vadd.f32 %v1296_v7, %v1295_v32  ;;  %v7429_v15 = vadd.f32 %v1303_v59, %v1302_v30  ;;  %v7431_v46 = vadd.f32 %v1310_v8, %v1309_v51  ;;  %v1336_v9 = vrot.slane %v1335_v11, 2  ;;  %v12334_v8 = vld [vmem:[#allocation63_spill] sm:$0xff] }
 0x12f   : > { %v1354_v61 = vsel %vm12320_vm14, %v12319_v40, 0.0  ;;  %12322 = vst [vmem:[#allocation37_spill] sm:$0xff] %v7425_v48  ;;  %v1349_v21 = vadd.f32 %v1348_v47, %v1347_v19  ;;  %v12323_v49 = vrot.slane %v7197_v13, 2  ;;  %v12324_v60 = vrot.slane %v7201_v56, 2  ;;  %v12340_v48 = vld [vmem:[#allocation65_spill] sm:$0xff]  ;;  %vm12420_vm14 = vmmov %vm12208_vm0 }
 0x130   : > { %v7439_v40 = vadd.f32 %v1317_v58, %v1316_v28  ;;  %v1355_v29 = vrot.slane %v1354_v61, 4  ;;  %v12326_v32 = vrot.slane %v7205_v44, 2  ;;  %v12328_v51 = vrot.slane %v7209_v3, 2  ;;  %v12343_v44 = vld [vmem:[#allocation66_spill] sm:$0xff] }
 0x131   : > { %v1361_v23 = vsel %vm12208_vm0, %v12323_v49, 0.0  ;;  %v1368_v37 = vsel %vm12325_vm1, %v12324_v60, 0.0  ;;  %v1324_v47 = vrot.slane %v1323_v16, 1  ;;  %v1331_v19 = vrot.slane %v1330_v36, 1  ;;  %v12337_v60 = vld [vmem:[#allocation64_spill] sm:$0xff]  ;;  %vm12421_vm1 = vmmov %vm12208_vm0 }
 0x132   : > { %v1375_v30 = vsel %vm12327_vm2, %v12326_v32, 0.0  ;;  %v1382_v57 = vsel %vm12329_vm3, %v12328_v51, 0.0  ;;  %v1343_v26 = vrot.slane %v1342_v43, 2  ;;  %v12330_v42 = vrot.slane %v7213_v22, 2  ;;  %vm12422_vm2 = vmmov %vm12208_vm0 }
 0x133   : > { %v1362_v14 = vrot.slane %v1361_v23, 4  ;;  %v1369_v7 = vrot.slane %v1368_v37, 4  ;;  %v12332_v28 = vrot.slane %v7217_v54, 2  ;;  %v12335_v45 = vrot.slane %v12334_v8, 2  ;;  %vm12423_vm3 = vmmov %vm12208_vm0 }
 0x134   : > { %v1389_v38 = vsel %vm12331_vm6, %v12330_v42, 0.0  ;;  %v1376_v27 = vrot.slane %v1375_v30, 4  ;;  %v1383_v49 = vrot.slane %v1382_v57, 4  ;;  %v12338_v32 = vrot.slane %v12337_v60, 2  ;;  %vm12424_vm6 = vmmov %vm12208_vm0 }
 0x135   : > { %v1396_v59 = vsel %vm12333_vm5, %v12332_v28, 0.0  ;;  %v1403_v58 = vsel %vm12336_vm7, %v12335_v45, 0.0  ;;  %v12341_v52 = vrot.slane %v12340_v48, 2  ;;  %v1337_v1 = vadd.f32 %v1336_v9, %v1335_v11  ;;  %vm12425_vm5 = vmmov %vm12208_vm0 }
 0x136   : > { %v1410_v51 = vsel %vm12339_vm4, %v12338_v32, 0.0  ;;  %v1350_v12 = vrot.slane %v1349_v21, 2  ;;  %v1356_v22 = vadd.f32 %v1355_v29, %v1354_v61  ;;  %v1390_v54 = vrot.slane %v1389_v38, 4  ;;  %v12346_v32 = vld [vmem:[#allocation67_spill] sm:$0xff]  ;;  %vm12426_vm7 = vmmov %vm12208_vm0 }
 0x137   : > { %v1417_v42 = vsel %vm12342_vm8, %v12341_v52, 0.0  ;;  %v7462_v3 = vadd.f32 %v1324_v47, %v1323_v16  ;;  %v1397_v28 = vrot.slane %v1396_v59, 4  ;;  %v1404_v8 = vrot.slane %v1403_v58, 4  ;;  %v12349_v47 = vld [vmem:[#allocation68_spill] sm:$0xff]  ;;  %vm12427_vm4 = vmmov %vm12208_vm0 }
 0x138   : > { %v12344_v45 = vrot.slane %v12343_v44, 2  ;;  %v1344_v13 = vadd.f32 %v1343_v26, %v1342_v43  ;;  %v1411_v60 = vrot.slane %v1410_v51, 4  ;;  %v1418_v20 = vrot.slane %v1417_v42, 4  ;;  %vm12428_vm8 = vmmov %vm12208_vm0 }
 0x139   : > { %v12347_v31 = vrot.slane %v12346_v32, 2  ;;  %v1363_v52 = vadd.f32 %v1362_v14, %v1361_v23  ;;  %v1370_v11 = vadd.f32 %v1369_v7, %v1368_v37  ;;  %v1377_v9 = vadd.f32 %v1376_v27, %v1375_v30 }
 0x13a   : > { %v1424_v56 = vsel %vm12345_vm9, %v12344_v45, 0.0  ;;  %v1384_v61 = vadd.f32 %v1383_v49, %v1382_v57  ;;  %v1391_v29 = vadd.f32 %v1390_v54, %v1389_v38  ;;  %v12350_v0 = vrot.slane %v12349_v47, 2  ;;  %vm12429_vm9 = vmmov %vm12208_vm0 }
 0x13b   : > { %v1431_v48 = vsel %vm12348_vm11, %v12347_v31, 0.0  ;;  %v1425_v16 = vrot.slane %v1424_v56, 4  ;;  %v12352_v44 = vrot.slane %v7249_v4, 2  ;;  %v7476_v26 = vadd.f32 %v1331_v19, %v1330_v36  ;;  %vm12430_vm11 = vmmov %vm12208_vm0 }
 0x13c   : > { %v1438_v34 = vsel %vm12351_vm12, %v12350_v0, 0.0  ;;  %v1398_v45 = vadd.f32 %v1397_v28, %v1396_v59  ;;  %v1405_v32 = vadd.f32 %v1404_v8, %v1403_v58  ;;  %v1432_v2 = vrot.slane %v1431_v48, 4  ;;  %vm12431_vm12 = vmmov %vm12208_vm0 }
 0x13d   : > { %v1445_v43 = vsel %vm12353_vm10, %v12352_v44, 0.0  ;;  %12354 = vst [vmem:[#allocation72_spill] sm:$0xff] %v7476_v26  ;;  %v1338_v31 = vrot.slane %v1337_v1, 1  ;;  %v1357_v23 = vrot.slane %v1356_v22, 2  ;;  %v1412_v37 = vadd.f32 %v1411_v60, %v1410_v51  ;;  %vm12432_vm10 = vmmov %vm12208_vm0 }
 0x13e   : > { %v1419_v30 = vadd.f32 %v1418_v20, %v1417_v42  ;;  %v1364_v57 = vrot.slane %v1363_v52, 2  ;;  %v1371_v54 = vrot.slane %v1370_v11, 2  ;;  %v1439_v38 = vrot.slane %v1438_v34, 4 }
 0x13f   : > { %v1446_v14 = vrot.slane %v1445_v43, 4  ;;  %v1378_v7 = vrot.slane %v1377_v9, 2  ;;  %v1385_v27 = vrot.slane %v1384_v61, 2  ;;  %v1392_v0 = vrot.slane %v1391_v29, 2 }
 0x140   : > { %v1426_v49 = vadd.f32 %v1425_v16, %v1424_v56  ;;  %v1351_v4 = vadd.f32 %v1350_v12, %v1349_v21  ;;  %v1399_v47 = vrot.slane %v1398_v45, 2  ;;  %v1406_v44 = vrot.slane %v1405_v32, 2 }
 0x141   : > { %v1433_v36 = vadd.f32 %v1432_v2, %v1431_v48  ;;  %v1345_v19 = vrot.slane %v1344_v13, 1  ;;  %v1358_v59 = vadd.f32 %v1357_v23, %v1356_v22  ;;  %v1413_v8 = vrot.slane %v1412_v37, 2 }
 0x142   : > { %v1420_v58 = vrot.slane %v1419_v30, 2  ;;  %v1365_v28 = vadd.f32 %v1364_v57, %v1363_v52  ;;  %v1372_v53 = vadd.f32 %v1371_v54, %v1370_v11  ;;  %v1440_v60 = vadd.f32 %v1439_v38, %v1438_v34 }
 0x143   : > { %v1447_v20 = vadd.f32 %v1446_v14, %v1445_v43  ;;  %v1379_v51 = vadd.f32 %v1378_v7, %v1377_v9  ;;  %v1386_v42 = vadd.f32 %v1385_v27, %v1384_v61  ;;  %v1393_v33 = vadd.f32 %v1392_v0, %v1391_v29 }
 0x144   : > { %v1427_v39 = vrot.slane %v1426_v49, 2  ;;  %v1339_v18 = vadd.f32 %v1338_v31, %v1337_v1  ;;  %v1400_v41 = vadd.f32 %v1399_v47, %v1398_v45  ;;  %v1407_v17 = vadd.f32 %v1406_v44, %v1405_v32 }
 0x145   : > { %v1434_v56 = vrot.slane %v1433_v36, 2  ;;  %v1352_v12 = vrot.slane %v1351_v4, 1  ;;  %v1359_v21 = vrot.slane %v1358_v59, 1  ;;  %v1414_v16 = vadd.f32 %v1413_v8, %v1412_v37 }
 0x146   : > { %v1421_v2 = vadd.f32 %v1420_v58, %v1419_v30  ;;  %v1366_v48 = vrot.slane %v1365_v28, 1  ;;  %v1373_v22 = vrot.slane %v1372_v53, 1  ;;  %v1441_v23 = vrot.slane %v1440_v60, 2 }
 0x147   : > { %v1448_v26 = vrot.slane %v1447_v20, 2  ;;  %v1380_v52 = vrot.slane %v1379_v51, 1  ;;  %v1387_v11 = vrot.slane %v1386_v42, 1  ;;  %v1394_v34 = vrot.slane %v1393_v33, 1 }
 0x148   : > { %v1428_v43 = vadd.f32 %v1427_v39, %v1426_v49  ;;  %v1346_v9 = vadd.f32 %v1345_v19, %v1344_v13  ;;  %v1401_v61 = vrot.slane %v1400_v41, 1  ;;  %v1408_v29 = vrot.slane %v1407_v17, 1 }
 0x149   : > { %v1435_v57 = vadd.f32 %v1434_v56, %v1433_v36  ;;  %v1353_v1 = vadd.f32 %v1352_v12, %v1351_v4  ;;  %v1360_v47 = vadd.f32 %v1359_v21, %v1358_v59  ;;  %v1415_v32 = vrot.slane %v1414_v16, 1 }
 0x14a   : > { %v1422_v45 = vrot.slane %v1421_v2, 1  ;;  %v1367_v31 = vadd.f32 %v1366_v48, %v1365_v28  ;;  %v1374_v54 = vadd.f32 %v1373_v22, %v1372_v53  ;;  %v1442_v37 = vadd.f32 %v1441_v23, %v1440_v60 }
 0x14b   : > { %v1449_v30 = vadd.f32 %v1448_v26, %v1447_v20  ;;  %v1381_v38 = vadd.f32 %v1380_v52, %v1379_v51  ;;  %v1388_v14 = vadd.f32 %v1387_v11, %v1386_v42  ;;  %v1395_v7 = vadd.f32 %v1394_v34, %v1393_v33  ;;  %v12355_v20 = vld [vmem:[#allocation72_spill] sm:$0xff]  ;;  %v12356_v11 = vld [vmem:[#allocation38_spill] sm:$0xff] }
 0x14c   : > { %v1429_v27 = vrot.slane %v1428_v43, 1  ;;  %v1402_v0 = vadd.f32 %v1401_v61, %v1400_v41  ;;  %v1409_v44 = vadd.f32 %v1408_v29, %v1407_v17  ;;  %v1436_v8 = vrot.slane %v1435_v57, 1  ;;  %v12360_v29 = vld [vmem:[#allocation41_spill] sm:$0xff] }
 0x14d   : > { %v1452_v39 = vmul.f32 0.5, %v7299_v5  ;;  %v1416_v13 = vadd.f32 %v1415_v32, %v1414_v16  ;;  %v1423_v49 = vadd.f32 %v1422_v45, %v1421_v2  ;;  %v1453_v4 = vmul.f32 0.5, %v7304_v35  ;;  %v12364_v32 = vld [vmem:[#allocation43_spill] sm:$0xff] }
 0x14e   : > { %v1454_v36 = vmul.f32 0.5, %v7310_v50  ;;  %v1443_v19 = vrot.slane %v1442_v37, 1  ;;  %v1450_v59 = vrot.slane %v1449_v30, 1  ;;  %v1455_v53 = vmul.f32 0.5, %v7332_v25 }
 0x14f   : > { %v1456_v26 = vmul.f32 0.5, %v7375_v62  ;;  %v1430_v58 = vadd.f32 %v1429_v27, %v1428_v43  ;;  %v1457_v33 = vmul.f32 0.5, %v7386_v24  ;;  %v1458_v17 = vmul.f32 0.5, %v7394_v63 }
 0x150   : > { %v1459_v41 = vmul.f32 0.5, %v7411_v10  ;;  %v1437_v5 = vadd.f32 %v1436_v8, %v1435_v57  ;;  %v1460_v28 = vmul.f32 0.5, %v7419_v6  ;;  %v1461_v35 = vmul.f32 0.5, %v7427_v55  ;;  %v12376_v8 = vld [vmem:[#allocation49_spill] sm:$0xff] }
 0x151   : > { %v1462_v50 = vmul.f32 0.5, %v7429_v15  ;;  %v1463_v60 = vmul.f32 0.5, %v7431_v46  ;;  %v1464_v25 = vmul.f32 0.5, %v7439_v40  ;;  %v1465_v62 = vmul.f32 0.5, %v7462_v3 }
 0x152   : > { %v1466_v51 = vmul.f32 0.5, %v12355_v20  ;;  %v1444_v24 = vadd.f32 %v1443_v19, %v1442_v37  ;;  %v1451_v42 = vadd.f32 %v1450_v59, %v1449_v30  ;;  %v1467_v63 = vmul.f32 0.5, %v1339_v18  ;;  %v12357_v18 = vld [vmem:[#allocation39_spill] sm:$0xff]  ;;  %v12368_v37 = vld [vmem:[#allocation45_spill] sm:$0xff]  ;;  %v12382_v19 = vld [vmem:[#allocation52_spill] sm:$0xff] }
 0x153   : > { %v1468_v56 = vmul.f32 0.5, %v1346_v9  ;;  %v1469_v10 = vmul.f32 0.5, %v1353_v1  ;;  %v1470_v12 = vmul.f32 0.5, %v1360_v47  ;;  %v1471_v21 = vmul.f32 0.5, %v1367_v31  ;;  %v12358_v9 = vld [vmem:[#allocation40_spill] sm:$0xff]  ;;  %v12362_v1 = vld [vmem:[#allocation42_spill] sm:$0xff] }
 0x154   : > { %v1472_v6 = vmul.f32 0.5, %v1374_v54  ;;  %v1473_v16 = vmul.f32 0.5, %v1381_v38  ;;  %v1474_v55 = vmul.f32 0.5, %v1388_v14  ;;  %v1475_v2 = vmul.f32 0.5, %v1395_v7  ;;  %v12366_v31 = vld [vmem:[#allocation44_spill] sm:$0xff]  ;;  %v12370_v38 = vld [vmem:[#allocation46_spill] sm:$0xff] }
 0x155   : > { %v1476_v15 = vmul.f32 0.5, %v1402_v0  ;;  %v1477_v48 = vmul.f32 0.5, %v1409_v44  ;;  %v1478_v46 = vmul.f32 0.5, %v1416_v13  ;;  %v1479_v22 = vmul.f32 0.5, %v1423_v49  ;;  %v12372_v7 = vld [vmem:[#allocation47_spill] sm:$0xff]  ;;  %v12374_v0 = vld [vmem:[#allocation48_spill] sm:$0xff] }
 0x156   : > { %v1480_v40 = vmul.f32 0.5, %v1430_v58  ;;  %v1481_v23 = vmul.f32 0.5, %v1437_v5  ;;  %v1482_v3 = vmul.f32 0.5, %v1444_v24  ;;  %v1483_v52 = vmul.f32 0.5, %v1451_v42  ;;  %v12378_v13 = vld [vmem:[#allocation50_spill] sm:$0xff]  ;;  %v12390_v5 = vld [vmem:[#allocation56_spill] sm:$0xff] }
 0x157   : > { %v7494_v34 = vsub.f32 %v12356_v11, %v1452_v39  ;;  %v7497_v43 = vsub.f32 %v12357_v18, %v1453_v4  ;;  %v7500_v61 = vsub.f32 %v12358_v9, %v1454_v36  ;;  %v7503_v57 = vsub.f32 %v12360_v29, %v1455_v53  ;;  %v12380_v4 = vld [vmem:[#allocation51_spill] sm:$0xff]  ;;  %v12384_v53 = vld [vmem:[#allocation53_spill] sm:$0xff]  ;;  %v12386_v58 = vld [vmem:[#allocation54_spill] sm:$0xff] }
 0x158   : > { %v7506_v47 = vsub.f32 %v12362_v1, %v1456_v26  ;;  %v7509_v45 = vsub.f32 %v12364_v32, %v1457_v33  ;;  %v7512_v54 = vsub.f32 %v12366_v31, %v1458_v17  ;;  %v7515_v30 = vsub.f32 %v12368_v37, %v1459_v41  ;;  %v12388_v17 = vld [vmem:[#allocation55_spill] sm:$0xff]  ;;  %v12400_v42 = vld [vmem:[#allocation61_spill] sm:$0xff] }
 0x159   : > { %12359 = vst [vmem:[#allocation72_spill] sm:$0xff] %v7500_v61  ;;  %12361 = vst [vmem:[#allocation38_spill] sm:$0xff] %v7503_v57  ;;  %v7518_v14 = vsub.f32 %v12370_v38, %v1460_v28  ;;  %v7521_v27 = vsub.f32 %v12372_v7, %v1461_v35  ;;  %v7524_v44 = vsub.f32 %v12374_v0, %v1462_v50  ;;  %v12392_v35 = vld [vmem:[#allocation57_spill] sm:$0xff] }
 0x15a   : > { %12363 = vst [vmem:[#allocation39_spill] sm:$0xff] %v7506_v47  ;;  %12365 = vst [vmem:[#allocation40_spill] sm:$0xff] %v7509_v45  ;;  %v7527_v39 = vsub.f32 %v12376_v8, %v1463_v60  ;;  %v7530_v49 = vsub.f32 %v12378_v13, %v1464_v25  ;;  %v7533_v36 = vsub.f32 %v12380_v4, %v1465_v62  ;;  %v12394_v60 = vld [vmem:[#allocation58_spill] sm:$0xff]  ;;  %v12396_v62 = vld [vmem:[#allocation59_spill] sm:$0xff] }
 0x15b   : > { %12367 = vst [vmem:[#allocation41_spill] sm:$0xff] %v7512_v54  ;;  %12369 = vst [vmem:[#allocation42_spill] sm:$0xff] %v7515_v30  ;;  %v7536_v59 = vsub.f32 %v12382_v19, %v1466_v51  ;;  %v7539_v26 = vsub.f32 %v12384_v53, %v1467_v63  ;;  %v7542_v33 = vsub.f32 %v12386_v58, %v1468_v56  ;;  %v12398_v51 = vld [vmem:[#allocation60_spill] sm:$0xff]  ;;  %v12402_v56 = vld [vmem:[#allocation62_spill] sm:$0xff] }
 0x15c   : > { %12371 = vst [vmem:[#allocation43_spill] sm:$0xff] %v7518_v14  ;;  %12373 = vst [vmem:[#allocation44_spill] sm:$0xff] %v7521_v27  ;;  %v7545_v41 = vsub.f32 %v12388_v17, %v1469_v10  ;;  %v7548_v28 = vsub.f32 %v12390_v5, %v1470_v12  ;;  %v7551_v50 = vsub.f32 %v12392_v35, %v1471_v21  ;;  %v12404_v12 = vld [vmem:[#allocation63_spill] sm:$0xff]  ;;  %v12406_v21 = vld [vmem:[#allocation64_spill] sm:$0xff] }
 0x15d   : > { %12375 = vst [vmem:[#allocation45_spill] sm:$0xff] %v7524_v44  ;;  %12377 = vst [vmem:[#allocation46_spill] sm:$0xff] %v7527_v39  ;;  %v7554_v25 = vsub.f32 %v12394_v60, %v1472_v6  ;;  %v7557_v20 = vsub.f32 %v12396_v62, %v1473_v16  ;;  %v7560_v24 = vsub.f32 %v12398_v51, %v1474_v55  ;;  %v12408_v6 = vld [vmem:[#allocation65_spill] sm:$0xff]  ;;  %v12410_v16 = vld [vmem:[#allocation66_spill] sm:$0xff] }
 0x15e   : > { %12379 = vst [vmem:[#allocation47_spill] sm:$0xff] %v7530_v49  ;;  %12381 = vst [vmem:[#allocation48_spill] sm:$0xff] %v7533_v36  ;;  %v7563_v63 = vsub.f32 %v12400_v42, %v1475_v2  ;;  %v7566_v10 = vsub.f32 %v12402_v56, %v1476_v15  ;;  %v7569_v11 = vsub.f32 %v12404_v12, %v1477_v48  ;;  %v12412_v55 = vld [vmem:[#allocation67_spill] sm:$0xff]  ;;  %v12414_v2 = vld [vmem:[#allocation68_spill] sm:$0xff] }
 0x15f   : > { %12383 = vst [vmem:[#allocation49_spill] sm:$0xff] %v7536_v59  ;;  %12385 = vst [vmem:[#allocation50_spill] sm:$0xff] %v7539_v26  ;;  %v7572_v18 = vsub.f32 %v12406_v21, %v1478_v46  ;;  %v7575_v9 = vsub.f32 %v12408_v6, %v1479_v22  ;;  %v7578_v29 = vsub.f32 %v12410_v16, %v1480_v40  ;;  %v12416_v15 = vld [vmem:[#allocation69_spill] sm:$0xff] }
 0x160   : > { %12387 = vst [vmem:[#allocation51_spill] sm:$0xff] %v7542_v33  ;;  %12389 = vst [vmem:[#allocation52_spill] sm:$0xff] %v7545_v41  ;;  %v7581_v1 = vsub.f32 %v12412_v55, %v1481_v23  ;;  %v7584_v32 = vsub.f32 %v12414_v2, %v1482_v3  ;;  %v7587_v31 = vsub.f32 %v12416_v15, %v1483_v52 }
 0x161   : > { %12391 = vst [vmem:[#allocation53_spill] sm:$0xff] %v7548_v28  ;;  %12393 = vst [vmem:[#allocation54_spill] sm:$0xff] %v7551_v50  ;;  %v1516_v48 = vmul.f32 %v7494_v34, %v7494_v34  ;;  %v1517_v46 = vmul.f32 %v7497_v43, %v7497_v43  ;;  %v1518_v22 = vmul.f32 %v7500_v61, %v7500_v61 }
 0x162   : > { %12395 = vst [vmem:[#allocation55_spill] sm:$0xff] %v7554_v25  ;;  %12397 = vst [vmem:[#allocation56_spill] sm:$0xff] %v7557_v20  ;;  %v1519_v40 = vmul.f32 %v7503_v57, %v7503_v57  ;;  %v1520_v23 = vmul.f32 %v7506_v47, %v7506_v47  ;;  %v7601_v3 = vmul.f32 %v7509_v45, %v7509_v45 }
 0x163   : > { %12399 = vst [vmem:[#allocation57_spill] sm:$0xff] %v7560_v24  ;;  %12401 = vst [vmem:[#allocation58_spill] sm:$0xff] %v7563_v63  ;;  %v7605_v52 = vmul.f32 %v7512_v54, %v7512_v54  ;;  %v7609_v37 = vmul.f32 %v7515_v30, %v7515_v30  ;;  %v7613_v38 = vmul.f32 %v7518_v14, %v7518_v14  ;;  %v1580_v6 = vrot.slane %v1516_v48, 2 }
 0x164   : > { %12403 = vst [vmem:[#allocation59_spill] sm:$0xff] %v7566_v10  ;;  %12405 = vst [vmem:[#allocation60_spill] sm:$0xff] %v7569_v11  ;;  %v7617_v7 = vmul.f32 %v7521_v27, %v7521_v27  ;;  %v7621_v0 = vmul.f32 %v7524_v44, %v7524_v44  ;;  %v7625_v8 = vmul.f32 %v7527_v39, %v7527_v39  ;;  %v1581_v16 = vrot.slane %v1517_v46, 2 }
 0x165   : > { %12407 = vst [vmem:[#allocation61_spill] sm:$0xff] %v7572_v18  ;;  %12409 = vst [vmem:[#allocation62_spill] sm:$0xff] %v7575_v9  ;;  %v7629_v13 = vmul.f32 %v7530_v49, %v7530_v49  ;;  %v7633_v4 = vmul.f32 %v7533_v36, %v7533_v36  ;;  %v7637_v19 = vmul.f32 %v7536_v59, %v7536_v59  ;;  %v1582_v15 = vrot.slane %v1518_v22, 2 }
 0x166   : > { %12411 = vst [vmem:[#allocation63_spill] sm:$0xff] %v7578_v29  ;;  %12413 = vst [vmem:[#allocation64_spill] sm:$0xff] %v7581_v1  ;;  %v7641_v53 = vmul.f32 %v7539_v26, %v7539_v26  ;;  %v7645_v58 = vmul.f32 %v7542_v33, %v7542_v33  ;;  %v7649_v17 = vmul.f32 %v7545_v41, %v7545_v41  ;;  %v1584_v46 = vrot.slane %v1520_v23, 2 }
 0x167   : > { %12415 = vst [vmem:[#allocation65_spill] sm:$0xff] %v7584_v32  ;;  %12417 = vst [vmem:[#allocation66_spill] sm:$0xff] %v7587_v31  ;;  %v7653_v5 = vmul.f32 %v7548_v28, %v7548_v28  ;;  %v7657_v35 = vmul.f32 %v7551_v50, %v7551_v50  ;;  %v7661_v60 = vmul.f32 %v7554_v25, %v7554_v25  ;;  %v1587_v22 = vrot.slane %v7609_v37, 2 }
 0x168   : > { %v7665_v62 = vmul.f32 %v7557_v20, %v7557_v20  ;;  %v7669_v51 = vmul.f32 %v7560_v24, %v7560_v24  ;;  %v7673_v42 = vmul.f32 %v7563_v63, %v7563_v63  ;;  %v7677_v56 = vmul.f32 %v7566_v10, %v7566_v10 }
 0x169   : > { %v7681_v12 = vmul.f32 %v7569_v11, %v7569_v11  ;;  %v7685_v21 = vmul.f32 %v7572_v18, %v7572_v18  ;;  %v7689_v55 = vmul.f32 %v7575_v9, %v7575_v9  ;;  %v7693_v2 = vmul.f32 %v7578_v29, %v7578_v29 }
 0x16a   : > { %v1583_v10 = vrot.slane %v1519_v40, 2  ;;  %v7697_v11 = vmul.f32 %v7581_v1, %v7581_v1  ;;  %v7701_v18 = vmul.f32 %v7584_v32, %v7584_v32  ;;  %v7705_v48 = vmul.f32 %v7587_v31, %v7587_v31 }
 0x16b   : > { %v1585_v9 = vrot.slane %v7601_v3, 2  ;;  %v1586_v29 = vrot.slane %v7605_v52, 2  ;;  %v1588_v40 = vrot.slane %v7613_v38, 2  ;;  %v1589_v1 = vrot.slane %v7617_v7, 2 }
 0x16c   : > { %v1590_v63 = vrot.slane %v7621_v0, 2  ;;  %v1644_v32 = vsel %vm12418_vm13, %v1580_v6, 0.0  ;;  %v1651_v24 = vsel %vm12419_vm15, %v1581_v16, 0.0  ;;  %v1591_v31 = vrot.slane %v7625_v8, 2  ;;  %vm12434_vm13 = vmmov %vm12208_vm0 }
 0x16d   : > { %v1592_v23 = vrot.slane %v7629_v13, 2  ;;  %v1658_v3 = vsel %vm12420_vm14, %v1582_v15, 0.0  ;;  %v1665_v52 = vsel %vm12208_vm0, %v1583_v10, 0.0  ;;  %v1593_v37 = vrot.slane %v7633_v4, 2  ;;  %vm12436_vm15 = vmmov %vm12208_vm0 }
 0x16e   : > { %v1594_v38 = vrot.slane %v7637_v19, 2  ;;  %v1595_v7 = vrot.slane %v7641_v53, 2  ;;  %v1645_v20 = vrot.slane %v1644_v32, 4  ;;  %v1652_v8 = vrot.slane %v1651_v24, 4  ;;  %vm12438_vm14 = vmmov %vm12208_vm0 }
 0x16f   : > { %v1659_v25 = vrot.slane %v1658_v3, 4  ;;  %v1666_v15 = vrot.slane %v1665_v52, 4  ;;  %v1672_v10 = vsel %vm12421_vm1, %v1584_v46, 0.0  ;;  %v1679_v50 = vsel %vm12422_vm2, %v1585_v9, 0.0  ;;  %vm12441_vm1 = vmmov %vm12208_vm0 }
 0x170   : > { %v1686_v13 = vsel %vm12423_vm3, %v1586_v29, 0.0  ;;  %v1646_v28 = vadd.f32 %v1645_v20, %v1644_v32  ;;  %v1653_v41 = vadd.f32 %v1652_v8, %v1651_v24  ;;  %v1673_v33 = vrot.slane %v1672_v10, 4  ;;  %vm12443_vm2 = vmmov %vm12208_vm0 }
 0x171   : > { %v1693_v46 = vsel %vm12424_vm6, %v1587_v22, 0.0  ;;  %v1660_v53 = vadd.f32 %v1659_v25, %v1658_v3  ;;  %v1667_v26 = vadd.f32 %v1666_v15, %v1665_v52  ;;  %v1680_v6 = vrot.slane %v1679_v50, 4  ;;  %vm12445_vm3 = vmmov %vm12208_vm0 }
 0x172   : > { %v1687_v59 = vrot.slane %v1686_v13, 4  ;;  %v1700_v16 = vsel %vm12425_vm5, %v1588_v40, 0.0  ;;  %v1694_v29 = vrot.slane %v1693_v46, 4  ;;  %v1647_v32 = vrot.slane %v1646_v28, 2  ;;  %vm12447_vm6 = vmmov %vm12208_vm0 }
 0x173   : > { %v1654_v22 = vrot.slane %v1653_v41, 2  ;;  %v1674_v8 = vadd.f32 %v1673_v33, %v1672_v10  ;;  %v1707_v19 = vsel %vm12426_vm7, %v1589_v1, 0.0  ;;  %v1661_v25 = vrot.slane %v1660_v53, 2  ;;  %vm12449_vm5 = vmmov %vm12208_vm0 }
 0x174   : > { %v1668_v3 = vrot.slane %v1667_v26, 2  ;;  %v1701_v52 = vrot.slane %v1700_v16, 4  ;;  %v1714_v15 = vsel %vm12427_vm4, %v1590_v63, 0.0  ;;  %v1681_v0 = vadd.f32 %v1680_v6, %v1679_v50  ;;  %vm12451_vm7 = vmmov %vm12208_vm0 }
 0x175   : > { %v1688_v4 = vadd.f32 %v1687_v59, %v1686_v13  ;;  %v1721_v40 = vsel %vm12428_vm8, %v1591_v31, 0.0  ;;  %v1728_v9 = vsel %vm12429_vm9, %v1592_v23, 0.0  ;;  %v1695_v20 = vadd.f32 %v1694_v29, %v1693_v46  ;;  %vm12453_vm4 = vmmov %vm12208_vm0 }
 0x176   : > { %v1708_v36 = vrot.slane %v1707_v19, 4  ;;  %v1735_v24 = vsel %vm12430_vm11, %v1593_v37, 0.0  ;;  %v1742_v49 = vsel %vm12431_vm12, %v1594_v38, 0.0  ;;  %v1648_v33 = vadd.f32 %v1647_v32, %v1646_v28  ;;  %vm12455_vm8 = vmmov %vm12208_vm0 }
 0x177   : > { %v1675_v10 = vrot.slane %v1674_v8, 2  ;;  %v1715_v1 = vrot.slane %v1714_v15, 4  ;;  %v1749_v39 = vsel %vm12432_vm10, %v1595_v7, 0.0  ;;  %v1655_v44 = vadd.f32 %v1654_v22, %v1653_v41  ;;  %vm12457_vm9 = vmmov %vm12208_vm0 }
 0x178   : > { %v1702_v27 = vadd.f32 %v1701_v52, %v1700_v16  ;;  %v1722_v63 = vrot.slane %v1721_v40, 4  ;;  %v1729_v50 = vrot.slane %v1728_v9, 4  ;;  %v1662_v59 = vadd.f32 %v1661_v25, %v1660_v53  ;;  %vm12459_vm11 = vmmov %vm12208_vm0 }
 0x179   : > { %v1669_v6 = vadd.f32 %v1668_v3, %v1667_v26  ;;  %v1736_v31 = vrot.slane %v1735_v24, 4  ;;  %v1743_v13 = vrot.slane %v1742_v49, 4  ;;  %v1682_v23 = vrot.slane %v1681_v0, 2  ;;  %vm12461_vm12 = vmmov %vm12208_vm0 }
 0x17a   : > { %v1689_v46 = vrot.slane %v1688_v4, 2  ;;  %v1709_v29 = vadd.f32 %v1708_v36, %v1707_v19  ;;  %v1750_v14 = vrot.slane %v1749_v39, 4  ;;  %v1649_v37 = vrot.slane %v1648_v33, 1  ;;  %vm12463_vm10 = vmmov %vm12208_vm0 }
 0x17b   : > { %v1676_v30 = vadd.f32 %v1675_v10, %v1674_v8  ;;  %v1696_v38 = vrot.slane %v1695_v20, 2  ;;  %v1716_v28 = vadd.f32 %v1715_v1, %v1714_v15  ;;  %v1656_v32 = vrot.slane %v1655_v44, 1 }
 0x17c   : > { %v1703_v54 = vrot.slane %v1702_v27, 2  ;;  %v1723_v45 = vadd.f32 %v1722_v63, %v1721_v40  ;;  %v1730_v7 = vadd.f32 %v1729_v50, %v1728_v9  ;;  %v1663_v41 = vrot.slane %v1662_v59, 1 }
 0x17d   : > { %v1670_v16 = vrot.slane %v1669_v6, 1  ;;  %v1737_v22 = vadd.f32 %v1736_v31, %v1735_v24  ;;  %v1744_v52 = vadd.f32 %v1743_v13, %v1742_v49  ;;  %v1683_v53 = vadd.f32 %v1682_v23, %v1681_v0 }
 0x17e   : > { %v1690_v26 = vadd.f32 %v1689_v46, %v1688_v4  ;;  %v1710_v25 = vrot.slane %v1709_v29, 2  ;;  %v1751_v3 = vadd.f32 %v1750_v14, %v1749_v39  ;;  %v7750_v47 = vadd.f32 %v1649_v37, %v1648_v33 }
 0x17f   : > { %v1677_v36 = vrot.slane %v1676_v30, 1  ;;  %v1697_v19 = vadd.f32 %v1696_v38, %v1695_v20  ;;  %v1717_v57 = vrot.slane %v1716_v28, 2  ;;  %v7752_v8 = vadd.f32 %v1656_v32, %v1655_v44 }
 0x180   : > { %v1704_v15 = vadd.f32 %v1703_v54, %v1702_v27  ;;  %v1724_v10 = vrot.slane %v1723_v45, 2  ;;  %v1731_v1 = vrot.slane %v1730_v7, 2  ;;  %v7754_v40 = vadd.f32 %v1663_v41, %v1662_v59 }
 0x181   : > { %v7756_v9 = vadd.f32 %v1670_v16, %v1669_v6  ;;  %v1738_v24 = vrot.slane %v1737_v22, 2  ;;  %v1745_v49 = vrot.slane %v1744_v52, 2  ;;  %v1684_v0 = vrot.slane %v1683_v53, 1 }
 0x182   : > { %v1691_v4 = vrot.slane %v1690_v26, 1  ;;  %v1711_v63 = vadd.f32 %v1710_v25, %v1709_v29  ;;  %v1752_v14 = vrot.slane %v1751_v3, 2  ;;  %v7758_v39 = vadd.f32 %v1677_v36, %v1676_v30 }
 0x183   : > { %v1698_v33 = vrot.slane %v1697_v19, 1  ;;  %v1718_v20 = vadd.f32 %v1717_v57, %v1716_v28  ;;  %v12433_v44 = vrot.slane %v7645_v58, 2  ;;  %v1705_v27 = vrot.slane %v1704_v15, 1 }
 0x184   : > { %v1725_v50 = vadd.f32 %v1724_v10, %v1723_v45  ;;  %v1732_v59 = vadd.f32 %v1731_v1, %v1730_v7  ;;  %v12435_v6 = vrot.slane %v7649_v17, 2  ;;  %v1739_v13 = vadd.f32 %v1738_v24, %v1737_v22 }
 0x185   : > { %v1756_v54 = vsel %vm12434_vm13, %v12433_v44, 0.0  ;;  %v1746_v23 = vadd.f32 %v1745_v49, %v1744_v52  ;;  %v12437_v46 = vrot.slane %v7653_v5, 2  ;;  %v12439_v29 = vrot.slane %v7657_v35, 2 }
 0x186   : > { %v1763_v31 = vsel %vm12436_vm15, %v12435_v6, 0.0  ;;  %v7772_v58 = vadd.f32 %v1684_v0, %v1683_v53  ;;  %v1712_v37 = vrot.slane %v1711_v63, 1  ;;  %v1753_v38 = vadd.f32 %v1752_v14, %v1751_v3 }
 0x187   : > { %v1770_v30 = vsel %vm12438_vm14, %v12437_v46, 0.0  ;;  %v1777_v57 = vsel %vm12208_vm0, %v12439_v29, 0.0  ;;  %v1757_v45 = vrot.slane %v1756_v54, 4  ;;  %v7774_v28 = vadd.f32 %v1691_v4, %v1690_v26 }
 0x188   : > { %v7776_v17 = vadd.f32 %v1698_v33, %v1697_v19  ;;  %v1719_v32 = vrot.slane %v1718_v20, 1  ;;  %v1764_v7 = vrot.slane %v1763_v31, 4  ;;  %v7778_v41 = vadd.f32 %v1705_v27, %v1704_v15 }
 0x189   : > { %v1726_v5 = vrot.slane %v1725_v50, 1  ;;  %v1771_v16 = vrot.slane %v1770_v30, 4  ;;  %v1778_v22 = vrot.slane %v1777_v57, 4  ;;  %v1733_v52 = vrot.slane %v1732_v59, 1 }
 0x18a   : > { %v1740_v35 = vrot.slane %v1739_v13, 1  ;;  %v1747_v25 = vrot.slane %v1746_v23, 1  ;;  %v12440_v53 = vrot.slane %v7661_v60, 2  ;;  %v7783_v3 = vadd.f32 %v1712_v37, %v1711_v63 }
 0x18b   : > { %v1754_v26 = vrot.slane %v1753_v38, 1  ;;  %v1758_v10 = vadd.f32 %v1757_v45, %v1756_v54  ;;  %v12442_v19 = vrot.slane %v7665_v62, 2  ;;  %v7788_v15 = vadd.f32 %v1719_v32, %v1718_v20 }
 0x18c   : > { %v1784_v36 = vsel %vm12441_vm1, %v12440_v53, 0.0  ;;  %v1765_v24 = vadd.f32 %v1764_v7, %v1763_v31  ;;  %v12444_v49 = vrot.slane %v7669_v51, 2  ;;  %v12446_v4 = vrot.slane %v7673_v42, 2 }
 0x18d   : > { %v1791_v1 = vsel %vm12443_vm2, %v12442_v19, 0.0  ;;  %v7796_v14 = vadd.f32 %v1726_v5, %v1725_v50  ;;  %v1772_v63 = vadd.f32 %v1771_v16, %v1770_v30  ;;  %v1779_v33 = vadd.f32 %v1778_v22, %v1777_v57 }
 0x18e   : > { %v1798_v0 = vsel %vm12445_vm3, %v12444_v49, 0.0  ;;  %v1805_v60 = vsel %vm12447_vm6, %v12446_v4, 0.0  ;;  %v1785_v44 = vrot.slane %v1784_v36, 4  ;;  %v7798_v54 = vadd.f32 %v1733_v52, %v1732_v59 }
 0x18f   : > { %v7800_v62 = vadd.f32 %v1740_v35, %v1739_v13  ;;  %v7802_v20 = vadd.f32 %v1747_v25, %v1746_v23  ;;  %v1792_v27 = vrot.slane %v1791_v1, 4  ;;  %v7804_v6 = vadd.f32 %v1754_v26, %v1753_v38 }
 0x190   : > { %v1759_v51 = vrot.slane %v1758_v10, 2  ;;  %v1799_v31 = vrot.slane %v1798_v0, 4  ;;  %v1806_v46 = vrot.slane %v1805_v60, 4  ;;  %v1766_v42 = vrot.slane %v1765_v24, 2 }
 0x191   : > { %v12448_v29 = vrot.slane %v7677_v56, 2  ;;  %v12450_v30 = vrot.slane %v7681_v12, 2  ;;  %v12452_v13 = vrot.slane %v7685_v21, 2  ;;  %v1773_v57 = vrot.slane %v1772_v63, 2 }
 0x192   : > { %v1780_v37 = vrot.slane %v1779_v33, 2  ;;  %v1786_v38 = vadd.f32 %v1785_v44, %v1784_v36  ;;  %v12454_v45 = vrot.slane %v7689_v55, 2  ;;  %v1793_v7 = vadd.f32 %v1792_v27, %v1791_v1 }
 0x193   : > { %v1812_v50 = vsel %vm12449_vm5, %v12448_v29, 0.0  ;;  %v1819_v59 = vsel %vm12451_vm7, %v12450_v30, 0.0  ;;  %v1826_v23 = vsel %vm12453_vm4, %v12452_v13, 0.0  ;;  %v12456_v56 = vrot.slane %v7693_v2, 2 }
 0x194   : > { %v1833_v32 = vsel %vm12455_vm8, %v12454_v45, 0.0  ;;  %v12458_v12 = vrot.slane %v7697_v11, 2  ;;  %v12460_v21 = vrot.slane %v7701_v18, 2  ;;  %v1813_v52 = vrot.slane %v1812_v50, 4 }
 0x195   : > { %v1840_v5 = vsel %vm12457_vm9, %v12456_v56, 0.0  ;;  %v1820_v35 = vrot.slane %v1819_v59, 4  ;;  %v1827_v25 = vrot.slane %v1826_v23, 4  ;;  %v12462_v55 = vrot.slane %v7705_v48, 2 }
 0x196   : > { %v1847_v16 = vsel %vm12459_vm11, %v12458_v12, 0.0  ;;  %v1854_v22 = vsel %vm12461_vm12, %v12460_v21, 0.0  ;;  %v1760_v36 = vadd.f32 %v1759_v51, %v1758_v10  ;;  %v1800_v26 = vadd.f32 %v1799_v31, %v1798_v0 }
 0x197   : > { %v1861_v53 = vsel %vm12463_vm10, %v12462_v55, 0.0  ;;  %v1807_v2 = vadd.f32 %v1806_v46, %v1805_v60  ;;  %v1834_v19 = vrot.slane %v1833_v32, 4  ;;  %v1767_v1 = vadd.f32 %v1766_v42, %v1765_v24 }
 0x198   : > { %v1841_v49 = vrot.slane %v1840_v5, 4  ;;  %v1848_v11 = vrot.slane %v1847_v16, 4  ;;  %v1855_v4 = vrot.slane %v1854_v22, 4  ;;  %v1774_v44 = vadd.f32 %v1773_v57, %v1772_v63 }
 0x199   : > { %v1781_v27 = vadd.f32 %v1780_v37, %v1779_v33  ;;  %v1787_v18 = vrot.slane %v1786_v38, 2  ;;  %v1862_v29 = vrot.slane %v1861_v53, 4  ;;  %v1794_v30 = vrot.slane %v1793_v7, 2 }
 0x19a   : > { %v1814_v13 = vadd.f32 %v1813_v52, %v1812_v50  ;;  %v1821_v45 = vadd.f32 %v1820_v35, %v1819_v59  ;;  %v1828_v56 = vadd.f32 %v1827_v25, %v1826_v23  ;;  %v1761_v12 = vrot.slane %v1760_v36, 1 }
 0x19b   : > { %v1801_v48 = vrot.slane %v1800_v26, 2  ;;  %v1808_v21 = vrot.slane %v1807_v2, 2  ;;  %v1835_v55 = vadd.f32 %v1834_v19, %v1833_v32  ;;  %v1768_v10 = vrot.slane %v1767_v1, 1 }
 0x19c   : > { %v1842_v0 = vadd.f32 %v1841_v49, %v1840_v5  ;;  %v1849_v60 = vadd.f32 %v1848_v11, %v1847_v16  ;;  %v1856_v51 = vadd.f32 %v1855_v4, %v1854_v22  ;;  %v1775_v24 = vrot.slane %v1774_v44, 1 }
 0x19d   : > { %v1782_v31 = vrot.slane %v1781_v27, 1  ;;  %v1788_v46 = vadd.f32 %v1787_v18, %v1786_v38  ;;  %v1863_v42 = vadd.f32 %v1862_v29, %v1861_v53  ;;  %v1795_v63 = vadd.f32 %v1794_v30, %v1793_v7 }
 0x19e   : > { %v1815_v33 = vrot.slane %v1814_v13, 2  ;;  %v1822_v57 = vrot.slane %v1821_v45, 2  ;;  %v1829_v37 = vrot.slane %v1828_v56, 2  ;;  %v7830_v61 = vadd.f32 %v1761_v12, %v1760_v36 }
 0x19f   : > { %v1802_v50 = vadd.f32 %v1801_v48, %v1800_v26  ;;  %v1809_v59 = vadd.f32 %v1808_v21, %v1807_v2  ;;  %v1836_v23 = vrot.slane %v1835_v55, 2  ;;  %v1843_v52 = vrot.slane %v1842_v0, 2 }
 0x1a0   : > { %v1850_v35 = vrot.slane %v1849_v60, 2  ;;  %v1857_v32 = vrot.slane %v1856_v51, 2  ;;  %5239 = vrsqrt.f32 %v7750_v47  ;;  %v7833_v5 = vadd.f32 %v1768_v10, %v1767_v1 }
 0x1a1   : > { %v7835_v16 = vadd.f32 %v1775_v24, %v1774_v44  ;;  %v1864_v38 = vrot.slane %v1863_v42, 2  ;;  %5241 = vrsqrt.f32 %v7752_v8  ;;  %v1816_v7 = vadd.f32 %v1815_v33, %v1814_v13 }
 0x1a2   : > { %v1823_v22 = vadd.f32 %v1822_v57, %v1821_v45  ;;  %v1830_v25 = vadd.f32 %v1829_v37, %v1828_v56  ;;  %5243 = vrsqrt.f32 %v7754_v40  ;;  %v1789_v53 = vrot.slane %v1788_v46, 1 }
 0x1a3   : > { %v1796_v36 = vrot.slane %v1795_v63, 1  ;;  %v1837_v26 = vadd.f32 %v1836_v23, %v1835_v55  ;;  %5245 = vrsqrt.f32 %v7756_v9  ;;  %v1844_v2 = vadd.f32 %v1843_v52, %v1842_v0 }
 0x1a4   : > { %v1851_v19 = vadd.f32 %v1850_v35, %v1849_v60  ;;  %v1858_v49 = vadd.f32 %v1857_v32, %v1856_v51  ;;  %5247 = vrsqrt.f32 %v7758_v39  ;;  %v1803_v1 = vrot.slane %v1802_v50, 1 }
 0x1a5   : > { %v1810_v11 = vrot.slane %v1809_v59, 1  ;;  %v1865_v4 = vadd.f32 %v1864_v38, %v1863_v42  ;;  %5249 = vrsqrt.f32 %v7772_v58  ;;  %v7842_v44 = vadd.f32 %v1782_v31, %v1781_v27 }
 0x1a6   : > { %v1817_v18 = vrot.slane %v1816_v7, 1  ;;  %v1824_v29 = vrot.slane %v1823_v22, 1  ;;  %v1831_v30 = vrot.slane %v1830_v25, 1  ;;  %v7844_v13 = vadd.f32 %v1789_v53, %v1788_v46 }
 0x1a7   : > { %v7846_v45 = vadd.f32 %v1796_v36, %v1795_v63  ;;  %v1838_v56 = vrot.slane %v1837_v26, 1  ;;  %5251 = vrsqrt.f32 %v7774_v28  ;;  %v1845_v12 = vrot.slane %v1844_v2, 1 }
 0x1a8   : > { %v1852_v48 = vrot.slane %v1851_v19, 1  ;;  %v1859_v21 = vrot.slane %v1858_v49, 1  ;;  %5253 = vrsqrt.f32 %v7776_v17  ;;  %v7850_v55 = vadd.f32 %v1803_v1, %v1802_v50 }
 0x1a9   : > { %v7852_v10 = vadd.f32 %v1810_v11, %v1809_v59  ;;  %v1866_v27 = vrot.slane %v1865_v4, 1  ;;  %5255 = vrsqrt.f32 %v7778_v41  ;;  %v7855_v0 = vadd.f32 %v1817_v18, %v1816_v7 }
 0x1aa   : > { %v7857_v60 = vadd.f32 %v1824_v29, %v1823_v22  ;;  %v7859_v51 = vadd.f32 %v1831_v30, %v1830_v25  ;;  %5257 = vrsqrt.f32 %v7783_v3  ;;  %v7862_v24 = vadd.f32 %v1838_v56, %v1837_v26 }
 0x1ab   : > { %vm1870_vm13 = vcmp.eq.f32.partialorder %v7750_v47, inf  ;;  %v1873_v31 = vand.u32 2147483648, %v7750_v47  ;;  %5259 = vrsqrt.f32 %v7788_v15  ;;  %v7867_v46 = vadd.f32 %v1845_v12, %v1844_v2 }
 0x1ac   : > { %v7869_v42 = vadd.f32 %v1852_v48, %v1851_v19  ;;  %v7871_v63 = vadd.f32 %v1859_v21, %v1858_v49  ;;  %5261 = vrsqrt.f32 %v7796_v14  ;;  %v7874_v57 = vadd.f32 %v1866_v27, %v1865_v4 }
 0x1ad   : > { %v5240_v33 = vpop.eup %5239  ;;  %vm1872_vm15 = vcmp.eq.f32.partialorder %v7750_v47, 0.0  ;;  %vm1877_vm14 = vcmp.eq.f32.partialorder %v7752_v8, inf  ;;  %v1880_v37 = vand.u32 2147483648, %v7752_v8  ;;  %5263 = vrsqrt.f32 %v7798_v54 }
 0x1ae   : > { %v5242_v50 = vpop.eup %5241  ;;  %vm1879_vm0 = vcmp.eq.f32.partialorder %v7752_v8, 0.0  ;;  %vm1884_vm1 = vcmp.eq.f32.partialorder %v7754_v40, inf  ;;  %v1887_v59 = vand.u32 2147483648, %v7754_v40  ;;  %vm1891_vm2 = vcmp.eq.f32.partialorder %v7756_v9, inf }
 0x1af   : > { %5265 = vrsqrt.f32 %v7800_v62  ;;  %v5244_v23 = vpop.eup %5243  ;;  %vm1886_vm3 = vcmp.eq.f32.partialorder %v7754_v40, 0.0  ;;  %vm1893_vm6 = vcmp.eq.f32.partialorder %v7756_v9, 0.0  ;;  %v1894_v52 = vand.u32 2147483648, %v7756_v9 }
 0x1b0   : > { %vm1898_vm5 = vcmp.eq.f32.partialorder %v7758_v39, inf  ;;  %v1901_v35 = vand.u32 2147483648, %v7758_v39  ;;  %5267 = vrsqrt.f32 %v7802_v20  ;;  %v5246_v32 = vpop.eup %5245  ;;  %vm1900_vm7 = vcmp.eq.f32.partialorder %v7758_v39, 0.0 }
 0x1b1   : > { %vm1905_vm4 = vcmp.eq.f32.partialorder %v7772_v58, inf  ;;  %v1908_v38 = vand.u32 2147483648, %v7772_v58  ;;  %5269 = vrsqrt.f32 %v7804_v6  ;;  %v5248_v7 = vpop.eup %5247  ;;  %v1869_v22 = vmul.f32 %v5240_v33, %v7750_v47 }
 0x1b2   : > { %v1915_v25 = vand.u32 2147483648, %v7774_v28  ;;  %5271 = vrsqrt.f32 %v7830_v61  ;;  %v5250_v53 = vpop.eup %5249  ;;  %v1876_v36 = vmul.f32 %v5242_v50, %v7752_v8  ;;  %v1922_v26 = vand.u32 2147483648, %v7776_v17 }
 0x1b3   : > { %vm1926_vm12 = vcmp.eq.f32.partialorder %v7778_v41, inf  ;;  %v1929_v2 = vand.u32 2147483648, %v7778_v41  ;;  %v1883_v19 = vmul.f32 %v5244_v23, %v7754_v40  ;;  %v1890_v49 = vmul.f32 %v5246_v32, %v7756_v9 }
 0x1b4   : > { %v1936_v1 = vand.u32 2147483648, %v7783_v3  ;;  %v5252_v11 = vpop.eup %5251  ;;  %v1897_v4 = vmul.f32 %v5248_v7, %v7758_v39  ;;  %v1943_v18 = vand.u32 2147483648, %v7788_v15  ;;  %5273 = vrsqrt.f32 %v7833_v5 }
 0x1b5   : > { %v5254_v29 = vpop.eup %5253  ;;  %v1871_v30 = vsel %vm1870_vm13, %v7750_v47, %v1869_v22  ;;  %v1904_v56 = vmul.f32 %v5250_v53, %v7772_v58  ;;  %vm1928_vm9 = vcmp.eq.f32.partialorder %v7778_v41, 0.0  ;;  %vm1947_vm10 = vcmp.eq.f32.partialorder %v7796_v14, inf }
 0x1b6   : > { %v1950_v12 = vand.u32 2147483648, %v7796_v14  ;;  %v5256_v48 = vpop.eup %5255  ;;  %v1878_v21 = vsel %vm1877_vm14, %v7752_v8, %v1876_v36  ;;  %vm1935_vm8 = vcmp.eq.f32.partialorder %v7783_v3, 0.0  ;;  %vm1954_vm11 = vcmp.eq.f32.partialorder %v7798_v54, inf }
 0x1b7   : > { %v1957_v27 = vand.u32 2147483648, %v7798_v54  ;;  %v1964_v33 = vand.u32 2147483648, %v7800_v62  ;;  %v5258_v23 = vpop.eup %5257  ;;  %v1885_v32 = vsel %vm1884_vm1, %v7754_v40, %v1883_v19  ;;  %v1892_v7 = vsel %vm1891_vm2, %v7756_v9, %v1890_v49 }
 0x1b8   : > { %v1911_v22 = vmul.f32 %v5252_v11, %v7774_v28  ;;  %vm1942_vm13 = vcmp.eq.f32.partialorder %v7788_v15, 0.0  ;;  %vm1961_vm14 = vcmp.eq.f32.partialorder %v7800_v62, inf  ;;  %5275 = vrsqrt.f32 %v7835_v16  ;;  %v5260_v53 = vpop.eup %5259 }
 0x1b9   : > { %v7944_v36 = vsel %vm1872_vm15, %v1873_v31, %v1871_v30  ;;  %v1899_v19 = vsel %vm1898_vm5, %v7758_v39, %v1897_v4  ;;  %v1918_v49 = vmul.f32 %v5254_v29, %v7776_v17  ;;  %vm1949_vm1 = vcmp.eq.f32.partialorder %v7796_v14, 0.0  ;;  %v5262_v50 = vpop.eup %5261 }
 0x1ba   : > { %vm1968_vm2 = vcmp.eq.f32.partialorder %v7802_v20, inf  ;;  %v1978_v11 = vand.u32 2147483648, %v7804_v6  ;;  %v7957_v47 = vsel %vm1879_vm0, %v1880_v37, %v1878_v21  ;;  %v1906_v31 = vsel %vm1905_vm4, %v7772_v58, %v1904_v56  ;;  %v5264_v29 = vpop.eup %5263 }
 0x1bb   : > { %v1925_v4 = vmul.f32 %v5256_v48, %v7778_v41  ;;  %vm1956_vm15 = vcmp.eq.f32.partialorder %v7798_v54, 0.0  ;;  %vm1975_vm5 = vcmp.eq.f32.partialorder %v7804_v6, inf  ;;  %5277 = vrsqrt.f32 %v7842_v44 }
 0x1bc   : > { %v7970_v8 = vsel %vm1886_vm3, %v1887_v59, %v1885_v32  ;;  %v7976_v37 = vsel %vm1893_vm6, %v1894_v52, %v1892_v7  ;;  %v1932_v30 = vmul.f32 %v5258_v23, %v7783_v3  ;;  %vm1963_vm0 = vcmp.eq.f32.partialorder %v7800_v62, 0.0  ;;  %v5266_v56 = vpop.eup %5265 }
 0x1bd   : > { %v7985_v40 = vsel %vm1900_vm7, %v1901_v35, %v1899_v19  ;;  %vm12464_vm3 = vcmp.eq.f32.partialorder %v7774_v28, inf  ;;  %v1939_v9 = vmul.f32 %v5260_v53, %v7788_v15  ;;  %v1985_v52 = vand.u32 2147483648, %v7830_v61  ;;  %v5268_v48 = vpop.eup %5267 }
 0x1be   : > { %v1913_v59 = vsel %vm12464_vm3, %v7774_v28, %v1911_v22  ;;  %vm12465_vm4 = vcmp.eq.f32.partialorder %v7772_v58, 0.0  ;;  %vm12466_vm7 = vcmp.eq.f32.partialorder %v7776_v17, inf  ;;  %v1946_v35 = vmul.f32 %v5262_v50, %v7796_v14  ;;  %v5270_v23 = vpop.eup %5269 }
 0x1bf   : > { %v7997_v21 = vsel %vm12465_vm4, %v1908_v38, %v1906_v31  ;;  %v1920_v39 = vsel %vm12466_vm7, %v7776_v17, %v1918_v49  ;;  %5279 = vrsqrt.f32 %v7844_v13  ;;  %v1927_v32 = vsel %vm1926_vm12, %v7778_v41, %v1925_v4  ;;  %v5272_v58 = vpop.eup %5271 }
 0x1c0   : > { %v1953_v7 = vmul.f32 %v5264_v29, %v7798_v54  ;;  %vm1984_vm4 = vcmp.eq.f32.partialorder %v7830_v61, 0.0  ;;  %5281 = vrsqrt.f32 %v7846_v45  ;;  %vm12467_vm7 = vcmp.eq.f32.partialorder %v7774_v28, 0.0 }
 0x1c1   : > { %v8016_v38 = vsel %vm12467_vm7, %v1915_v25, %v1913_v59  ;;  %vm12468_vm3 = vcmp.eq.f32.partialorder %v7783_v3, inf  ;;  %v1960_v22 = vmul.f32 %v5266_v56, %v7800_v62  ;;  %5283 = vrsqrt.f32 %v7850_v55  ;;  %v5274_v31 = vpop.eup %5273 }
 0x1c2   : > { %v1934_v50 = vsel %vm12468_vm3, %v7783_v3, %v1932_v30  ;;  %vm12469_vm12 = vcmp.eq.f32.partialorder %v7776_v17, 0.0  ;;  %vm12470_vm6 = vcmp.eq.f32.partialorder %v7788_v15, inf  ;;  %v1967_v25 = vmul.f32 %v5268_v48, %v7802_v20 }
 0x1c3   : > { %v8027_v53 = vsel %vm12469_vm12, %v1922_v26, %v1920_v39  ;;  %v1941_v28 = vsel %vm12470_vm6, %v7788_v15, %v1939_v9  ;;  %v1992_v19 = vand.u32 2147483648, %v7833_v5  ;;  %v8038_v49 = vsel %vm1928_vm9, %v1929_v2, %v1927_v32 }
 0x1c4   : > { %v1948_v17 = vsel %vm1947_vm10, %v7796_v14, %v1946_v35  ;;  %v1974_v26 = vmul.f32 %v5270_v23, %v7804_v6  ;;  %vm1991_vm3 = vcmp.eq.f32.partialorder %v7833_v5, 0.0  ;;  %5285 = vrsqrt.f32 %v7852_v10 }
 0x1c5   : > { %v8050_v4 = vsel %vm1935_vm8, %v1936_v1, %v1934_v50  ;;  %v1955_v41 = vsel %vm1954_vm11, %v7798_v54, %v1953_v7  ;;  %v1981_v2 = vmul.f32 %v5272_v58, %v7830_v61  ;;  %5287 = vrsqrt.f32 %v7855_v0  ;;  %v5276_v30 = vpop.eup %5275 }
 0x1c6   : > { %v8061_v29 = vsel %vm1942_vm13, %v1943_v18, %v1941_v28  ;;  %v1962_v3 = vsel %vm1961_vm14, %v7800_v62, %v1960_v22  ;;  %vm1996_vm8 = vcmp.eq.f32.partialorder %v7835_v16, inf  ;;  %5289 = vrsqrt.f32 %v7857_v60 }
 0x1c7   : > { %v8072_v1 = vsel %vm1949_vm1, %v1950_v12, %v1948_v17  ;;  %v1969_v15 = vsel %vm1968_vm2, %v7802_v20, %v1967_v25  ;;  %vm1998_vm9 = vcmp.eq.f32.partialorder %v7835_v16, 0.0  ;;  %v1999_v18 = vand.u32 2147483648, %v7835_v16 }
 0x1c8   : > { %5291 = vrsqrt.f32 %v7859_v51  ;;  %v8084_v56 = vsel %vm1956_vm15, %v1957_v27, %v1955_v41  ;;  %v1976_v14 = vsel %vm1975_vm5, %v7804_v6, %v1974_v26  ;;  %v1988_v12 = vmul.f32 %v5274_v31, %v7833_v5  ;;  %v5278_v27 = vpop.eup %5277 }
 0x1c9   : > { %5293 = vrsqrt.f32 %v7862_v24  ;;  %v8095_v59 = vsel %vm1963_vm0, %v1964_v33, %v1962_v3  ;;  %vm12471_vm11 = vcmp.eq.f32.partialorder %v7830_v61, inf  ;;  %vm2003_vm10 = vcmp.eq.f32.partialorder %v7842_v44, inf }
 0x1ca   : > { %v1983_v54 = vsel %vm12471_vm11, %v7830_v61, %v1981_v2  ;;  %5295 = vrsqrt.f32 %v7867_v46  ;;  %v12472_v9 = vand.u32 2147483648, %v7802_v20  ;;  %vm12473_vm13 = vcmp.eq.f32.partialorder %v7802_v20, 0.0 }
 0x1cb   : > { %vm2005_vm14 = vcmp.eq.f32.partialorder %v7842_v44, 0.0  ;;  %v2006_v62 = vand.u32 2147483648, %v7842_v44  ;;  %5297 = vrsqrt.f32 %v7869_v42  ;;  %vm12474_vm1 = vcmp.eq.f32.partialorder %v7804_v6, 0.0 }
 0x1cc   : > { %v8106_v48 = vsel %vm12473_vm13, %v12472_v9, %v1969_v15  ;;  %v8115_v33 = vsel %vm12474_vm1, %v1978_v11, %v1976_v14  ;;  %v1995_v39 = vmul.f32 %v5276_v30, %v7835_v16  ;;  %vm2010_vm2 = vcmp.eq.f32.partialorder %v7844_v13, inf  ;;  %v5280_v11 = vpop.eup %5279 }
 0x1cd   : > { %5299 = vrsqrt.f32 %v7871_v63  ;;  %v8122_v20 = vsel %vm1984_vm4, %v1985_v52, %v1983_v54  ;;  %vm12475_vm15 = vcmp.eq.f32.partialorder %v7833_v5, inf  ;;  %vm2012_vm5 = vcmp.eq.f32.partialorder %v7844_v13, 0.0  ;;  %v5282_v61 = vpop.eup %5281 }
 0x1ce   : > { %v1990_v35 = vsel %vm12475_vm15, %v7833_v5, %v1988_v12  ;;  %v2013_v6 = vand.u32 2147483648, %v7844_v13  ;;  %vm2017_vm0 = vcmp.eq.f32.partialorder %v7846_v45, inf  ;;  %v2002_v23 = vmul.f32 %v5278_v27, %v7842_v44  ;;  %v5284_v7 = vpop.eup %5283 }
 0x1cf   : > { %vm2019_vm6 = vcmp.eq.f32.partialorder %v7846_v45, 0.0  ;;  %v2020_v32 = vand.u32 2147483648, %v7846_v45  ;;  %5301 = vrsqrt.f32 %v7874_v57  ;;  %vm2024_vm4 = vcmp.eq.f32.partialorder %v7850_v55, inf }
 0x1d0   : > { %vm2026_vm7 = vcmp.eq.f32.partialorder %v7850_v55, 0.0  ;;  %v2027_v52 = vand.u32 2147483648, %v7850_v55  ;;  %vm2031_vm12 = vcmp.eq.f32.partialorder %v7852_v10, inf  ;;  %v8140_v58 = vsel %vm1991_vm3, %v1992_v19, %v1990_v35 }
 0x1d1   : > { %v1997_v50 = vsel %vm1996_vm8, %v7835_v16, %v1995_v39  ;;  %v2034_v22 = vand.u32 2147483648, %v7852_v10  ;;  %vm2038_vm11 = vcmp.eq.f32.partialorder %v7855_v0, inf  ;;  %v2009_v28 = vmul.f32 %v5280_v11, %v7844_v13  ;;  %v5286_v26 = vpop.eup %5285 }
 0x1d2   : > { %v2041_v25 = vand.u32 2147483648, %v7855_v0  ;;  %vm2045_vm13 = vcmp.eq.f32.partialorder %v7857_v60, inf  ;;  %v2048_v17 = vand.u32 2147483648, %v7857_v60  ;;  %v2004_v5 = vsel %vm2003_vm10, %v7842_v44, %v2002_v23  ;;  %v5288_v41 = vpop.eup %5287 }
 0x1d3   : > { %v2016_v19 = vmul.f32 %v5282_v61, %v7846_v45  ;;  %v2055_v31 = vand.u32 2147483648, %v7859_v51  ;;  %v8161_v2 = vsel %vm1998_vm9, %v1999_v18, %v1997_v50  ;;  %v2023_v3 = vmul.f32 %v5284_v7, %v7850_v55  ;;  %v5290_v30 = vpop.eup %5289 }
 0x1d4   : > { %vm2047_vm15 = vcmp.eq.f32.partialorder %v7857_v60, 0.0  ;;  %vm2059_vm10 = vcmp.eq.f32.partialorder %v7862_v24, inf  ;;  %v2062_v15 = vand.u32 2147483648, %v7862_v24  ;;  %vm2066_vm3 = vcmp.eq.f32.partialorder %v7867_v46, inf }
 0x1d5   : > { %v2069_v14 = vand.u32 2147483648, %v7867_v46  ;;  %vm2073_vm1 = vcmp.eq.f32.partialorder %v7869_v42, inf  ;;  %v2076_v16 = vand.u32 2147483648, %v7869_v42  ;;  %v5292_v18 = vpop.eup %5291  ;;  %v2007_v12 = vsel %vm2005_vm14, %v2006_v62, %v2004_v5 }
 0x1d6   : > { %v2011_v54 = vsel %vm2010_vm2, %v7844_v13, %v2009_v28  ;;  %vm2061_vm9 = vcmp.eq.f32.partialorder %v7862_v24, 0.0  ;;  %vm2080_vm8 = vcmp.eq.f32.partialorder %v7871_v63, inf  ;;  %v2083_v27 = vand.u32 2147483648, %v7871_v63  ;;  %v5294_v39 = vpop.eup %5293 }
 0x1d7   : > { %v2090_v9 = vand.u32 2147483648, %v7874_v57  ;;  %v2018_v35 = vsel %vm2017_vm0, %v7846_v45, %v2016_v19  ;;  %v2030_v44 = vmul.f32 %v5286_v26, %v7852_v10  ;;  %v2037_v62 = vmul.f32 %v5288_v41, %v7855_v0  ;;  %v5296_v23 = vpop.eup %5295 }
 0x1d8   : > { %vm2068_vm14 = vcmp.eq.f32.partialorder %v7867_v46, 0.0  ;;  %v8188_v11 = vadd.f32 1e-10, %v7944_v36  ;;  %v2025_v61 = vsel %vm2024_vm4, %v7850_v55, %v2023_v3  ;;  %v2044_v7 = vmul.f32 %v5290_v30, %v7857_v60  ;;  %v5298_v26 = vpop.eup %5297 }
 0x1d9   : > { %vm2075_vm2 = vcmp.eq.f32.partialorder %v7869_v42, 0.0  ;;  %vm2087_vm0 = vcmp.eq.f32.partialorder %v7874_v57, inf  ;;  %v8197_v50 = vadd.f32 1e-10, %v7957_v47  ;;  %v8200_v28 = vadd.f32 1e-10, %v7970_v8 }
 0x1da   : > { %v2014_v36 = vsel %vm2012_vm5, %v2013_v6, %v2011_v54  ;;  %v2051_v5 = vmul.f32 %v5292_v18, %v7859_v51  ;;  %vm2082_vm4 = vcmp.eq.f32.partialorder %v7871_v63, 0.0  ;;  %v8207_v19 = vadd.f32 1e-10, %v7976_v37  ;;  %v5300_v3 = vpop.eup %5299 }
 0x1db   : > { %v8210_v41 = vadd.f32 1e-10, %v7985_v40  ;;  %v2021_v47 = vsel %vm2019_vm6, %v2020_v32, %v2018_v35  ;;  %v2058_v8 = vmul.f32 %v5294_v39, %v7862_v24  ;;  %v8218_v13 = vadd.f32 1e-10, %v7997_v21 }
 0x1dc   : > { %v8221_v6 = vadd.f32 1e-10, %v8016_v38  ;;  %v2028_v37 = vsel %vm2026_vm7, %v2027_v52, %v2025_v61  ;;  %v2032_v40 = vsel %vm2031_vm12, %v7852_v10, %v2030_v44  ;;  %v2039_v45 = vsel %vm2038_vm11, %v7855_v0, %v2037_v62  ;;  %v5302_v21 = vpop.eup %5301 }
 0x1dd   : > { %v2065_v32 = vmul.f32 %v5296_v23, %v7867_v46  ;;  %vm2089_vm5 = vcmp.eq.f32.partialorder %v7874_v57, 0.0  ;;  %v2046_v38 = vsel %vm2045_vm13, %v7857_v60, %v2044_v7  ;;  %v2072_v55 = vmul.f32 %v5298_v26, %v7869_v42  ;;  %v8347_v26 = vld [vmem:[%s6077_s7 + $0x10] sm:$0xff] }
 0x1de   : > { %v8238_v52 = vadd.f32 1e-10, %v8027_v53  ;;  %v8241_v30 = vadd.f32 1e-10, %v8038_v49  ;;  %vm12476_vm6 = vcmp.eq.f32.partialorder %v7859_v51, inf  ;;  %v2079_v54 = vmul.f32 %v5300_v3, %v7871_v63  ;;  %12482 = vst [vmem:[#allocation69_spill] sm:$0xff] %v8347_v26 }
 0x1df   : > { %v2053_v18 = vsel %vm12476_vm6, %v7859_v51, %v2051_v5  ;;  %v8248_v39 = vadd.f32 1e-10, %v8050_v4  ;;  %v8251_v35 = vadd.f32 1e-10, %v8061_v29  ;;  %vm12477_vm7 = vcmp.eq.f32.partialorder %v7852_v10, 0.0 }
 0x1e0   : > { %v2035_v53 = vsel %vm12477_vm7, %v2034_v22, %v2032_v40  ;;  %vm12478_vm12 = vcmp.eq.f32.partialorder %v7855_v0, 0.0  ;;  %v2060_v44 = vsel %vm2059_vm10, %v7862_v24, %v2058_v8  ;;  %v8265_v4 = vadd.f32 1e-10, %v8072_v1 }
 0x1e1   : > { %v2042_v49 = vsel %vm12478_vm12, %v2041_v25, %v2039_v45  ;;  %v2049_v29 = vsel %vm2047_vm15, %v2048_v17, %v2046_v38  ;;  %v2067_v10 = vsel %vm2066_vm3, %v7867_v46, %v2065_v32  ;;  %v2086_v22 = vmul.f32 %v5302_v21, %v7874_v57  ;;  %v8381_v45 = vld [vmem:[%s6077_s7 + $0x20] sm:$0xff]  ;;  %v8483_v21 = vld [vmem:[%s6077_s7 + $0xd8] sm:$0xff] }
 0x1e2   : > { %v8276_v0 = vadd.f32 1e-10, %v8084_v56  ;;  %vm12479_vm11 = vcmp.eq.f32.partialorder %v7859_v51, 0.0  ;;  %v2074_v60 = vsel %vm2073_vm1, %v7869_v42, %v2072_v55  ;;  %v8286_v25 = vadd.f32 1e-10, %v8095_v59  ;;  %12487 = vst [vmem:[#allocation74_spill] sm:$0xff] %v8381_v45 }
 0x1e3   : > { %v2056_v1 = vsel %vm12479_vm11, %v2055_v31, %v2053_v18  ;;  %v8289_v17 = vadd.f32 1e-10, %v8106_v48  ;;  %v2063_v56 = vsel %vm2061_vm9, %v2062_v15, %v2060_v44  ;;  %v2081_v51 = vsel %vm2080_vm8, %v7871_v63, %v2079_v54  ;;  %v8396_v54 = vld [vmem:[%s6077_s7 + $0x38] sm:$0xff]  ;;  %12511 = vst [vmem:[#allocation97_spill] sm:$0xff] %v8483_v21  ;;  %v8487_v32 = vld [vmem:[%s6077_s7 + $0xe0] sm:$0xff] }
 0x1e4   : > { %v8299_v31 = vadd.f32 1e-10, %v8115_v33  ;;  %v8302_v62 = vadd.f32 1e-10, %v8122_v20  ;;  %v2070_v59 = vsel %vm2068_vm14, %v2069_v14, %v2067_v10  ;;  %v8309_v48 = vadd.f32 1e-10, %v8140_v58 }
 0x1e5   : > { %v8312_v24 = vadd.f32 1e-10, %v8161_v2  ;;  %v8314_v15 = vadd.f32 1e-10, %v2007_v12  ;;  %v2077_v33 = vsel %vm2075_vm2, %v2076_v16, %v2074_v60  ;;  %v2088_v20 = vsel %vm2087_vm0, %v7874_v57, %v2086_v22  ;;  %v8326_v14 = vld [vmem:[%s6077_s7] sm:$0xff]  ;;  %v8338_v16 = vld [vmem:[%s6077_s7 + $0x8] sm:$0xff] }
 0x1e6   : > { %v8323_v46 = vadd.f32 1e-10, %v2014_v36  ;;  %12480 = vst [vmem:[#allocation67_spill] sm:$0xff] %v8326_v14  ;;  %v2188_v58 = vrot.slane %v8326_v14, 4  ;;  %v2084_v2 = vsel %vm2082_vm4, %v2083_v27, %v2081_v51  ;;  %v8333_v12 = vadd.f32 1e-10, %v2021_v47 }
 0x1e7   : > { %v8335_v42 = vadd.f32 1e-10, %v2028_v37  ;;  %12481 = vst [vmem:[#allocation68_spill] sm:$0xff] %v8338_v16  ;;  %v2189_v23 = vrot.slane %v8338_v16, 4  ;;  %v8341_v61 = vadd.f32 1e-10, %v2035_v53  ;;  %5303 = vrcp.f32 %v8188_v11 }
 0x1e8   : > { %v8343_v7 = vadd.f32 1e-10, %v2042_v49  ;;  %v2190_v63 = vrot.slane %v8347_v26, 4  ;;  %v2091_v27 = vsel %vm2089_vm5, %v2090_v9, %v2088_v20  ;;  %v8354_v36 = vadd.f32 1e-10, %v2049_v29  ;;  %v8363_v11 = vld [vmem:[%s6077_s7 + $0x18] sm:$0xff] }
 0x1e9   : > { %v8356_v5 = vadd.f32 1e-10, %v2056_v1  ;;  %5305 = vrcp.f32 %v8197_v50  ;;  %v8359_v3 = vadd.f32 1e-10, %v2063_v56  ;;  %12483 = vst [vmem:[#allocation73_spill] sm:$0xff] %v8363_v11  ;;  %v2191_v47 = vrot.slane %v8363_v11, 4 }
 0x1ea   : > { %5307 = vrcp.f32 %v8200_v28  ;;  %vm12484_vm13 = vcmask 1041408   ;;  %v8367_v57 = vadd.f32 1e-10, %v2070_v59  ;;  %v8369_v9 = vadd.f32 1e-10, %v2077_v33  ;;  %12491 = vst [vmem:[#allocation77_spill] sm:$0xff] %v8396_v54 }
 0x1eb   : > { %v2252_v8 = vsel %vm12484_vm13, %v2188_v58, 0.0  ;;  %5309 = vrcp.f32 %v8207_v19  ;;  %vm12485_vm3 = vmmov %vm12484_vm13  ;;  %v8373_v37 = vadd.f32 1e-10, %v2084_v2  ;;  %v8375_v40 = vadd.f32 1e-10, %v2091_v27  ;;  %v8385_v19 = vld [vmem:[%s6077_s7 + $0x28] sm:$0xff] }
 0x1ec   : > { %v2259_v50 = vsel %vm12485_vm3, %v2189_v23, 0.0  ;;  %5311 = vrcp.f32 %v8210_v41  ;;  %vm12486_vm8 = vmmov %vm12485_vm3  ;;  %12488 = vst [vmem:[#allocation75_spill] sm:$0xff] %v8385_v19  ;;  %v2253_v38 = vrot.slane %v2252_v8, 4  ;;  %v8390_v41 = vld [vmem:[%s6077_s7 + $0x30] sm:$0xff]  ;;  %v8400_v49 = vld [vmem:[%s6077_s7 + $0x40] sm:$0xff] }
 0x1ed   : > { %v2266_v28 = vsel %vm12486_vm8, %v2190_v63, 0.0  ;;  %5313 = vrcp.f32 %v8218_v13  ;;  %12489 = vst [vmem:[#allocation76_spill] sm:$0xff] %v8390_v41  ;;  %v2260_v18 = vrot.slane %v2259_v50, 4  ;;  %vm12490_vm1 = vmmov %vm12485_vm3  ;;  %v8405_v29 = vld [vmem:[%s6077_s7 + $0x48] sm:$0xff]  ;;  %v8409_v22 = vld [vmem:[%s6077_s7 + $0x50] sm:$0xff] }
 0x1ee   : > { %5315 = vrcp.f32 %v8221_v6  ;;  %v2273_v13 = vsel %vm12490_vm1, %v2191_v47, 0.0  ;;  %12492 = vst [vmem:[#allocation78_spill] sm:$0xff] %v8400_v49  ;;  %v2267_v44 = vrot.slane %v2266_v28, 4  ;;  %12493 = vst [vmem:[#allocation79_spill] sm:$0xff] %v8405_v29  ;;  %v8413_v1 = vld [vmem:[%s6077_s7 + $0x58] sm:$0xff]  ;;  %v8418_v56 = vld [vmem:[%s6077_s7 + $0x60] sm:$0xff]  ;;  %v2254_v51 = vadd.f32 %v2253_v38, %v2252_v8 }
 0x1ef   : > { %5317 = vrcp.f32 %v8238_v52  ;;  %12494 = vst [vmem:[#allocation80_spill] sm:$0xff] %v8409_v22  ;;  %12495 = vst [vmem:[#allocation81_spill] sm:$0xff] %v8413_v1  ;;  %v2274_v59 = vrot.slane %v2273_v13, 4  ;;  %v8423_v33 = vld [vmem:[%s6077_s7 + $0x68] sm:$0xff]  ;;  %v8427_v58 = vld [vmem:[%s6077_s7 + $0x70] sm:$0xff] }
 0x1f0   : > { %5319 = vrcp.f32 %v8241_v30  ;;  %12496 = vst [vmem:[#allocation82_spill] sm:$0xff] %v8418_v56  ;;  %12497 = vst [vmem:[#allocation83_spill] sm:$0xff] %v8423_v33  ;;  %v8432_v23 = vld [vmem:[%s6077_s7 + $0x78] sm:$0xff]  ;;  %v8436_v27 = vld [vmem:[%s6077_s7 + $0x80] sm:$0xff]  ;;  %v2268_v47 = vadd.f32 %v2267_v44, %v2266_v28 }
 0x1f1   : > { %5321 = vrcp.f32 %v8248_v39  ;;  %12498 = vst [vmem:[#allocation84_spill] sm:$0xff] %v8427_v58  ;;  %v2261_v39 = vadd.f32 %v2260_v18, %v2259_v50  ;;  %12499 = vst [vmem:[#allocation85_spill] sm:$0xff] %v8432_v23  ;;  %v8441_v8 = vld [vmem:[%s6077_s7 + $0x88] sm:$0xff]  ;;  %v8445_v38 = vld [vmem:[%s6077_s7 + $0x90] sm:$0xff]  ;;  %v2255_v50 = vrot.slane %v2254_v51, 2  ;;  %v2275_v20 = vadd.f32 %v2274_v59, %v2273_v13 }
 0x1f2   : > { %5323 = vrcp.f32 %v8251_v35  ;;  %12500 = vst [vmem:[#allocation86_spill] sm:$0xff] %v8436_v27  ;;  %12501 = vst [vmem:[#allocation87_spill] sm:$0xff] %v8441_v8  ;;  %v8449_v18 = vld [vmem:[%s6077_s7 + $0x98] sm:$0xff]  ;;  %v8453_v35 = vld [vmem:[%s6077_s7 + $0xa0] sm:$0xff]  ;;  %v2269_v55 = vrot.slane %v2268_v47, 2 }
 0x1f3   : > { %5325 = vrcp.f32 %v8265_v4  ;;  %12502 = vst [vmem:[#allocation88_spill] sm:$0xff] %v8445_v38  ;;  %12503 = vst [vmem:[#allocation89_spill] sm:$0xff] %v8449_v18  ;;  %v8457_v28 = vld [vmem:[%s6077_s7 + $0xa8] sm:$0xff]  ;;  %v8461_v60 = vld [vmem:[%s6077_s7 + $0xb0] sm:$0xff]  ;;  %v2262_v6 = vrot.slane %v2261_v39, 2  ;;  %v2256_v16 = vadd.f32 %v2255_v50, %v2254_v51  ;;  %v2276_v14 = vrot.slane %v2275_v20, 2 }
 0x1f4   : > { %5327 = vrcp.f32 %v8276_v0  ;;  %v5304_v2 = vpop.eup %5303  ;;  %12504 = vst [vmem:[#allocation90_spill] sm:$0xff] %v8453_v35  ;;  %12505 = vst [vmem:[#allocation91_spill] sm:$0xff] %v8457_v28  ;;  %v8465_v63 = vld [vmem:[%s6077_s7 + $0xb8] sm:$0xff]  ;;  %v8469_v10 = vld [vmem:[%s6077_s7 + $0xc0] sm:$0xff]  ;;  %v12518_v51 = vrot.slane %v8381_v45, 4 }
 0x1f5   : > { %12506 = vst [vmem:[#allocation92_spill] sm:$0xff] %v8461_v60  ;;  %12507 = vst [vmem:[#allocation93_spill] sm:$0xff] %v8465_v63  ;;  %5329 = vrcp.f32 %v8286_v25  ;;  %v8474_v13 = vld [vmem:[%s6077_s7 + $0xc8] sm:$0xff]  ;;  %v8478_v4 = vld [vmem:[%s6077_s7 + $0xd0] sm:$0xff]  ;;  %v8500_v0 = vmul.f32 %v5304_v2, %v7494_v34  ;;  %v2263_v59 = vadd.f32 %v2262_v6, %v2261_v39  ;;  %v12524_v6 = vrot.slane %v8385_v19, 4 }
 0x1f6   : > { %v5306_v30 = vpop.eup %5305  ;;  %12508 = vst [vmem:[#allocation94_spill] sm:$0xff] %v8469_v10  ;;  %12509 = vst [vmem:[#allocation95_spill] sm:$0xff] %v8474_v13  ;;  %5331 = vrcp.f32 %v8289_v17  ;;  %v8491_v11 = vld [vmem:[%s6077_s7 + $0xe8] sm:$0xff]  ;;  %v8496_v53 = vld [vmem:[%s6077_s7 + $0xf0] sm:$0xff]  ;;  %v2270_v17 = vadd.f32 %v2269_v55, %v2268_v47  ;;  %v2257_v39 = vrot.slane %v2256_v16, 1  ;;  %v2277_v47 = vadd.f32 %v2276_v14, %v2275_v20 }
 0x1f7   : > { %v5308_v44 = vpop.eup %5307  ;;  %12510 = vst [vmem:[#allocation96_spill] sm:$0xff] %v8478_v4  ;;  %12512 = vst [vmem:[#allocation98_spill] sm:$0xff] %v8487_v32  ;;  %5333 = vrcp.f32 %v8299_v31  ;;  %v8504_v25 = vld [vmem:[%s6077_s7 + $0xf8] sm:$0xff]  ;;  %v8508_v31 = vmul.f32 %v5306_v30, %v7497_v43  ;;  %v12520_v2 = vld [vmem:[#allocation72_spill] sm:$0xff] }
 0x1f8   : > { %v5310_v52 = vpop.eup %5309  ;;  %12513 = vst [vmem:[#allocation99_spill] sm:$0xff] %v8491_v11  ;;  %12514 = vst [vmem:[#allocation100_spill] sm:$0xff] %v8496_v53  ;;  %5335 = vrcp.f32 %v8302_v62  ;;  %v12522_v62 = vld [vmem:[#allocation38_spill] sm:$0xff] }
 0x1f9   : > { %v5312_v26 = vpop.eup %5311  ;;  %12515 = vst [vmem:[#allocation101_spill] sm:$0xff] %v8500_v0  ;;  %12516 = vst [vmem:[#allocation102_spill] sm:$0xff] %v8504_v25  ;;  %5337 = vrcp.f32 %v8309_v48  ;;  %v8515_v0 = vmul.f32 %v5308_v44, %v12520_v2  ;;  %v8518_v53 = vmul.f32 %v5310_v52, %v12522_v62  ;;  %v12526_v48 = vld [vmem:[#allocation39_spill] sm:$0xff]  ;;  %v12528_v44 = vld [vmem:[#allocation40_spill] sm:$0xff]  ;;  %v2264_v52 = vrot.slane %v2263_v59, 1 }
 0x1fa   : > { %v5314_v4 = vpop.eup %5313  ;;  %12517 = vst [vmem:[#allocation103_spill] sm:$0xff] %v8508_v31  ;;  %vm12519_vm15 = vmmov %vm12490_vm1  ;;  %5339 = vrcp.f32 %v8312_v24  ;;  %v8525_v55 = vmul.f32 %v5312_v26, %v12526_v48  ;;  %v12530_v26 = vrot.slane %v8390_v41, 4  ;;  %v12534_v20 = vld [vmem:[#allocation42_spill] sm:$0xff] }
 0x1fb   : > { %v5316_v11 = vpop.eup %5315  ;;  %v2280_v50 = vsel %vm12519_vm15, %v12518_v51, 0.0  ;;  %12521 = vst [vmem:[#allocation72_spill] sm:$0xff] %v8515_v0  ;;  %12523 = vst [vmem:[#allocation38_spill] sm:$0xff] %v8518_v53  ;;  %5341 = vrcp.f32 %v8314_v15  ;;  %v8529_v2 = vmul.f32 %v5314_v4, %v12528_v44  ;;  %v12536_v44 = vld [vmem:[#allocation43_spill] sm:$0xff]  ;;  %v8550_v0 = vadd.f32 %v2257_v39, %v2256_v16  ;;  %v12544_v16 = vld [vmem:[#allocation46_spill] sm:$0xff] }
 0x1fc   : > { %v5318_v34 = vpop.eup %5317  ;;  %vm12525_vm10 = vmmov %vm12490_vm1  ;;  %12527 = vst [vmem:[#allocation39_spill] sm:$0xff] %v8525_v55  ;;  %5343 = vrcp.f32 %v8323_v46  ;;  %v2281_v24 = vrot.slane %v2280_v50, 4  ;;  %v12532_v55 = vld [vmem:[#allocation41_spill] sm:$0xff]  ;;  %v8552_v31 = vadd.f32 %v2264_v52, %v2263_v59  ;;  %v12546_v59 = vld [vmem:[#allocation47_spill] sm:$0xff] }
 0x1fd   : > { %v2287_v43 = vsel %vm12525_vm10, %v12524_v6, 0.0  ;;  %v5320_v30 = vpop.eup %5319  ;;  %12529 = vst [vmem:[#allocation40_spill] sm:$0xff] %v8529_v2  ;;  %5345 = vrcp.f32 %v8333_v12  ;;  %v2271_v6 = vrot.slane %v2270_v17, 1  ;;  %vm12531_vm9 = vmmov %vm12490_vm1  ;;  %v8537_v14 = vmul.f32 %v5316_v11, %v12532_v55  ;;  %v12538_v12 = vld [vmem:[#allocation44_spill] sm:$0xff] }
 0x1fe   : > { %v5322_v51 = vpop.eup %5321  ;;  %v2288_v32 = vrot.slane %v2287_v43, 4  ;;  %v2294_v48 = vsel %vm12531_vm9, %v12530_v26, 0.0  ;;  %v8540_v4 = vmul.f32 %v5318_v34, %v12534_v20  ;;  %v8543_v46 = vmul.f32 %v5320_v30, %v12536_v44  ;;  %vm12541_vm14 = vmmov %vm12490_vm1  ;;  %v12542_v20 = vld [vmem:[#allocation45_spill] sm:$0xff] }
 0x1ff   : > { %v5324_v62 = vpop.eup %5323  ;;  %12533 = vst [vmem:[#allocation41_spill] sm:$0xff] %v8537_v14  ;;  %5347 = vrcp.f32 %v8335_v42  ;;  %v8547_v53 = vmul.f32 %v5322_v51, %v12538_v12  ;;  %v2278_v26 = vrot.slane %v2277_v47, 1  ;;  %v2282_v11 = vadd.f32 %v2281_v24, %v2280_v50  ;;  %vm12549_vm2 = vmmov %vm12490_vm1 }
 0x200   : > { %v5326_v15 = vpop.eup %5325  ;;  %12535 = vst [vmem:[#allocation42_spill] sm:$0xff] %v8540_v4  ;;  %12537 = vst [vmem:[#allocation43_spill] sm:$0xff] %v8543_v46  ;;  %5349 = vrcp.f32 %v8341_v61  ;;  %v2295_v55 = vrot.slane %v2294_v48, 4  ;;  %v12540_v34 = vrot.slane %v8396_v54, 4  ;;  %v8558_v44 = vmul.f32 %v5324_v62, %v12542_v20 }
 0x201   : > { %v5328_v2 = vpop.eup %5327  ;;  %12539 = vst [vmem:[#allocation44_spill] sm:$0xff] %v8547_v53  ;;  %5351 = vrcp.f32 %v8343_v7  ;;  %v8561_v42 = vadd.f32 %v2271_v6, %v2270_v17  ;;  %v2289_v51 = vadd.f32 %v2288_v32, %v2287_v43  ;;  %v8564_v39 = vmul.f32 %v5326_v15, %v12544_v16  ;;  %vm12551_vm0 = vmmov %vm12490_vm1 }
 0x202   : > { %v2301_v30 = vsel %vm12541_vm14, %v12540_v34, 0.0  ;;  %12543 = vst [vmem:[#allocation45_spill] sm:$0xff] %v8558_v44  ;;  %v5330_v61 = vpop.eup %5329  ;;  %v8567_v52 = vmul.f32 %v5328_v2, %v12546_v59  ;;  %5353 = vrcp.f32 %v8354_v36  ;;  %v12548_v50 = vrot.slane %v8400_v49, 4  ;;  %vm12553_vm4 = vmmov %vm12551_vm0 }
 0x203   : > { %12545 = vst [vmem:[#allocation46_spill] sm:$0xff] %v8564_v39  ;;  %v5332_v62 = vpop.eup %5331  ;;  %5355 = vrcp.f32 %v8356_v5  ;;  %v8574_v7 = vadd.f32 %v2278_v26, %v2277_v47  ;;  %v2302_v17 = vrot.slane %v2301_v30, 4  ;;  %v12550_v32 = vrot.slane %v8405_v29, 4  ;;  %vm12555_vm5 = vmmov %vm12551_vm0  ;;  %v12562_v39 = vld [vmem:[#allocation50_spill] sm:$0xff] }
 0x204   : > { %12547 = vst [vmem:[#allocation47_spill] sm:$0xff] %v8567_v52  ;;  %v2308_v24 = vsel %vm12549_vm2, %v12548_v50, 0.0  ;;  %v5334_v6 = vpop.eup %5333  ;;  %v2283_v15 = vrot.slane %v2282_v11, 2  ;;  %v2296_v2 = vadd.f32 %v2295_v55, %v2294_v48  ;;  %v12552_v12 = vrot.slane %v8409_v22, 4  ;;  %vm12557_vm6 = vmmov %vm12551_vm0  ;;  %v12560_v55 = vld [vmem:[#allocation49_spill] sm:$0xff] }
 0x205   : > { %v2315_v43 = vsel %vm12551_vm0, %v12550_v32, 0.0  ;;  %v12554_v34 = vrot.slane %v8413_v1, 4  ;;  %v5336_v16 = vpop.eup %5335  ;;  %5357 = vrcp.f32 %v8359_v3  ;;  %v2290_v5 = vrot.slane %v2289_v51, 2  ;;  %v12558_v32 = vld [vmem:[#allocation48_spill] sm:$0xff]  ;;  %vm12567_vm7 = vmmov %vm12551_vm0 }
 0x206   : > { %v2322_v36 = vsel %vm12553_vm4, %v12552_v12, 0.0  ;;  %v2309_v47 = vrot.slane %v2308_v24, 4  ;;  %v12556_v26 = vrot.slane %v8418_v56, 4  ;;  %v5338_v50 = vpop.eup %5337  ;;  %v8590_v48 = vmul.f32 %v5330_v61, %v12558_v32  ;;  %vm12569_vm12 = vmmov %vm12551_vm0 }
 0x207   : > { %v2329_v20 = vsel %vm12555_vm5, %v12554_v34, 0.0  ;;  %v8593_v52 = vmul.f32 %v5332_v62, %v12560_v55  ;;  %5359 = vrcp.f32 %v8367_v57  ;;  %v2316_v12 = vrot.slane %v2315_v43, 4  ;;  %v5340_v34 = vpop.eup %5339  ;;  %vm12581_vm11 = vmmov %vm12551_vm0 }
 0x208   : > { %v2336_v59 = vsel %vm12557_vm6, %v12556_v26, 0.0  ;;  %12559 = vst [vmem:[#allocation48_spill] sm:$0xff] %v8590_v48  ;;  %v8597_v44 = vmul.f32 %v5334_v6, %v12562_v39  ;;  %v2303_v3 = vadd.f32 %v2302_v17, %v2301_v30  ;;  %v2323_v53 = vrot.slane %v2322_v36, 4  ;;  %v5342_v4 = vpop.eup %5341  ;;  %v12564_v48 = vld [vmem:[#allocation51_spill] sm:$0xff]  ;;  %vm12587_vm13 = vmmov %vm12551_vm0 }
 0x209   : > { %12561 = vst [vmem:[#allocation49_spill] sm:$0xff] %v8593_v52  ;;  %v2330_v46 = vrot.slane %v2329_v20, 4  ;;  %5361 = vrcp.f32 %v8369_v9  ;;  %v2284_v26 = vadd.f32 %v2283_v15, %v2282_v11  ;;  %v2297_v14 = vrot.slane %v2296_v2, 2  ;;  %v5344_v32 = vpop.eup %5343  ;;  %v12570_v15 = vld [vmem:[#allocation52_spill] sm:$0xff]  ;;  %vm12593_vm3 = vmmov %vm12551_vm0 }
 0x20a   : > { %12563 = vst [vmem:[#allocation50_spill] sm:$0xff] %v8597_v44  ;;  %v2337_v61 = vrot.slane %v2336_v59, 4  ;;  %v8601_v62 = vmul.f32 %v5336_v16, %v12564_v48  ;;  %5363 = vrcp.f32 %v8373_v37  ;;  %v2291_v57 = vadd.f32 %v2290_v5, %v2289_v51  ;;  %v5346_v52 = vpop.eup %5345  ;;  %v12572_v5 = vld [vmem:[#allocation53_spill] sm:$0xff]  ;;  %vm12603_vm8 = vmmov %vm12551_vm0 }
 0x20b   : > { %v2310_v55 = vadd.f32 %v2309_v47, %v2308_v24  ;;  %5365 = vrcp.f32 %v8375_v40  ;;  %v2317_v30 = vadd.f32 %v2316_v12, %v2315_v43  ;;  %v12566_v39 = vrot.slane %v8423_v33, 4  ;;  %vm12609_vm1 = vmmov %vm12551_vm0 }
 0x20c   : > { %12565 = vst [vmem:[#allocation51_spill] sm:$0xff] %v8601_v62  ;;  %v12568_v9 = vrot.slane %v8427_v58, 4  ;;  %v5348_v6 = vpop.eup %5347  ;;  %v8612_v16 = vmul.f32 %v5338_v50, %v12570_v15  ;;  %v2304_v48 = vrot.slane %v2303_v3, 2  ;;  %v2324_v37 = vadd.f32 %v2323_v53, %v2322_v36  ;;  %v12576_v50 = vld [vmem:[#allocation55_spill] sm:$0xff]  ;;  %v12578_v53 = vld [vmem:[#allocation56_spill] sm:$0xff]  ;;  %vm12611_vm15 = vmmov %vm12551_vm0 }
 0x20d   : > { %v2343_v17 = vsel %vm12567_vm7, %v12566_v39, 0.0  ;;  %v2331_v51 = vadd.f32 %v2330_v46, %v2329_v20  ;;  %v5350_v24 = vpop.eup %5349  ;;  %v8615_v47 = vmul.f32 %v5340_v34, %v12572_v5  ;;  %v2285_v40 = vrot.slane %v2284_v26, 1  ;;  %vm12613_vm10 = vmmov %vm12551_vm0 }
 0x20e   : > { %v2350_v11 = vsel %vm12569_vm12, %v12568_v9, 0.0  ;;  %12571 = vst [vmem:[#allocation52_spill] sm:$0xff] %v8612_v16  ;;  %v2298_v43 = vadd.f32 %v2297_v14, %v2296_v2  ;;  %v2338_v12 = vadd.f32 %v2337_v61, %v2336_v59  ;;  %v2292_v62 = vrot.slane %v2291_v57, 1  ;;  %v5352_v33 = vpop.eup %5351  ;;  %v12574_v9 = vld [vmem:[#allocation54_spill] sm:$0xff]  ;;  %vm12615_vm9 = vmmov %vm12551_vm0 }
 0x20f   : > { %12573 = vst [vmem:[#allocation53_spill] sm:$0xff] %v8615_v47  ;;  %v2311_v39 = vrot.slane %v2310_v55, 2  ;;  %v2344_v44 = vrot.slane %v2343_v17, 4  ;;  %v2351_v58 = vrot.slane %v2350_v11, 4  ;;  %v8618_v56 = vmul.f32 %v5342_v4, %v12574_v9  ;;  %v5354_v20 = vpop.eup %5353  ;;  %v12582_v47 = vld [vmem:[#allocation57_spill] sm:$0xff]  ;;  %vm12617_vm14 = vmmov %vm12551_vm0 }
 0x210   : > { %v8621_v15 = vmul.f32 %v5344_v32, %v12576_v50  ;;  %v8624_v46 = vmul.f32 %v5346_v52, %v12578_v53  ;;  %v2318_v36 = vrot.slane %v2317_v30, 2  ;;  %v2305_v34 = vadd.f32 %v2304_v48, %v2303_v3  ;;  %v5356_v61 = vpop.eup %5355  ;;  %v12584_v48 = vld [vmem:[#allocation58_spill] sm:$0xff]  ;;  %vm12619_vm2 = vmmov %vm12551_vm0 }
 0x211   : > { %12575 = vst [vmem:[#allocation54_spill] sm:$0xff] %v8618_v56  ;;  %v2325_v5 = vrot.slane %v2324_v37, 2  ;;  %v2332_v14 = vrot.slane %v2331_v51, 2  ;;  %v12580_v2 = vrot.slane %v8432_v23, 4  ;;  %v8630_v16 = vmul.f32 %v5348_v6, %v12582_v47  ;;  %vm12623_vm4 = vmmov %vm12551_vm0 }
 0x212   : > { %12577 = vst [vmem:[#allocation55_spill] sm:$0xff] %v8621_v15  ;;  %12579 = vst [vmem:[#allocation56_spill] sm:$0xff] %v8624_v46  ;;  %v8632_v4 = vadd.f32 %v2285_v40, %v2284_v26  ;;  %v2299_v32 = vrot.slane %v2298_v43, 1  ;;  %v2339_v9 = vrot.slane %v2338_v12, 2  ;;  %v8634_v50 = vadd.f32 %v2292_v62, %v2291_v57  ;;  %v5358_v3 = vpop.eup %5357  ;;  %v12588_v26 = vld [vmem:[#allocation59_spill] sm:$0xff] }
 0x213   : > { %v2357_v59 = vsel %vm12581_vm11, %v12580_v2, 0.0  ;;  %12583 = vst [vmem:[#allocation57_spill] sm:$0xff] %v8630_v16  ;;  %v2312_v52 = vadd.f32 %v2311_v39, %v2310_v55  ;;  %v2345_v53 = vadd.f32 %v2344_v44, %v2343_v17  ;;  %v2352_v46 = vadd.f32 %v2351_v58, %v2350_v11  ;;  %v12590_v55 = vld [vmem:[#allocation60_spill] sm:$0xff]  ;;  %vm12625_vm5 = vmmov %vm12551_vm0 }
 0x214   : > { %v8637_v15 = vmul.f32 %v5350_v24, %v12584_v48  ;;  %v2319_v56 = vadd.f32 %v2318_v36, %v2317_v30  ;;  %v2358_v23 = vrot.slane %v2357_v59, 4  ;;  %v12586_v2 = vrot.slane %v8436_v27, 4  ;;  %v5360_v47 = vpop.eup %5359  ;;  %vm12628_vm6 = vmmov %vm12551_vm0  ;;  %v12632_v27 = vld [vmem:[#allocation100_spill] sm:$0xff] }
 0x215   : > { %v8643_v40 = vmul.f32 %v5352_v33, %v12588_v26  ;;  %v2306_v16 = vrot.slane %v2305_v34, 1  ;;  %v2326_v62 = vadd.f32 %v2325_v5, %v2324_v37  ;;  %v2333_v57 = vadd.f32 %v2332_v14, %v2331_v51  ;;  %v12594_v26 = vld [vmem:[#allocation61_spill] sm:$0xff]  ;;  %v12596_v37 = vld [vmem:[#allocation62_spill] sm:$0xff]  ;;  %vm12631_vm7 = vmmov %vm12551_vm0 }
 0x216   : > { %12585 = vst [vmem:[#allocation58_spill] sm:$0xff] %v8637_v15  ;;  %v2364_v6 = vsel %vm12587_vm13, %v12586_v2, 0.0  ;;  %v8646_v44 = vmul.f32 %v5354_v20, %v12590_v55  ;;  %v8648_v58 = vadd.f32 %v2299_v32, %v2298_v43  ;;  %v2340_v17 = vadd.f32 %v2339_v9, %v2338_v12  ;;  %v5362_v24 = vpop.eup %5361  ;;  %v12598_v55 = vld [vmem:[#allocation63_spill] sm:$0xff]  ;;  %vm12634_vm12 = vmmov %vm12551_vm0 }
 0x217   : > { %12589 = vst [vmem:[#allocation59_spill] sm:$0xff] %v8643_v40  ;;  %v12592_v30 = vrot.slane %v8441_v8, 4  ;;  %v2313_v39 = vrot.slane %v2312_v52, 1  ;;  %v2346_v36 = vrot.slane %v2345_v53, 2  ;;  %v2353_v48 = vrot.slane %v2352_v46, 2  ;;  %v5364_v33 = vpop.eup %5363  ;;  %vm12636_vm11 = vmmov %vm12551_vm0 }
 0x218   : > { %12591 = vst [vmem:[#allocation60_spill] sm:$0xff] %v8646_v44  ;;  %v2365_v2 = vrot.slane %v2364_v6, 4  ;;  %v8654_v40 = vmul.f32 %v5356_v61, %v12594_v26  ;;  %v8657_v51 = vmul.f32 %v5358_v3, %v12596_v37  ;;  %v2320_v20 = vrot.slane %v2319_v56, 1  ;;  %v5366_v5 = vpop.eup %5365  ;;  %v12600_v44 = vld [vmem:[#allocation64_spill] sm:$0xff]  ;;  %vm12699_vm13 = vmmov %vm12551_vm0 }
 0x219   : > { %v2371_v11 = vsel %vm12593_vm3, %v12592_v30, 0.0  ;;  %v2359_v43 = vadd.f32 %v2358_v23, %v2357_v59  ;;  %v8659_v12 = vadd.f32 %v2306_v16, %v2305_v34  ;;  %v2327_v14 = vrot.slane %v2326_v62, 1  ;;  %v12604_v34 = vld [vmem:[#allocation65_spill] sm:$0xff]  ;;  %vm12700_vm3 = vmmov %vm12551_vm0 }
 0x21a   : > { %12595 = vst [vmem:[#allocation61_spill] sm:$0xff] %v8654_v40  ;;  %12597 = vst [vmem:[#allocation62_spill] sm:$0xff] %v8657_v51  ;;  %v2334_v32 = vrot.slane %v2333_v57, 1  ;;  %v2372_v9 = vrot.slane %v2371_v11, 4  ;;  %v8662_v30 = vmul.f32 %v5360_v47, %v12598_v55  ;;  %v8665_v15 = vmul.f32 %v5362_v24, %v12600_v44  ;;  %v12606_v51 = vld [vmem:[#allocation66_spill] sm:$0xff] }
 0x21b   : > { %v2341_v8 = vrot.slane %v2340_v17, 1  ;;  %v12602_v61 = vrot.slane %v8445_v38, 4  ;;  %v8670_v26 = vadd.f32 %v2313_v39, %v2312_v52  ;;  %v2347_v23 = vadd.f32 %v2346_v36, %v2345_v53 }
 0x21c   : > { %12599 = vst [vmem:[#allocation63_spill] sm:$0xff] %v8662_v30  ;;  %12601 = vst [vmem:[#allocation64_spill] sm:$0xff] %v8665_v15  ;;  %v2354_v59 = vadd.f32 %v2353_v48, %v2352_v46  ;;  %v2366_v16 = vadd.f32 %v2365_v2, %v2364_v6  ;;  %v8673_v37 = vmul.f32 %v5364_v33, %v12604_v34  ;;  %v2360_v44 = vrot.slane %v2359_v43, 2 }
 0x21d   : > { %v2378_v3 = vsel %vm12603_vm8, %v12602_v61, 0.0  ;;  %v8676_v40 = vmul.f32 %v5366_v5, %v12606_v51  ;;  %v8678_v47 = vadd.f32 %v2320_v20, %v2319_v56  ;;  %v8680_v24 = vadd.f32 %v2327_v14, %v2326_v62  ;;  %vm12701_vm8 = vmmov %vm12551_vm0 }
 0x21e   : > { %12605 = vst [vmem:[#allocation65_spill] sm:$0xff] %v8673_v37  ;;  %v8682_v55 = vadd.f32 %v2334_v32, %v2333_v57  ;;  %v2373_v15 = vadd.f32 %v2372_v9, %v2371_v11  ;;  %v2379_v61 = vrot.slane %v2378_v3, 4  ;;  %v8684_v52 = vadd.f32 %v2341_v8, %v2340_v17 }
 0x21f   : > { %12607 = vst [vmem:[#allocation66_spill] sm:$0xff] %v8676_v40  ;;  %v12608_v46 = vrot.slane %v8449_v18, 4  ;;  %v12610_v6 = vrot.slane %v8453_v35, 4  ;;  %v12612_v56 = vrot.slane %v8457_v28, 4  ;;  %v2348_v62 = vrot.slane %v2347_v23, 1 }
 0x220   : > { %v2355_v48 = vrot.slane %v2354_v59, 1  ;;  %v2367_v57 = vrot.slane %v2366_v16, 2  ;;  %v12614_v11 = vrot.slane %v8461_v60, 4  ;;  %v8698_v17 = vadd.f32 %v2360_v44, %v2359_v43 }
 0x221   : > { %v2385_v53 = vsel %vm12609_vm1, %v12608_v46, 0.0  ;;  %v2392_v39 = vsel %vm12611_vm15, %v12610_v6, 0.0  ;;  %v2399_v36 = vsel %vm12613_vm10, %v12612_v56, 0.0  ;;  %v12616_v2 = vrot.slane %v8465_v63, 4  ;;  %v12621_v46 = vld [vmem:[#allocation96_spill] sm:$0xff]  ;;  %vm12702_vm1 = vmmov %vm12551_vm0 }
 0x222   : > { %v2406_v8 = vsel %vm12615_vm9, %v12614_v11, 0.0  ;;  %v12618_v51 = vrot.slane %v8469_v10, 4  ;;  %v12620_v5 = vrot.slane %v8474_v13, 4  ;;  %v2386_v32 = vrot.slane %v2385_v53, 4  ;;  %v12626_v13 = vld [vmem:[#allocation98_spill] sm:$0xff]  ;;  %vm12703_vm15 = vmmov %vm12551_vm0 }
 0x223   : > { %v2413_v33 = vsel %vm12617_vm14, %v12616_v2, 0.0  ;;  %v2393_v9 = vrot.slane %v2392_v39, 4  ;;  %v2400_v34 = vrot.slane %v2399_v36, 4  ;;  %v12622_v6 = vrot.slane %v12621_v46, 4  ;;  %vm12704_vm10 = vmmov %vm12551_vm0 }
 0x224   : > { %v2420_v20 = vsel %vm12619_vm2, %v12618_v51, 0.0  ;;  %v2427_v14 = vsel %vm12551_vm0, %v12620_v5, 0.0  ;;  %v2374_v44 = vrot.slane %v2373_v15, 2  ;;  %v2380_v56 = vadd.f32 %v2379_v61, %v2378_v3  ;;  %vm12705_vm9 = vmmov %vm12551_vm0 }
 0x225   : > { %v2434_v43 = vsel %vm12623_vm4, %v12622_v6, 0.0  ;;  %v2407_v11 = vrot.slane %v2406_v8, 4  ;;  %v12624_v2 = vrot.slane %v8483_v21, 4  ;;  %v2414_v37 = vrot.slane %v2413_v33, 4  ;;  %v12629_v6 = vld [vmem:[#allocation99_spill] sm:$0xff]  ;;  %vm12706_vm14 = vmmov %vm12551_vm0 }
 0x226   : > { %v2421_v51 = vrot.slane %v2420_v20, 4  ;;  %v2428_v30 = vrot.slane %v2427_v14, 4  ;;  %v12627_v10 = vrot.slane %v12626_v13, 4  ;;  %v8718_v63 = vadd.f32 %v2348_v62, %v2347_v23  ;;  %vm12707_vm2 = vmmov %vm12551_vm0 }
 0x227   : > { %v2441_v40 = vsel %vm12625_vm5, %v12624_v2, 0.0  ;;  %v8720_v60 = vadd.f32 %v2367_v57, %v2366_v16  ;;  %v2435_v46 = vrot.slane %v2434_v43, 4  ;;  %v12630_v28 = vrot.slane %v12629_v6, 4  ;;  %vm12708_vm4 = vmmov %vm12551_vm0 }
 0x228   : > { %v2448_v5 = vsel %vm12628_vm6, %v12627_v10, 0.0  ;;  %v2387_v61 = vadd.f32 %v2386_v32, %v2385_v53  ;;  %v2394_v21 = vadd.f32 %v2393_v9, %v2392_v39  ;;  %v2401_v35 = vadd.f32 %v2400_v34, %v2399_v36  ;;  %vm12709_vm5 = vmmov %vm12551_vm0 }
 0x229   : > { %v2455_v3 = vsel %vm12631_vm7, %v12630_v28, 0.0  ;;  %v2442_v2 = vrot.slane %v2441_v40, 4  ;;  %v2408_v18 = vadd.f32 %v2407_v11, %v2406_v8  ;;  %v2449_v38 = vrot.slane %v2448_v5, 4  ;;  %vm12710_vm6 = vmmov %vm12551_vm0 }
 0x22a   : > { %v12633_v1 = vrot.slane %v12632_v27, 4  ;;  %v12635_v10 = vrot.slane %v8504_v25, 4  ;;  %v2415_v16 = vadd.f32 %v2414_v37, %v2413_v33  ;;  %v2422_v62 = vadd.f32 %v2421_v51, %v2420_v20  ;;  %vm12711_vm7 = vmmov %vm12551_vm0 }
 0x22b   : > { %v2429_v57 = vadd.f32 %v2428_v30, %v2427_v14  ;;  %v2456_v6 = vrot.slane %v2455_v3, 4  ;;  %v8731_v22 = vadd.f32 %v2355_v48, %v2354_v59  ;;  %v2362_v28 = vrot.slane %v8698_v17, 1 }
 0x22c   : > { %v2462_v13 = vsel %vm12634_vm12, %v12633_v1, 0.0  ;;  %v2469_v23 = vsel %vm12636_vm11, %v12635_v10, 0.0  ;;  %v2381_v53 = vrot.slane %v2380_v56, 2  ;;  %v2436_v39 = vadd.f32 %v2435_v46, %v2434_v43  ;;  %vm12712_vm12 = vmmov %vm12551_vm0 }
 0x22d   : > { %v2388_v36 = vrot.slane %v2387_v61, 2  ;;  %v2443_v8 = vadd.f32 %v2442_v2, %v2441_v40  ;;  %v2463_v32 = vrot.slane %v2462_v13, 4  ;;  %v2470_v9 = vrot.slane %v2469_v23, 4  ;;  %vm12713_vm11 = vmmov %vm12551_vm0 }
 0x22e   : > { %v2395_v34 = vrot.slane %v2394_v21, 2  ;;  %v2402_v1 = vrot.slane %v2401_v35, 2  ;;  %v2409_v11 = vrot.slane %v2408_v18, 2  ;;  %v2450_v25 = vadd.f32 %v2449_v38, %v2448_v5 }
 0x22f   : > { %v2416_v27 = vrot.slane %v2415_v16, 2  ;;  %v2423_v10 = vrot.slane %v2422_v62, 2  ;;  %v2430_v37 = vrot.slane %v2429_v57, 2  ;;  %v2457_v33 = vadd.f32 %v2456_v6, %v2455_v3 }
 0x230   : > { %v2369_v30 = vrot.slane %v8720_v60, 1  ;;  %v2375_v59 = vadd.f32 %v2374_v44, %v2373_v15  ;;  %v2382_v48 = vadd.f32 %v2381_v53, %v2380_v56  ;;  %v2437_v20 = vrot.slane %v2436_v39, 2 }
 0x231   : > { %v2389_v14 = vadd.f32 %v2388_v36, %v2387_v61  ;;  %v2444_v51 = vrot.slane %v2443_v8, 2  ;;  %v2464_v46 = vadd.f32 %v2463_v32, %v2462_v13  ;;  %v2471_v43 = vadd.f32 %v2470_v9, %v2469_v23 }
 0x232   : > { %v2396_v40 = vadd.f32 %v2395_v34, %v2394_v21  ;;  %v2403_v2 = vadd.f32 %v2402_v1, %v2401_v35  ;;  %v2410_v29 = vadd.f32 %v2409_v11, %v2408_v18  ;;  %v2451_v49 = vrot.slane %v2450_v25, 2 }
 0x233   : > { %v2417_v54 = vadd.f32 %v2416_v27, %v2415_v16  ;;  %v2424_v41 = vadd.f32 %v2423_v10, %v2422_v62  ;;  %v2431_v38 = vadd.f32 %v2430_v37, %v2429_v57  ;;  %v2458_v5 = vrot.slane %v2457_v33, 2 }
 0x234   : > { %v2363_v19 = vadd.f32 %v2362_v28, %v8698_v17  ;;  %v2376_v6 = vrot.slane %v2375_v59, 1  ;;  %v2383_v3 = vrot.slane %v2382_v48, 1  ;;  %v2438_v45 = vadd.f32 %v2437_v20, %v2436_v39 }
 0x235   : > { %v2390_v15 = vrot.slane %v2389_v14, 1  ;;  %v2445_v44 = vadd.f32 %v2444_v51, %v2443_v8  ;;  %v2465_v56 = vrot.slane %v2464_v46, 2  ;;  %v2472_v61 = vrot.slane %v2471_v43, 2 }
 0x236   : > { %v2397_v53 = vrot.slane %v2396_v40, 1  ;;  %v2404_v13 = vrot.slane %v2403_v2, 1  ;;  %v2411_v23 = vrot.slane %v2410_v29, 1  ;;  %v2452_v21 = vadd.f32 %v2451_v49, %v2450_v25 }
 0x237   : > { %v2418_v35 = vrot.slane %v2417_v54, 1  ;;  %v2425_v18 = vrot.slane %v2424_v41, 1  ;;  %v2432_v36 = vrot.slane %v2431_v38, 1  ;;  %v2459_v27 = vadd.f32 %v2458_v5, %v2457_v33 }
 0x238   : > { %v2370_v16 = vadd.f32 %v2369_v30, %v8720_v60  ;;  %v2377_v62 = vadd.f32 %v2376_v6, %v2375_v59  ;;  %v2384_v57 = vadd.f32 %v2383_v3, %v2382_v48  ;;  %v2439_v17 = vrot.slane %v2438_v45, 1 }
 0x239   : > { %v2391_v28 = vadd.f32 %v2390_v15, %v2389_v14  ;;  %v2446_v32 = vrot.slane %v2445_v44, 1  ;;  %v2466_v39 = vadd.f32 %v2465_v56, %v2464_v46  ;;  %v2473_v9 = vadd.f32 %v2472_v61, %v2471_v43 }
 0x23a   : > { %v2398_v8 = vadd.f32 %v2397_v53, %v2396_v40  ;;  %v2405_v34 = vadd.f32 %v2404_v13, %v2403_v2  ;;  %v2412_v1 = vadd.f32 %v2411_v23, %v2410_v29  ;;  %v2453_v11 = vrot.slane %v2452_v21, 1  ;;  %v12637_v23 = vld [vmem:[#allocation67_spill] sm:$0xff] }
 0x23b   : > { %v2419_v10 = vadd.f32 %v2418_v35, %v2417_v54  ;;  %v2426_v37 = vadd.f32 %v2425_v18, %v2424_v41  ;;  %v2433_v49 = vadd.f32 %v2432_v36, %v2431_v38  ;;  %v2460_v25 = vrot.slane %v2459_v27, 1  ;;  %v12639_v35 = vld [vmem:[#allocation69_spill] sm:$0xff] }
 0x23c   : > { %v2440_v20 = vadd.f32 %v2439_v17, %v2438_v45  ;;  %v2476_v33 = vmul.f32 0.5, %v8550_v0  ;;  %v2477_v60 = vmul.f32 0.5, %v8552_v31  ;;  %v2478_v30 = vmul.f32 0.5, %v8561_v42  ;;  %v12641_v36 = vld [vmem:[#allocation73_spill] sm:$0xff] }
 0x23d   : > { %v2447_v59 = vadd.f32 %v2446_v32, %v2445_v44  ;;  %v2467_v48 = vrot.slane %v2466_v39, 1  ;;  %v2474_v14 = vrot.slane %v2473_v9, 1  ;;  %v2479_v51 = vmul.f32 0.5, %v8574_v7 }
 0x23e   : > { %v2454_v46 = vadd.f32 %v2453_v11, %v2452_v21  ;;  %v2480_v29 = vmul.f32 0.5, %v8632_v4  ;;  %v2481_v54 = vmul.f32 0.5, %v8634_v50  ;;  %v2482_v41 = vmul.f32 0.5, %v8648_v58 }
 0x23f   : > { %v2461_v43 = vadd.f32 %v2460_v25, %v2459_v27  ;;  %v2483_v45 = vmul.f32 0.5, %v8659_v12  ;;  %v2484_v0 = vmul.f32 0.5, %v8670_v26  ;;  %v2485_v31 = vmul.f32 0.5, %v8678_v47 }
 0x240   : > { %v2486_v42 = vmul.f32 0.5, %v8680_v24  ;;  %v2487_v40 = vmul.f32 0.5, %v8682_v55  ;;  %v2488_v7 = vmul.f32 0.5, %v8684_v52  ;;  %v2489_v2 = vmul.f32 0.5, %v8718_v63 }
 0x241   : > { %v2468_v4 = vadd.f32 %v2467_v48, %v2466_v39  ;;  %v2475_v38 = vadd.f32 %v2474_v14, %v2473_v9  ;;  %v2490_v50 = vmul.f32 0.5, %v8731_v22  ;;  %v2491_v58 = vmul.f32 0.5, %v2363_v19  ;;  %v12638_v19 = vld [vmem:[#allocation68_spill] sm:$0xff]  ;;  %v12649_v39 = vld [vmem:[#allocation77_spill] sm:$0xff] }
 0x242   : > { %v2492_v5 = vmul.f32 0.5, %v2370_v16  ;;  %v2493_v6 = vmul.f32 0.5, %v2377_v62  ;;  %v2494_v12 = vmul.f32 0.5, %v2384_v57  ;;  %v2495_v3 = vmul.f32 0.5, %v2391_v28  ;;  %v12643_v16 = vld [vmem:[#allocation74_spill] sm:$0xff]  ;;  %v12645_v57 = vld [vmem:[#allocation75_spill] sm:$0xff] }
 0x243   : > { %v2496_v26 = vmul.f32 0.5, %v2398_v8  ;;  %v2497_v15 = vmul.f32 0.5, %v2405_v34  ;;  %v2498_v47 = vmul.f32 0.5, %v2412_v1  ;;  %v2499_v44 = vmul.f32 0.5, %v2419_v10  ;;  %v12647_v28 = vld [vmem:[#allocation76_spill] sm:$0xff]  ;;  %v12651_v8 = vld [vmem:[#allocation78_spill] sm:$0xff] }
 0x244   : > { %v2500_v24 = vmul.f32 0.5, %v2426_v37  ;;  %v2501_v56 = vmul.f32 0.5, %v2433_v49  ;;  %v2502_v55 = vmul.f32 0.5, %v2440_v20  ;;  %v2503_v61 = vmul.f32 0.5, %v2447_v59  ;;  %v12653_v1 = vld [vmem:[#allocation79_spill] sm:$0xff]  ;;  %v12655_v10 = vld [vmem:[#allocation80_spill] sm:$0xff] }
 0x245   : > { %v2504_v52 = vmul.f32 0.5, %v2454_v46  ;;  %v2505_v53 = vmul.f32 0.5, %v2461_v43  ;;  %v2506_v63 = vmul.f32 0.5, %v2468_v4  ;;  %v2507_v13 = vmul.f32 0.5, %v2475_v38  ;;  %v12657_v49 = vld [vmem:[#allocation81_spill] sm:$0xff]  ;;  %v12659_v20 = vld [vmem:[#allocation82_spill] sm:$0xff] }
 0x246   : > { %v8753_v21 = vsub.f32 %v12637_v23, %v2476_v33  ;;  %v8756_v22 = vsub.f32 %v12638_v19, %v2477_v60  ;;  %v8759_v18 = vsub.f32 %v12639_v35, %v2478_v30  ;;  %v8762_v27 = vsub.f32 %v12641_v36, %v2479_v51  ;;  %v12661_v60 = vld [vmem:[#allocation83_spill] sm:$0xff]  ;;  %v12663_v59 = vld [vmem:[#allocation84_spill] sm:$0xff]  ;;  %v12665_v14 = vld [vmem:[#allocation85_spill] sm:$0xff] }
 0x247   : > { %v8765_v62 = vsub.f32 %v12643_v16, %v2480_v29  ;;  %v8768_v17 = vsub.f32 %v12645_v57, %v2481_v54  ;;  %v8771_v32 = vsub.f32 %v12647_v28, %v2482_v41  ;;  %v8774_v9 = vsub.f32 %v12649_v39, %v2483_v45  ;;  %v12667_v46 = vld [vmem:[#allocation86_spill] sm:$0xff]  ;;  %v12669_v54 = vld [vmem:[#allocation87_spill] sm:$0xff]  ;;  %v12671_v43 = vld [vmem:[#allocation88_spill] sm:$0xff] }
 0x248   : > { %12640 = vst [vmem:[#allocation67_spill] sm:$0xff] %v8759_v18  ;;  %12642 = vst [vmem:[#allocation68_spill] sm:$0xff] %v8762_v27  ;;  %v8777_v34 = vsub.f32 %v12651_v8, %v2484_v0  ;;  %v8780_v11 = vsub.f32 %v12653_v1, %v2485_v31  ;;  %v8783_v37 = vsub.f32 %v12655_v10, %v2486_v42  ;;  %v12673_v0 = vld [vmem:[#allocation89_spill] sm:$0xff]  ;;  %v12675_v42 = vld [vmem:[#allocation90_spill] sm:$0xff] }
 0x249   : > { %12644 = vst [vmem:[#allocation69_spill] sm:$0xff] %v8765_v62  ;;  %12646 = vst [vmem:[#allocation73_spill] sm:$0xff] %v8768_v17  ;;  %v8786_v25 = vsub.f32 %v12657_v49, %v2487_v40  ;;  %v8789_v33 = vsub.f32 %v12659_v20, %v2488_v7  ;;  %v8792_v30 = vsub.f32 %v12661_v60, %v2489_v2  ;;  %v12677_v7 = vld [vmem:[#allocation91_spill] sm:$0xff]  ;;  %v12679_v4 = vld [vmem:[#allocation92_spill] sm:$0xff] }
 0x24a   : > { %12648 = vst [vmem:[#allocation74_spill] sm:$0xff] %v8771_v32  ;;  %12650 = vst [vmem:[#allocation75_spill] sm:$0xff] %v8774_v9  ;;  %v8795_v48 = vsub.f32 %v12663_v59, %v2490_v50  ;;  %v8798_v51 = vsub.f32 %v12665_v14, %v2491_v58  ;;  %v8801_v29 = vsub.f32 %v12667_v46, %v2492_v5  ;;  %v12681_v50 = vld [vmem:[#allocation93_spill] sm:$0xff]  ;;  %v12683_v5 = vld [vmem:[#allocation94_spill] sm:$0xff] }
 0x24b   : > { %12652 = vst [vmem:[#allocation76_spill] sm:$0xff] %v8777_v34  ;;  %12654 = vst [vmem:[#allocation77_spill] sm:$0xff] %v8780_v11  ;;  %v8804_v41 = vsub.f32 %v12669_v54, %v2493_v6  ;;  %v8807_v45 = vsub.f32 %v12671_v43, %v2494_v12  ;;  %v8810_v31 = vsub.f32 %v12673_v0, %v2495_v3  ;;  %v12685_v12 = vld [vmem:[#allocation95_spill] sm:$0xff]  ;;  %v12687_v3 = vld [vmem:[#allocation96_spill] sm:$0xff] }
 0x24c   : > { %12656 = vst [vmem:[#allocation78_spill] sm:$0xff] %v8783_v37  ;;  %12658 = vst [vmem:[#allocation79_spill] sm:$0xff] %v8786_v25  ;;  %v8813_v40 = vsub.f32 %v12675_v42, %v2496_v26  ;;  %v8816_v2 = vsub.f32 %v12677_v7, %v2497_v15  ;;  %v8819_v38 = vsub.f32 %v12679_v4, %v2498_v47  ;;  %v12689_v26 = vld [vmem:[#allocation97_spill] sm:$0xff]  ;;  %v12691_v15 = vld [vmem:[#allocation98_spill] sm:$0xff] }
 0x24d   : > { %12660 = vst [vmem:[#allocation80_spill] sm:$0xff] %v8789_v33  ;;  %12662 = vst [vmem:[#allocation81_spill] sm:$0xff] %v8792_v30  ;;  %v8822_v58 = vsub.f32 %v12681_v50, %v2499_v44  ;;  %v8825_v6 = vsub.f32 %v12683_v5, %v2500_v24  ;;  %v8828_v23 = vsub.f32 %v12685_v12, %v2501_v56  ;;  %v12693_v47 = vld [vmem:[#allocation99_spill] sm:$0xff]  ;;  %v12695_v44 = vld [vmem:[#allocation100_spill] sm:$0xff] }
 0x24e   : > { %12664 = vst [vmem:[#allocation82_spill] sm:$0xff] %v8795_v48  ;;  %12666 = vst [vmem:[#allocation83_spill] sm:$0xff] %v8798_v51  ;;  %v8831_v19 = vsub.f32 %v12687_v3, %v2502_v55  ;;  %v8834_v35 = vsub.f32 %v12689_v26, %v2503_v61  ;;  %v8837_v36 = vsub.f32 %v12691_v15, %v2504_v52  ;;  %v12697_v24 = vld [vmem:[#allocation102_spill] sm:$0xff] }
 0x24f   : > { %12668 = vst [vmem:[#allocation84_spill] sm:$0xff] %v8801_v29  ;;  %12670 = vst [vmem:[#allocation85_spill] sm:$0xff] %v8804_v41  ;;  %v8840_v16 = vsub.f32 %v12693_v47, %v2505_v53  ;;  %v8843_v57 = vsub.f32 %v12695_v44, %v2506_v63  ;;  %v8846_v28 = vsub.f32 %v12697_v24, %v2507_v13 }
 0x250   : > { %12672 = vst [vmem:[#allocation86_spill] sm:$0xff] %v8807_v45  ;;  %12674 = vst [vmem:[#allocation87_spill] sm:$0xff] %v8810_v31  ;;  %v2540_v56 = vmul.f32 %v8753_v21, %v8753_v21  ;;  %v2541_v55 = vmul.f32 %v8756_v22, %v8756_v22  ;;  %v2542_v61 = vmul.f32 %v8759_v18, %v8759_v18 }
 0x251   : > { %12676 = vst [vmem:[#allocation88_spill] sm:$0xff] %v8813_v40  ;;  %12678 = vst [vmem:[#allocation89_spill] sm:$0xff] %v8816_v2  ;;  %v2543_v52 = vmul.f32 %v8762_v27, %v8762_v27  ;;  %v8858_v53 = vmul.f32 %v8765_v62, %v8765_v62  ;;  %v8862_v63 = vmul.f32 %v8768_v17, %v8768_v17 }
 0x252   : > { %12680 = vst [vmem:[#allocation90_spill] sm:$0xff] %v8819_v38  ;;  %12682 = vst [vmem:[#allocation91_spill] sm:$0xff] %v8822_v58  ;;  %v8866_v13 = vmul.f32 %v8771_v32, %v8771_v32  ;;  %v8870_v39 = vmul.f32 %v8774_v9, %v8774_v9  ;;  %v8874_v8 = vmul.f32 %v8777_v34, %v8777_v34  ;;  %v2604_v3 = vrot.slane %v2540_v56, 4 }
 0x253   : > { %12684 = vst [vmem:[#allocation92_spill] sm:$0xff] %v8825_v6  ;;  %12686 = vst [vmem:[#allocation93_spill] sm:$0xff] %v8828_v23  ;;  %v8878_v1 = vmul.f32 %v8780_v11, %v8780_v11  ;;  %v8882_v10 = vmul.f32 %v8783_v37, %v8783_v37  ;;  %v8886_v49 = vmul.f32 %v8786_v25, %v8786_v25  ;;  %v2605_v26 = vrot.slane %v2541_v55, 4 }
 0x254   : > { %12688 = vst [vmem:[#allocation94_spill] sm:$0xff] %v8831_v19  ;;  %12690 = vst [vmem:[#allocation95_spill] sm:$0xff] %v8834_v35  ;;  %v8890_v20 = vmul.f32 %v8789_v33, %v8789_v33  ;;  %v8894_v60 = vmul.f32 %v8792_v30, %v8792_v30  ;;  %v8898_v59 = vmul.f32 %v8795_v48, %v8795_v48  ;;  %v2606_v44 = vrot.slane %v2542_v61, 4 }
 0x255   : > { %12692 = vst [vmem:[#allocation96_spill] sm:$0xff] %v8837_v36  ;;  %12694 = vst [vmem:[#allocation97_spill] sm:$0xff] %v8840_v16  ;;  %v8902_v14 = vmul.f32 %v8798_v51, %v8798_v51  ;;  %v8906_v46 = vmul.f32 %v8801_v29, %v8801_v29  ;;  %v8910_v54 = vmul.f32 %v8804_v41, %v8804_v41  ;;  %v2607_v24 = vrot.slane %v2543_v52, 4 }
 0x256   : > { %12696 = vst [vmem:[#allocation98_spill] sm:$0xff] %v8843_v57  ;;  %12698 = vst [vmem:[#allocation99_spill] sm:$0xff] %v8846_v28  ;;  %v8914_v43 = vmul.f32 %v8807_v45, %v8807_v45  ;;  %v8918_v0 = vmul.f32 %v8810_v31, %v8810_v31  ;;  %v8922_v42 = vmul.f32 %v8813_v40, %v8813_v40  ;;  %v2609_v61 = vrot.slane %v8862_v63, 4 }
 0x257   : > { %v8926_v7 = vmul.f32 %v8816_v2, %v8816_v2  ;;  %v8930_v4 = vmul.f32 %v8819_v38, %v8819_v38  ;;  %v8934_v50 = vmul.f32 %v8822_v58, %v8822_v58  ;;  %v8938_v5 = vmul.f32 %v8825_v6, %v8825_v6 }
 0x258   : > { %v8942_v12 = vmul.f32 %v8828_v23, %v8828_v23  ;;  %v8946_v15 = vmul.f32 %v8831_v19, %v8831_v19  ;;  %v8950_v47 = vmul.f32 %v8834_v35, %v8834_v35  ;;  %v8954_v6 = vmul.f32 %v8837_v36, %v8837_v36 }
 0x259   : > { %v8958_v23 = vmul.f32 %v8840_v16, %v8840_v16  ;;  %v8962_v56 = vmul.f32 %v8843_v57, %v8843_v57  ;;  %v8966_v55 = vmul.f32 %v8846_v28, %v8846_v28  ;;  %v2608_v35 = vrot.slane %v8858_v53, 4 }
 0x25a   : > { %v2610_v52 = vrot.slane %v8866_v13, 4  ;;  %v2611_v36 = vrot.slane %v8870_v39, 4  ;;  %v2612_v19 = vrot.slane %v8874_v8, 4  ;;  %v2613_v16 = vrot.slane %v8878_v1, 4 }
 0x25b   : > { %v2668_v58 = vsel %vm12699_vm13, %v2604_v3, 0.0  ;;  %v2675_v57 = vsel %vm12700_vm3, %v2605_v26, 0.0  ;;  %v2614_v38 = vrot.slane %v8882_v10, 4  ;;  %v2615_v28 = vrot.slane %v8886_v49, 4  ;;  %vm12715_vm13 = vmmov %vm12551_vm0 }
 0x25c   : > { %v2682_v53 = vsel %vm12701_vm8, %v2606_v44, 0.0  ;;  %v2689_v63 = vsel %vm12702_vm1, %v2607_v24, 0.0  ;;  %v2616_v13 = vrot.slane %v8890_v20, 4  ;;  %v2617_v39 = vrot.slane %v8894_v60, 4  ;;  %vm12717_vm3 = vmmov %vm12551_vm0 }
 0x25d   : > { %v2618_v8 = vrot.slane %v8898_v59, 4  ;;  %v2619_v1 = vrot.slane %v8902_v14, 4  ;;  %v2669_v2 = vrot.slane %v2668_v58, 4  ;;  %v2676_v10 = vrot.slane %v2675_v57, 4  ;;  %vm12719_vm8 = vmmov %vm12551_vm0 }
 0x25e   : > { %v2683_v40 = vrot.slane %v2682_v53, 4  ;;  %v2690_v24 = vrot.slane %v2689_v63, 4  ;;  %v2696_v31 = vsel %vm12703_vm15, %v2608_v35, 0.0  ;;  %v2703_v49 = vsel %vm12704_vm10, %v2609_v61, 0.0  ;;  %vm12721_vm1 = vmmov %vm12551_vm0 }
 0x25f   : > { %v2670_v45 = vadd.f32 %v2669_v2, %v2668_v58  ;;  %v2677_v44 = vadd.f32 %v2676_v10, %v2675_v57  ;;  %v2710_v41 = vsel %vm12705_vm9, %v2610_v52, 0.0  ;;  %v2717_v20 = vsel %vm12706_vm14, %v2611_v36, 0.0  ;;  %vm12723_vm15 = vmmov %vm12551_vm0 }
 0x260   : > { %v2684_v29 = vadd.f32 %v2683_v40, %v2682_v53  ;;  %v2691_v14 = vadd.f32 %v2690_v24, %v2689_v63  ;;  %v2697_v51 = vrot.slane %v2696_v31, 4  ;;  %v2704_v3 = vrot.slane %v2703_v49, 4  ;;  %vm12725_vm10 = vmmov %vm12551_vm0 }
 0x261   : > { %v2724_v26 = vsel %vm12707_vm2, %v2612_v19, 0.0  ;;  %v2731_v35 = vsel %vm12551_vm0, %v2613_v16, 0.0  ;;  %v2711_v58 = vrot.slane %v2710_v41, 4  ;;  %v2718_v57 = vrot.slane %v2717_v20, 4  ;;  %vm12727_vm9 = vmmov %vm12551_vm0 }
 0x262   : > { %v2671_v10 = vrot.slane %v2670_v45, 2  ;;  %v2678_v59 = vrot.slane %v2677_v44, 2  ;;  %v2725_v40 = vrot.slane %v2724_v26, 4  ;;  %v2732_v53 = vrot.slane %v2731_v35, 4  ;;  %vm12729_vm14 = vmmov %vm12551_vm0 }
 0x263   : > { %v2738_v63 = vsel %vm12708_vm4, %v2614_v38, 0.0  ;;  %v2745_v19 = vsel %vm12709_vm5, %v2615_v28, 0.0  ;;  %v2685_v24 = vrot.slane %v2684_v29, 2  ;;  %v2692_v16 = vrot.slane %v2691_v14, 2  ;;  %vm12731_vm2 = vmmov %vm12551_vm0 }
 0x264   : > { %v2698_v60 = vadd.f32 %v2697_v51, %v2696_v31  ;;  %v2705_v61 = vadd.f32 %v2704_v3, %v2703_v49  ;;  %v2712_v48 = vadd.f32 %v2711_v58, %v2710_v41  ;;  %v2719_v2 = vadd.f32 %v2718_v57, %v2717_v20  ;;  %vm12734_vm4 = vmmov %vm12551_vm0 }
 0x265   : > { %v2752_v30 = vsel %vm12710_vm6, %v2616_v13, 0.0  ;;  %v2759_v36 = vsel %vm12711_vm7, %v2617_v39, 0.0  ;;  %v2739_v33 = vrot.slane %v2738_v63, 4  ;;  %v2746_v52 = vrot.slane %v2745_v19, 4  ;;  %vm12736_vm5 = vmmov %vm12551_vm0 }
 0x266   : > { %v2766_v25 = vsel %vm12712_vm12, %v2618_v8, 0.0  ;;  %v2773_v37 = vsel %vm12713_vm11, %v2619_v1, 0.0  ;;  %v2672_v11 = vadd.f32 %v2671_v10, %v2670_v45  ;;  %v2679_v38 = vadd.f32 %v2678_v59, %v2677_v44  ;;  %vm12738_vm6 = vmmov %vm12551_vm0 }
 0x267   : > { %v2726_v34 = vadd.f32 %v2725_v40, %v2724_v26  ;;  %v2733_v28 = vadd.f32 %v2732_v53, %v2731_v35  ;;  %v2686_v9 = vadd.f32 %v2685_v24, %v2684_v29  ;;  %v2693_v32 = vadd.f32 %v2692_v16, %v2691_v14  ;;  %vm12740_vm7 = vmmov %vm12551_vm0 }
 0x268   : > { %v2753_v51 = vrot.slane %v2752_v30, 4  ;;  %v2760_v31 = vrot.slane %v2759_v36, 4  ;;  %v2699_v41 = vrot.slane %v2698_v60, 2  ;;  %v2706_v3 = vrot.slane %v2705_v61, 2  ;;  %vm12742_vm12 = vmmov %vm12551_vm0 }
 0x269   : > { %v2767_v49 = vrot.slane %v2766_v25, 4  ;;  %v2774_v13 = vrot.slane %v2773_v37, 4  ;;  %v2713_v20 = vrot.slane %v2712_v48, 2  ;;  %v2720_v39 = vrot.slane %v2719_v2, 2  ;;  %vm12744_vm11 = vmmov %vm12551_vm0 }
 0x26a   : > { %v2740_v58 = vadd.f32 %v2739_v33, %v2738_v63  ;;  %v2747_v57 = vadd.f32 %v2746_v52, %v2745_v19  ;;  %v2673_v17 = vrot.slane %v2672_v11, 1  ;;  %v2680_v8 = vrot.slane %v2679_v38, 1 }
 0x26b   : > { %v2727_v62 = vrot.slane %v2726_v34, 2  ;;  %v2734_v1 = vrot.slane %v2733_v28, 2  ;;  %v2687_v45 = vrot.slane %v2686_v9, 1  ;;  %v2694_v44 = vrot.slane %v2693_v32, 1 }
 0x26c   : > { %v2754_v26 = vadd.f32 %v2753_v51, %v2752_v30  ;;  %v2761_v59 = vadd.f32 %v2760_v31, %v2759_v36  ;;  %v2700_v29 = vadd.f32 %v2699_v41, %v2698_v60  ;;  %v2707_v14 = vadd.f32 %v2706_v3, %v2705_v61 }
 0x26d   : > { %v2768_v35 = vadd.f32 %v2767_v49, %v2766_v25  ;;  %v2775_v10 = vadd.f32 %v2774_v13, %v2773_v37  ;;  %v2714_v40 = vadd.f32 %v2713_v20, %v2712_v48  ;;  %v2721_v53 = vadd.f32 %v2720_v39, %v2719_v2 }
 0x26e   : > { %v2741_v24 = vrot.slane %v2740_v58, 2  ;;  %v2748_v16 = vrot.slane %v2747_v57, 2  ;;  %v9012_v27 = vadd.f32 %v2673_v17, %v2672_v11  ;;  %v9014_v33 = vadd.f32 %v2680_v8, %v2679_v38 }
 0x26f   : > { %v2728_v52 = vadd.f32 %v2727_v62, %v2726_v34  ;;  %v2735_v63 = vadd.f32 %v2734_v1, %v2733_v28  ;;  %v9016_v19 = vadd.f32 %v2687_v45, %v2686_v9  ;;  %v9018_v18 = vadd.f32 %v2694_v44, %v2693_v32 }
 0x270   : > { %v2755_v30 = vrot.slane %v2754_v26, 2  ;;  %v2762_v36 = vrot.slane %v2761_v59, 2  ;;  %v2701_v60 = vrot.slane %v2700_v29, 1  ;;  %v2708_v61 = vrot.slane %v2707_v14, 1 }
 0x271   : > { %v2769_v25 = vrot.slane %v2768_v35, 2  ;;  %v2776_v37 = vrot.slane %v2775_v10, 2  ;;  %v2715_v48 = vrot.slane %v2714_v40, 1  ;;  %v2722_v2 = vrot.slane %v2721_v53, 1 }
 0x272   : > { %v2742_v51 = vadd.f32 %v2741_v24, %v2740_v58  ;;  %v2749_v31 = vadd.f32 %v2748_v16, %v2747_v57  ;;  %v2729_v17 = vrot.slane %v2728_v52, 1  ;;  %v2736_v11 = vrot.slane %v2735_v63, 1 }
 0x273   : > { %v12714_v38 = vrot.slane %v8906_v46, 4  ;;  %v12716_v9 = vrot.slane %v8910_v54, 4  ;;  %v2756_v34 = vadd.f32 %v2755_v30, %v2754_v26  ;;  %v2763_v28 = vadd.f32 %v2762_v36, %v2761_v59 }
 0x274   : > { %v12718_v41 = vrot.slane %v8914_v43, 4  ;;  %v12720_v49 = vrot.slane %v8918_v0, 4  ;;  %v9032_v20 = vadd.f32 %v2701_v60, %v2700_v29  ;;  %v9034_v39 = vadd.f32 %v2708_v61, %v2707_v14 }
 0x275   : > { %v2780_v62 = vsel %vm12715_vm13, %v12714_v38, 0.0  ;;  %v2787_v32 = vsel %vm12717_vm3, %v12716_v9, 0.0  ;;  %v2770_v46 = vadd.f32 %v2769_v25, %v2768_v35  ;;  %v2777_v58 = vadd.f32 %v2776_v37, %v2775_v10 }
 0x276   : > { %v2794_v3 = vsel %vm12719_vm8, %v12718_v41, 0.0  ;;  %v2801_v13 = vsel %vm12721_vm1, %v12720_v49, 0.0  ;;  %v9036_v57 = vadd.f32 %v2715_v48, %v2714_v40  ;;  %v2743_v54 = vrot.slane %v2742_v51, 1 }
 0x277   : > { %v2781_v8 = vrot.slane %v2780_v62, 4  ;;  %v2788_v1 = vrot.slane %v2787_v32, 4  ;;  %v9038_v45 = vadd.f32 %v2722_v2, %v2721_v53  ;;  %v2750_v43 = vrot.slane %v2749_v31, 1 }
 0x278   : > { %v2795_v44 = vrot.slane %v2794_v3, 4  ;;  %v2802_v26 = vrot.slane %v2801_v13, 4  ;;  %v9040_v59 = vadd.f32 %v2729_v17, %v2728_v52  ;;  %v9042_v0 = vadd.f32 %v2736_v11, %v2735_v63 }
 0x279   : > { %v2757_v29 = vrot.slane %v2756_v34, 1  ;;  %v2764_v24 = vrot.slane %v2763_v28, 1  ;;  %v2771_v14 = vrot.slane %v2770_v46, 1  ;;  %v2778_v16 = vrot.slane %v2777_v58, 1 }
 0x27a   : > { %v12722_v35 = vrot.slane %v8922_v42, 4  ;;  %v12724_v40 = vrot.slane %v8926_v7, 4  ;;  %v9050_v30 = vadd.f32 %v2743_v54, %v2742_v51  ;;  %v2782_v36 = vadd.f32 %v2781_v8, %v2780_v62 }
 0x27b   : > { %v2789_v60 = vadd.f32 %v2788_v1, %v2787_v32  ;;  %v12726_v52 = vrot.slane %v8930_v4, 4  ;;  %v9055_v61 = vadd.f32 %v2750_v43, %v2749_v31  ;;  %v2796_v25 = vadd.f32 %v2795_v44, %v2794_v3 }
 0x27c   : > { %v2808_v10 = vsel %vm12723_vm15, %v12722_v35, 0.0  ;;  %v2815_v53 = vsel %vm12725_vm10, %v12724_v40, 0.0  ;;  %v2803_v37 = vadd.f32 %v2802_v26, %v2801_v13  ;;  %v12728_v42 = vrot.slane %v8934_v50, 4 }
 0x27d   : > { %v2822_v63 = vsel %vm12727_vm9, %v12726_v52, 0.0  ;;  %v9060_v2 = vadd.f32 %v2757_v29, %v2756_v34  ;;  %v9062_v7 = vadd.f32 %v2764_v24, %v2763_v28  ;;  %v2809_v51 = vrot.slane %v2808_v10, 4 }
 0x27e   : > { %v2829_v48 = vsel %vm12729_vm14, %v12728_v42, 0.0  ;;  %v2816_v17 = vrot.slane %v2815_v53, 4  ;;  %v9064_v11 = vadd.f32 %v2771_v14, %v2770_v46  ;;  %v9066_v38 = vadd.f32 %v2778_v16, %v2777_v58 }
 0x27f   : > { %v2823_v4 = vrot.slane %v2822_v63, 4  ;;  %v12730_v31 = vrot.slane %v8938_v5, 4  ;;  %v2783_v9 = vrot.slane %v2782_v36, 2  ;;  %v2790_v32 = vrot.slane %v2789_v60, 2 }
 0x280   : > { %v2830_v50 = vrot.slane %v2829_v48, 4  ;;  %v12732_v41 = vrot.slane %v8942_v12, 4  ;;  %v2797_v28 = vrot.slane %v2796_v25, 2  ;;  %v2804_v3 = vrot.slane %v2803_v37, 2 }
 0x281   : > { %v2836_v62 = vsel %vm12731_vm2, %v12730_v31, 0.0  ;;  %v12733_v49 = vrot.slane %v8946_v15, 4  ;;  %v12735_v46 = vrot.slane %v8950_v47, 4  ;;  %v2810_v5 = vadd.f32 %v2809_v51, %v2808_v10 }
 0x282   : > { %v2843_v34 = vsel %vm12551_vm0, %v12732_v41, 0.0  ;;  %v2817_v54 = vadd.f32 %v2816_v17, %v2815_v53  ;;  %v2837_v8 = vrot.slane %v2836_v62, 4  ;;  %v12737_v1 = vrot.slane %v8954_v6, 4 }
 0x283   : > { %v2850_v13 = vsel %vm12734_vm4, %v12733_v49, 0.0  ;;  %v2857_v58 = vsel %vm12736_vm5, %v12735_v46, 0.0  ;;  %v2844_v12 = vrot.slane %v2843_v34, 4  ;;  %v12739_v44 = vrot.slane %v8958_v23, 4 }
 0x284   : > { %v2864_v43 = vsel %vm12738_vm6, %v12737_v1, 0.0  ;;  %v12741_v15 = vrot.slane %v8962_v56, 4  ;;  %v12743_v47 = vrot.slane %v8966_v55, 4  ;;  %v2824_v14 = vadd.f32 %v2823_v4, %v2822_v63 }
 0x285   : > { %v2871_v26 = vsel %vm12740_vm7, %v12739_v44, 0.0  ;;  %v2831_v16 = vadd.f32 %v2830_v50, %v2829_v48  ;;  %v2851_v35 = vrot.slane %v2850_v13, 4  ;;  %v2858_v10 = vrot.slane %v2857_v58, 4 }
 0x286   : > { %v2878_v29 = vsel %vm12742_vm12, %v12741_v15, 0.0  ;;  %v2885_v24 = vsel %vm12744_vm11, %v12743_v47, 0.0  ;;  %v2784_v6 = vadd.f32 %v2783_v9, %v2782_v36  ;;  %v2791_v40 = vadd.f32 %v2790_v32, %v2789_v60 }
 0x287   : > { %v2798_v53 = vadd.f32 %v2797_v28, %v2796_v25  ;;  %v2865_v52 = vrot.slane %v2864_v43, 4  ;;  %v2805_v42 = vadd.f32 %v2804_v3, %v2803_v37  ;;  %v2872_v23 = vrot.slane %v2871_v26, 4 }
 0x288   : > { %v2879_v51 = vrot.slane %v2878_v29, 4  ;;  %v2886_v17 = vrot.slane %v2885_v24, 4  ;;  %v2811_v31 = vrot.slane %v2810_v5, 2  ;;  %v2818_v56 = vrot.slane %v2817_v54, 2 }
 0x289   : > { %v2838_v41 = vadd.f32 %v2837_v8, %v2836_v62  ;;  %v2845_v49 = vadd.f32 %v2844_v12, %v2843_v34  ;;  %v2825_v46 = vrot.slane %v2824_v14, 2  ;;  %v2832_v55 = vrot.slane %v2831_v16, 2 }
 0x28a   : > { %v2852_v1 = vadd.f32 %v2851_v35, %v2850_v13  ;;  %v2859_v44 = vadd.f32 %v2858_v10, %v2857_v58  ;;  %v2785_v63 = vrot.slane %v2784_v6, 1  ;;  %v2792_v48 = vrot.slane %v2791_v40, 1 }
 0x28b   : > { %v2799_v4 = vrot.slane %v2798_v53, 1  ;;  %v2866_v50 = vadd.f32 %v2865_v52, %v2864_v43  ;;  %v2806_v36 = vrot.slane %v2805_v42, 1  ;;  %v2873_v60 = vadd.f32 %v2872_v23, %v2871_v26 }
 0x28c   : > { %v2880_v25 = vadd.f32 %v2879_v51, %v2878_v29  ;;  %v2887_v9 = vadd.f32 %v2886_v17, %v2885_v24  ;;  %v2812_v37 = vadd.f32 %v2811_v31, %v2810_v5  ;;  %v2819_v32 = vadd.f32 %v2818_v56, %v2817_v54 }
 0x28d   : > { %v2839_v28 = vrot.slane %v2838_v41, 2  ;;  %v2846_v3 = vrot.slane %v2845_v49, 2  ;;  %v2826_v15 = vadd.f32 %v2825_v46, %v2824_v14  ;;  %v2833_v47 = vadd.f32 %v2832_v55, %v2831_v16 }
 0x28e   : > { %v2853_v62 = vrot.slane %v2852_v1, 2  ;;  %v2860_v34 = vrot.slane %v2859_v44, 2  ;;  %v9092_v8 = vadd.f32 %v2785_v63, %v2784_v6  ;;  %v9094_v13 = vadd.f32 %v2792_v48, %v2791_v40 }
 0x28f   : > { %v2867_v58 = vrot.slane %v2866_v50, 2  ;;  %5367 = vrsqrt.f32 %v9012_v27  ;;  %v9097_v43 = vadd.f32 %v2799_v4, %v2798_v53  ;;  %v2874_v12 = vrot.slane %v2873_v60, 2 }
 0x290   : > { %v2881_v26 = vrot.slane %v2880_v25, 2  ;;  %v2888_v29 = vrot.slane %v2887_v9, 2  ;;  %v9099_v5 = vadd.f32 %v2806_v36, %v2805_v42  ;;  %v2840_v54 = vadd.f32 %v2839_v28, %v2838_v41 }
 0x291   : > { %v2847_v24 = vadd.f32 %v2846_v3, %v2845_v49  ;;  %5369 = vrsqrt.f32 %v9014_v33  ;;  %v2813_v14 = vrot.slane %v2812_v37, 1  ;;  %v2854_v16 = vadd.f32 %v2853_v62, %v2852_v1 }
 0x292   : > { %v2861_v35 = vadd.f32 %v2860_v34, %v2859_v44  ;;  %5371 = vrsqrt.f32 %v9016_v19  ;;  %v2820_v10 = vrot.slane %v2819_v32, 1  ;;  %v2827_v6 = vrot.slane %v2826_v15, 1 }
 0x293   : > { %v2868_v40 = vadd.f32 %v2867_v58, %v2866_v50  ;;  %5373 = vrsqrt.f32 %v9018_v18  ;;  %v2875_v53 = vadd.f32 %v2874_v12, %v2873_v60  ;;  %v2882_v52 = vadd.f32 %v2881_v26, %v2880_v25 }
 0x294   : > { %v2889_v23 = vadd.f32 %v2888_v29, %v2887_v9  ;;  %5375 = vrsqrt.f32 %v9032_v20  ;;  %v2834_v42 = vrot.slane %v2833_v47, 1  ;;  %v2841_v51 = vrot.slane %v2840_v54, 1 }
 0x295   : > { %v2848_v17 = vrot.slane %v2847_v24, 1  ;;  %5377 = vrsqrt.f32 %v9034_v39  ;;  %v9106_v31 = vadd.f32 %v2813_v14, %v2812_v37  ;;  %v2855_v56 = vrot.slane %v2854_v16, 1 }
 0x296   : > { %v2862_v41 = vrot.slane %v2861_v35, 1  ;;  %5379 = vrsqrt.f32 %v9036_v57  ;;  %v9109_v49 = vadd.f32 %v2820_v10, %v2819_v32  ;;  %v9111_v46 = vadd.f32 %v2827_v6, %v2826_v15 }
 0x297   : > { %v2869_v55 = vrot.slane %v2868_v40, 1  ;;  %5381 = vrsqrt.f32 %v9038_v45  ;;  %v2876_v1 = vrot.slane %v2875_v53, 1  ;;  %v2883_v44 = vrot.slane %v2882_v52, 1 }
 0x298   : > { %v2890_v63 = vrot.slane %v2889_v23, 1  ;;  %5383 = vrsqrt.f32 %v9040_v59  ;;  %v9115_v48 = vadd.f32 %v2834_v42, %v2833_v47  ;;  %v9117_v4 = vadd.f32 %v2841_v51, %v2840_v54 }
 0x299   : > { %v9119_v50 = vadd.f32 %v2848_v17, %v2847_v24  ;;  %5385 = vrsqrt.f32 %v9042_v0  ;;  %v9122_v36 = vadd.f32 %v2855_v56, %v2854_v16  ;;  %v9124_v60 = vadd.f32 %v2862_v41, %v2861_v35 }
 0x29a   : > { %vm2894_vm13 = vcmp.eq.f32.partialorder %v9012_v27, inf  ;;  %5387 = vrsqrt.f32 %v9050_v30  ;;  %v9128_v25 = vadd.f32 %v2869_v55, %v2868_v40  ;;  %vm2896_vm3 = vcmp.eq.f32.partialorder %v9012_v27, 0.0 }
 0x29b   : > { %v2897_v9 = vand.u32 2147483648, %v9012_v27  ;;  %5389 = vrsqrt.f32 %v9055_v61  ;;  %v9133_v32 = vadd.f32 %v2876_v1, %v2875_v53  ;;  %v9135_v28 = vadd.f32 %v2883_v44, %v2882_v52 }
 0x29c   : > { %v5368_v37 = vpop.eup %5367  ;;  %v9137_v3 = vadd.f32 %v2890_v63, %v2889_v23  ;;  %5391 = vrsqrt.f32 %v9060_v2  ;;  %vm2901_vm8 = vcmp.eq.f32.partialorder %v9014_v33, inf  ;;  %vm2903_vm1 = vcmp.eq.f32.partialorder %v9014_v33, 0.0 }
 0x29d   : > { %v2904_v15 = vand.u32 2147483648, %v9014_v33  ;;  %5393 = vrsqrt.f32 %v9062_v7  ;;  %vm2908_vm15 = vcmp.eq.f32.partialorder %v9016_v19, inf  ;;  %v2911_v62 = vand.u32 2147483648, %v9016_v19 }
 0x29e   : > { %v5370_v47 = vpop.eup %5369  ;;  %vm2915_vm10 = vcmp.eq.f32.partialorder %v9018_v18, inf  ;;  %5395 = vrsqrt.f32 %v9064_v11  ;;  %v2893_v58 = vmul.f32 %v5368_v37, %v9012_v27  ;;  %vm2910_vm9 = vcmp.eq.f32.partialorder %v9016_v19, 0.0 }
 0x29f   : > { %v5372_v34 = vpop.eup %5371  ;;  %vm2917_vm14 = vcmp.eq.f32.partialorder %v9018_v18, 0.0  ;;  %v2918_v12 = vand.u32 2147483648, %v9018_v18  ;;  %vm2922_vm2 = vcmp.eq.f32.partialorder %v9032_v20, inf  ;;  %5397 = vrsqrt.f32 %v9066_v38 }
 0x2a0   : > { %v5374_v26 = vpop.eup %5373  ;;  %v2925_v29 = vand.u32 2147483648, %v9032_v20  ;;  %vm2929_vm0 = vcmp.eq.f32.partialorder %v9034_v39, inf  ;;  %v2932_v54 = vand.u32 2147483648, %v9034_v39  ;;  %vm2936_vm4 = vcmp.eq.f32.partialorder %v9036_v57, inf }
 0x2a1   : > { %v5376_v24 = vpop.eup %5375  ;;  %v2900_v14 = vmul.f32 %v5370_v47, %v9014_v33  ;;  %v2939_v16 = vand.u32 2147483648, %v9036_v57  ;;  %5399 = vrsqrt.f32 %v9092_v8  ;;  %v2907_v10 = vmul.f32 %v5372_v34, %v9016_v19 }
 0x2a2   : > { %v5378_v35 = vpop.eup %5377  ;;  %v2946_v6 = vand.u32 2147483648, %v9038_v45  ;;  %v2953_v40 = vand.u32 2147483648, %v9040_v59  ;;  %v2895_v52 = vsel %vm2894_vm13, %v9012_v27, %v2893_v58  ;;  %v2914_v23 = vmul.f32 %v5374_v26, %v9018_v18 }
 0x2a3   : > { %v5380_v53 = vpop.eup %5379  ;;  %vm2938_vm11 = vcmp.eq.f32.partialorder %v9036_v57, 0.0  ;;  %vm2945_vm6 = vcmp.eq.f32.partialorder %v9038_v45, 0.0  ;;  %vm2957_vm5 = vcmp.eq.f32.partialorder %v9042_v0, inf  ;;  %v2960_v42 = vand.u32 2147483648, %v9042_v0 }
 0x2a4   : > { %v5382_v51 = vpop.eup %5381  ;;  %v2967_v17 = vand.u32 2147483648, %v9050_v30  ;;  %v2974_v56 = vand.u32 2147483648, %v9055_v61  ;;  %5401 = vrsqrt.f32 %v9094_v13  ;;  %v2902_v55 = vsel %vm2901_vm8, %v9014_v33, %v2900_v14 }
 0x2a5   : > { %v5384_v41 = vpop.eup %5383  ;;  %v2921_v1 = vmul.f32 %v5376_v24, %v9032_v20  ;;  %v2928_v44 = vmul.f32 %v5378_v35, %v9034_v39  ;;  %vm2952_vm13 = vcmp.eq.f32.partialorder %v9040_v59, 0.0  ;;  %vm2959_vm12 = vcmp.eq.f32.partialorder %v9042_v0, 0.0 }
 0x2a6   : > { %v2981_v63 = vand.u32 2147483648, %v9060_v2  ;;  %v5386_v37 = vpop.eup %5385  ;;  %v9191_v47 = vsel %vm2896_vm3, %v2897_v9, %v2895_v52  ;;  %v2909_v34 = vsel %vm2908_vm15, %v9016_v19, %v2907_v10  ;;  %vm2978_vm8 = vcmp.eq.f32.partialorder %v9060_v2, inf }
 0x2a7   : > { %v2988_v58 = vand.u32 2147483648, %v9062_v7  ;;  %v5388_v24 = vpop.eup %5387  ;;  %v2916_v14 = vsel %vm2915_vm10, %v9018_v18, %v2914_v23  ;;  %v2935_v27 = vmul.f32 %v5380_v53, %v9036_v57  ;;  %v2942_v9 = vmul.f32 %v5382_v51, %v9038_v45 }
 0x2a8   : > { %vm2966_vm3 = vcmp.eq.f32.partialorder %v9050_v30, 0.0  ;;  %5403 = vrsqrt.f32 %v9097_v43  ;;  %v5390_v35 = vpop.eup %5389  ;;  %v9212_v10 = vsel %vm2903_vm1, %v2904_v15, %v2902_v55  ;;  %v2949_v52 = vmul.f32 %v5384_v41, %v9040_v59 }
 0x2a9   : > { %vm2992_vm10 = vcmp.eq.f32.partialorder %v9064_v11, inf  ;;  %vm2999_vm7 = vcmp.eq.f32.partialorder %v9066_v38, inf  ;;  %v3002_v53 = vand.u32 2147483648, %v9066_v38  ;;  %v5392_v23 = vpop.eup %5391  ;;  %v2923_v51 = vsel %vm2922_vm2, %v9032_v20, %v2921_v1 }
 0x2aa   : > { %v2930_v26 = vsel %vm2929_vm0, %v9034_v39, %v2928_v44  ;;  %v2956_v33 = vmul.f32 %v5386_v37, %v9042_v0  ;;  %vm2980_vm1 = vcmp.eq.f32.partialorder %v9060_v2, 0.0  ;;  %vm2987_vm15 = vcmp.eq.f32.partialorder %v9062_v7, 0.0  ;;  %v5394_v15 = vpop.eup %5393 }
 0x2ab   : > { %5405 = vrsqrt.f32 %v9099_v5  ;;  %v9232_v41 = vsel %vm2910_vm9, %v2911_v62, %v2909_v34  ;;  %v9238_v55 = vsel %vm2917_vm14, %v2918_v12, %v2916_v14  ;;  %v3009_v1 = vand.u32 2147483648, %v9092_v8  ;;  %v5396_v44 = vpop.eup %5395 }
 0x2ac   : > { %v2937_v37 = vsel %vm2936_vm4, %v9036_v57, %v2935_v27  ;;  %vm12745_vm0 = vcmp.eq.f32.partialorder %v9038_v45, inf  ;;  %v2963_v62 = vmul.f32 %v5388_v24, %v9050_v30  ;;  %v2970_v34 = vmul.f32 %v5390_v35, %v9055_v61  ;;  %v5398_v18 = vpop.eup %5397 }
 0x2ad   : > { %v2944_v19 = vsel %vm12745_vm0, %v9038_v45, %v2942_v9  ;;  %vm2994_vm9 = vcmp.eq.f32.partialorder %v9064_v11, 0.0  ;;  %vm3001_vm14 = vcmp.eq.f32.partialorder %v9066_v38, 0.0  ;;  %vm12746_vm2 = vcmp.eq.f32.partialorder %v9032_v20, 0.0 }
 0x2ae   : > { %v9256_v12 = vsel %vm12746_vm2, %v2925_v29, %v2923_v51  ;;  %vm12747_vm4 = vcmp.eq.f32.partialorder %v9034_v39, 0.0  ;;  %vm12748_vm0 = vcmp.eq.f32.partialorder %v9040_v59, inf  ;;  %5407 = vrsqrt.f32 %v9106_v31  ;;  %v5400_v39 = vpop.eup %5399 }
 0x2af   : > { %v9262_v14 = vsel %vm12747_vm4, %v2932_v54, %v2930_v26  ;;  %v2951_v24 = vsel %vm12748_vm0, %v9040_v59, %v2949_v52  ;;  %v2958_v27 = vsel %vm2957_vm5, %v9042_v0, %v2956_v33  ;;  %v2977_v20 = vmul.f32 %v5392_v23, %v9060_v2 }
 0x2b0   : > { %v2984_v29 = vmul.f32 %v5394_v15, %v9062_v7  ;;  %vm3008_vm2 = vcmp.eq.f32.partialorder %v9092_v8, 0.0  ;;  %5409 = vrsqrt.f32 %v9109_v49  ;;  %v9279_v54 = vsel %vm2938_vm11, %v2939_v16, %v2937_v37 }
 0x2b1   : > { %v9285_v26 = vsel %vm2945_vm6, %v2946_v6, %v2944_v19  ;;  %vm3013_vm5 = vcmp.eq.f32.partialorder %v9094_v13, inf  ;;  %5411 = vrsqrt.f32 %v9111_v46  ;;  %vm12749_vm4 = vcmp.eq.f32.partialorder %v9050_v30, inf  ;;  %v5402_v23 = vpop.eup %5401 }
 0x2b2   : > { %v2965_v9 = vsel %vm12749_vm4, %v9050_v30, %v2963_v62  ;;  %vm12750_vm0 = vcmp.eq.f32.partialorder %v9055_v61, inf  ;;  %v2991_v16 = vmul.f32 %v5396_v44, %v9064_v11  ;;  %v2998_v35 = vmul.f32 %v5398_v18, %v9066_v38 }
 0x2b3   : > { %v2972_v57 = vsel %vm12750_vm0, %v9055_v61, %v2970_v34  ;;  %v9301_v45 = vsel %vm2952_vm13, %v2953_v40, %v2951_v24  ;;  %v9307_v6 = vsel %vm2959_vm12, %v2960_v42, %v2958_v27  ;;  %vm3015_vm6 = vcmp.eq.f32.partialorder %v9094_v13, 0.0 }
 0x2b4   : > { %v3016_v52 = vand.u32 2147483648, %v9094_v13  ;;  %5413 = vrsqrt.f32 %v9115_v48  ;;  %v2979_v51 = vsel %vm2978_vm8, %v9060_v2, %v2977_v20  ;;  %vm12751_vm11 = vcmp.eq.f32.partialorder %v9062_v7, inf }
 0x2b5   : > { %v2986_v59 = vsel %vm12751_vm11, %v9062_v7, %v2984_v29  ;;  %v3005_v40 = vmul.f32 %v5400_v39, %v9092_v8  ;;  %5415 = vrsqrt.f32 %v9117_v4  ;;  %v9324_v0 = vsel %vm2966_vm3, %v2967_v17, %v2965_v9 }
 0x2b6   : > { %vm12752_vm12 = vcmp.eq.f32.partialorder %v9055_v61, 0.0  ;;  %vm3020_vm13 = vcmp.eq.f32.partialorder %v9097_v43, inf  ;;  %5417 = vrsqrt.f32 %v9119_v50  ;;  %v2993_v33 = vsel %vm2992_vm10, %v9064_v11, %v2991_v16  ;;  %v5404_v61 = vpop.eup %5403 }
 0x2b7   : > { %v9330_v42 = vsel %vm12752_vm12, %v2974_v56, %v2972_v57  ;;  %v3000_v30 = vsel %vm2999_vm7, %v9066_v38, %v2998_v35  ;;  %vm3022_vm8 = vcmp.eq.f32.partialorder %v9097_v43, 0.0  ;;  %v3023_v17 = vand.u32 2147483648, %v9097_v43 }
 0x2b8   : > { %5419 = vrsqrt.f32 %v9122_v36  ;;  %v9347_v56 = vsel %vm2980_vm1, %v2981_v63, %v2979_v51  ;;  %v9353_v15 = vsel %vm2987_vm15, %v2988_v58, %v2986_v59  ;;  %v3012_v44 = vmul.f32 %v5402_v23, %v9094_v13  ;;  %v5406_v2 = vpop.eup %5405 }
 0x2b9   : > { %5421 = vrsqrt.f32 %v9124_v60  ;;  %vm12753_vm7 = vcmp.eq.f32.partialorder %v9092_v8, inf  ;;  %vm3027_vm3 = vcmp.eq.f32.partialorder %v9099_v5, inf  ;;  %vm3029_vm10 = vcmp.eq.f32.partialorder %v9099_v5, 0.0 }
 0x2ba   : > { %v3007_v37 = vsel %vm12753_vm7, %v9092_v8, %v3005_v40  ;;  %5423 = vrsqrt.f32 %v9128_v25  ;;  %v12754_v63 = vand.u32 2147483648, %v9064_v11  ;;  %v9373_v58 = vsel %vm3001_vm14, %v3002_v53, %v3000_v30 }
 0x2bb   : > { %v3030_v19 = vand.u32 2147483648, %v9099_v5  ;;  %5425 = vrsqrt.f32 %v9133_v32  ;;  %v3019_v62 = vmul.f32 %v5404_v61, %v9097_v43  ;;  %vm3034_vm15 = vcmp.eq.f32.partialorder %v9106_v31, inf  ;;  %v5408_v53 = vpop.eup %5407 }
 0x2bc   : > { %v9367_v7 = vsel %vm2994_vm9, %v12754_v63, %v2993_v33  ;;  %v3037_v34 = vand.u32 2147483648, %v9106_v31  ;;  %5427 = vrsqrt.f32 %v9135_v28  ;;  %v9385_v11 = vsel %vm3008_vm2, %v3009_v1, %v3007_v37 }
 0x2bd   : > { %v3014_v38 = vsel %vm3013_vm5, %v9094_v13, %v3012_v44  ;;  %vm3036_vm1 = vcmp.eq.f32.partialorder %v9106_v31, 0.0  ;;  %vm3041_vm9 = vcmp.eq.f32.partialorder %v9109_v49, inf  ;;  %5429 = vrsqrt.f32 %v9137_v3  ;;  %v5410_v8 = vpop.eup %5409 }
 0x2be   : > { %v3026_v18 = vmul.f32 %v5406_v2, %v9099_v5  ;;  %vm3043_vm14 = vcmp.eq.f32.partialorder %v9109_v49, 0.0  ;;  %v3044_v24 = vand.u32 2147483648, %v9109_v49  ;;  %vm3048_vm2 = vcmp.eq.f32.partialorder %v9111_v46, inf  ;;  %v5412_v20 = vpop.eup %5411 }
 0x2bf   : > { %vm3050_vm4 = vcmp.eq.f32.partialorder %v9111_v46, 0.0  ;;  %v3051_v1 = vand.u32 2147483648, %v9111_v46  ;;  %vm3055_vm5 = vcmp.eq.f32.partialorder %v9115_v48, inf  ;;  %v3058_v27 = vand.u32 2147483648, %v9115_v48 }
 0x2c0   : > { %v9403_v29 = vsel %vm3015_vm6, %v3016_v52, %v3014_v38  ;;  %v3021_v39 = vsel %vm3020_vm13, %v9097_v43, %v3019_v62  ;;  %vm3062_vm0 = vcmp.eq.f32.partialorder %v9117_v4, inf  ;;  %v3065_v9 = vand.u32 2147483648, %v9117_v4 }
 0x2c1   : > { %v3033_v57 = vmul.f32 %v5408_v53, %v9106_v31  ;;  %vm3057_vm11 = vcmp.eq.f32.partialorder %v9115_v48, 0.0  ;;  %vm3069_vm12 = vcmp.eq.f32.partialorder %v9119_v50, inf  ;;  %v3072_v16 = vand.u32 2147483648, %v9119_v50  ;;  %v5414_v13 = vpop.eup %5413 }
 0x2c2   : > { %v3028_v35 = vsel %vm3027_vm3, %v9099_v5, %v3026_v18  ;;  %v3040_v52 = vmul.f32 %v5410_v8, %v9109_v49  ;;  %v3079_v23 = vand.u32 2147483648, %v9122_v36  ;;  %v5416_v51 = vpop.eup %5415  ;;  %v9424_v59 = vsel %vm3022_vm8, %v3023_v17, %v3021_v39 }
 0x2c3   : > { %v3047_v40 = vmul.f32 %v5412_v20, %v9111_v46  ;;  %vm3071_vm7 = vcmp.eq.f32.partialorder %v9119_v50, 0.0  ;;  %v3086_v33 = vand.u32 2147483648, %v9124_v60  ;;  %vm3090_vm3 = vcmp.eq.f32.partialorder %v9128_v25, inf  ;;  %v5418_v30 = vpop.eup %5417 }
 0x2c4   : > { %v3093_v61 = vand.u32 2147483648, %v9128_v25  ;;  %v3100_v44 = vand.u32 2147483648, %v9133_v32  ;;  %v3107_v43 = vand.u32 2147483648, %v9135_v28  ;;  %v9437_v37 = vsel %vm3029_vm10, %v3030_v19, %v3028_v35 }
 0x2c5   : > { %v5420_v17 = vpop.eup %5419  ;;  %v3035_v2 = vsel %vm3034_vm15, %v9106_v31, %v3033_v57  ;;  %v3054_v63 = vmul.f32 %v5414_v13, %v9115_v48  ;;  %vm3085_vm8 = vcmp.eq.f32.partialorder %v9124_v60, 0.0  ;;  %vm3104_vm6 = vcmp.eq.f32.partialorder %v9135_v28, inf }
 0x2c6   : > { %v3114_v62 = vand.u32 2147483648, %v9137_v3  ;;  %v5422_v38 = vpop.eup %5421  ;;  %v3042_v53 = vsel %vm3041_vm9, %v9109_v49, %v3040_v52  ;;  %v3061_v5 = vmul.f32 %v5416_v51, %v9117_v4  ;;  %vm3092_vm10 = vcmp.eq.f32.partialorder %v9128_v25, 0.0 }
 0x2c7   : > { %vm3111_vm13 = vcmp.eq.f32.partialorder %v9137_v3, inf  ;;  %v9453_v19 = vadd.f32 1e-10, %v9191_v47  ;;  %v9456_v18 = vadd.f32 1e-10, %v9212_v10  ;;  %v5424_v8 = vpop.eup %5423  ;;  %v3049_v20 = vsel %vm3048_vm2, %v9111_v46, %v3047_v40 }
 0x2c8   : > { %v3068_v39 = vmul.f32 %v5418_v30, %v9119_v50  ;;  %vm3099_vm15 = vcmp.eq.f32.partialorder %v9133_v32, 0.0  ;;  %v9464_v57 = vadd.f32 1e-10, %v9232_v41  ;;  %v9467_v13 = vadd.f32 1e-10, %v9238_v55  ;;  %v5426_v47 = vpop.eup %5425 }
 0x2c9   : > { %v3038_v10 = vsel %vm3036_vm1, %v3037_v34, %v3035_v2  ;;  %v3075_v35 = vmul.f32 %v5420_v17, %v9122_v36  ;;  %vm3106_vm9 = vcmp.eq.f32.partialorder %v9135_v28, 0.0  ;;  %v9476_v52 = vadd.f32 1e-10, %v9256_v12  ;;  %v5428_v41 = vpop.eup %5427 }
 0x2ca   : > { %v9479_v51 = vadd.f32 1e-10, %v9262_v14  ;;  %v3045_v55 = vsel %vm3043_vm14, %v3044_v24, %v3042_v53  ;;  %v3056_v31 = vsel %vm3055_vm5, %v9115_v48, %v3054_v63  ;;  %v3082_v34 = vmul.f32 %v5422_v38, %v9124_v60  ;;  %v5430_v40 = vpop.eup %5429 }
 0x2cb   : > { %vm3113_vm1 = vcmp.eq.f32.partialorder %v9137_v3, 0.0  ;;  %v9491_v12 = vadd.f32 1e-10, %v9279_v54  ;;  %v3052_v14 = vsel %vm3050_vm4, %v3051_v1, %v3049_v20  ;;  %v3063_v49 = vsel %vm3062_vm0, %v9117_v4, %v3061_v5 }
 0x2cc   : > { %v3089_v24 = vmul.f32 %v5424_v8, %v9128_v25  ;;  %v9502_v30 = vadd.f32 1e-10, %v9285_v26  ;;  %v3070_v54 = vsel %vm3069_vm12, %v9119_v50, %v3068_v39  ;;  %v3096_v17 = vmul.f32 %v5426_v47, %v9133_v32  ;;  %v9609_v39 = vld [vmem:[%s6077_s7 + $0x8] sm:$0xff] }
 0x2cd   : > { %v9509_v2 = vadd.f32 1e-10, %v9301_v45  ;;  %v9512_v46 = vadd.f32 1e-10, %v9307_v6  ;;  %v3059_v1 = vsel %vm3057_vm11, %v3058_v27, %v3056_v31  ;;  %vm12755_vm14 = vcmp.eq.f32.partialorder %v9122_v36, inf  ;;  %12761 = vst [vmem:[#allocation102_spill] sm:$0xff] %v9609_v39 }
 0x2ce   : > { %v3077_v26 = vsel %vm12755_vm14, %v9122_v36, %v3075_v35  ;;  %v3103_v63 = vmul.f32 %v5428_v41, %v9135_v28  ;;  %v9523_v38 = vadd.f32 1e-10, %v9324_v0  ;;  %vm12756_vm2 = vcmp.eq.f32.partialorder %v9117_v4, 0.0  ;;  %v9640_v31 = vld [vmem:[%s6077_s7 + $0x18] sm:$0xff] }
 0x2cf   : > { %v3066_v45 = vsel %vm12756_vm2, %v3065_v9, %v3063_v49  ;;  %vm12757_vm4 = vcmp.eq.f32.partialorder %v9124_v60, inf  ;;  %v3110_v48 = vmul.f32 %v5430_v40, %v9137_v3  ;;  %v9534_v27 = vadd.f32 1e-10, %v9330_v42  ;;  %12764 = vst [vmem:[#allocation105_spill] sm:$0xff] %v9640_v31 }
 0x2d0   : > { %v3084_v6 = vsel %vm12757_vm4, %v9124_v60, %v3082_v34  ;;  %v3073_v0 = vsel %vm3071_vm7, %v3072_v16, %v3070_v54  ;;  %v3091_v53 = vsel %vm3090_vm3, %v9128_v25, %v3089_v24  ;;  %v9544_v4 = vadd.f32 1e-10, %v9347_v56  ;;  %v9658_v54 = vld [vmem:[%s6077_s7 + $0x30] sm:$0xff]  ;;  %v9751_v24 = vld [vmem:[%s6077_s7 + $0xd8] sm:$0xff] }
 0x2d1   : > { %v9547_v9 = vadd.f32 1e-10, %v9353_v15  ;;  %vm12758_vm5 = vcmp.eq.f32.partialorder %v9122_v36, 0.0  ;;  %vm12759_vm0 = vcmp.eq.f32.partialorder %v9133_v32, inf  ;;  %v9557_v16 = vadd.f32 1e-10, %v9367_v7 }
 0x2d2   : > { %v3080_v42 = vsel %vm12758_vm5, %v3079_v23, %v3077_v26  ;;  %v3098_v50 = vsel %vm12759_vm0, %v9133_v32, %v3096_v17  ;;  %v9560_v5 = vadd.f32 1e-10, %v9373_v58  ;;  %v3087_v56 = vsel %vm3085_vm8, %v3086_v33, %v3084_v6  ;;  %12769 = vst [vmem:[#allocation108_spill] sm:$0xff] %v9658_v54  ;;  %v9672_v6 = vld [vmem:[%s6077_s7 + $0x48] sm:$0xff]  ;;  %12791 = vst [vmem:[#allocation129_spill] sm:$0xff] %v9751_v24 }
 0x2d3   : > { %v3105_v36 = vsel %vm3104_vm6, %v9135_v28, %v3103_v63  ;;  %v9570_v15 = vadd.f32 1e-10, %v9385_v11  ;;  %v9573_v23 = vadd.f32 1e-10, %v9403_v29  ;;  %v3094_v7 = vsel %vm3092_vm10, %v3093_v61, %v3091_v53  ;;  %v9597_v61 = vld [vmem:[%s6077_s7] sm:$0xff]  ;;  %v9620_v28 = vld [vmem:[%s6077_s7 + $0x10] sm:$0xff] }
 0x2d4   : > { %v3112_v60 = vsel %vm3111_vm13, %v9137_v3, %v3110_v48  ;;  %v9583_v58 = vadd.f32 1e-10, %v9424_v59  ;;  %v9586_v33 = vadd.f32 1e-10, %v9437_v37  ;;  %v3101_v11 = vsel %vm3099_vm15, %v3100_v44, %v3098_v50  ;;  %12760 = vst [vmem:[#allocation100_spill] sm:$0xff] %v9597_v61  ;;  %12762 = vst [vmem:[#allocation104_spill] sm:$0xff] %v9620_v28 }
 0x2d5   : > { %v9592_v29 = vadd.f32 1e-10, %v3038_v10  ;;  %v9594_v25 = vadd.f32 1e-10, %v3045_v55  ;;  %v3212_v8 = vrot.slane %v9597_v61, 6  ;;  %v3108_v59 = vsel %vm3106_vm9, %v3107_v43, %v3105_v36  ;;  %v9667_v63 = vld [vmem:[%s6077_s7 + $0x40] sm:$0xff] }
 0x2d6   : > { %v9604_v37 = vadd.f32 1e-10, %v3052_v14  ;;  %v9606_v20 = vadd.f32 1e-10, %v3059_v1  ;;  %v3213_v32 = vrot.slane %v9609_v39, 6  ;;  %v3115_v44 = vsel %vm3113_vm1, %v3114_v62, %v3112_v60  ;;  %v9648_v14 = vld [vmem:[%s6077_s7 + $0x20] sm:$0xff] }
 0x2d7   : > { %v9616_v47 = vadd.f32 1e-10, %v3066_v45  ;;  %5431 = vrcp.f32 %v9453_v19  ;;  %v3214_v43 = vrot.slane %v9620_v28, 6  ;;  %v9623_v10 = vadd.f32 1e-10, %v3073_v0  ;;  %12766 = vst [vmem:[#allocation106_spill] sm:$0xff] %v9648_v14 }
 0x2d8   : > { %v9625_v35 = vadd.f32 1e-10, %v3080_v42  ;;  %v9627_v41 = vadd.f32 1e-10, %v3087_v56  ;;  %5433 = vrcp.f32 %v9456_v18  ;;  %v9630_v3 = vadd.f32 1e-10, %v3094_v7 }
 0x2d9   : > { %v9632_v62 = vadd.f32 1e-10, %v3101_v11  ;;  %5435 = vrcp.f32 %v9464_v57  ;;  %vm12763_vm11 = vcmask 1041408   ;;  %v9636_v55 = vadd.f32 1e-10, %v3108_v59  ;;  %v9663_v1 = vld [vmem:[%s6077_s7 + $0x38] sm:$0xff] }
 0x2da   : > { %v3276_v19 = vsel %vm12763_vm11, %v3212_v8, 0.0  ;;  %5437 = vrcp.f32 %v9467_v13  ;;  %v3215_v34 = vrot.slane %v9640_v31, 6  ;;  %vm12765_vm12 = vmmov %vm12763_vm11  ;;  %v9644_v40 = vadd.f32 1e-10, %v3115_v44  ;;  %v9654_v13 = vld [vmem:[%s6077_s7 + $0x28] sm:$0xff]  ;;  %12770 = vst [vmem:[#allocation109_spill] sm:$0xff] %v9663_v1 }
 0x2db   : > { %v3283_v18 = vsel %vm12765_vm12, %v3213_v32, 0.0  ;;  %5439 = vrcp.f32 %v9476_v52  ;;  %vm12767_vm7 = vmmov %vm12763_vm11  ;;  %12768 = vst [vmem:[#allocation107_spill] sm:$0xff] %v9654_v13  ;;  %v3277_v52 = vrot.slane %v3276_v19, 4  ;;  %v9678_v53 = vld [vmem:[%s6077_s7 + $0x50] sm:$0xff]  ;;  %v9682_v50 = vld [vmem:[%s6077_s7 + $0x58] sm:$0xff]  ;;  %v12796_v24 = vrot.slane %v9648_v14, 6 }
 0x2dc   : > { %v3290_v49 = vsel %vm12767_vm7, %v3214_v43, 0.0  ;;  %5441 = vrcp.f32 %v9479_v51  ;;  %12771 = vst [vmem:[#allocation110_spill] sm:$0xff] %v9667_v63  ;;  %v3284_v45 = vrot.slane %v3283_v18, 4  ;;  %12772 = vst [vmem:[#allocation111_spill] sm:$0xff] %v9672_v6  ;;  %v9691_v7 = vld [vmem:[%s6077_s7 + $0x68] sm:$0xff]  ;;  %v9695_v60 = vld [vmem:[%s6077_s7 + $0x70] sm:$0xff] }
 0x2dd   : > { %5443 = vrcp.f32 %v9491_v12  ;;  %v3291_v0 = vrot.slane %v3290_v49, 4  ;;  %vm12773_vm6 = vmmov %vm12767_vm7  ;;  %12774 = vst [vmem:[#allocation112_spill] sm:$0xff] %v9678_v53  ;;  %v3278_v8 = vadd.f32 %v3277_v52, %v3276_v19  ;;  %v9700_v59 = vld [vmem:[%s6077_s7 + $0x78] sm:$0xff]  ;;  %v9704_v43 = vld [vmem:[%s6077_s7 + $0x80] sm:$0xff] }
 0x2de   : > { %5445 = vrcp.f32 %v9502_v30  ;;  %v3297_v12 = vsel %vm12773_vm6, %v3215_v34, 0.0  ;;  %12775 = vst [vmem:[#allocation113_spill] sm:$0xff] %v9682_v50  ;;  %v9686_v30 = vld [vmem:[%s6077_s7 + $0x60] sm:$0xff]  ;;  %12777 = vst [vmem:[#allocation115_spill] sm:$0xff] %v9691_v7  ;;  %v3285_v44 = vadd.f32 %v3284_v45, %v3283_v18  ;;  %v9712_v52 = vld [vmem:[%s6077_s7 + $0x90] sm:$0xff] }
 0x2df   : > { %5447 = vrcp.f32 %v9509_v2  ;;  %12776 = vst [vmem:[#allocation114_spill] sm:$0xff] %v9686_v30  ;;  %12778 = vst [vmem:[#allocation116_spill] sm:$0xff] %v9695_v60  ;;  %v9708_v2 = vld [vmem:[%s6077_s7 + $0x88] sm:$0xff]  ;;  %v3292_v11 = vadd.f32 %v3291_v0, %v3290_v49  ;;  %v9717_v18 = vld [vmem:[%s6077_s7 + $0x98] sm:$0xff]  ;;  %v3279_v34 = vrot.slane %v3278_v8, 2 }
 0x2e0   : > { %5449 = vrcp.f32 %v9512_v46  ;;  %12779 = vst [vmem:[#allocation117_spill] sm:$0xff] %v9700_v59  ;;  %v3298_v46 = vrot.slane %v3297_v12, 4  ;;  %12780 = vst [vmem:[#allocation118_spill] sm:$0xff] %v9704_v43  ;;  %v9721_v32 = vld [vmem:[%s6077_s7 + $0xa0] sm:$0xff]  ;;  %v9725_v36 = vld [vmem:[%s6077_s7 + $0xa8] sm:$0xff]  ;;  %v3286_v49 = vrot.slane %v3285_v44, 2 }
 0x2e1   : > { %5451 = vrcp.f32 %v9523_v38  ;;  %12781 = vst [vmem:[#allocation119_spill] sm:$0xff] %v9708_v2  ;;  %12782 = vst [vmem:[#allocation120_spill] sm:$0xff] %v9712_v52  ;;  %v9729_v42 = vld [vmem:[%s6077_s7 + $0xb0] sm:$0xff]  ;;  %v9737_v45 = vld [vmem:[%s6077_s7 + $0xc0] sm:$0xff]  ;;  %v3293_v57 = vrot.slane %v3292_v11, 2 }
 0x2e2   : > { %5453 = vrcp.f32 %v9534_v27  ;;  %12783 = vst [vmem:[#allocation121_spill] sm:$0xff] %v9717_v18  ;;  %12784 = vst [vmem:[#allocation122_spill] sm:$0xff] %v9721_v32  ;;  %v9733_v27 = vld [vmem:[%s6077_s7 + $0xb8] sm:$0xff]  ;;  %v9742_v19 = vld [vmem:[%s6077_s7 + $0xc8] sm:$0xff]  ;;  %v3299_v26 = vadd.f32 %v3298_v46, %v3297_v12 }
 0x2e3   : > { %12785 = vst [vmem:[#allocation123_spill] sm:$0xff] %v9725_v36  ;;  %12786 = vst [vmem:[#allocation124_spill] sm:$0xff] %v9729_v42  ;;  %5455 = vrcp.f32 %v9544_v4  ;;  %v9747_v0 = vld [vmem:[%s6077_s7 + $0xd0] sm:$0xff]  ;;  %v9756_v51 = vld [vmem:[%s6077_s7 + $0xe0] sm:$0xff] }
 0x2e4   : > { %v5432_v56 = vpop.eup %5431  ;;  %12787 = vst [vmem:[#allocation125_spill] sm:$0xff] %v9733_v27  ;;  %12788 = vst [vmem:[#allocation126_spill] sm:$0xff] %v9737_v45  ;;  %5457 = vrcp.f32 %v9547_v9  ;;  %v9760_v46 = vld [vmem:[%s6077_s7 + $0xe8] sm:$0xff]  ;;  %v9764_v28 = vld [vmem:[%s6077_s7 + $0xf0] sm:$0xff]  ;;  %v3287_v9 = vadd.f32 %v3286_v49, %v3285_v44  ;;  %v3300_v38 = vrot.slane %v3299_v26, 2 }
 0x2e5   : > { %v5434_v48 = vpop.eup %5433  ;;  %12789 = vst [vmem:[#allocation127_spill] sm:$0xff] %v9742_v19  ;;  %12790 = vst [vmem:[#allocation128_spill] sm:$0xff] %v9747_v0  ;;  %5459 = vrcp.f32 %v9557_v16  ;;  %v9769_v4 = vld [vmem:[%s6077_s7 + $0xf8] sm:$0xff]  ;;  %v3280_v16 = vadd.f32 %v3279_v34, %v3278_v8  ;;  %v9776_v0 = vmul.f32 %v5432_v56, %v8753_v21  ;;  %v3294_v8 = vadd.f32 %v3293_v57, %v3292_v11  ;;  %s5879_s7 = sshll.u32 %s5959_s6, 4  ;;  %s5880_s7 = int_to_ptr.vmem [resolvable:$false] %s5879_s7 }
 0x2e6   : > { %v5436_v17 = vpop.eup %5435  ;;  %12792 = vst [vmem:[#allocation130_spill] sm:$0xff] %v9756_v51  ;;  %12793 = vst [vmem:[#allocation131_spill] sm:$0xff] %v9760_v46  ;;  %5461 = vrcp.f32 %v9560_v5  ;;  %v9780_v5 = vmul.f32 %v5434_v48, %v8756_v22  ;;  %v12800_v46 = vld [vmem:[#allocation67_spill] sm:$0xff]  ;;  %v12806_v22 = vld [vmem:[#allocation69_spill] sm:$0xff]  ;;  %v12810_v11 = vrot.slane %v9658_v54, 6  ;;  %s5881_s8 = scalar_lea.vmem %s5880_s7, 8192  ;;  %p5882_p0 = scmp.lt.s32.totalorder %s11749_s21, %s5880_s7 }
 0x2e7   : > { %v5438_v31 = vpop.eup %5437  ;;  %12794 = vst [vmem:[#allocation132_spill] sm:$0xff] %v9764_v28  ;;  %12795 = vst [vmem:[#allocation133_spill] sm:$0xff] %v9769_v4  ;;  %5463 = vrcp.f32 %v9570_v15  ;;  %v9783_v19 = vmul.f32 %v5436_v17, %v12800_v46  ;;  %v12804_v15 = vrot.slane %v9654_v13, 6  ;;  %v12808_v17 = vld [vmem:[#allocation73_spill] sm:$0xff]  ;;  %p5883_p1 = scmp.lt.s32.totalorder %s5881_s8, %s5875_s5 }
 0x2e8   : > { %v5440_v39 = vpop.eup %5439  ;;  %vm12797_vm13 = vmmov %vm12773_vm6  ;;  %12798 = vst [vmem:[#allocation134_spill] sm:$0xff] %v9776_v0  ;;  %5465 = vrcp.f32 %v9573_v23  ;;  %v3281_v23 = vrot.slane %v3280_v16, 1 }
 0x2e9   : > { %v3304_v12 = vsel %vm12797_vm13, %v12796_v24, 0.0  ;;  %v5442_v51 = vpop.eup %5441  ;;  %12799 = vst [vmem:[#allocation135_spill] sm:$0xff] %v9780_v5  ;;  %12801 = vst [vmem:[#allocation67_spill] sm:$0xff] %v9783_v19  ;;  %v12802_v24 = vld [vmem:[#allocation68_spill] sm:$0xff]  ;;  %5467 = vrcp.f32 %v9583_v58  ;;  %v9794_v48 = vmul.f32 %v5440_v39, %v12806_v22  ;;  %v3301_v58 = vadd.f32 %v3300_v38, %v3299_v26  ;;  %v12814_v22 = vld [vmem:[#allocation75_spill] sm:$0xff]  ;;  %p5884_p2 = por %p5883_p1, %p5882_p0 }
 0x2ea   : > { %v5444_v28 = vpop.eup %5443  ;;  %v9787_v61 = vmul.f32 %v5438_v31, %v12802_v24  ;;  %v3305_v21 = vrot.slane %v3304_v12, 4  ;;  %vm12805_vm3 = vmmov %vm12773_vm6  ;;  %v9797_v49 = vmul.f32 %v5442_v51, %v12808_v17  ;;  %5469 = vrcp.f32 %v9586_v33  ;;  %v12816_v17 = vld [vmem:[#allocation76_spill] sm:$0xff]  ;;  %v12818_v38 = vld [vmem:[#allocation77_spill] sm:$0xff] }
 0x2eb   : > { %v5446_v34 = vpop.eup %5445  ;;  %v3311_v56 = vsel %vm12805_vm3, %v12804_v15, 0.0  ;;  %12807 = vst [vmem:[#allocation69_spill] sm:$0xff] %v9794_v48  ;;  %5471 = vrcp.f32 %v9592_v29  ;;  %v3288_v31 = vrot.slane %v3287_v9, 1  ;;  %vm12811_vm8 = vmmov %vm12805_vm3  ;;  %v12812_v15 = vld [vmem:[#allocation74_spill] sm:$0xff]  ;;  %v3295_v39 = vrot.slane %v3294_v8, 1  ;;  %p5885_p3 = pnand %p5884_p2, %p5878_p12 }
 0x2ec   : > { %12803 = vst [vmem:[#allocation68_spill] sm:$0xff] %v9787_v61  ;;  %v5448_v44 = vpop.eup %5447  ;;  %12809 = vst [vmem:[#allocation73_spill] sm:$0xff] %v9797_v49  ;;  %v3318_v46 = vsel %vm12811_vm8, %v12810_v11, 0.0  ;;  %v9805_v61 = vmul.f32 %v5444_v28, %v12812_v15  ;;  %5473 = vrcp.f32 %v9594_v25  ;;  %v3312_v51 = vrot.slane %v3311_v56, 4  ;;  %v12820_v15 = vld [vmem:[#allocation78_spill] sm:$0xff] }
 0x2ed   : > { %v5450_v57 = vpop.eup %5449  ;;  %v9809_v33 = vmul.f32 %v5446_v34, %v12814_v22  ;;  %v9812_v49 = vmul.f32 %v5448_v44, %v12816_v17  ;;  %5475 = vrcp.f32 %v9604_v37  ;;  %v3306_v29 = vadd.f32 %v3305_v21, %v3304_v12  ;;  %vm12823_vm10 = vmmov %vm12805_vm3 }
 0x2ee   : > { %v5452_v24 = vpop.eup %5451  ;;  %12813 = vst [vmem:[#allocation74_spill] sm:$0xff] %v9805_v61  ;;  %v9816_v11 = vmul.f32 %v5450_v57, %v12818_v38  ;;  %5477 = vrcp.f32 %v9606_v20  ;;  %v9819_v28 = vadd.f32 %v3281_v23, %v3280_v16  ;;  %v3319_v25 = vrot.slane %v3318_v46, 4  ;;  %vm12825_vm15 = vmmov %vm12805_vm3 }
 0x2ef   : > { %12815 = vst [vmem:[#allocation75_spill] sm:$0xff] %v9809_v33  ;;  %12817 = vst [vmem:[#allocation76_spill] sm:$0xff] %v9812_v49  ;;  %v5454_v26 = vpop.eup %5453  ;;  %v9822_v61 = vmul.f32 %v5452_v24, %v12820_v15  ;;  %v9824_v34 = vadd.f32 %v3288_v31, %v3287_v9  ;;  %v3302_v22 = vrot.slane %v3301_v58, 1  ;;  %v12822_v44 = vrot.slane %v9663_v1, 6  ;;  %v12826_v24 = vld [vmem:[#allocation79_spill] sm:$0xff]  ;;  %v12840_v33 = vld [vmem:[#allocation82_spill] sm:$0xff] }
 0x2f0   : > { %12819 = vst [vmem:[#allocation77_spill] sm:$0xff] %v9816_v11  ;;  %v5456_v12 = vpop.eup %5455  ;;  %5479 = vrcp.f32 %v9616_v47  ;;  %v9830_v21 = vadd.f32 %v3295_v39, %v3294_v8  ;;  %v3313_v57 = vadd.f32 %v3312_v51, %v3311_v56  ;;  %v12824_v20 = vrot.slane %v9667_v63, 6  ;;  %vm12829_vm9 = vmmov %vm12805_vm3 }
 0x2f1   : > { %12821 = vst [vmem:[#allocation78_spill] sm:$0xff] %v9822_v61  ;;  %v3325_v37 = vsel %vm12823_vm10, %v12822_v44, 0.0  ;;  %v5458_v23 = vpop.eup %5457  ;;  %v9836_v17 = vmul.f32 %v5454_v26, %v12826_v24  ;;  %5481 = vrcp.f32 %v9623_v10  ;;  %v3307_v9 = vrot.slane %v3306_v29, 2  ;;  %vm12831_vm1 = vmmov %vm12805_vm3 }
 0x2f2   : > { %v3332_v16 = vsel %vm12825_vm15, %v12824_v20, 0.0  ;;  %v12828_v31 = vrot.slane %v9672_v6, 6  ;;  %v5460_v15 = vpop.eup %5459  ;;  %v3320_v47 = vadd.f32 %v3319_v25, %v3318_v46  ;;  %v3326_v8 = vrot.slane %v3325_v37, 4  ;;  %vm12833_vm14 = vmmov %vm12831_vm1  ;;  %v12834_v20 = vld [vmem:[#allocation80_spill] sm:$0xff] }
 0x2f3   : > { %12827 = vst [vmem:[#allocation79_spill] sm:$0xff] %v9836_v17  ;;  %v12830_v56 = vrot.slane %v9678_v53, 6  ;;  %v12832_v51 = vrot.slane %v9682_v50, 6  ;;  %v5462_v26 = vpop.eup %5461  ;;  %v9849_v24 = vmul.f32 %v5456_v12, %v12834_v20  ;;  %5483 = vrcp.f32 %v9625_v35  ;;  %vm12837_vm2 = vmmov %vm12831_vm1 }
 0x2f4   : > { %v3339_v38 = vsel %vm12829_vm9, %v12828_v31, 0.0  ;;  %v9852_v10 = vadd.f32 %v3302_v22, %v3301_v58  ;;  %v3333_v31 = vrot.slane %v3332_v16, 4  ;;  %v5464_v17 = vpop.eup %5463  ;;  %5485 = vrcp.f32 %v9627_v41  ;;  %vm12845_vm4 = vmmov %vm12831_vm1 }
 0x2f5   : > { %v3346_v39 = vsel %vm12831_vm1, %v12830_v56, 0.0  ;;  %v3353_v44 = vsel %vm12833_vm14, %v12832_v51, 0.0  ;;  %12835 = vst [vmem:[#allocation80_spill] sm:$0xff] %v9849_v24  ;;  %v3314_v46 = vrot.slane %v3313_v57, 2  ;;  %v3340_v25 = vrot.slane %v3339_v38, 4  ;;  %v5466_v11 = vpop.eup %5465  ;;  %v12838_v51 = vld [vmem:[#allocation81_spill] sm:$0xff]  ;;  %vm12847_vm5 = vmmov %vm12831_vm1 }
 0x2f6   : > { %v12836_v56 = vrot.slane %v9686_v30, 6  ;;  %v9859_v49 = vmul.f32 %v5458_v23, %v12838_v51  ;;  %5487 = vrcp.f32 %v9630_v3  ;;  %v3347_v12 = vrot.slane %v3346_v39, 4  ;;  %v5468_v58 = vpop.eup %5467  ;;  %v12842_v51 = vld [vmem:[#allocation83_spill] sm:$0xff]  ;;  %vm12863_vm0 = vmmov %vm12831_vm1 }
 0x2f7   : > { %v3354_v35 = vrot.slane %v3353_v44, 4  ;;  %5489 = vrcp.f32 %v9632_v62  ;;  %v3308_v22 = vadd.f32 %v3307_v9, %v3306_v29  ;;  %v3321_v20 = vrot.slane %v3320_v47, 2  ;;  %v5470_v24 = vpop.eup %5469  ;;  %vm12867_vm11 = vmmov %vm12863_vm0 }
 0x2f8   : > { %v3360_v61 = vsel %vm12837_vm2, %v12836_v56, 0.0  ;;  %12839 = vst [vmem:[#allocation81_spill] sm:$0xff] %v9859_v49  ;;  %v3327_v41 = vadd.f32 %v3326_v8, %v3325_v37  ;;  %v9864_v48 = vmul.f32 %v5460_v15, %v12840_v33  ;;  %5491 = vrcp.f32 %v9636_v55  ;;  %v5472_v23 = vpop.eup %5471  ;;  %v12848_v8 = vld [vmem:[#allocation84_spill] sm:$0xff]  ;;  %vm12873_vm12 = vmmov %vm12863_vm0 }
 0x2f9   : > { %v3334_v56 = vadd.f32 %v3333_v31, %v3332_v16  ;;  %v3361_v19 = vrot.slane %v3360_v61, 4  ;;  %v9868_v49 = vmul.f32 %v5462_v26, %v12842_v51  ;;  %5493 = vrcp.f32 %v9644_v40  ;;  %v5474_v62 = vpop.eup %5473  ;;  %vm12885_vm7 = vmmov %vm12863_vm0 }
 0x2fa   : > { %12841 = vst [vmem:[#allocation82_spill] sm:$0xff] %v9864_v48  ;;  %v3315_v3 = vadd.f32 %v3314_v46, %v3313_v57  ;;  %v3341_v5 = vadd.f32 %v3340_v25, %v3339_v38  ;;  %v3348_v29 = vadd.f32 %v3347_v12, %v3346_v39  ;;  %v3355_v9 = vadd.f32 %v3354_v35, %v3353_v44  ;;  %v5476_v16 = vpop.eup %5475  ;;  %v12850_v38 = vld [vmem:[#allocation85_spill] sm:$0xff]  ;;  %v12852_v39 = vld [vmem:[#allocation86_spill] sm:$0xff]  ;;  %v12854_v35 = vld [vmem:[#allocation87_spill] sm:$0xff] }
 0x2fb   : > { %12843 = vst [vmem:[#allocation83_spill] sm:$0xff] %v9868_v49  ;;  %v12844_v37 = vrot.slane %v9691_v7, 6  ;;  %v12846_v15 = vrot.slane %v9695_v60, 6  ;;  %v9878_v31 = vmul.f32 %v5464_v17, %v12848_v8  ;;  %v3309_v26 = vrot.slane %v3308_v22, 1  ;;  %v5478_v57 = vpop.eup %5477  ;;  %v12856_v8 = vld [vmem:[#allocation88_spill] sm:$0xff]  ;;  %vm12889_vm6 = vmmov %vm12863_vm0 }
 0x2fc   : > { %v3322_v51 = vadd.f32 %v3321_v20, %v3320_v47  ;;  %v3328_v40 = vrot.slane %v3327_v41, 2  ;;  %v9881_v46 = vmul.f32 %v5466_v11, %v12850_v38  ;;  %v9884_v44 = vmul.f32 %v5468_v58, %v12852_v39  ;;  %v12858_v38 = vld [vmem:[#allocation89_spill] sm:$0xff]  ;;  %vm12891_vm13 = vmmov %vm12863_vm0 }
 0x2fd   : > { %v3367_v33 = vsel %vm12845_vm4, %v12844_v37, 0.0  ;;  %v3374_v55 = vsel %vm12847_vm5, %v12846_v15, 0.0  ;;  %12849 = vst [vmem:[#allocation84_spill] sm:$0xff] %v9878_v31  ;;  %v3335_v25 = vrot.slane %v3334_v56, 2  ;;  %v3362_v12 = vadd.f32 %v3361_v19, %v3360_v61  ;;  %v5480_v17 = vpop.eup %5479  ;;  %vm12893_vm3 = vmmov %vm12863_vm0 }
 0x2fe   : > { %12851 = vst [vmem:[#allocation85_spill] sm:$0xff] %v9881_v46  ;;  %12853 = vst [vmem:[#allocation86_spill] sm:$0xff] %v9884_v44  ;;  %v9887_v37 = vmul.f32 %v5470_v24, %v12854_v35  ;;  %v3316_v15 = vrot.slane %v3315_v3, 1  ;;  %v3368_v49 = vrot.slane %v3367_v33, 4  ;;  %v3375_v48 = vrot.slane %v3374_v55, 4  ;;  %v5482_v11 = vpop.eup %5481  ;;  %v12860_v24 = vld [vmem:[#allocation90_spill] sm:$0xff] }
 0x2ff   : > { %v9890_v31 = vmul.f32 %v5472_v23, %v12856_v8  ;;  %v3342_v47 = vrot.slane %v3341_v5, 2  ;;  %v3349_v20 = vrot.slane %v3348_v29, 2  ;;  %v3356_v0 = vrot.slane %v3355_v9, 2  ;;  %vm12895_vm8 = vmmov %vm12863_vm0 }
 0x300   : > { %12855 = vst [vmem:[#allocation87_spill] sm:$0xff] %v9887_v37  ;;  %v9893_v46 = vmul.f32 %v5474_v62, %v12858_v38  ;;  %v9895_v58 = vadd.f32 %v3309_v26, %v3308_v22  ;;  %v3323_v61 = vrot.slane %v3322_v51, 1  ;;  %v3329_v19 = vadd.f32 %v3328_v40, %v3327_v41  ;;  %v5484_v8 = vpop.eup %5483  ;;  %vm12897_vm10 = vmmov %vm12863_vm0 }
 0x301   : > { %12857 = vst [vmem:[#allocation88_spill] sm:$0xff] %v9890_v31  ;;  %v9898_v39 = vmul.f32 %v5476_v16, %v12860_v24  ;;  %v3336_v35 = vadd.f32 %v3335_v25, %v3334_v56  ;;  %v3363_v37 = vrot.slane %v3362_v12, 2  ;;  %v12862_v44 = vrot.slane %v9700_v59, 6  ;;  %v12864_v31 = vld [vmem:[#allocation91_spill] sm:$0xff]  ;;  %v5486_v26 = vpop.eup %5485  ;;  %v12868_v24 = vld [vmem:[#allocation92_spill] sm:$0xff]  ;;  %vm12899_vm15 = vmmov %vm12863_vm0 }
 0x302   : > { %12859 = vst [vmem:[#allocation89_spill] sm:$0xff] %v9893_v46  ;;  %v9904_v60 = vmul.f32 %v5478_v57, %v12864_v31  ;;  %v9906_v7 = vadd.f32 %v3316_v15, %v3315_v3  ;;  %v3369_v62 = vadd.f32 %v3368_v49, %v3367_v33  ;;  %v3376_v22 = vadd.f32 %v3375_v48, %v3374_v55  ;;  %v12870_v15 = vld [vmem:[#allocation93_spill] sm:$0xff]  ;;  %v12874_v33 = vld [vmem:[#allocation94_spill] sm:$0xff]  ;;  %vm12902_vm9 = vmmov %vm12863_vm0 }
 0x303   : > { %12861 = vst [vmem:[#allocation90_spill] sm:$0xff] %v9898_v39  ;;  %v3381_v23 = vsel %vm12863_vm0, %v12862_v44, 0.0  ;;  %v3343_v38 = vadd.f32 %v3342_v47, %v3341_v5  ;;  %v3350_v41 = vadd.f32 %v3349_v20, %v3348_v29  ;;  %v3357_v40 = vadd.f32 %v3356_v0, %v3355_v9  ;;  %v5488_v25 = vpop.eup %5487  ;;  %vm12905_vm1 = vmmov %vm12863_vm0 }
 0x304   : > { %12865 = vst [vmem:[#allocation91_spill] sm:$0xff] %v9904_v60  ;;  %v12866_v16 = vrot.slane %v9704_v43, 6  ;;  %v9912_v39 = vmul.f32 %v5480_v17, %v12868_v24  ;;  %v9914_v44 = vadd.f32 %v3323_v61, %v3322_v51  ;;  %v3330_v31 = vrot.slane %v3329_v19, 1  ;;  %v5490_v3 = vpop.eup %5489  ;;  %v12876_v61 = vld [vmem:[#allocation95_spill] sm:$0xff]  ;;  %v12880_v60 = vld [vmem:[#allocation97_spill] sm:$0xff]  ;;  %vm12908_vm14 = vmmov %vm12863_vm0 }
 0x305   : > { %v3382_v57 = vrot.slane %v3381_v23, 4  ;;  %v9917_v49 = vmul.f32 %v5482_v11, %v12870_v15  ;;  %v3337_v48 = vrot.slane %v3336_v35, 1  ;;  %v3364_v5 = vadd.f32 %v3363_v37, %v3362_v12  ;;  %v5492_v9 = vpop.eup %5491  ;;  %vm12911_vm2 = vmmov %vm12863_vm0 }
 0x306   : > { %v3388_v56 = vsel %vm12867_vm11, %v12866_v16, 0.0  ;;  %12869 = vst [vmem:[#allocation92_spill] sm:$0xff] %v9912_v39  ;;  %v12872_v0 = vrot.slane %v9708_v2, 6  ;;  %v9923_v55 = vmul.f32 %v5484_v8, %v12874_v33  ;;  %v3370_v17 = vrot.slane %v3369_v62, 2  ;;  %v5494_v20 = vpop.eup %5493  ;;  %v12882_v33 = vld [vmem:[#allocation98_spill] sm:$0xff]  ;;  %vm12914_vm4 = vmmov %vm12863_vm0 }
 0x307   : > { %12871 = vst [vmem:[#allocation93_spill] sm:$0xff] %v9917_v49  ;;  %v3377_v47 = vrot.slane %v3376_v22, 2  ;;  %v3389_v51 = vrot.slane %v3388_v56, 4  ;;  %v9926_v16 = vmul.f32 %v5486_v26, %v12876_v61  ;;  %v3344_v24 = vrot.slane %v3343_v38, 1  ;;  %v12878_v49 = vld [vmem:[#allocation96_spill] sm:$0xff]  ;;  %vm12917_vm5 = vmmov %vm12863_vm0 }
 0x308   : > { %v3395_v29 = vsel %vm12873_vm12, %v12872_v0, 0.0  ;;  %12875 = vst [vmem:[#allocation94_spill] sm:$0xff] %v9923_v55  ;;  %v3351_v11 = vrot.slane %v3350_v41, 1  ;;  %v3358_v15 = vrot.slane %v3357_v40, 1  ;;  %v9929_v12 = vmul.f32 %v5488_v25, %v12878_v49  ;;  %vm12983_vm11 = vmmov %vm12863_vm0 }
 0x309   : > { %12877 = vst [vmem:[#allocation95_spill] sm:$0xff] %v9926_v16  ;;  %v9931_v37 = vadd.f32 %v3330_v31, %v3329_v19  ;;  %v3383_v0 = vadd.f32 %v3382_v57, %v3381_v23  ;;  %v3396_v39 = vrot.slane %v3395_v29, 4  ;;  %v9934_v8 = vmul.f32 %v5490_v3, %v12880_v60  ;;  %v12886_v19 = vld [vmem:[#allocation99_spill] sm:$0xff]  ;;  %vm12984_vm12 = vmmov %vm12863_vm0 }
 0x30a   : > { %12879 = vst [vmem:[#allocation96_spill] sm:$0xff] %v9929_v12  ;;  %v9937_v55 = vmul.f32 %v5492_v9, %v12882_v33  ;;  %v9939_v46 = vadd.f32 %v3337_v48, %v3336_v35  ;;  %v3365_v26 = vrot.slane %v3364_v5, 1  ;;  %v3371_v61 = vadd.f32 %v3370_v17, %v3369_v62 }
 0x30b   : > { %12881 = vst [vmem:[#allocation97_spill] sm:$0xff] %v9934_v8  ;;  %v3378_v16 = vadd.f32 %v3377_v47, %v3376_v22  ;;  %v3390_v2 = vadd.f32 %v3389_v51, %v3388_v56  ;;  %v12884_v43 = vrot.slane %v9712_v52, 6  ;;  %v9945_v31 = vmul.f32 %v5494_v20, %v12886_v19 }
 0x30c   : > { %12883 = vst [vmem:[#allocation98_spill] sm:$0xff] %v9937_v55  ;;  %v9947_v23 = vadd.f32 %v3344_v24, %v3343_v38  ;;  %v9949_v60 = vadd.f32 %v3351_v11, %v3350_v41  ;;  %v9951_v57 = vadd.f32 %v3358_v15, %v3357_v40  ;;  %v3384_v3 = vrot.slane %v3383_v0, 2  ;;  %v12900_v15 = vld [vmem:[#allocation127_spill] sm:$0xff] }
 0x30d   : > { %v3402_v25 = vsel %vm12885_vm7, %v12884_v43, 0.0  ;;  %12887 = vst [vmem:[#allocation99_spill] sm:$0xff] %v9945_v31  ;;  %v3397_v35 = vadd.f32 %v3396_v39, %v3395_v29  ;;  %v12888_v49 = vrot.slane %v9717_v18, 6  ;;  %v12890_v22 = vrot.slane %v9721_v32, 6  ;;  %v12906_v31 = vld [vmem:[#allocation129_spill] sm:$0xff]  ;;  %vm12985_vm7 = vmmov %vm12863_vm0 }
 0x30e   : > { %v9959_v43 = vadd.f32 %v3365_v26, %v3364_v5  ;;  %v3403_v48 = vrot.slane %v3402_v25, 4  ;;  %v12892_v38 = vrot.slane %v9725_v36, 6  ;;  %v12894_v40 = vrot.slane %v9729_v42, 6  ;;  %v12909_v36 = vld [vmem:[#allocation130_spill] sm:$0xff] }
 0x30f   : > { %v3409_v62 = vsel %vm12889_vm6, %v12888_v49, 0.0  ;;  %v3416_v56 = vsel %vm12891_vm13, %v12890_v22, 0.0  ;;  %v3372_v39 = vrot.slane %v3371_v61, 1  ;;  %v3379_v29 = vrot.slane %v3378_v16, 1  ;;  %v12903_v22 = vld [vmem:[#allocation128_spill] sm:$0xff]  ;;  %vm12986_vm6 = vmmov %vm12863_vm0 }
 0x310   : > { %v3423_v41 = vsel %vm12893_vm3, %v12892_v38, 0.0  ;;  %v3430_v9 = vsel %vm12895_vm8, %v12894_v40, 0.0  ;;  %v3391_v17 = vrot.slane %v3390_v2, 2  ;;  %v12896_v47 = vrot.slane %v9733_v27, 6  ;;  %vm12987_vm13 = vmmov %vm12863_vm0 }
 0x311   : > { %v3410_v20 = vrot.slane %v3409_v62, 4  ;;  %v3417_v24 = vrot.slane %v3416_v56, 4  ;;  %v12898_v5 = vrot.slane %v9737_v45, 6  ;;  %v12901_v33 = vrot.slane %v12900_v15, 6  ;;  %vm12988_vm3 = vmmov %vm12863_vm0 }
 0x312   : > { %v3437_v51 = vsel %vm12897_vm10, %v12896_v47, 0.0  ;;  %v3424_v19 = vrot.slane %v3423_v41, 4  ;;  %v3431_v49 = vrot.slane %v3430_v9, 4  ;;  %v12904_v38 = vrot.slane %v12903_v22, 6  ;;  %vm12989_vm8 = vmmov %vm12863_vm0 }
 0x313   : > { %v3444_v11 = vsel %vm12899_vm15, %v12898_v5, 0.0  ;;  %v3451_v26 = vsel %vm12902_vm9, %v12901_v33, 0.0  ;;  %v12907_v55 = vrot.slane %v12906_v31, 6  ;;  %v3385_v8 = vadd.f32 %v3384_v3, %v3383_v0  ;;  %vm12990_vm10 = vmmov %vm12863_vm0 }
 0x314   : > { %v3458_v40 = vsel %vm12905_vm1, %v12904_v38, 0.0  ;;  %v3398_v12 = vrot.slane %v3397_v35, 2  ;;  %v3404_v27 = vadd.f32 %v3403_v48, %v3402_v25  ;;  %v3438_v45 = vrot.slane %v3437_v51, 4  ;;  %v12912_v38 = vld [vmem:[#allocation131_spill] sm:$0xff]  ;;  %vm12991_vm15 = vmmov %vm12863_vm0 }
 0x315   : > { %v3465_v47 = vsel %vm12908_vm14, %v12907_v55, 0.0  ;;  %v9982_v42 = vadd.f32 %v3372_v39, %v3371_v61  ;;  %v3445_v5 = vrot.slane %v3444_v11, 4  ;;  %v3452_v15 = vrot.slane %v3451_v26, 4  ;;  %v12915_v39 = vld [vmem:[#allocation132_spill] sm:$0xff]  ;;  %vm12992_vm9 = vmmov %vm12863_vm0 }
 0x316   : > { %v12910_v33 = vrot.slane %v12909_v36, 6  ;;  %v3392_v18 = vadd.f32 %v3391_v17, %v3390_v2  ;;  %v3459_v22 = vrot.slane %v3458_v40, 4  ;;  %v3466_v52 = vrot.slane %v3465_v47, 4  ;;  %vm12993_vm1 = vmmov %vm12863_vm0 }
 0x317   : > { %v12913_v59 = vrot.slane %v12912_v38, 6  ;;  %v3411_v55 = vadd.f32 %v3410_v20, %v3409_v62  ;;  %v3418_v0 = vadd.f32 %v3417_v24, %v3416_v56  ;;  %v3425_v3 = vadd.f32 %v3424_v19, %v3423_v41  ;;  %vm12994_vm14 = vmmov %vm12863_vm0 }
 0x318   : > { %v3472_v32 = vsel %vm12911_vm2, %v12910_v33, 0.0  ;;  %v3432_v25 = vadd.f32 %v3431_v49, %v3430_v9  ;;  %v3439_v48 = vadd.f32 %v3438_v45, %v3437_v51  ;;  %v12916_v30 = vrot.slane %v12915_v39, 6  ;;  %vm12995_vm2 = vmmov %vm12863_vm0 }
 0x319   : > { %v3479_v31 = vsel %vm12914_vm4, %v12913_v59, 0.0  ;;  %v3473_v61 = vrot.slane %v3472_v32, 4  ;;  %v12918_v36 = vrot.slane %v9769_v4, 6  ;;  %v9996_v17 = vadd.f32 %v3379_v29, %v3378_v16  ;;  %vm12996_vm4 = vmmov %vm12863_vm0 }
 0x31a   : > { %v3486_v50 = vsel %vm12917_vm5, %v12916_v30, 0.0  ;;  %v3446_v33 = vadd.f32 %v3445_v5, %v3444_v11  ;;  %v3453_v38 = vadd.f32 %v3452_v15, %v3451_v26  ;;  %v3480_v53 = vrot.slane %v3479_v31, 4  ;;  %vm12997_vm5 = vmmov %vm12863_vm0 }
 0x31b   : > { %v3493_v2 = vsel %vm12863_vm0, %v12918_v36, 0.0  ;;  %12919 = vst [vmem:[#allocation136_spill] sm:$0xff] %v9996_v17  ;;  %v3386_v59 = vrot.slane %v3385_v8, 1  ;;  %v3405_v62 = vrot.slane %v3404_v27, 2  ;;  %v3460_v56 = vadd.f32 %v3459_v22, %v3458_v40 }
 0x31c   : > { %v3467_v41 = vadd.f32 %v3466_v52, %v3465_v47  ;;  %v3412_v9 = vrot.slane %v3411_v55, 2  ;;  %v3419_v45 = vrot.slane %v3418_v0, 2  ;;  %v3487_v51 = vrot.slane %v3486_v50, 4 }
 0x31d   : > { %v3494_v20 = vrot.slane %v3493_v2, 4  ;;  %v3426_v24 = vrot.slane %v3425_v3, 2  ;;  %v3433_v19 = vrot.slane %v3432_v25, 2  ;;  %v3440_v30 = vrot.slane %v3439_v48, 2 }
 0x31e   : > { %v3474_v49 = vadd.f32 %v3473_v61, %v3472_v32  ;;  %v3399_v4 = vadd.f32 %v3398_v12, %v3397_v35  ;;  %v3447_v39 = vrot.slane %v3446_v33, 2  ;;  %v3454_v36 = vrot.slane %v3453_v38, 2 }
 0x31f   : > { %v3481_v16 = vadd.f32 %v3480_v53, %v3479_v31  ;;  %v3393_v29 = vrot.slane %v3392_v18, 1  ;;  %v3406_v11 = vadd.f32 %v3405_v62, %v3404_v27  ;;  %v3461_v15 = vrot.slane %v3460_v56, 2 }
 0x320   : > { %v3468_v26 = vrot.slane %v3467_v41, 2  ;;  %v3413_v5 = vadd.f32 %v3412_v9, %v3411_v55  ;;  %v3420_v6 = vadd.f32 %v3419_v45, %v3418_v0  ;;  %v3488_v22 = vadd.f32 %v3487_v51, %v3486_v50 }
 0x321   : > { %v3495_v52 = vadd.f32 %v3494_v20, %v3493_v2  ;;  %v3427_v40 = vadd.f32 %v3426_v24, %v3425_v3  ;;  %v3434_v47 = vadd.f32 %v3433_v19, %v3432_v25  ;;  %v3441_v63 = vadd.f32 %v3440_v30, %v3439_v48 }
 0x322   : > { %v3475_v1 = vrot.slane %v3474_v49, 2  ;;  %v3387_v54 = vadd.f32 %v3386_v59, %v3385_v8  ;;  %v3448_v13 = vadd.f32 %v3447_v39, %v3446_v33  ;;  %v3455_v14 = vadd.f32 %v3454_v36, %v3453_v38 }
 0x323   : > { %v3482_v32 = vrot.slane %v3481_v16, 2  ;;  %v3400_v12 = vrot.slane %v3399_v4, 1  ;;  %v3407_v35 = vrot.slane %v3406_v11, 1  ;;  %v3462_v61 = vadd.f32 %v3461_v15, %v3460_v56 }
 0x324   : > { %v3469_v53 = vadd.f32 %v3468_v26, %v3467_v41  ;;  %v3414_v31 = vrot.slane %v3413_v5, 1  ;;  %v3421_v27 = vrot.slane %v3420_v6, 1  ;;  %v3489_v62 = vrot.slane %v3488_v22, 2 }
 0x325   : > { %v3496_v17 = vrot.slane %v3495_v52, 2  ;;  %v3428_v55 = vrot.slane %v3427_v40, 1  ;;  %v3435_v0 = vrot.slane %v3434_v47, 1  ;;  %v3442_v50 = vrot.slane %v3441_v63, 1 }
 0x326   : > { %v3476_v2 = vadd.f32 %v3475_v1, %v3474_v49  ;;  %v3394_v3 = vadd.f32 %v3393_v29, %v3392_v18  ;;  %v3449_v25 = vrot.slane %v3448_v13, 1  ;;  %v3456_v48 = vrot.slane %v3455_v14, 1 }
 0x327   : > { %v3483_v9 = vadd.f32 %v3482_v32, %v3481_v16  ;;  %v3401_v8 = vadd.f32 %v3400_v12, %v3399_v4  ;;  %v3408_v39 = vadd.f32 %v3407_v35, %v3406_v11  ;;  %v3463_v38 = vrot.slane %v3462_v61, 1 }
 0x328   : > { %v3470_v33 = vrot.slane %v3469_v53, 1  ;;  %v3415_v59 = vadd.f32 %v3414_v31, %v3413_v5  ;;  %v3422_v45 = vadd.f32 %v3421_v27, %v3420_v6  ;;  %v3490_v56 = vadd.f32 %v3489_v62, %v3488_v22 }
 0x329   : > { %v3497_v41 = vadd.f32 %v3496_v17, %v3495_v52  ;;  %v3429_v51 = vadd.f32 %v3428_v55, %v3427_v40  ;;  %v3436_v20 = vadd.f32 %v3435_v0, %v3434_v47  ;;  %v3443_v24 = vadd.f32 %v3442_v50, %v3441_v63  ;;  %v12920_v52 = vld [vmem:[#allocation136_spill] sm:$0xff] }
 0x32a   : > { %v3477_v19 = vrot.slane %v3476_v2, 1  ;;  %v3450_v30 = vadd.f32 %v3449_v25, %v3448_v13  ;;  %v3457_v36 = vadd.f32 %v3456_v48, %v3455_v14  ;;  %v3484_v15 = vrot.slane %v3483_v9, 1  ;;  %v12921_v0 = vld [vmem:[#allocation100_spill] sm:$0xff]  ;;  %v12925_v48 = vld [vmem:[#allocation105_spill] sm:$0xff] }
 0x32b   : > { %v3500_v1 = vmul.f32 0.5, %v9819_v28  ;;  %v3464_v18 = vadd.f32 %v3463_v38, %v3462_v61  ;;  %v3471_v49 = vadd.f32 %v3470_v33, %v3469_v53  ;;  %v3501_v4 = vmul.f32 0.5, %v9824_v34  ;;  %v12929_v38 = vld [vmem:[#allocation107_spill] sm:$0xff] }
 0x32c   : > { %v3502_v16 = vmul.f32 0.5, %v9830_v21  ;;  %v3491_v29 = vrot.slane %v3490_v56, 1  ;;  %v3498_v11 = vrot.slane %v3497_v41, 1  ;;  %v3503_v6 = vmul.f32 0.5, %v9852_v10 }
 0x32d   : > { %v3504_v17 = vmul.f32 0.5, %v9895_v58  ;;  %v3478_v26 = vadd.f32 %v3477_v19, %v3476_v2  ;;  %v3505_v63 = vmul.f32 0.5, %v9906_v7  ;;  %v3506_v14 = vmul.f32 0.5, %v9914_v44 }
 0x32e   : > { %v3507_v13 = vmul.f32 0.5, %v9931_v37  ;;  %v3485_v28 = vadd.f32 %v3484_v15, %v3483_v9  ;;  %v3508_v5 = vmul.f32 0.5, %v9939_v46  ;;  %v3509_v34 = vmul.f32 0.5, %v9947_v23  ;;  %v12941_v15 = vld [vmem:[#allocation113_spill] sm:$0xff] }
 0x32f   : > { %v3510_v21 = vmul.f32 0.5, %v9949_v60  ;;  %v3511_v22 = vmul.f32 0.5, %v9951_v57  ;;  %v3512_v10 = vmul.f32 0.5, %v9959_v43  ;;  %v3513_v58 = vmul.f32 0.5, %v9982_v42 }
 0x330   : > { %v3514_v40 = vmul.f32 0.5, %v12920_v52  ;;  %v3492_v7 = vadd.f32 %v3491_v29, %v3490_v56  ;;  %v3499_v47 = vadd.f32 %v3498_v11, %v3497_v41  ;;  %v3515_v44 = vmul.f32 0.5, %v3387_v54  ;;  %v12922_v54 = vld [vmem:[#allocation102_spill] sm:$0xff]  ;;  %v12933_v56 = vld [vmem:[#allocation109_spill] sm:$0xff]  ;;  %v12947_v29 = vld [vmem:[#allocation116_spill] sm:$0xff] }
 0x331   : > { %v3516_v32 = vmul.f32 0.5, %v3394_v3  ;;  %v3517_v37 = vmul.f32 0.5, %v3401_v8  ;;  %v3518_v12 = vmul.f32 0.5, %v3408_v39  ;;  %v3519_v35 = vmul.f32 0.5, %v3415_v59  ;;  %v12923_v3 = vld [vmem:[#allocation104_spill] sm:$0xff]  ;;  %v12927_v8 = vld [vmem:[#allocation106_spill] sm:$0xff] }
 0x332   : > { %v3520_v46 = vmul.f32 0.5, %v3422_v45  ;;  %v3521_v61 = vmul.f32 0.5, %v3429_v51  ;;  %v3522_v23 = vmul.f32 0.5, %v3436_v20  ;;  %v3523_v53 = vmul.f32 0.5, %v3443_v24  ;;  %v12931_v59 = vld [vmem:[#allocation108_spill] sm:$0xff]  ;;  %v12935_v51 = vld [vmem:[#allocation110_spill] sm:$0xff] }
 0x333   : > { %v3524_v60 = vmul.f32 0.5, %v3450_v30  ;;  %v3525_v31 = vmul.f32 0.5, %v3457_v36  ;;  %v3526_v57 = vmul.f32 0.5, %v3464_v18  ;;  %v3527_v27 = vmul.f32 0.5, %v3471_v49  ;;  %v12937_v24 = vld [vmem:[#allocation111_spill] sm:$0xff]  ;;  %v12939_v30 = vld [vmem:[#allocation112_spill] sm:$0xff] }
 0x334   : > { %v3528_v43 = vmul.f32 0.5, %v3478_v26  ;;  %v3529_v62 = vmul.f32 0.5, %v3485_v28  ;;  %v3530_v42 = vmul.f32 0.5, %v3492_v7  ;;  %v3531_v55 = vmul.f32 0.5, %v3499_v47  ;;  %v12943_v18 = vld [vmem:[#allocation114_spill] sm:$0xff]  ;;  %v12955_v28 = vld [vmem:[#allocation120_spill] sm:$0xff] }
 0x335   : > { %v10014_v50 = vsub.f32 %v12921_v0, %v3500_v1  ;;  %v10017_v2 = vsub.f32 %v12922_v54, %v3501_v4  ;;  %v10020_v25 = vsub.f32 %v12923_v3, %v3502_v16  ;;  %v10023_v9 = vsub.f32 %v12925_v48, %v3503_v6  ;;  %v12945_v4 = vld [vmem:[#allocation115_spill] sm:$0xff]  ;;  %v12949_v6 = vld [vmem:[#allocation117_spill] sm:$0xff]  ;;  %v12951_v26 = vld [vmem:[#allocation118_spill] sm:$0xff] }
 0x336   : > { %v10026_v39 = vsub.f32 %v12927_v8, %v3504_v17  ;;  %v10029_v33 = vsub.f32 %v12929_v38, %v3505_v63  ;;  %v10032_v45 = vsub.f32 %v12931_v59, %v3506_v14  ;;  %v10035_v41 = vsub.f32 %v12933_v56, %v3507_v13  ;;  %v12953_v14 = vld [vmem:[#allocation119_spill] sm:$0xff]  ;;  %v12965_v47 = vld [vmem:[#allocation125_spill] sm:$0xff] }
 0x337   : > { %12924 = vst [vmem:[#allocation136_spill] sm:$0xff] %v10020_v25  ;;  %12926 = vst [vmem:[#allocation100_spill] sm:$0xff] %v10023_v9  ;;  %v10038_v20 = vsub.f32 %v12935_v51, %v3508_v5  ;;  %v10041_v19 = vsub.f32 %v12937_v24, %v3509_v34  ;;  %v10044_v36 = vsub.f32 %v12939_v30, %v3510_v21  ;;  %v12957_v34 = vld [vmem:[#allocation121_spill] sm:$0xff] }
 0x338   : > { %12928 = vst [vmem:[#allocation102_spill] sm:$0xff] %v10026_v39  ;;  %12930 = vst [vmem:[#allocation104_spill] sm:$0xff] %v10029_v33  ;;  %v10047_v1 = vsub.f32 %v12941_v15, %v3511_v22  ;;  %v10050_v49 = vsub.f32 %v12943_v18, %v3512_v10  ;;  %v10053_v16 = vsub.f32 %v12945_v4, %v3513_v58  ;;  %v12959_v22 = vld [vmem:[#allocation122_spill] sm:$0xff]  ;;  %v12961_v58 = vld [vmem:[#allocation123_spill] sm:$0xff] }
 0x339   : > { %12932 = vst [vmem:[#allocation105_spill] sm:$0xff] %v10032_v45  ;;  %12934 = vst [vmem:[#allocation106_spill] sm:$0xff] %v10035_v41  ;;  %v10056_v11 = vsub.f32 %v12947_v29, %v3514_v40  ;;  %v10059_v17 = vsub.f32 %v12949_v6, %v3515_v44  ;;  %v10062_v63 = vsub.f32 %v12951_v26, %v3516_v32  ;;  %v12963_v40 = vld [vmem:[#allocation124_spill] sm:$0xff]  ;;  %v12967_v32 = vld [vmem:[#allocation126_spill] sm:$0xff] }
 0x33a   : > { %12936 = vst [vmem:[#allocation107_spill] sm:$0xff] %v10038_v20  ;;  %12938 = vst [vmem:[#allocation108_spill] sm:$0xff] %v10041_v19  ;;  %v10065_v13 = vsub.f32 %v12953_v14, %v3517_v37  ;;  %v10068_v5 = vsub.f32 %v12955_v28, %v3518_v12  ;;  %v10071_v21 = vsub.f32 %v12957_v34, %v3519_v35  ;;  %v12969_v12 = vld [vmem:[#allocation127_spill] sm:$0xff]  ;;  %v12971_v35 = vld [vmem:[#allocation128_spill] sm:$0xff] }
 0x33b   : > { %12940 = vst [vmem:[#allocation109_spill] sm:$0xff] %v10044_v36  ;;  %12942 = vst [vmem:[#allocation110_spill] sm:$0xff] %v10047_v1  ;;  %v10074_v10 = vsub.f32 %v12959_v22, %v3520_v46  ;;  %v10077_v52 = vsub.f32 %v12961_v58, %v3521_v61  ;;  %v10080_v7 = vsub.f32 %v12963_v40, %v3522_v23  ;;  %v12973_v46 = vld [vmem:[#allocation129_spill] sm:$0xff]  ;;  %v12975_v61 = vld [vmem:[#allocation130_spill] sm:$0xff] }
 0x33c   : > { %12944 = vst [vmem:[#allocation111_spill] sm:$0xff] %v10050_v49  ;;  %12946 = vst [vmem:[#allocation112_spill] sm:$0xff] %v10053_v16  ;;  %v10083_v44 = vsub.f32 %v12965_v47, %v3523_v53  ;;  %v10086_v37 = vsub.f32 %v12967_v32, %v3524_v60  ;;  %v10089_v0 = vsub.f32 %v12969_v12, %v3525_v31  ;;  %v12977_v23 = vld [vmem:[#allocation131_spill] sm:$0xff]  ;;  %v12979_v53 = vld [vmem:[#allocation132_spill] sm:$0xff] }
 0x33d   : > { %12948 = vst [vmem:[#allocation113_spill] sm:$0xff] %v10056_v11  ;;  %12950 = vst [vmem:[#allocation114_spill] sm:$0xff] %v10059_v17  ;;  %v10092_v54 = vsub.f32 %v12971_v35, %v3526_v57  ;;  %v10095_v3 = vsub.f32 %v12973_v46, %v3527_v27  ;;  %v10098_v48 = vsub.f32 %v12975_v61, %v3528_v43  ;;  %v12981_v60 = vld [vmem:[#allocation133_spill] sm:$0xff] }
 0x33e   : > { %12952 = vst [vmem:[#allocation115_spill] sm:$0xff] %v10062_v63  ;;  %12954 = vst [vmem:[#allocation116_spill] sm:$0xff] %v10065_v13  ;;  %v10101_v8 = vsub.f32 %v12977_v23, %v3529_v62  ;;  %v10104_v38 = vsub.f32 %v12979_v53, %v3530_v42  ;;  %v10107_v59 = vsub.f32 %v12981_v60, %v3531_v55 }
 0x33f   : > { %12956 = vst [vmem:[#allocation117_spill] sm:$0xff] %v10068_v5  ;;  %12958 = vst [vmem:[#allocation118_spill] sm:$0xff] %v10071_v21  ;;  %v3564_v31 = vmul.f32 %v10014_v50, %v10014_v50  ;;  %v3565_v57 = vmul.f32 %v10017_v2, %v10017_v2  ;;  %v3566_v27 = vmul.f32 %v10020_v25, %v10020_v25 }
 0x340   : > { %12960 = vst [vmem:[#allocation119_spill] sm:$0xff] %v10074_v10  ;;  %12962 = vst [vmem:[#allocation120_spill] sm:$0xff] %v10077_v52  ;;  %v3567_v43 = vmul.f32 %v10023_v9, %v10023_v9  ;;  %v3568_v62 = vmul.f32 %v10026_v39, %v10026_v39  ;;  %v10121_v42 = vmul.f32 %v10029_v33, %v10029_v33 }
 0x341   : > { %12964 = vst [vmem:[#allocation121_spill] sm:$0xff] %v10080_v7  ;;  %12966 = vst [vmem:[#allocation122_spill] sm:$0xff] %v10083_v44  ;;  %v10125_v55 = vmul.f32 %v10032_v45, %v10032_v45  ;;  %v10129_v56 = vmul.f32 %v10035_v41, %v10035_v41  ;;  %v10133_v51 = vmul.f32 %v10038_v20, %v10038_v20  ;;  %v3628_v46 = vrot.slane %v3564_v31, 6 }
 0x342   : > { %12968 = vst [vmem:[#allocation123_spill] sm:$0xff] %v10086_v37  ;;  %12970 = vst [vmem:[#allocation124_spill] sm:$0xff] %v10089_v0  ;;  %v10137_v24 = vmul.f32 %v10041_v19, %v10041_v19  ;;  %v10141_v30 = vmul.f32 %v10044_v36, %v10044_v36  ;;  %v10145_v15 = vmul.f32 %v10047_v1, %v10047_v1  ;;  %v3629_v61 = vrot.slane %v3565_v57, 6 }
 0x343   : > { %12972 = vst [vmem:[#allocation125_spill] sm:$0xff] %v10092_v54  ;;  %12974 = vst [vmem:[#allocation126_spill] sm:$0xff] %v10095_v3  ;;  %v10149_v18 = vmul.f32 %v10050_v49, %v10050_v49  ;;  %v10153_v4 = vmul.f32 %v10053_v16, %v10053_v16  ;;  %v10157_v29 = vmul.f32 %v10056_v11, %v10056_v11  ;;  %v3630_v60 = vrot.slane %v3566_v27, 6 }
 0x344   : > { %12976 = vst [vmem:[#allocation127_spill] sm:$0xff] %v10098_v48  ;;  %12978 = vst [vmem:[#allocation128_spill] sm:$0xff] %v10101_v8  ;;  %v10161_v6 = vmul.f32 %v10059_v17, %v10059_v17  ;;  %v10165_v26 = vmul.f32 %v10062_v63, %v10062_v63  ;;  %v10169_v14 = vmul.f32 %v10065_v13, %v10065_v13  ;;  %v3632_v57 = vrot.slane %v3568_v62, 6 }
 0x345   : > { %12980 = vst [vmem:[#allocation129_spill] sm:$0xff] %v10104_v38  ;;  %12982 = vst [vmem:[#allocation130_spill] sm:$0xff] %v10107_v59  ;;  %v10173_v28 = vmul.f32 %v10068_v5, %v10068_v5  ;;  %v10177_v34 = vmul.f32 %v10071_v21, %v10071_v21  ;;  %v10181_v22 = vmul.f32 %v10074_v10, %v10074_v10  ;;  %v3635_v27 = vrot.slane %v10129_v56, 6 }
 0x346   : > { %v10185_v58 = vmul.f32 %v10077_v52, %v10077_v52  ;;  %v10189_v40 = vmul.f32 %v10080_v7, %v10080_v7  ;;  %v10193_v47 = vmul.f32 %v10083_v44, %v10083_v44  ;;  %v10197_v32 = vmul.f32 %v10086_v37, %v10086_v37 }
 0x347   : > { %v10201_v12 = vmul.f32 %v10089_v0, %v10089_v0  ;;  %v10205_v35 = vmul.f32 %v10092_v54, %v10092_v54  ;;  %v10209_v23 = vmul.f32 %v10095_v3, %v10095_v3  ;;  %v10213_v53 = vmul.f32 %v10098_v48, %v10098_v48 }
 0x348   : > { %v3631_v37 = vrot.slane %v3567_v43, 6  ;;  %v10217_v0 = vmul.f32 %v10101_v8, %v10101_v8  ;;  %v10221_v54 = vmul.f32 %v10104_v38, %v10104_v38  ;;  %v10225_v31 = vmul.f32 %v10107_v59, %v10107_v59 }
 0x349   : > { %v3633_v3 = vrot.slane %v10121_v42, 6  ;;  %v3634_v48 = vrot.slane %v10125_v55, 6  ;;  %v3636_v43 = vrot.slane %v10133_v51, 6  ;;  %v3637_v8 = vrot.slane %v10137_v24, 6 }
 0x34a   : > { %v3638_v44 = vrot.slane %v10141_v30, 6  ;;  %v3692_v38 = vsel %vm12983_vm11, %v3628_v46, 0.0  ;;  %v3699_v7 = vsel %vm12984_vm12, %v3629_v61, 0.0  ;;  %v3639_v59 = vrot.slane %v10145_v15, 6  ;;  %vm12999_vm11 = vmmov %vm12863_vm0 }
 0x34b   : > { %v3640_v62 = vrot.slane %v10149_v18, 6  ;;  %v3706_v42 = vsel %vm12985_vm7, %v3630_v60, 0.0  ;;  %v3713_v55 = vsel %vm12986_vm6, %v3631_v37, 0.0  ;;  %v3641_v56 = vrot.slane %v10153_v4, 6  ;;  %vm13001_vm12 = vmmov %vm12863_vm0 }
 0x34c   : > { %v3642_v51 = vrot.slane %v10157_v29, 6  ;;  %v3643_v24 = vrot.slane %v10161_v6, 6  ;;  %v3693_v52 = vrot.slane %v3692_v38, 4  ;;  %v3700_v15 = vrot.slane %v3699_v7, 4  ;;  %vm13003_vm7 = vmmov %vm12863_vm0 }
 0x34d   : > { %v3707_v10 = vrot.slane %v3706_v42, 4  ;;  %v3714_v60 = vrot.slane %v3713_v55, 4  ;;  %v3720_v37 = vsel %vm12987_vm13, %v3632_v57, 0.0  ;;  %v3727_v21 = vsel %vm12988_vm3, %v3633_v3, 0.0  ;;  %vm13005_vm6 = vmmov %vm12863_vm0 }
 0x34e   : > { %v3734_v18 = vsel %vm12989_vm8, %v3634_v48, 0.0  ;;  %v3694_v5 = vadd.f32 %v3693_v52, %v3692_v38  ;;  %v3701_v13 = vadd.f32 %v3700_v15, %v3699_v7  ;;  %v3721_v63 = vrot.slane %v3720_v37, 4  ;;  %vm13007_vm13 = vmmov %vm12863_vm0 }
 0x34f   : > { %v3741_v57 = vsel %vm12990_vm10, %v3635_v27, 0.0  ;;  %v3708_v6 = vadd.f32 %v3707_v10, %v3706_v42  ;;  %v3715_v17 = vadd.f32 %v3714_v60, %v3713_v55  ;;  %v3728_v46 = vrot.slane %v3727_v21, 4  ;;  %vm13009_vm3 = vmmov %vm12863_vm0 }
 0x350   : > { %v3735_v11 = vrot.slane %v3734_v18, 4  ;;  %v3748_v61 = vsel %vm12991_vm15, %v3636_v43, 0.0  ;;  %v3742_v48 = vrot.slane %v3741_v57, 4  ;;  %v3695_v38 = vrot.slane %v3694_v5, 2  ;;  %vm13011_vm8 = vmmov %vm12863_vm0 }
 0x351   : > { %v3702_v27 = vrot.slane %v3701_v13, 2  ;;  %v3722_v15 = vadd.f32 %v3721_v63, %v3720_v37  ;;  %v3755_v29 = vsel %vm12992_vm9, %v3637_v8, 0.0  ;;  %v3709_v10 = vrot.slane %v3708_v6, 2  ;;  %vm13013_vm10 = vmmov %vm12863_vm0 }
 0x352   : > { %v3716_v42 = vrot.slane %v3715_v17, 2  ;;  %v3749_v55 = vrot.slane %v3748_v61, 4  ;;  %v3762_v60 = vsel %vm12993_vm1, %v3638_v44, 0.0  ;;  %v3729_v30 = vadd.f32 %v3728_v46, %v3727_v21  ;;  %vm13015_vm15 = vmmov %vm12863_vm0 }
 0x353   : > { %v3736_v4 = vadd.f32 %v3735_v11, %v3734_v18  ;;  %v3769_v43 = vsel %vm12994_vm14, %v3639_v59, 0.0  ;;  %v3776_v3 = vsel %vm12995_vm2, %v3640_v62, 0.0  ;;  %v3743_v52 = vadd.f32 %v3742_v48, %v3741_v57  ;;  %vm13017_vm9 = vmmov %vm12863_vm0 }
 0x354   : > { %v3756_v16 = vrot.slane %v3755_v29, 4  ;;  %v3783_v7 = vsel %vm12996_vm4, %v3641_v56, 0.0  ;;  %v3790_v49 = vsel %vm12997_vm5, %v3642_v51, 0.0  ;;  %v3696_v63 = vadd.f32 %v3695_v38, %v3694_v5  ;;  %vm13019_vm1 = vmmov %vm12863_vm0 }
 0x355   : > { %v3723_v37 = vrot.slane %v3722_v15, 2  ;;  %v3763_v8 = vrot.slane %v3762_v60, 4  ;;  %v3797_v1 = vsel %vm12863_vm0, %v3643_v24, 0.0  ;;  %v3703_v36 = vadd.f32 %v3702_v27, %v3701_v13  ;;  %vm13021_vm14 = vmmov %vm12863_vm0 }
 0x356   : > { %v3750_v19 = vadd.f32 %v3749_v55, %v3748_v61  ;;  %v3770_v44 = vrot.slane %v3769_v43, 4  ;;  %v3777_v21 = vrot.slane %v3776_v3, 4  ;;  %v3710_v11 = vadd.f32 %v3709_v10, %v3708_v6  ;;  %vm13023_vm2 = vmmov %vm12863_vm0 }
 0x357   : > { %v3717_v46 = vadd.f32 %v3716_v42, %v3715_v17  ;;  %v3784_v59 = vrot.slane %v3783_v7, 4  ;;  %v3791_v18 = vrot.slane %v3790_v49, 4  ;;  %v3730_v62 = vrot.slane %v3729_v30, 2  ;;  %vm13025_vm4 = vmmov %vm12863_vm0 }
 0x358   : > { %v3737_v57 = vrot.slane %v3736_v4, 2  ;;  %v3757_v48 = vadd.f32 %v3756_v16, %v3755_v29  ;;  %v3798_v20 = vrot.slane %v3797_v1, 4  ;;  %v3697_v56 = vrot.slane %v3696_v63, 1  ;;  %vm13027_vm5 = vmmov %vm12863_vm0 }
 0x359   : > { %v3724_v41 = vadd.f32 %v3723_v37, %v3722_v15  ;;  %v3744_v51 = vrot.slane %v3743_v52, 2  ;;  %v3764_v5 = vadd.f32 %v3763_v8, %v3762_v60  ;;  %v3704_v38 = vrot.slane %v3703_v36, 1 }
 0x35a   : > { %v3751_v45 = vrot.slane %v3750_v19, 2  ;;  %v3771_v33 = vadd.f32 %v3770_v44, %v3769_v43  ;;  %v3778_v24 = vadd.f32 %v3777_v21, %v3776_v3  ;;  %v3711_v13 = vrot.slane %v3710_v11, 1 }
 0x35b   : > { %v3718_v61 = vrot.slane %v3717_v46, 1  ;;  %v3785_v27 = vadd.f32 %v3784_v59, %v3783_v7  ;;  %v3792_v55 = vadd.f32 %v3791_v18, %v3790_v49  ;;  %v3731_v6 = vadd.f32 %v3730_v62, %v3729_v30 }
 0x35c   : > { %v3738_v17 = vadd.f32 %v3737_v57, %v3736_v4  ;;  %v3758_v10 = vrot.slane %v3757_v48, 2  ;;  %v3799_v42 = vadd.f32 %v3798_v20, %v3797_v1  ;;  %v10270_v39 = vadd.f32 %v3697_v56, %v3696_v63 }
 0x35d   : > { %v3725_v16 = vrot.slane %v3724_v41, 1  ;;  %v3745_v29 = vadd.f32 %v3744_v51, %v3743_v52  ;;  %v3765_v9 = vrot.slane %v3764_v5, 2  ;;  %v10272_v15 = vadd.f32 %v3704_v38, %v3703_v36 }
 0x35e   : > { %v3752_v60 = vadd.f32 %v3751_v45, %v3750_v19  ;;  %v3772_v37 = vrot.slane %v3771_v33, 2  ;;  %v3779_v8 = vrot.slane %v3778_v24, 2  ;;  %v10274_v43 = vadd.f32 %v3711_v13, %v3710_v11 }
 0x35f   : > { %v10276_v3 = vadd.f32 %v3718_v61, %v3717_v46  ;;  %v3786_v7 = vrot.slane %v3785_v27, 2  ;;  %v3793_v49 = vrot.slane %v3792_v55, 2  ;;  %v3732_v30 = vrot.slane %v3731_v6, 1 }
 0x360   : > { %v3739_v4 = vrot.slane %v3738_v17, 1  ;;  %v3759_v44 = vadd.f32 %v3758_v10, %v3757_v48  ;;  %v3800_v20 = vrot.slane %v3799_v42, 2  ;;  %v10278_v1 = vadd.f32 %v3725_v16, %v3724_v41 }
 0x361   : > { %v3746_v63 = vrot.slane %v3745_v29, 1  ;;  %v3766_v52 = vadd.f32 %v3765_v9, %v3764_v5  ;;  %v12998_v36 = vrot.slane %v10165_v26, 6  ;;  %v3753_v19 = vrot.slane %v3752_v60, 1 }
 0x362   : > { %v3773_v21 = vadd.f32 %v3772_v37, %v3771_v33  ;;  %v3780_v11 = vadd.f32 %v3779_v8, %v3778_v24  ;;  %v13000_v46 = vrot.slane %v10169_v14, 6  ;;  %v3787_v18 = vadd.f32 %v3786_v7, %v3785_v27 }
 0x363   : > { %v3804_v45 = vsel %vm12999_vm11, %v12998_v36, 0.0  ;;  %v3794_v62 = vadd.f32 %v3793_v49, %v3792_v55  ;;  %v13002_v57 = vrot.slane %v10173_v28, 6  ;;  %v13004_v48 = vrot.slane %v10177_v34, 6 }
 0x364   : > { %v3811_v59 = vsel %vm13001_vm12, %v13000_v46, 0.0  ;;  %v10292_v26 = vadd.f32 %v3732_v30, %v3731_v6  ;;  %v3760_v56 = vrot.slane %v3759_v44, 1  ;;  %v3801_v51 = vadd.f32 %v3800_v20, %v3799_v42 }
 0x365   : > { %v3818_v41 = vsel %vm13003_vm7, %v13002_v57, 0.0  ;;  %v3825_v9 = vsel %vm13005_vm6, %v13004_v48, 0.0  ;;  %v3805_v33 = vrot.slane %v3804_v45, 4  ;;  %v10294_v5 = vadd.f32 %v3739_v4, %v3738_v17 }
 0x366   : > { %v10296_v14 = vadd.f32 %v3746_v63, %v3745_v29  ;;  %v3767_v38 = vrot.slane %v3766_v52, 1  ;;  %v3812_v24 = vrot.slane %v3811_v59, 4  ;;  %v10298_v13 = vadd.f32 %v3753_v19, %v3752_v60 }
 0x367   : > { %v3774_v28 = vrot.slane %v3773_v21, 1  ;;  %v3819_v61 = vrot.slane %v3818_v41, 4  ;;  %v3826_v27 = vrot.slane %v3825_v9, 4  ;;  %v3781_v55 = vrot.slane %v3780_v11, 1 }
 0x368   : > { %v3788_v34 = vrot.slane %v3787_v18, 1  ;;  %v3795_v10 = vrot.slane %v3794_v62, 1  ;;  %v13006_v6 = vrot.slane %v10181_v22, 6  ;;  %v10303_v42 = vadd.f32 %v3760_v56, %v3759_v44 }
 0x369   : > { %v3802_v17 = vrot.slane %v3801_v51, 1  ;;  %v3806_v37 = vadd.f32 %v3805_v33, %v3804_v45  ;;  %v13008_v29 = vrot.slane %v10185_v58, 6  ;;  %v10308_v60 = vadd.f32 %v3767_v38, %v3766_v52 }
 0x36a   : > { %v3832_v16 = vsel %vm13007_vm13, %v13006_v6, 0.0  ;;  %v3813_v7 = vadd.f32 %v3812_v24, %v3811_v59  ;;  %v13010_v49 = vrot.slane %v10189_v40, 6  ;;  %v13012_v4 = vrot.slane %v10193_v47, 6 }
 0x36b   : > { %v3839_v8 = vsel %vm13009_vm3, %v13008_v29, 0.0  ;;  %v10316_v20 = vadd.f32 %v3774_v28, %v3773_v21  ;;  %v3820_v44 = vadd.f32 %v3819_v61, %v3818_v41  ;;  %v3827_v63 = vadd.f32 %v3826_v27, %v3825_v9 }
 0x36c   : > { %v3846_v30 = vsel %vm13011_vm8, %v13010_v49, 0.0  ;;  %v3853_v22 = vsel %vm13013_vm10, %v13012_v4, 0.0  ;;  %v3833_v36 = vrot.slane %v3832_v16, 4  ;;  %v10318_v45 = vadd.f32 %v3781_v55, %v3780_v11 }
 0x36d   : > { %v10320_v58 = vadd.f32 %v3788_v34, %v3787_v18  ;;  %v10322_v52 = vadd.f32 %v3795_v10, %v3794_v62  ;;  %v3840_v19 = vrot.slane %v3839_v8, 4  ;;  %v10324_v46 = vadd.f32 %v3802_v17, %v3801_v51 }
 0x36e   : > { %v3807_v40 = vrot.slane %v3806_v37, 2  ;;  %v3847_v59 = vrot.slane %v3846_v30, 4  ;;  %v3854_v57 = vrot.slane %v3853_v22, 4  ;;  %v3814_v47 = vrot.slane %v3813_v7, 2 }
 0x36f   : > { %v13014_v48 = vrot.slane %v10197_v32, 6  ;;  %v13016_v41 = vrot.slane %v10201_v12, 6  ;;  %v13018_v18 = vrot.slane %v10205_v35, 6  ;;  %v3821_v9 = vrot.slane %v3820_v44, 2 }
 0x370   : > { %v3828_v56 = vrot.slane %v3827_v63, 2  ;;  %v3834_v51 = vadd.f32 %v3833_v36, %v3832_v16  ;;  %v13020_v33 = vrot.slane %v10209_v23, 6  ;;  %v3841_v24 = vadd.f32 %v3840_v19, %v3839_v8 }
 0x371   : > { %v3860_v21 = vsel %vm13015_vm15, %v13014_v48, 0.0  ;;  %v3867_v11 = vsel %vm13017_vm9, %v13016_v41, 0.0  ;;  %v3874_v62 = vsel %vm13019_vm1, %v13018_v18, 0.0  ;;  %v13022_v32 = vrot.slane %v10213_v53, 6 }
 0x372   : > { %v3881_v38 = vsel %vm13021_vm14, %v13020_v33, 0.0  ;;  %v13024_v12 = vrot.slane %v10217_v0, 6  ;;  %v13026_v35 = vrot.slane %v10221_v54, 6  ;;  %v3861_v55 = vrot.slane %v3860_v21, 4 }
 0x373   : > { %v3888_v28 = vsel %vm13023_vm2, %v13022_v32, 0.0  ;;  %v3868_v34 = vrot.slane %v3867_v11, 4  ;;  %v3875_v10 = vrot.slane %v3874_v62, 4  ;;  %v13028_v23 = vrot.slane %v10225_v31, 6 }
 0x374   : > { %v3895_v61 = vsel %vm13025_vm4, %v13024_v12, 0.0  ;;  %v3902_v27 = vsel %vm13027_vm5, %v13026_v35, 0.0  ;;  %v3808_v16 = vadd.f32 %v3807_v40, %v3806_v37  ;;  %v3848_v17 = vadd.f32 %v3847_v59, %v3846_v30 }
 0x375   : > { %v3909_v6 = vsel %vm12863_vm0, %v13028_v23, 0.0  ;;  %v3855_v53 = vadd.f32 %v3854_v57, %v3853_v22  ;;  %v3882_v29 = vrot.slane %v3881_v38, 4  ;;  %v3815_v8 = vadd.f32 %v3814_v47, %v3813_v7 }
 0x376   : > { %v3889_v49 = vrot.slane %v3888_v28, 4  ;;  %v3896_v0 = vrot.slane %v3895_v61, 4  ;;  %v3903_v4 = vrot.slane %v3902_v27, 4  ;;  %v3822_v36 = vadd.f32 %v3821_v9, %v3820_v44 }
 0x377   : > { %v3829_v19 = vadd.f32 %v3828_v56, %v3827_v63  ;;  %v3835_v54 = vrot.slane %v3834_v51, 2  ;;  %v3910_v48 = vrot.slane %v3909_v6, 4  ;;  %v3842_v41 = vrot.slane %v3841_v24, 2 }
 0x378   : > { %v3862_v18 = vadd.f32 %v3861_v55, %v3860_v21  ;;  %v3869_v33 = vadd.f32 %v3868_v34, %v3867_v11  ;;  %v3876_v32 = vadd.f32 %v3875_v10, %v3874_v62  ;;  %v3809_v12 = vrot.slane %v3808_v16, 1 }
 0x379   : > { %v3849_v31 = vrot.slane %v3848_v17, 2  ;;  %v3856_v35 = vrot.slane %v3855_v53, 2  ;;  %v3883_v23 = vadd.f32 %v3882_v29, %v3881_v38  ;;  %v3816_v37 = vrot.slane %v3815_v8, 1 }
 0x37a   : > { %v3890_v30 = vadd.f32 %v3889_v49, %v3888_v28  ;;  %v3897_v22 = vadd.f32 %v3896_v0, %v3895_v61  ;;  %v3904_v40 = vadd.f32 %v3903_v4, %v3902_v27  ;;  %v3823_v7 = vrot.slane %v3822_v36, 1 }
 0x37b   : > { %v3830_v59 = vrot.slane %v3829_v19, 1  ;;  %v3836_v57 = vadd.f32 %v3835_v54, %v3834_v51  ;;  %v3911_v47 = vadd.f32 %v3910_v48, %v3909_v6  ;;  %v3843_v44 = vadd.f32 %v3842_v41, %v3841_v24 }
 0x37c   : > { %v3863_v63 = vrot.slane %v3862_v18, 2  ;;  %v3870_v9 = vrot.slane %v3869_v33, 2  ;;  %v3877_v56 = vrot.slane %v3876_v32, 2  ;;  %v10350_v25 = vadd.f32 %v3809_v12, %v3808_v16 }
 0x37d   : > { %v3850_v21 = vadd.f32 %v3849_v31, %v3848_v17  ;;  %v3857_v11 = vadd.f32 %v3856_v35, %v3855_v53  ;;  %v3884_v62 = vrot.slane %v3883_v23, 2  ;;  %v3891_v55 = vrot.slane %v3890_v30, 2 }
 0x37e   : > { %v3898_v34 = vrot.slane %v3897_v22, 2  ;;  %v3905_v38 = vrot.slane %v3904_v40, 2  ;;  %5495 = vrsqrt.f32 %v10270_v39  ;;  %v10353_v28 = vadd.f32 %v3816_v37, %v3815_v8 }
 0x37f   : > { %v10355_v61 = vadd.f32 %v3823_v7, %v3822_v36  ;;  %v3912_v51 = vrot.slane %v3911_v47, 2  ;;  %5497 = vrsqrt.f32 %v10272_v15  ;;  %v3864_v24 = vadd.f32 %v3863_v63, %v3862_v18 }
 0x380   : > { %v3871_v27 = vadd.f32 %v3870_v9, %v3869_v33  ;;  %v3878_v10 = vadd.f32 %v3877_v56, %v3876_v32  ;;  %5499 = vrsqrt.f32 %v10274_v43  ;;  %v3837_v6 = vrot.slane %v3836_v57, 1 }
 0x381   : > { %v3844_v16 = vrot.slane %v3843_v44, 1  ;;  %v3885_v17 = vadd.f32 %v3884_v62, %v3883_v23  ;;  %5501 = vrsqrt.f32 %v10276_v3  ;;  %v3892_v53 = vadd.f32 %v3891_v55, %v3890_v30 }
 0x382   : > { %v3899_v29 = vadd.f32 %v3898_v34, %v3897_v22  ;;  %v3906_v49 = vadd.f32 %v3905_v38, %v3904_v40  ;;  %5503 = vrsqrt.f32 %v10278_v1  ;;  %v3851_v8 = vrot.slane %v3850_v21, 1 }
 0x383   : > { %v3858_v0 = vrot.slane %v3857_v11, 1  ;;  %v3913_v4 = vadd.f32 %v3912_v51, %v3911_v47  ;;  %5505 = vrsqrt.f32 %v10292_v26  ;;  %v10362_v36 = vadd.f32 %v3830_v59, %v3829_v19 }
 0x384   : > { %v3865_v54 = vrot.slane %v3864_v24, 1  ;;  %v3872_v48 = vrot.slane %v3871_v27, 1  ;;  %v3879_v41 = vrot.slane %v3878_v10, 1  ;;  %v10364_v18 = vadd.f32 %v3837_v6, %v3836_v57 }
 0x385   : > { %v10366_v33 = vadd.f32 %v3844_v16, %v3843_v44  ;;  %v3886_v32 = vrot.slane %v3885_v17, 1  ;;  %5507 = vrsqrt.f32 %v10294_v5  ;;  %v3893_v12 = vrot.slane %v3892_v53, 1 }
 0x386   : > { %v3900_v31 = vrot.slane %v3899_v29, 1  ;;  %v3907_v35 = vrot.slane %v3906_v49, 1  ;;  %5509 = vrsqrt.f32 %v10296_v14  ;;  %v10370_v23 = vadd.f32 %v3851_v8, %v3850_v21 }
 0x387   : > { %v10372_v37 = vadd.f32 %v3858_v0, %v3857_v11  ;;  %v3914_v19 = vrot.slane %v3913_v4, 1  ;;  %5511 = vrsqrt.f32 %v10298_v13  ;;  %v10375_v30 = vadd.f32 %v3865_v54, %v3864_v24 }
 0x388   : > { %v10377_v22 = vadd.f32 %v3872_v48, %v3871_v27  ;;  %v10379_v40 = vadd.f32 %v3879_v41, %v3878_v10  ;;  %5513 = vrsqrt.f32 %v10303_v42  ;;  %v10382_v7 = vadd.f32 %v3886_v32, %v3885_v17 }
 0x389   : > { %vm3918_vm11 = vcmp.eq.f32.partialorder %v10270_v39, inf  ;;  %v3921_v59 = vand.u32 2147483648, %v10270_v39  ;;  %5515 = vrsqrt.f32 %v10308_v60  ;;  %v10387_v57 = vadd.f32 %v3893_v12, %v3892_v53 }
 0x38a   : > { %v10389_v47 = vadd.f32 %v3900_v31, %v3899_v29  ;;  %v10391_v44 = vadd.f32 %v3907_v35, %v3906_v49  ;;  %5517 = vrsqrt.f32 %v10316_v20  ;;  %v10394_v9 = vadd.f32 %v3914_v19, %v3913_v4 }
 0x38b   : > { %v5496_v63 = vpop.eup %5495  ;;  %vm3920_vm12 = vcmp.eq.f32.partialorder %v10270_v39, 0.0  ;;  %vm3925_vm7 = vcmp.eq.f32.partialorder %v10272_v15, inf  ;;  %v3928_v56 = vand.u32 2147483648, %v10272_v15  ;;  %5519 = vrsqrt.f32 %v10318_v45 }
 0x38c   : > { %v5498_v21 = vpop.eup %5497  ;;  %vm3932_vm6 = vcmp.eq.f32.partialorder %v10274_v43, inf  ;;  %v3935_v11 = vand.u32 2147483648, %v10274_v43  ;;  %vm3939_vm13 = vcmp.eq.f32.partialorder %v10276_v3, inf  ;;  %5521 = vrsqrt.f32 %v10320_v58 }
 0x38d   : > { %v5500_v62 = vpop.eup %5499  ;;  %vm3927_vm3 = vcmp.eq.f32.partialorder %v10272_v15, 0.0  ;;  %vm3934_vm8 = vcmp.eq.f32.partialorder %v10274_v43, 0.0  ;;  %vm3941_vm10 = vcmp.eq.f32.partialorder %v10276_v3, 0.0  ;;  %v3942_v55 = vand.u32 2147483648, %v10276_v3 }
 0x38e   : > { %vm3946_vm15 = vcmp.eq.f32.partialorder %v10278_v1, inf  ;;  %v3949_v34 = vand.u32 2147483648, %v10278_v1  ;;  %5523 = vrsqrt.f32 %v10322_v52  ;;  %v5502_v38 = vpop.eup %5501  ;;  %vm3948_vm9 = vcmp.eq.f32.partialorder %v10278_v1, 0.0 }
 0x38f   : > { %vm3953_vm1 = vcmp.eq.f32.partialorder %v10292_v26, inf  ;;  %v3956_v51 = vand.u32 2147483648, %v10292_v26  ;;  %vm3960_vm14 = vcmp.eq.f32.partialorder %v10294_v5, inf  ;;  %5525 = vrsqrt.f32 %v10324_v46  ;;  %v5504_v24 = vpop.eup %5503 }
 0x390   : > { %v3917_v27 = vmul.f32 %v5496_v63, %v10270_v39  ;;  %v3963_v10 = vand.u32 2147483648, %v10294_v5  ;;  %v3970_v6 = vand.u32 2147483648, %v10296_v14  ;;  %v5506_v16 = vpop.eup %5505  ;;  %v3924_v17 = vmul.f32 %v5498_v21, %v10272_v15 }
 0x391   : > { %v3977_v53 = vand.u32 2147483648, %v10298_v13  ;;  %5527 = vrsqrt.f32 %v10350_v25  ;;  %v3931_v29 = vmul.f32 %v5500_v62, %v10274_v43  ;;  %v3938_v49 = vmul.f32 %v5502_v38, %v10276_v3 }
 0x392   : > { %v3984_v8 = vand.u32 2147483648, %v10303_v42  ;;  %v5508_v0 = vpop.eup %5507  ;;  %v3945_v4 = vmul.f32 %v5504_v24, %v10278_v1  ;;  %v3991_v54 = vand.u32 2147483648, %v10308_v60  ;;  %5529 = vrsqrt.f32 %v10353_v28 }
 0x393   : > { %v5510_v48 = vpop.eup %5509  ;;  %v3919_v41 = vsel %vm3918_vm11, %v10270_v39, %v3917_v27  ;;  %v3952_v32 = vmul.f32 %v5506_v16, %v10292_v26  ;;  %vm3976_vm2 = vcmp.eq.f32.partialorder %v10298_v13, 0.0  ;;  %vm3995_vm0 = vcmp.eq.f32.partialorder %v10316_v20, inf }
 0x394   : > { %v3998_v12 = vand.u32 2147483648, %v10316_v20  ;;  %v5512_v31 = vpop.eup %5511  ;;  %v3926_v35 = vsel %vm3925_vm7, %v10272_v15, %v3924_v17  ;;  %vm3983_vm5 = vcmp.eq.f32.partialorder %v10303_v42, 0.0  ;;  %vm4002_vm4 = vcmp.eq.f32.partialorder %v10318_v45, inf }
 0x395   : > { %v4005_v19 = vand.u32 2147483648, %v10318_v45  ;;  %v5514_v21 = vpop.eup %5513  ;;  %v3933_v62 = vsel %vm3932_vm6, %v10274_v43, %v3931_v29  ;;  %v3940_v38 = vsel %vm3939_vm13, %v10276_v3, %v3938_v49  ;;  %v3959_v24 = vmul.f32 %v5508_v0, %v10294_v5 }
 0x396   : > { %vm3990_vm11 = vcmp.eq.f32.partialorder %v10308_v60, 0.0  ;;  %5531 = vrsqrt.f32 %v10355_v61  ;;  %v5516_v27 = vpop.eup %5515  ;;  %v10463_v16 = vsel %vm3920_vm12, %v3921_v59, %v3919_v41  ;;  %v3947_v17 = vsel %vm3946_vm15, %v10278_v1, %v3945_v4 }
 0x397   : > { %v3966_v29 = vmul.f32 %v5510_v48, %v10296_v14  ;;  %vm3997_vm6 = vcmp.eq.f32.partialorder %v10316_v20, 0.0  ;;  %vm4016_vm13 = vcmp.eq.f32.partialorder %v10322_v52, inf  ;;  %v4019_v49 = vand.u32 2147483648, %v10322_v52  ;;  %v5518_v0 = vpop.eup %5517 }
 0x398   : > { %v3954_v63 = vsel %vm3953_vm1, %v10292_v26, %v3952_v32  ;;  %v3973_v39 = vmul.f32 %v5512_v31, %v10298_v13  ;;  %vm4004_vm12 = vcmp.eq.f32.partialorder %v10318_v45, 0.0  ;;  %vm4023_vm7 = vcmp.eq.f32.partialorder %v10324_v46, inf  ;;  %v5520_v4 = vpop.eup %5519 }
 0x399   : > { %5533 = vrsqrt.f32 %v10362_v36  ;;  %v10484_v48 = vsel %vm3927_vm3, %v3928_v56, %v3926_v35  ;;  %v10490_v41 = vsel %vm3934_vm8, %v3935_v11, %v3933_v62  ;;  %v10496_v32 = vsel %vm3941_vm10, %v3942_v55, %v3940_v38  ;;  %v5522_v59 = vpop.eup %5521 }
 0x39a   : > { %v3980_v31 = vmul.f32 %v5514_v21, %v10303_v42  ;;  %vm4011_vm15 = vcmp.eq.f32.partialorder %v10320_v58, 0.0  ;;  %v10504_v15 = vsel %vm3948_vm9, %v3949_v34, %v3947_v17  ;;  %v3961_v43 = vsel %vm3960_vm14, %v10294_v5, %v3959_v24 }
 0x39b   : > { %v3987_v56 = vmul.f32 %v5516_v27, %v10308_v60  ;;  %vm4018_vm3 = vcmp.eq.f32.partialorder %v10322_v52, 0.0  ;;  %vm4030_vm8 = vcmp.eq.f32.partialorder %v10350_v25, inf  ;;  %v4033_v3 = vand.u32 2147483648, %v10350_v25  ;;  %v5524_v11 = vpop.eup %5523 }
 0x39c   : > { %vm13029_vm10 = vcmp.eq.f32.partialorder %v10292_v26, 0.0  ;;  %vm13030_vm9 = vcmp.eq.f32.partialorder %v10296_v14, inf  ;;  %v3994_v34 = vmul.f32 %v5518_v0, %v10316_v20  ;;  %5535 = vrsqrt.f32 %v10364_v18  ;;  %v5526_v35 = vpop.eup %5525 }
 0x39d   : > { %v10517_v1 = vsel %vm13029_vm10, %v3956_v51, %v3954_v63  ;;  %v3968_v55 = vsel %vm13030_vm9, %v10296_v14, %v3966_v29  ;;  %vm13031_vm14 = vcmp.eq.f32.partialorder %v10298_v13, inf  ;;  %v4001_v62 = vmul.f32 %v5520_v4, %v10318_v45 }
 0x39e   : > { %v3975_v21 = vsel %vm13031_vm14, %v10298_v13, %v3973_v39  ;;  %5537 = vrsqrt.f32 %v10366_v33  ;;  %vm13032_vm9 = vcmp.eq.f32.partialorder %v10294_v5, 0.0  ;;  %vm13033_vm1 = vcmp.eq.f32.partialorder %v10303_v42, inf  ;;  %v5528_v38 = vpop.eup %5527 }
 0x39f   : > { %v10535_v26 = vsel %vm13032_vm9, %v3963_v10, %v3961_v43  ;;  %v3982_v51 = vsel %vm13033_vm1, %v10303_v42, %v3980_v31  ;;  %v4008_v63 = vmul.f32 %v5522_v59, %v10320_v58  ;;  %vm4032_vm14 = vcmp.eq.f32.partialorder %v10350_v25, 0.0  ;;  %v5530_v29 = vpop.eup %5529 }
 0x3a0   : > { %5539 = vrsqrt.f32 %v10370_v23  ;;  %vm13034_vm10 = vcmp.eq.f32.partialorder %v10296_v14, 0.0  ;;  %vm13035_vm9 = vcmp.eq.f32.partialorder %v10308_v60, inf  ;;  %v4015_v10 = vmul.f32 %v5524_v11, %v10322_v52 }
 0x3a1   : > { %v10547_v24 = vsel %vm13034_vm10, %v3970_v6, %v3968_v55  ;;  %v3989_v5 = vsel %vm13035_vm9, %v10308_v60, %v3987_v56  ;;  %v4040_v27 = vand.u32 2147483648, %v10353_v28  ;;  %v10558_v17 = vsel %vm3976_vm2, %v3977_v53, %v3975_v21 }
 0x3a2   : > { %v3996_v14 = vsel %vm3995_vm0, %v10316_v20, %v3994_v34  ;;  %v4022_v6 = vmul.f32 %v5526_v35, %v10324_v46  ;;  %vm4039_vm1 = vcmp.eq.f32.partialorder %v10353_v28, 0.0  ;;  %5541 = vrsqrt.f32 %v10372_v37 }
 0x3a3   : > { %v10570_v0 = vsel %vm3983_vm5, %v3984_v8, %v3982_v51  ;;  %v4003_v13 = vsel %vm4002_vm4, %v10318_v45, %v4001_v62  ;;  %vm4044_vm2 = vcmp.eq.f32.partialorder %v10355_v61, inf  ;;  %5543 = vrsqrt.f32 %v10375_v30  ;;  %v5532_v59 = vpop.eup %5531 }
 0x3a4   : > { %v10581_v53 = vsel %vm3990_vm11, %v3991_v54, %v3989_v5  ;;  %vm13036_vm0 = vcmp.eq.f32.partialorder %v10320_v58, inf  ;;  %v4029_v8 = vmul.f32 %v5528_v38, %v10350_v25  ;;  %5545 = vrsqrt.f32 %v10377_v22 }
 0x3a5   : > { %v4010_v42 = vsel %vm13036_vm0, %v10320_v58, %v4008_v63  ;;  %v10592_v39 = vsel %vm3997_vm6, %v3998_v12, %v3996_v14  ;;  %v4017_v60 = vsel %vm4016_vm13, %v10322_v52, %v4015_v10  ;;  %vm4046_vm4 = vcmp.eq.f32.partialorder %v10355_v61, 0.0 }
 0x3a6   : > { %v4047_v54 = vand.u32 2147483648, %v10355_v61  ;;  %5547 = vrsqrt.f32 %v10379_v40  ;;  %v10604_v4 = vsel %vm4004_vm12, %v4005_v19, %v4003_v13  ;;  %v4024_v20 = vsel %vm4023_vm7, %v10324_v46, %v4022_v6  ;;  %v5534_v45 = vpop.eup %5533 }
 0x3a7   : > { %v4036_v12 = vmul.f32 %v5530_v29, %v10353_v28  ;;  %5549 = vrsqrt.f32 %v10382_v7  ;;  %v13037_v31 = vand.u32 2147483648, %v10320_v58  ;;  %vm4051_vm5 = vcmp.eq.f32.partialorder %v10362_v36, inf }
 0x3a8   : > { %vm4053_vm11 = vcmp.eq.f32.partialorder %v10362_v36, 0.0  ;;  %5551 = vrsqrt.f32 %v10387_v57  ;;  %v10624_v19 = vsel %vm4018_vm3, %v4019_v49, %v4017_v60  ;;  %v4031_v56 = vsel %vm4030_vm8, %v10350_v25, %v4029_v8 }
 0x3a9   : > { %v10615_v43 = vsel %vm4011_vm15, %v13037_v31, %v4010_v42  ;;  %v4054_v58 = vand.u32 2147483648, %v10362_v36  ;;  %5553 = vrsqrt.f32 %v10389_v47  ;;  %v13038_v11 = vand.u32 2147483648, %v10324_v46 }
 0x3aa   : > { %vm13039_vm7 = vcmp.eq.f32.partialorder %v10324_v46, 0.0  ;;  %v4043_v34 = vmul.f32 %v5532_v59, %v10355_v61  ;;  %vm4058_vm6 = vcmp.eq.f32.partialorder %v10364_v18, inf  ;;  %5555 = vrsqrt.f32 %v10391_v44  ;;  %v5536_v46 = vpop.eup %5535 }
 0x3ab   : > { %v10635_v55 = vsel %vm13039_vm7, %v13038_v11, %v4024_v20  ;;  %vm13040_vm13 = vcmp.eq.f32.partialorder %v10353_v28, inf  ;;  %vm4060_vm12 = vcmp.eq.f32.partialorder %v10364_v18, 0.0  ;;  %v4061_v49 = vand.u32 2147483648, %v10364_v18  ;;  %v5538_v51 = vpop.eup %5537 }
 0x3ac   : > { %v4038_v52 = vsel %vm13040_vm13, %v10353_v28, %v4036_v12  ;;  %vm4065_vm15 = vcmp.eq.f32.partialorder %v10366_v33, inf  ;;  %5557 = vrsqrt.f32 %v10394_v9  ;;  %v10651_v35 = vsel %vm4032_vm14, %v4033_v3, %v4031_v56 }
 0x3ad   : > { %v4050_v21 = vmul.f32 %v5534_v45, %v10362_v36  ;;  %vm4067_vm3 = vcmp.eq.f32.partialorder %v10366_v33, 0.0  ;;  %v4068_v62 = vand.u32 2147483648, %v10366_v33  ;;  %vm4072_vm8 = vcmp.eq.f32.partialorder %v10370_v23, inf  ;;  %v5540_v38 = vpop.eup %5539 }
 0x3ae   : > { %vm4074_vm10 = vcmp.eq.f32.partialorder %v10370_v23, 0.0  ;;  %v4075_v63 = vand.u32 2147483648, %v10370_v23  ;;  %vm4079_vm9 = vcmp.eq.f32.partialorder %v10372_v37, inf  ;;  %v10662_v25 = vsel %vm4039_vm1, %v4040_v27, %v4038_v52 }
 0x3af   : > { %v4045_v3 = vsel %vm4044_vm2, %v10355_v61, %v4043_v34  ;;  %v4082_v5 = vand.u32 2147483648, %v10372_v37  ;;  %vm4086_vm14 = vcmp.eq.f32.partialorder %v10375_v30, inf  ;;  %v4057_v10 = vmul.f32 %v5536_v46, %v10364_v18  ;;  %v5542_v27 = vpop.eup %5541 }
 0x3b0   : > { %v4089_v14 = vand.u32 2147483648, %v10375_v30  ;;  %vm4093_vm7 = vcmp.eq.f32.partialorder %v10377_v22, inf  ;;  %v4096_v28 = vand.u32 2147483648, %v10377_v22  ;;  %v4052_v6 = vsel %vm4051_vm5, %v10362_v36, %v4050_v21  ;;  %v5544_v42 = vpop.eup %5543 }
 0x3b1   : > { %v4064_v29 = vmul.f32 %v5538_v51, %v10366_v33  ;;  %vm4100_vm2 = vcmp.eq.f32.partialorder %v10379_v40, inf  ;;  %v4103_v13 = vand.u32 2147483648, %v10379_v40  ;;  %v10683_v8 = vsel %vm4046_vm4, %v4047_v54, %v4045_v3  ;;  %v5546_v20 = vpop.eup %5545 }
 0x3b2   : > { %v4071_v60 = vmul.f32 %v5540_v38, %v10370_v23  ;;  %vm4095_vm13 = vcmp.eq.f32.partialorder %v10377_v22, 0.0  ;;  %vm4107_vm0 = vcmp.eq.f32.partialorder %v10382_v7, inf  ;;  %v4110_v59 = vand.u32 2147483648, %v10382_v7 }
 0x3b3   : > { %v4117_v12 = vand.u32 2147483648, %v10387_v57  ;;  %v4124_v31 = vand.u32 2147483648, %v10389_v47  ;;  %v4131_v61 = vand.u32 2147483648, %v10391_v44  ;;  %v5548_v54 = vpop.eup %5547  ;;  %v10696_v45 = vsel %vm4053_vm11, %v4054_v58, %v4052_v6 }
 0x3b4   : > { %v4059_v56 = vsel %vm4058_vm6, %v10364_v18, %v4057_v10  ;;  %v4078_v11 = vmul.f32 %v5542_v27, %v10372_v37  ;;  %vm4109_vm4 = vcmp.eq.f32.partialorder %v10382_v7, 0.0  ;;  %vm4121_vm1 = vcmp.eq.f32.partialorder %v10389_v47, inf  ;;  %v5550_v52 = vpop.eup %5549 }
 0x3b5   : > { %v4138_v34 = vand.u32 2147483648, %v10394_v9  ;;  %v4066_v46 = vsel %vm4065_vm15, %v10366_v33, %v4064_v29  ;;  %v4085_v36 = vmul.f32 %v5544_v42, %v10375_v30  ;;  %vm4128_vm11 = vcmp.eq.f32.partialorder %v10391_v44, inf  ;;  %v5552_v51 = vpop.eup %5551 }
 0x3b6   : > { %vm4135_vm5 = vcmp.eq.f32.partialorder %v10394_v9, inf  ;;  %v4140_v58 = vadd.f32 1e-10, %v10463_v16  ;;  %v4141_v21 = vadd.f32 1e-10, %v10484_v48  ;;  %v4073_v38 = vsel %vm4072_vm8, %v10370_v23, %v4071_v60  ;;  %v5554_v6 = vpop.eup %5553 }
 0x3b7   : > { %v4092_v3 = vmul.f32 %v5546_v20, %v10377_v22  ;;  %vm4116_vm6 = vcmp.eq.f32.partialorder %v10387_v57, 0.0  ;;  %v4142_v10 = vadd.f32 1e-10, %v10490_v41  ;;  %v4143_v27 = vadd.f32 1e-10, %v10496_v32  ;;  %v5556_v60 = vpop.eup %5555 }
 0x3b8   : > { %v4062_v16 = vsel %vm4060_vm12, %v4061_v49, %v4059_v56  ;;  %v4099_v48 = vmul.f32 %v5548_v54, %v10379_v40  ;;  %vm4123_vm15 = vcmp.eq.f32.partialorder %v10389_v47, 0.0  ;;  %v4144_v29 = vadd.f32 1e-10, %v10504_v15 }
 0x3b9   : > { %v4145_v42 = vadd.f32 1e-10, %v10517_v1  ;;  %v4069_v41 = vsel %vm4067_vm3, %v4068_v62, %v4066_v46  ;;  %v4080_v32 = vsel %vm4079_vm9, %v10372_v37, %v4078_v11  ;;  %v4106_v20 = vmul.f32 %v5550_v52, %v10382_v7  ;;  %v5558_v49 = vpop.eup %5557 }
 0x3ba   : > { %vm4130_vm12 = vcmp.eq.f32.partialorder %v10391_v44, 0.0  ;;  %vm4137_vm8 = vcmp.eq.f32.partialorder %v10394_v9, 0.0  ;;  %v4146_v18 = vadd.f32 1e-10, %v10535_v26  ;;  %v4076_v15 = vsel %vm4074_vm10, %v4075_v63, %v4073_v38  ;;  %v13045_v38 = vld [vmem:[#allocation101_spill] sm:$0xff] }
 0x3bb   : > { %v4087_v33 = vsel %vm4086_vm14, %v10375_v30, %v4085_v36  ;;  %v4147_v1 = vadd.f32 1e-10, %v10547_v24  ;;  %v4148_v62 = vadd.f32 1e-10, %v10558_v17  ;;  %v4094_v54 = vsel %vm4093_vm7, %v10377_v22, %v4092_v3  ;;  %v13046_v3 = vld [vmem:[#allocation70_spill] sm:$0xff] }
 0x3bc   : > { %v4113_v26 = vmul.f32 %v5552_v51, %v10387_v57  ;;  %v4149_v56 = vadd.f32 1e-10, %v10570_v0  ;;  %v4150_v11 = vadd.f32 1e-10, %v10581_v53  ;;  %vm13041_vm3 = vcmp.eq.f32.partialorder %v10372_v37, 0.0 }
 0x3bd   : > { %v4083_v23 = vsel %vm13041_vm3, %v4082_v5, %v4080_v32  ;;  %v4101_v24 = vsel %vm4100_vm2, %v10379_v40, %v4099_v48  ;;  %v4120_v17 = vmul.f32 %v5554_v6, %v10389_v47  ;;  %v4151_v63 = vadd.f32 1e-10, %v10592_v39  ;;  %v13049_v6 = vld [vmem:[#allocation71_spill] sm:$0xff]  ;;  %v13051_v48 = vld [vmem:[#allocation72_spill] sm:$0xff] }
 0x3be   : > { %vm13042_vm10 = vcmp.eq.f32.partialorder %v10375_v30, 0.0  ;;  %v4108_v53 = vsel %vm4107_vm0, %v10382_v7, %v4106_v20  ;;  %v4127_v37 = vmul.f32 %v5556_v60, %v10391_v44  ;;  %v4134_v5 = vmul.f32 %v5558_v49, %v10394_v9  ;;  %v13054_v60 = vld [vmem:[#allocation38_spill] sm:$0xff]  ;;  %v13057_v20 = vld [vmem:[#allocation39_spill] sm:$0xff] }
 0x3bf   : > { %v4090_v0 = vsel %vm13042_vm10, %v4089_v14, %v4087_v33  ;;  %v4097_v52 = vsel %vm4095_vm13, %v4096_v28, %v4094_v54  ;;  %v4152_v39 = vadd.f32 1e-10, %v10604_v4  ;;  %v4153_v46 = vadd.f32 1e-10, %v10615_v43  ;;  %v13061_v33 = vld [vmem:[#allocation11_spill] sm:$0xff]  ;;  %v13064_v54 = vld [vmem:[#allocation12_spill] sm:$0xff] }
 0x3c0   : > { %v4154_v30 = vadd.f32 1e-10, %v10624_v19  ;;  %vm13043_vm9 = vcmp.eq.f32.partialorder %v10379_v40, 0.0  ;;  %vm13044_vm14 = vcmp.eq.f32.partialorder %v10387_v57, inf  ;;  %v4155_v51 = vadd.f32 1e-10, %v10635_v55 }
 0x3c1   : > { %v4104_v14 = vsel %vm13043_vm9, %v4103_v13, %v4101_v24  ;;  %v4115_v36 = vsel %vm13044_vm14, %v10387_v57, %v4113_v26  ;;  %5559 = vrcp.f32 %v4140_v58  ;;  %v4111_v22 = vsel %vm4109_vm4, %v4110_v59, %v4108_v53  ;;  %v13069_v24 = vld [vmem:[#allocation43_spill] sm:$0xff]  ;;  %v13072_v53 = vld [vmem:[#allocation44_spill] sm:$0xff] }
 0x3c2   : > { %v4122_v4 = vsel %vm4121_vm1, %v10389_v47, %v4120_v17  ;;  %v4156_v43 = vadd.f32 1e-10, %v10651_v35  ;;  %5561 = vrcp.f32 %v4141_v21  ;;  %v4129_v40 = vsel %vm4128_vm11, %v10391_v44, %v4127_v37  ;;  %v13070_v17 = vld [vmem:[#allocation14_spill] sm:$0xff]  ;;  %v13073_v37 = vld [vmem:[#allocation15_spill] sm:$0xff] }
 0x3c3   : > { %v4136_v19 = vsel %vm4135_vm5, %v10394_v9, %v4134_v5  ;;  %v10800_v55 = vadd.f32 1e-10, %v10662_v25  ;;  %5563 = vrcp.f32 %v4142_v10  ;;  %v4118_v7 = vsel %vm4116_vm6, %v4117_v12, %v4115_v36  ;;  %v13078_v36 = vld [vmem:[#allocation46_spill] sm:$0xff] }
 0x3c4   : > { %v10807_v35 = vadd.f32 1e-10, %v10683_v8  ;;  %v10810_v28 = vadd.f32 1e-10, %v10696_v45  ;;  %5565 = vrcp.f32 %v4143_v27  ;;  %v4125_v13 = vsel %vm4123_vm15, %v4124_v31, %v4122_v4  ;;  %v13048_v27 = vld [vmem:[#allocation103_spill] sm:$0xff] }
 0x3c5   : > { %v10816_v25 = vadd.f32 1e-10, %v4062_v16  ;;  %v10818_v59 = vadd.f32 1e-10, %v4069_v41  ;;  %5567 = vrcp.f32 %v4144_v29  ;;  %v4132_v57 = vsel %vm4130_vm12, %v4131_v61, %v4129_v40  ;;  %v13052_v29 = vld [vmem:[#allocation8_spill] sm:$0xff]  ;;  %v13055_v41 = vld [vmem:[#allocation9_spill] sm:$0xff] }
 0x3c6   : > { %v4139_v8 = vsel %vm4137_vm8, %v4138_v34, %v4136_v19  ;;  %v10828_v12 = vadd.f32 1e-10, %v4076_v15  ;;  %5569 = vrcp.f32 %v4145_v42  ;;  %v10830_v47 = vadd.f32 1e-10, %v4083_v23  ;;  %v13060_v15 = vld [vmem:[#allocation40_spill] sm:$0xff]  ;;  %v13067_v23 = vld [vmem:[#allocation13_spill] sm:$0xff] }
 0x3c7   : > { %v10832_v31 = vadd.f32 1e-10, %v4090_v0  ;;  %v10834_v45 = vadd.f32 1e-10, %v4097_v52  ;;  %5571 = vrcp.f32 %v4146_v18  ;;  %v10836_v58 = vadd.f32 1e-10, %v4104_v14 }
 0x3c8   : > { %v10838_v21 = vadd.f32 1e-10, %v4111_v22  ;;  %v10840_v44 = vadd.f32 1e-10, %v4118_v7  ;;  %5573 = vrcp.f32 %v4147_v1  ;;  %v10842_v61 = vadd.f32 1e-10, %v4125_v13 }
 0x3c9   : > { %v10844_v9 = vadd.f32 1e-10, %v4132_v57  ;;  %v10846_v34 = vadd.f32 1e-10, %v4139_v8  ;;  %5575 = vrcp.f32 %v4148_v62  ;;  %vm13047_vm0 = vcmask 1041408   ;;  %v13058_v18 = vld [vmem:[#allocation10_spill] sm:$0xff] }
 0x3ca   : > { %5577 = vrcp.f32 %v4149_v56  ;;  %v4236_v10 = vsel %vm13047_vm0, %v13046_v3, %v13045_v38  ;;  %vm13050_vm7 = vmmov %vm13047_vm0  ;;  %v13063_v62 = vld [vmem:[#allocation41_spill] sm:$0xff]  ;;  %v13066_v56 = vld [vmem:[#allocation42_spill] sm:$0xff] }
 0x3cb   : > { %v4237_v16 = vsel %vm13050_vm7, %v13049_v6, %v13048_v27  ;;  %vm13053_vm1 = vmmov %vm13047_vm0  ;;  %5579 = vrcp.f32 %v4150_v11  ;;  %v13075_v52 = vld [vmem:[#allocation45_spill] sm:$0xff]  ;;  %v13081_v19 = vld [vmem:[#allocation47_spill] sm:$0xff] }
 0x3cc   : > { %v4238_v42 = vsel %vm13053_vm1, %v13052_v29, %v13051_v48  ;;  %vm13056_vm2 = vmmov %vm13047_vm0  ;;  %5581 = vrcp.f32 %v4151_v63  ;;  %v13076_v63 = vld [vmem:[#allocation16_spill] sm:$0xff]  ;;  %v13079_v22 = vld [vmem:[#allocation17_spill] sm:$0xff] }
 0x3cd   : > { %v4239_v32 = vsel %vm13056_vm2, %v13055_v41, %v13054_v60  ;;  %vm13059_vm13 = vmmov %vm13047_vm0  ;;  %5583 = vrcp.f32 %v4152_v39  ;;  %v13082_v7 = vld [vmem:[#allocation18_spill] sm:$0xff]  ;;  %v13084_v13 = vld [vmem:[#allocation48_spill] sm:$0xff] }
 0x3ce   : > { %v4240_v49 = vsel %vm13059_vm13, %v13058_v18, %v13057_v20  ;;  %vm13062_vm5 = vmmov %vm13047_vm0  ;;  %v5560_v40 = vpop.eup %5559  ;;  %5585 = vrcp.f32 %v4153_v46  ;;  %v13085_v57 = vld [vmem:[#allocation19_spill] sm:$0xff]  ;;  %v13087_v38 = vld [vmem:[#allocation49_spill] sm:$0xff] }
 0x3cf   : > { %v4241_v1 = vsel %vm13062_vm5, %v13061_v33, %v13060_v15  ;;  %vm13065_vm4 = vmmov %vm13047_vm0  ;;  %v13088_v3 = vld [vmem:[#allocation20_spill] sm:$0xff]  ;;  %v5562_v6 = vpop.eup %5561  ;;  %5587 = vrcp.f32 %v4154_v30  ;;  %v13090_v48 = vld [vmem:[#allocation50_spill] sm:$0xff] }
 0x3d0   : > { %v4242_v26 = vsel %vm13065_vm4, %v13064_v54, %v13063_v62  ;;  %vm13068_vm11 = vmmov %vm13047_vm0  ;;  %v13091_v29 = vld [vmem:[#allocation21_spill] sm:$0xff]  ;;  %v13093_v60 = vld [vmem:[#allocation51_spill] sm:$0xff]  ;;  %v5564_v62 = vpop.eup %5563  ;;  %5589 = vrcp.f32 %v4155_v51 }
 0x3d1   : > { %v4243_v11 = vsel %vm13068_vm11, %v13067_v23, %v13066_v56  ;;  %vm13071_vm6 = vmmov %vm13047_vm0  ;;  %v13094_v41 = vld [vmem:[#allocation22_spill] sm:$0xff]  ;;  %v13095_v18 = vld [vmem:[#allocation52_spill] sm:$0xff]  ;;  %5591 = vrcp.f32 %v4156_v43 }
 0x3d2   : > { %v4244_v0 = vsel %vm13071_vm6, %v13070_v17, %v13069_v24  ;;  %vm13074_vm15 = vmmov %vm13047_vm0  ;;  %v10913_v20 = vsel %vm13047_vm0, %v13094_v41, %v13093_v60  ;;  %v13096_v15 = vld [vmem:[#allocation23_spill] sm:$0xff]  ;;  %v13098_v54 = vld [vmem:[#allocation53_spill] sm:$0xff]  ;;  %5593 = vrcp.f32 %v10800_v55 }
 0x3d3   : > { %v10878_v5 = vsel %vm13074_vm15, %v13073_v37, %v13072_v53  ;;  %vm13077_vm12 = vmmov %vm13047_vm0  ;;  %v13099_v56 = vld [vmem:[#allocation24_spill] sm:$0xff]  ;;  %v13101_v23 = vld [vmem:[#allocation54_spill] sm:$0xff]  ;;  %5595 = vrcp.f32 %v10807_v35 }
 0x3d4   : > { %v10883_v14 = vsel %vm13077_vm12, %v13076_v63, %v13075_v52  ;;  %vm13080_vm8 = vmmov %vm13047_vm0  ;;  %v13102_v24 = vld [vmem:[#allocation25_spill] sm:$0xff]  ;;  %v13104_v53 = vld [vmem:[#allocation55_spill] sm:$0xff]  ;;  %v5566_v63 = vpop.eup %5565  ;;  %vm4268_vm12 = vcmask 1043456   ;;  %5597 = vrcp.f32 %v10810_v28 }
 0x3d5   : > { %v10888_v4 = vsel %vm13080_vm8, %v13079_v22, %v13078_v36  ;;  %vm13083_vm3 = vmmov %vm13047_vm0  ;;  %v13105_v37 = vld [vmem:[#allocation26_spill] sm:$0xff]  ;;  %v13107_v36 = vld [vmem:[#allocation56_spill] sm:$0xff] }
 0x3d6   : > { %v10893_v39 = vsel %vm13083_vm3, %v13082_v7, %v13081_v19  ;;  %vm13086_vm10 = vmmov %vm13047_vm0  ;;  %v13108_v22 = vld [vmem:[#allocation27_spill] sm:$0xff]  ;;  %v13110_v19 = vld [vmem:[#allocation57_spill] sm:$0xff] }
 0x3d7   : > { %v10898_v8 = vsel %vm13086_vm10, %v13085_v57, %v13084_v13  ;;  %vm13089_vm9 = vmmov %vm13047_vm0  ;;  %v13111_v7 = vld [vmem:[#allocation28_spill] sm:$0xff]  ;;  %v13113_v57 = vld [vmem:[#allocation58_spill] sm:$0xff] }
 0x3d8   : > { %v10903_v27 = vsel %vm13089_vm9, %v13088_v3, %v13087_v38  ;;  %vm13092_vm14 = vmmov %vm13047_vm0  ;;  %v13114_v38 = vld [vmem:[#allocation29_spill] sm:$0xff]  ;;  %v13117_v43 = vld [vmem:[#allocation30_spill] sm:$0xff] }
 0x3d9   : > { %v10908_v46 = vsel %vm13092_vm14, %v13091_v29, %v13090_v48  ;;  %vm13097_vm7 = vmmov %vm13047_vm0  ;;  %v5568_v48 = vpop.eup %5567  ;;  %v13116_v29 = vld [vmem:[#allocation59_spill] sm:$0xff]  ;;  %v13119_v41 = vld [vmem:[#allocation60_spill] sm:$0xff]  ;;  %5599 = vrcp.f32 %v10816_v25 }
 0x3da   : > { %v10918_v33 = vsel %vm13097_vm7, %v13096_v15, %v13095_v18  ;;  %vm13100_vm1 = vmmov %vm13047_vm0  ;;  %v13120_v18 = vld [vmem:[#allocation31_spill] sm:$0xff]  ;;  %v13125_v55 = vld [vmem:[#allocation62_spill] sm:$0xff]  ;;  %vm4301_vm7 = vcmask 1045504  }
 0x3db   : > { %v10923_v30 = vsel %vm13100_vm1, %v13099_v56, %v13098_v54  ;;  %vm13103_vm2 = vmmov %vm13047_vm0  ;;  %v5570_v54 = vpop.eup %5569  ;;  %v13122_v56 = vld [vmem:[#allocation61_spill] sm:$0xff]  ;;  %v13132_v35 = vld [vmem:[#allocation35_spill] sm:$0xff]  ;;  %5601 = vrcp.f32 %v10818_v59 }
 0x3dc   : > { %v10928_v17 = vsel %vm13103_vm2, %v13102_v24, %v13101_v23  ;;  %vm13106_vm13 = vmmov %vm13047_vm0  ;;  %v13123_v23 = vld [vmem:[#allocation32_spill] sm:$0xff] }
 0x3dd   : > { %v10933_v52 = vsel %vm13106_vm13, %v13105_v37, %v13104_v53  ;;  %vm13109_vm5 = vmmov %vm13047_vm0  ;;  %v13126_v53 = vld [vmem:[#allocation33_spill] sm:$0xff] }
 0x3de   : > { %v10938_v51 = vsel %vm13109_vm5, %v13108_v22, %v13107_v36  ;;  %vm13112_vm4 = vmmov %vm13047_vm0  ;;  %v13128_v36 = vld [vmem:[#allocation63_spill] sm:$0xff]  ;;  %v13129_v22 = vld [vmem:[#allocation34_spill] sm:$0xff] }
 0x3df   : > { %v10943_v13 = vsel %vm13112_vm4, %v13111_v7, %v13110_v19  ;;  %vm13115_vm11 = vmmov %vm13047_vm0  ;;  %v5572_v7 = vpop.eup %5571  ;;  %5603 = vrcp.f32 %v10828_v12 }
 0x3e0   : > { %v10948_v3 = vsel %vm13115_vm11, %v13114_v38, %v13113_v57  ;;  %vm13118_vm6 = vmmov %vm13047_vm0  ;;  %v13131_v57 = vld [vmem:[#allocation64_spill] sm:$0xff] }
 0x3e1   : > { %v10954_v60 = vsel %vm13118_vm6, %v13117_v43, %v13116_v29  ;;  %vm13121_vm15 = vmmov %vm13047_vm0  ;;  %v13134_v29 = vld [vmem:[#allocation65_spill] sm:$0xff]  ;;  %v13135_v43 = vld [vmem:[#allocation36_spill] sm:$0xff] }
 0x3e2   : > { %v10959_v15 = vsel %vm13121_vm15, %v13120_v18, %v13119_v41  ;;  %vm13124_vm8 = vmmov %vm13047_vm0  ;;  %v13137_v18 = vld [vmem:[#allocation66_spill] sm:$0xff] }
 0x3e3   : > { %v10965_v24 = vsel %vm13124_vm8, %v13123_v23, %v13122_v56  ;;  %vm13127_vm3 = vmmov %vm13047_vm0  ;;  %v13138_v56 = vld [vmem:[#allocation37_spill] sm:$0xff] }
 0x3e4   : > { %v10970_v37 = vsel %vm13127_vm3, %v13126_v53, %v13125_v55  ;;  %vm13130_vm10 = vmmov %vm13047_vm0  ;;  %v10991_v23 = vsel %vm13047_vm0, %v13138_v56, %v13137_v18  ;;  %v5574_v55 = vpop.eup %5573  ;;  %v13139_v53 = vld [vmem:[#allocation134_spill] sm:$0xff]  ;;  %v13142_v18 = vld [vmem:[#allocation68_spill] sm:$0xff]  ;;  %5605 = vrcp.f32 %v10830_v47 }
 0x3e5   : > { %v10975_v19 = vsel %vm13130_vm10, %v13129_v22, %v13128_v36  ;;  %vm13133_vm9 = vmmov %vm13047_vm0  ;;  %v10996_v28 = vsel %vm4268_vm12, %v4236_v10, %v13139_v53  ;;  %v13140_v36 = vld [vmem:[#allocation135_spill] sm:$0xff]  ;;  %v11012_v25 = vsel %vm4268_vm12, %v4239_v32, %v13142_v18  ;;  %v13143_v10 = vld [vmem:[#allocation69_spill] sm:$0xff]  ;;  %v11019_v53 = vmul.f32 %v5562_v6, %v10017_v2 }
 0x3e6   : > { %v10981_v38 = vsel %vm13133_vm9, %v13132_v35, %v13131_v57  ;;  %vm13136_vm14 = vmmov %vm13047_vm0  ;;  %v11000_v22 = vsel %vm4268_vm12, %v4237_v16, %v13140_v36  ;;  %v13141_v57 = vld [vmem:[#allocation67_spill] sm:$0xff]  ;;  %v11016_v56 = vsel %vm4268_vm12, %v4240_v49, %v13143_v10  ;;  %v13146_v36 = vld [vmem:[#allocation136_spill] sm:$0xff] }
 0x3e7   : > { %v10986_v41 = vsel %vm13136_vm14, %v13135_v43, %v13134_v29  ;;  %v11004_v35 = vsel %vm4268_vm12, %v4238_v42, %v13141_v57  ;;  %v5576_v29 = vpop.eup %5575  ;;  %v11007_v43 = vmul.f32 %v5560_v40, %v10014_v50  ;;  %v13144_v42 = vld [vmem:[#allocation73_spill] sm:$0xff]  ;;  %v13145_v40 = vld [vmem:[#allocation74_spill] sm:$0xff]  ;;  %v11031_v57 = vmul.f32 %v5564_v62, %v13146_v36  ;;  %v13147_v49 = vld [vmem:[#allocation75_spill] sm:$0xff] }
 0x3e8   : > { %v5578_v16 = vpop.eup %5577  ;;  %v11024_v50 = vsel %vm4268_vm12, %v4241_v1, %v13144_v42  ;;  %v11028_v59 = vsel %vm4268_vm12, %v4242_v26, %v13145_v40  ;;  %v11036_v2 = vsel %vm4268_vm12, %v4243_v11, %v13147_v49  ;;  %v13148_v6 = vld [vmem:[#allocation76_spill] sm:$0xff]  ;;  %5607 = vrcp.f32 %v10832_v31  ;;  %v13150_v26 = vld [vmem:[#allocation77_spill] sm:$0xff]  ;;  %v13151_v47 = vld [vmem:[#allocation78_spill] sm:$0xff] }
 0x3e9   : > { %v5580_v32 = vpop.eup %5579  ;;  %v11040_v12 = vsel %vm4268_vm12, %v4244_v0, %v13148_v6  ;;  %v13149_v18 = vld [vmem:[#allocation100_spill] sm:$0xff]  ;;  %v11047_v62 = vsel %vm4268_vm12, %v10878_v5, %v13150_v26  ;;  %v11052_v11 = vsel %vm4268_vm12, %v10883_v14, %v13151_v47  ;;  %v13152_v40 = vld [vmem:[#allocation102_spill] sm:$0xff]  ;;  %5609 = vrcp.f32 %v10834_v45  ;;  %v13153_v36 = vld [vmem:[#allocation79_spill] sm:$0xff] }
 0x3ea   : > { %v5582_v1 = vpop.eup %5581  ;;  %v4179_v10 = vmul.f32 %v5566_v63, %v13149_v18  ;;  %v4181_v0 = vmul.f32 %v5568_v48, %v13152_v40  ;;  %v11059_v63 = vsel %vm4268_vm12, %v10888_v4, %v13153_v36  ;;  %v13154_v31 = vld [vmem:[#allocation80_spill] sm:$0xff]  ;;  %5611 = vrcp.f32 %v10836_v58  ;;  %v13156_v14 = vld [vmem:[#allocation81_spill] sm:$0xff]  ;;  %v13157_v45 = vld [vmem:[#allocation82_spill] sm:$0xff] }
 0x3eb   : > { %v5584_v42 = vpop.eup %5583  ;;  %v11064_v5 = vsel %vm4268_vm12, %v10893_v39, %v13154_v31  ;;  %v13155_v6 = vld [vmem:[#allocation104_spill] sm:$0xff]  ;;  %v11071_v48 = vsel %vm4268_vm12, %v10898_v8, %v13156_v14  ;;  %v11076_v4 = vsel %vm4268_vm12, %v10903_v27, %v13157_v45  ;;  %v13158_v47 = vld [vmem:[#allocation105_spill] sm:$0xff]  ;;  %5613 = vrcp.f32 %v10838_v21  ;;  %v13159_v39 = vld [vmem:[#allocation83_spill] sm:$0xff] }
 0x3ec   : > { %v5586_v49 = vpop.eup %5585  ;;  %v4183_v18 = vmul.f32 %v5570_v54, %v13155_v6  ;;  %v4185_v40 = vmul.f32 %v5572_v7, %v13158_v47  ;;  %v11083_v54 = vsel %vm4268_vm12, %v10908_v46, %v13159_v39  ;;  %v13160_v58 = vld [vmem:[#allocation84_spill] sm:$0xff]  ;;  %v13161_v31 = vld [vmem:[#allocation106_spill] sm:$0xff]  ;;  %5615 = vrcp.f32 %v10840_v44  ;;  %v13162_v27 = vld [vmem:[#allocation85_spill] sm:$0xff] }
 0x3ed   : > { %v5588_v26 = vpop.eup %5587  ;;  %v11088_v8 = vsel %vm4268_vm12, %v10913_v20, %v13160_v58  ;;  %v4187_v6 = vmul.f32 %v5574_v55, %v13161_v31  ;;  %v11095_v7 = vsel %vm4268_vm12, %v10918_v33, %v13162_v27  ;;  %v13163_v21 = vld [vmem:[#allocation86_spill] sm:$0xff]  ;;  %v13164_v45 = vld [vmem:[#allocation107_spill] sm:$0xff]  ;;  %5617 = vrcp.f32 %v10842_v61  ;;  %v13166_v44 = vld [vmem:[#allocation88_spill] sm:$0xff] }
 0x3ee   : > { %v5590_v36 = vpop.eup %5589  ;;  %v11100_v46 = vsel %vm4268_vm12, %v10923_v30, %v13163_v21  ;;  %v4189_v47 = vmul.f32 %v5576_v29, %v13164_v45  ;;  %v13165_v20 = vld [vmem:[#allocation87_spill] sm:$0xff]  ;;  %v11112_v33 = vsel %vm4268_vm12, %v10933_v52, %v13166_v44  ;;  %v13167_v58 = vld [vmem:[#allocation108_spill] sm:$0xff]  ;;  %5619 = vrcp.f32 %v10844_v9  ;;  %v13168_v30 = vld [vmem:[#allocation89_spill] sm:$0xff] }
 0x3ef   : > { %v5592_v14 = vpop.eup %5591  ;;  %v11107_v55 = vsel %vm4268_vm12, %v10928_v17, %v13165_v20  ;;  %v4191_v31 = vmul.f32 %v5578_v16, %v13167_v58  ;;  %v4290_v29 = vsel %vm4268_vm12, %v10938_v51, %v13168_v30  ;;  %v13169_v61 = vld [vmem:[#allocation90_spill] sm:$0xff]  ;;  %v13170_v21 = vld [vmem:[#allocation109_spill] sm:$0xff]  ;;  %5621 = vrcp.f32 %v10846_v34  ;;  %v13171_v52 = vld [vmem:[#allocation91_spill] sm:$0xff] }
 0x3f0   : > { %v5594_v39 = vpop.eup %5593  ;;  %v11122_v27 = vsel %vm4268_vm12, %v10943_v13, %v13169_v61  ;;  %v4193_v45 = vmul.f32 %v5580_v32, %v13170_v21  ;;  %v11129_v16 = vsel %vm4268_vm12, %v10948_v3, %v13171_v52  ;;  %v13173_v9 = vld [vmem:[#allocation92_spill] sm:$0xff]  ;;  %v13174_v44 = vld [vmem:[#allocation110_spill] sm:$0xff]  ;;  %v13175_v13 = vld [vmem:[#allocation111_spill] sm:$0xff] }
 0x3f1   : > { %v5596_v17 = vpop.eup %5595  ;;  %13172 = vst [vmem:[#allocation131_spill] sm:$0xff] %v11129_v16  ;;  %v11134_v20 = vsel %vm4268_vm12, %v10954_v60, %v13173_v9  ;;  %v4195_v58 = vmul.f32 %v5582_v1, %v13174_v44  ;;  %v4197_v30 = vmul.f32 %v5584_v42, %v13175_v13  ;;  %v13176_v61 = vld [vmem:[#allocation93_spill] sm:$0xff]  ;;  %v13177_v34 = vld [vmem:[#allocation94_spill] sm:$0xff]  ;;  %v13178_v52 = vld [vmem:[#allocation112_spill] sm:$0xff] }
 0x3f2   : > { %v5598_v51 = vpop.eup %5597  ;;  %v11141_v32 = vsel %vm4268_vm12, %v10959_v15, %v13176_v61  ;;  %v11146_v3 = vsel %vm4268_vm12, %v10965_v24, %v13177_v34  ;;  %v4199_v16 = vmul.f32 %v5586_v49, %v13178_v52  ;;  %v13179_v60 = vld [vmem:[#allocation95_spill] sm:$0xff]  ;;  %v13180_v1 = vld [vmem:[#allocation96_spill] sm:$0xff]  ;;  %v13181_v15 = vld [vmem:[#allocation97_spill] sm:$0xff] }
 0x3f3   : > { %v5600_v21 = vpop.eup %5599  ;;  %v11152_v9 = vsel %vm4268_vm12, %v10970_v37, %v13179_v60  ;;  %v11157_v42 = vsel %vm4268_vm12, %v10975_v19, %v13180_v1  ;;  %v11162_v44 = vsel %vm4268_vm12, %v10981_v38, %v13181_v15  ;;  %v13183_v13 = vld [vmem:[#allocation113_spill] sm:$0xff]  ;;  %v13184_v34 = vld [vmem:[#allocation98_spill] sm:$0xff]  ;;  %v13185_v37 = vld [vmem:[#allocation99_spill] sm:$0xff]  ;;  %v4302_v19 = vsel %vm4301_vm7, %v10996_v28, %v11007_v43 }
 0x3f4   : > { %13182 = vst [vmem:[#allocation132_spill] sm:$0xff] %v11162_v44  ;;  %v5602_v24 = vpop.eup %5601  ;;  %v4201_v61 = vmul.f32 %v5588_v26, %v13183_v13  ;;  %v11168_v49 = vsel %vm4268_vm12, %v10986_v41, %v13184_v34  ;;  %v11173_v52 = vsel %vm4268_vm12, %v10991_v23, %v13185_v37  ;;  %v13186_v38 = vld [vmem:[#allocation114_spill] sm:$0xff]  ;;  %v13187_v15 = vld [vmem:[#allocation115_spill] sm:$0xff]  ;;  %v4303_v26 = vsel %vm4301_vm7, %v11000_v22, %v11019_v53  ;;  %v13188_v23 = vld [vmem:[#allocation116_spill] sm:$0xff] }
 0x3f5   : > { %v5604_v60 = vpop.eup %5603  ;;  %v4203_v1 = vmul.f32 %v5590_v36, %v13186_v38  ;;  %v4205_v44 = vmul.f32 %v5592_v14, %v13187_v15  ;;  %v4304_v41 = vsel %vm4301_vm7, %v11004_v35, %v11031_v57  ;;  %v4207_v34 = vmul.f32 %v5594_v39, %v13188_v23  ;;  %v13189_v14 = vld [vmem:[#allocation117_spill] sm:$0xff]  ;;  %v13190_v22 = vld [vmem:[#allocation118_spill] sm:$0xff]  ;;  %v13191_v15 = vld [vmem:[#allocation119_spill] sm:$0xff] }
 0x3f6   : > { %v5606_v13 = vpop.eup %5605  ;;  %v4305_v37 = vsel %vm4301_vm7, %v11012_v25, %v4179_v10  ;;  %v4306_v28 = vsel %vm4301_vm7, %v11016_v56, %v4181_v0  ;;  %v4307_v43 = vsel %vm4301_vm7, %v11024_v50, %v4183_v18  ;;  %v4209_v38 = vmul.f32 %v5596_v17, %v13189_v14  ;;  %v13192_v10 = vld [vmem:[#allocation120_spill] sm:$0xff]  ;;  %v11205_v18 = vpop.permute.xlu0 %4337  ;;  %v13193_v17 = vld [vmem:[#allocation121_spill] sm:$0xff] }
 0x3f7   : > { %v5608_v36 = vpop.eup %5607  ;;  %v4211_v53 = vmul.f32 %v5598_v51, %v13190_v22  ;;  %v4308_v35 = vsel %vm4301_vm7, %v11028_v59, %v4185_v40  ;;  %v4309_v57 = vsel %vm4301_vm7, %v11036_v2, %v4187_v6  ;;  %v4213_v25 = vmul.f32 %v5600_v21, %v13191_v15  ;;  %v13194_v21 = vld [vmem:[#allocation122_spill] sm:$0xff] }
 0x3f8   : > { %v5610_v39 = vpop.eup %5609  ;;  %v4215_v23 = vmul.f32 %v5602_v24, %v13192_v10  ;;  %v4310_v56 = vsel %vm4301_vm7, %v11040_v12, %v4189_v47  ;;  %v4311_v50 = vsel %vm4301_vm7, %v11047_v62, %v4191_v31  ;;  %v4217_v51 = vmul.f32 %v5604_v60, %v13193_v17 }
 0x3f9   : > { %v5612_v0 = vpop.eup %5611  ;;  %v4312_v59 = vsel %vm4301_vm7, %v11052_v11, %v4193_v45  ;;  %v4313_v2 = vsel %vm4301_vm7, %v11059_v63, %v4195_v58  ;;  %v4314_v40 = vsel %vm4301_vm7, %v11064_v5, %v4197_v30  ;;  %v4219_v12 = vmul.f32 %v5606_v13, %v13194_v21 }
 0x3fa   : > { %v5614_v6 = vpop.eup %5613  ;;  %v4315_v62 = vsel %vm4301_vm7, %v11071_v48, %v4199_v16  ;;  %v4316_v47 = vsel %vm4301_vm7, %v11076_v4, %v4201_v61  ;;  %v4317_v31 = vsel %vm4301_vm7, %v11083_v54, %v4203_v1  ;;  %v4318_v11 = vsel %vm4301_vm7, %v11088_v8, %v4205_v44  ;;  %v13195_v16 = vld [vmem:[#allocation123_spill] sm:$0xff]  ;;  %v13196_v44 = vld [vmem:[#allocation124_spill] sm:$0xff]  ;;  %v13197_v1 = vld [vmem:[#allocation125_spill] sm:$0xff] }
 0x3fb   : > { %v5616_v24 = vpop.eup %5615  ;;  %v4319_v63 = vsel %vm4301_vm7, %v11095_v7, %v4207_v34  ;;  %v4320_v5 = vsel %vm4301_vm7, %v11100_v46, %v4209_v38  ;;  %v4321_v45 = vsel %vm4301_vm7, %v11107_v55, %v4211_v53  ;;  %v4221_v58 = vmul.f32 %v5608_v36, %v13195_v16  ;;  %v13198_v34 = vld [vmem:[#allocation131_spill] sm:$0xff]  ;;  %v13199_v36 = vld [vmem:[#allocation126_spill] sm:$0xff]  ;;  %v13201_v53 = vld [vmem:[#allocation128_spill] sm:$0xff] }
 0x3fc   : > { %v5618_v48 = vpop.eup %5617  ;;  %v4322_v4 = vsel %vm4301_vm7, %v11112_v33, %v4213_v25  ;;  %v4323_v54 = vsel %vm4301_vm7, %v4290_v29, %v4215_v23  ;;  %v4340_v30 = vmul.f32 %v11205_v18, %v4302_v19  ;;  %v4223_v61 = vmul.f32 %v5610_v39, %v13196_v44  ;;  %v13200_v38 = vld [vmem:[#allocation127_spill] sm:$0xff] }
 0x3fd   : > { %v5620_v8 = vpop.eup %5619  ;;  %v4324_v7 = vsel %vm4301_vm7, %v11122_v27, %v4217_v51  ;;  %v4341_v46 = vmul.f32 %v11205_v18, %v4303_v26  ;;  %v4342_v55 = vmul.f32 %v11205_v18, %v4304_v41  ;;  %v4225_v13 = vmul.f32 %v5612_v0, %v13197_v1 }
 0x3fe   : > { %v5622_v60 = vpop.eup %5621  ;;  %v4325_v33 = vsel %vm4301_vm7, %v13198_v34, %v4219_v12  ;;  %v4343_v29 = vmul.f32 %v11205_v18, %v4305_v37  ;;  %v4344_v19 = vmul.f32 %v11205_v18, %v4306_v28  ;;  %v4227_v14 = vmul.f32 %v5614_v6, %v13199_v36  ;;  %v13202_v37 = vld [vmem:[#allocation129_spill] sm:$0xff]  ;;  %v13203_v28 = vld [vmem:[#allocation130_spill] sm:$0xff] }
 0x3ff   : > { %v4229_v22 = vmul.f32 %v5616_v24, %v13200_v38  ;;  %v4345_v27 = vmul.f32 %v11205_v18, %v4307_v43  ;;  %v4346_v26 = vmul.f32 %v11205_v18, %v4308_v35  ;;  %v4231_v41 = vmul.f32 %v5618_v48, %v13201_v53 }
 0x400   : > { %v4326_v39 = vsel %vm4301_vm7, %v11134_v20, %v4221_v58  ;;  %v4347_v15 = vmul.f32 %v11205_v18, %v4309_v57  ;;  %v4348_v25 = vmul.f32 %v11205_v18, %v4310_v56  ;;  %v4233_v10 = vmul.f32 %v5620_v8, %v13202_v37 }
 0x401   : > { %v4235_v23 = vmul.f32 %v5622_v60, %v13203_v28  ;;  %v4327_v0 = vsel %vm4301_vm7, %v11141_v32, %v4223_v61  ;;  %v4349_v43 = vmul.f32 %v11205_v18, %v4311_v50  ;;  %v4328_v35 = vsel %vm4301_vm7, %v11146_v3, %v4225_v13  ;;  %v13204_v50 = vld [vmem:[#allocation132_spill] sm:$0xff]  ;;  %v11300_v61 = vpop.permute.xlu1 %4413 }
 0x402   : > { %v4350_v17 = vmul.f32 %v11205_v18, %v4312_v59  ;;  %v4351_v20 = vmul.f32 %v11205_v18, %v4313_v2  ;;  %v4352_v57 = vmul.f32 %v11205_v18, %v4314_v40  ;;  %v4329_v56 = vsel %vm4301_vm7, %v11152_v9, %v4227_v14 }
 0x403   : > { %v4330_v51 = vsel %vm4301_vm7, %v11157_v42, %v4229_v22  ;;  %v4353_v6 = vmul.f32 %v11205_v18, %v4315_v62  ;;  %v4354_v32 = vmul.f32 %v11205_v18, %v4316_v47  ;;  %v4331_v21 = vsel %vm4301_vm7, %v13204_v50, %v4231_v41  ;;  %v4376_v62 = vpop.permute.xlu0 %4375 }
 0x404   : > { %v4355_v3 = vmul.f32 %v11205_v18, %v4317_v31  ;;  %v4356_v59 = vmul.f32 %v11205_v18, %v4318_v11  ;;  %v4357_v2 = vmul.f32 %v11205_v18, %v4319_v63  ;;  %v4332_v40 = vsel %vm4301_vm7, %v11168_v49, %v4233_v10 }
 0x405   : > { %v4333_v9 = vsel %vm4301_vm7, %v11173_v52, %v4235_v23  ;;  %v4358_v42 = vmul.f32 %v11205_v18, %v4320_v5  ;;  %v4359_v12 = vmul.f32 %v11205_v18, %v4321_v45  ;;  %v4360_v47 = vmul.f32 %v11205_v18, %v4322_v4 }
 0x406   : > { %v4361_v24 = vmul.f32 %v11205_v18, %v4323_v54  ;;  %v4362_v31 = vmul.f32 %v11205_v18, %v4324_v7  ;;  %v4363_v11 = vmul.f32 %v11205_v18, %v4325_v33  ;;  %v4364_v63 = vmul.f32 %v11205_v18, %v4326_v39 }
 0x407   : > { %v4365_v49 = vmul.f32 %v11205_v18, %v4327_v0  ;;  %v4366_v48 = vmul.f32 %v11205_v18, %v4328_v35  ;;  %v4367_v52 = vmul.f32 %v11205_v18, %v4329_v56  ;;  %v4368_v5 = vmul.f32 %v11205_v18, %v4330_v51 }
 0x408   : > { %v4369_v45 = vmul.f32 %v11205_v18, %v4331_v21  ;;  %v4370_v16 = vmul.f32 %v11205_v18, %v4332_v40  ;;  %v4371_v58 = vmul.f32 %v11205_v18, %v4333_v9  ;;  %v11292_v4 = vadd.f32 %v4376_v62, %v4340_v30 }
 0x409   : > { %v11294_v54 = vadd.f32 %v4376_v62, %v4341_v46  ;;  %v11296_v8 = vadd.f32 %v4376_v62, %v4342_v55  ;;  %v11298_v44 = vadd.f32 %v4376_v62, %v4343_v29  ;;  %v11302_v7 = vadd.f32 %v4376_v62, %v4344_v19 }
 0x40a   : > { %v11304_v60 = vadd.f32 %v4376_v62, %v4345_v27  ;;  %v11306_v1 = vadd.f32 %v4376_v62, %v4346_v26  ;;  %v11308_v13 = vadd.f32 %v4376_v62, %v4347_v15  ;;  %v11310_v34 = vadd.f32 %v4376_v62, %v4348_v25 }
 0x40b   : > { %v11312_v18 = vadd.f32 %v4376_v62, %v4349_v43  ;;  %v11314_v30 = vadd.f32 %v4376_v62, %v4350_v17  ;;  %v11316_v46 = vadd.f32 %v4376_v62, %v4351_v20  ;;  %v11318_v55 = vadd.f32 %v4376_v62, %v4352_v57 }
 0x40c   : > { %v11320_v33 = vadd.f32 %v4376_v62, %v4353_v6  ;;  %v11322_v29 = vadd.f32 %v4376_v62, %v4354_v32  ;;  %v11324_v19 = vadd.f32 %v4376_v62, %v4355_v3  ;;  %v11326_v36 = vadd.f32 %v4376_v62, %v4356_v59 }
 0x40d   : > { %v11328_v14 = vadd.f32 %v4376_v62, %v4357_v2  ;;  %v11330_v38 = vadd.f32 %v4376_v62, %v4358_v42  ;;  %v4416_v22 = vmul.f32 %v11300_v61, %v11292_v4  ;;  %v11334_v27 = vadd.f32 %v4376_v62, %v4359_v12 }
 0x40e   : > { %v4417_v26 = vmul.f32 %v11300_v61, %v11294_v54  ;;  %v4418_v53 = vmul.f32 %v11300_v61, %v11296_v8  ;;  %v4419_v41 = vmul.f32 %v11300_v61, %v11298_v44  ;;  %v11342_v39 = vadd.f32 %v4376_v62, %v4360_v47 }
 0x40f   : > { %v11344_v15 = vadd.f32 %v4376_v62, %v4361_v24  ;;  %v11346_v25 = vadd.f32 %v4376_v62, %v4362_v31  ;;  %v4420_v37 = vmul.f32 %v11300_v61, %v11302_v7  ;;  %v11350_v10 = vadd.f32 %v4376_v62, %v4363_v11 }
 0x410   : > { %v11352_v28 = vadd.f32 %v4376_v62, %v4364_v63  ;;  %v11354_v23 = vadd.f32 %v4376_v62, %v4365_v49  ;;  %v4421_v0 = vmul.f32 %v11300_v61, %v11304_v60  ;;  %v11358_v43 = vadd.f32 %v4376_v62, %v4366_v48 }
 0x411   : > { %v4422_v35 = vmul.f32 %v11300_v61, %v11306_v1  ;;  %v4423_v17 = vmul.f32 %v11300_v61, %v11308_v13  ;;  %v4448_v20 = vsub.f32 0.0, %v4416_v22  ;;  %v11364_v57 = vadd.f32 %v4376_v62, %v4367_v52 }
 0x412   : > { %v4449_v56 = vsub.f32 0.0, %v4417_v26  ;;  %v4450_v51 = vsub.f32 0.0, %v4418_v53  ;;  %v4451_v6 = vsub.f32 0.0, %v4419_v41  ;;  %v11366_v32 = vadd.f32 %v4376_v62, %v4368_v5 }
 0x413   : > { %v11368_v50 = vadd.f32 %v4376_v62, %v4369_v45  ;;  %v4424_v21 = vmul.f32 %v11300_v61, %v11310_v34  ;;  %v4452_v3 = vsub.f32 0.0, %v4420_v37  ;;  %v11372_v59 = vadd.f32 %v4376_v62, %v4370_v16 }
 0x414   : > { %13205 = vst [vmem:[#allocation133_spill] sm:$0xff] %v11366_v32  ;;  %v11374_v2 = vadd.f32 %v4376_v62, %v4371_v58  ;;  %v4425_v40 = vmul.f32 %v11300_v61, %v11312_v18  ;;  %v4453_v9 = vsub.f32 0.0, %v4421_v0  ;;  %v4426_v42 = vmul.f32 %v11300_v61, %v11314_v30 }
 0x415   : > { %13206 = vst [vmem:[#allocation101_spill] sm:$0xff] %v11368_v50  ;;  %13207 = vst [vmem:[#allocation70_spill] sm:$0xff] %v11372_v59  ;;  %v4454_v12 = vsub.f32 0.0, %v4422_v35  ;;  %v4455_v47 = vsub.f32 0.0, %v4423_v17  ;;  %v4480_v24 = vmul.f32 1.442695, %v4448_v20  ;;  %v4427_v31 = vmul.f32 %v11300_v61, %v11316_v46 }
 0x416   : > { %13208 = vst [vmem:[#allocation103_spill] sm:$0xff] %v11374_v2  ;;  %v4482_v11 = vmul.f32 1.442695, %v4449_v56  ;;  %v4484_v63 = vmul.f32 1.442695, %v4450_v51  ;;  %v4428_v62 = vmul.f32 %v11300_v61, %v11318_v55  ;;  %v4456_v48 = vsub.f32 0.0, %v4424_v21 }
 0x417   : > { %v4486_v49 = vmul.f32 1.442695, %v4451_v6  ;;  %5623 = vpow2.f32 %v4480_v24  ;;  %v4488_v52 = vmul.f32 1.442695, %v4452_v3  ;;  %v4429_v5 = vmul.f32 %v11300_v61, %v11320_v33 }
 0x418   : > { %v4457_v45 = vsub.f32 0.0, %v4425_v40  ;;  %5625 = vpow2.f32 %v4482_v11  ;;  %v4490_v16 = vmul.f32 1.442695, %v4453_v9  ;;  %v4430_v58 = vmul.f32 %v11300_v61, %v11322_v29 }
 0x419   : > { %v4458_v22 = vsub.f32 0.0, %v4426_v42  ;;  %5627 = vpow2.f32 %v4484_v63  ;;  %v4492_v26 = vmul.f32 1.442695, %v4454_v12  ;;  %v4431_v53 = vmul.f32 %v11300_v61, %v11324_v19 }
 0x41a   : > { %v4459_v41 = vsub.f32 0.0, %v4427_v31  ;;  %5629 = vpow2.f32 %v4486_v49  ;;  %v4494_v37 = vmul.f32 1.442695, %v4455_v47  ;;  %v4432_v0 = vmul.f32 %v11300_v61, %v11326_v36 }
 0x41b   : > { %v4460_v35 = vsub.f32 0.0, %v4428_v62  ;;  %5631 = vpow2.f32 %v4488_v52  ;;  %v4496_v17 = vmul.f32 1.442695, %v4456_v48  ;;  %v4433_v20 = vmul.f32 %v11300_v61, %v11328_v14 }
 0x41c   : > { %v4461_v56 = vsub.f32 0.0, %v4429_v5  ;;  %5633 = vpow2.f32 %v4490_v16  ;;  %v4498_v51 = vmul.f32 1.442695, %v4457_v45  ;;  %v4434_v6 = vmul.f32 %v11300_v61, %v11330_v38 }
 0x41d   : > { %v4462_v21 = vsub.f32 0.0, %v4430_v58  ;;  %5635 = vpow2.f32 %v4492_v26  ;;  %v4500_v3 = vmul.f32 1.442695, %v4458_v22  ;;  %v4435_v40 = vmul.f32 %v11300_v61, %v11334_v27 }
 0x41e   : > { %v4463_v9 = vsub.f32 0.0, %v4431_v53  ;;  %5637 = vpow2.f32 %v4494_v37  ;;  %v4502_v42 = vmul.f32 1.442695, %v4459_v41  ;;  %v4436_v12 = vmul.f32 %v11300_v61, %v11342_v39 }
 0x41f   : > { %v4464_v47 = vsub.f32 0.0, %v4432_v0  ;;  %5639 = vpow2.f32 %v4496_v17  ;;  %v4504_v24 = vmul.f32 1.442695, %v4460_v35  ;;  %v4437_v31 = vmul.f32 %v11300_v61, %v11344_v15 }
 0x420   : > { %v4465_v11 = vsub.f32 0.0, %v4433_v20  ;;  %5641 = vpow2.f32 %v4498_v51  ;;  %v4506_v63 = vmul.f32 1.442695, %v4461_v56  ;;  %v4438_v49 = vmul.f32 %v11300_v61, %v11346_v25 }
 0x421   : > { %v4466_v62 = vsub.f32 0.0, %v4434_v6  ;;  %5643 = vpow2.f32 %v4500_v3  ;;  %v4508_v48 = vmul.f32 1.442695, %v4462_v21  ;;  %v4439_v52 = vmul.f32 %v11300_v61, %v11350_v10 }
 0x422   : > { %v4467_v5 = vsub.f32 0.0, %v4435_v40  ;;  %5645 = vpow2.f32 %v4502_v42  ;;  %v4510_v45 = vmul.f32 1.442695, %v4463_v9  ;;  %v4440_v16 = vmul.f32 %v11300_v61, %v11352_v28 }
 0x423   : > { %v4468_v58 = vsub.f32 0.0, %v4436_v12  ;;  %5647 = vpow2.f32 %v4504_v24  ;;  %v4512_v22 = vmul.f32 1.442695, %v4464_v47  ;;  %v4441_v53 = vmul.f32 %v11300_v61, %v11354_v23 }
 0x424   : > { %v11408_v26 = vpop.eup %5623  ;;  %v4469_v41 = vsub.f32 0.0, %v4437_v31  ;;  %5649 = vpow2.f32 %v4506_v63  ;;  %v4514_v37 = vmul.f32 1.442695, %v4465_v11  ;;  %v4442_v35 = vmul.f32 %v11300_v61, %v11358_v43 }
 0x425   : > { %v5626_v0 = vpop.eup %5625  ;;  %v4470_v17 = vsub.f32 0.0, %v4438_v49  ;;  %5651 = vpow2.f32 %v4508_v48  ;;  %v4516_v20 = vmul.f32 1.442695, %v4466_v62  ;;  %v4443_v51 = vmul.f32 %v11300_v61, %v11364_v57 }
 0x426   : > { %v5628_v56 = vpop.eup %5627  ;;  %v4471_v6 = vsub.f32 0.0, %v4439_v52  ;;  %5653 = vpow2.f32 %v4510_v45  ;;  %v4518_v21 = vmul.f32 1.442695, %v4467_v5  ;;  %v4444_v40 = vmul.f32 %v11300_v61, %v11366_v32 }
 0x427   : > { %v5630_v3 = vpop.eup %5629  ;;  %v4472_v9 = vsub.f32 0.0, %v4440_v16  ;;  %5655 = vpow2.f32 %v4512_v22  ;;  %v4520_v42 = vmul.f32 1.442695, %v4468_v58  ;;  %v4445_v47 = vmul.f32 %v11300_v61, %v11368_v50 }
 0x428   : > { %v5632_v12 = vpop.eup %5631  ;;  %v4473_v24 = vsub.f32 0.0, %v4441_v53  ;;  %5657 = vpow2.f32 %v4514_v37  ;;  %v4522_v31 = vmul.f32 1.442695, %v4469_v41  ;;  %v4446_v63 = vmul.f32 %v11300_v61, %v11372_v59 }
 0x429   : > { %v5634_v11 = vpop.eup %5633  ;;  %v4474_v49 = vsub.f32 0.0, %v4442_v35  ;;  %5659 = vpow2.f32 %v4516_v20  ;;  %v4524_v62 = vmul.f32 1.442695, %v4470_v17  ;;  %v4447_v52 = vmul.f32 %v11300_v61, %v11374_v2 }
 0x42a   : > { %v5636_v48 = vpop.eup %5635  ;;  %v4475_v5 = vsub.f32 0.0, %v4443_v51  ;;  %5661 = vpow2.f32 %v4518_v21  ;;  %v4526_v45 = vmul.f32 1.442695, %v4471_v6  ;;  %v4476_v58 = vsub.f32 0.0, %v4444_v40 }
 0x42b   : > { %v5638_v16 = vpop.eup %5637  ;;  %5663 = vpow2.f32 %v4520_v42  ;;  %v4528_v22 = vmul.f32 1.442695, %v4472_v9  ;;  %v4477_v41 = vsub.f32 0.0, %v4445_v47  ;;  %v4530_v37 = vmul.f32 1.442695, %v4473_v24 }
 0x42c   : > { %v5640_v53 = vpop.eup %5639  ;;  %5665 = vpow2.f32 %v4522_v31  ;;  %v4478_v59 = vsub.f32 0.0, %v4446_v63  ;;  %v4532_v35 = vmul.f32 1.442695, %v4474_v49  ;;  %v4479_v20 = vsub.f32 0.0, %v4447_v52 }
 0x42d   : > { %v5642_v50 = vpop.eup %5641  ;;  %5667 = vpow2.f32 %v4524_v62  ;;  %v4534_v32 = vmul.f32 1.442695, %v4475_v5  ;;  %v4536_v51 = vmul.f32 1.442695, %v4476_v58  ;;  %v4538_v21 = vmul.f32 1.442695, %v4477_v41 }
 0x42e   : > { %v5644_v17 = vpop.eup %5643  ;;  %5669 = vpow2.f32 %v4526_v45  ;;  %v4540_v9 = vmul.f32 1.442695, %v4478_v59  ;;  %v4542_v47 = vmul.f32 1.442695, %v4479_v20  ;;  %v4544_v31 = vadd.f32 1.0, %v11408_v26 }
 0x42f   : > { %v5646_v61 = vpop.eup %5645  ;;  %5671 = vpow2.f32 %v4528_v22  ;;  %v4545_v49 = vadd.f32 1.0, %v5626_v0  ;;  %v4546_v52 = vadd.f32 1.0, %v5628_v56  ;;  %v4547_v45 = vadd.f32 1.0, %v5630_v3 }
 0x430   : > { %v5648_v6 = vpop.eup %5647  ;;  %5673 = vpow2.f32 %v4530_v37  ;;  %v4548_v22 = vadd.f32 1.0, %v5632_v12  ;;  %v4549_v41 = vadd.f32 1.0, %v5634_v11  ;;  %v4550_v37 = vadd.f32 1.0, %v5636_v48 }
 0x431   : > { %v5650_v40 = vpop.eup %5649  ;;  %5675 = vpow2.f32 %v4532_v35  ;;  %v4551_v26 = vadd.f32 1.0, %v5638_v16  ;;  %v4552_v0 = vadd.f32 1.0, %v5640_v53  ;;  %v4553_v56 = vadd.f32 1.0, %v5642_v50 }
 0x432   : > { %v5652_v42 = vpop.eup %5651  ;;  %5677 = vpow2.f32 %v4534_v32  ;;  %v4554_v3 = vadd.f32 1.0, %v5644_v17 }
 0x433   : > { %v5654_v24 = vpop.eup %5653  ;;  %5679 = vpow2.f32 %v4536_v51  ;;  %v4558_v48 = vadd.f32 1.0, %v5652_v42 }
 0x434   : > { %v5656_v63 = vpop.eup %5655  ;;  %5681 = vpow2.f32 %v4538_v21  ;;  %v4559_v16 = vadd.f32 1.0, %v5654_v24 }
 0x435   : > { %v5658_v62 = vpop.eup %5657  ;;  %5683 = vpow2.f32 %v4540_v9  ;;  %v4555_v9 = vadd.f32 1.0, %v5646_v61 }
 0x436   : > { %v5660_v5 = vpop.eup %5659  ;;  %5685 = vpow2.f32 %v4542_v47  ;;  %v4556_v47 = vadd.f32 1.0, %v5648_v6 }
 0x437   : > { %v5662_v58 = vpop.eup %5661  ;;  %5687 = vrcp.f32 %v4544_v31  ;;  %v4557_v31 = vadd.f32 1.0, %v5650_v40 }
 0x438   : > { %v5664_v59 = vpop.eup %5663  ;;  %5689 = vrcp.f32 %v4545_v49  ;;  %v4563_v50 = vadd.f32 1.0, %v5662_v58 }
 0x439   : > { %v5666_v32 = vpop.eup %5665  ;;  %5691 = vrcp.f32 %v4546_v52  ;;  %v4560_v52 = vadd.f32 1.0, %v5656_v63 }
 0x43a   : > { %v5668_v35 = vpop.eup %5667  ;;  %5693 = vrcp.f32 %v4547_v45  ;;  %v4561_v45 = vadd.f32 1.0, %v5658_v62 }
 0x43b   : > { %v5670_v20 = vpop.eup %5669  ;;  %5695 = vrcp.f32 %v4548_v22  ;;  %v4562_v22 = vadd.f32 1.0, %v5660_v5  ;;  %v4566_v2 = vadd.f32 1.0, %v5668_v35 }
 0x43c   : > { %v5672_v51 = vpop.eup %5671  ;;  %5697 = vrcp.f32 %v4549_v41  ;;  %v4564_v41 = vadd.f32 1.0, %v5664_v59  ;;  %v4567_v61 = vadd.f32 1.0, %v5670_v20 }
 0x43d   : > { %v5674_v21 = vpop.eup %5673  ;;  %5699 = vrcp.f32 %v4550_v37  ;;  %v4565_v37 = vadd.f32 1.0, %v5666_v32  ;;  %v4568_v6 = vadd.f32 1.0, %v5672_v51 }
 0x43e   : > { %v5676_v12 = vpop.eup %5675  ;;  %5701 = vrcp.f32 %v4551_v26  ;;  %v11425_v40 = vadd.f32 1.0, %v5674_v21 }
 0x43f   : > { %v5678_v11 = vpop.eup %5677  ;;  %5703 = vrcp.f32 %v4552_v0  ;;  %v11427_v42 = vadd.f32 1.0, %v5676_v12 }
 0x440   : > { %v5680_v49 = vpop.eup %5679  ;;  %5705 = vrcp.f32 %v4553_v56  ;;  %v11429_v63 = vadd.f32 1.0, %v5678_v11 }
 0x441   : > { %v5682_v53 = vpop.eup %5681  ;;  %5707 = vrcp.f32 %v4554_v3  ;;  %v11431_v62 = vadd.f32 1.0, %v5680_v49 }
 0x442   : > { %v5684_v17 = vpop.eup %5683  ;;  %5709 = vrcp.f32 %v4555_v9  ;;  %v11433_v5 = vadd.f32 1.0, %v5682_v53 }
 0x443   : > { %v5686_v26 = vpop.eup %5685  ;;  %5711 = vrcp.f32 %v4556_v47  ;;  %v11435_v59 = vadd.f32 1.0, %v5684_v17 }
 0x444   : > { %v5688_v24 = vpop.eup %5687  ;;  %5713 = vrcp.f32 %v4557_v31  ;;  %v11437_v32 = vadd.f32 1.0, %v5686_v26 }
 0x445   : > { %v5690_v58 = vpop.eup %5689  ;;  %5715 = vrcp.f32 %v4558_v48  ;;  %vm4640_vm1 = vcmp.ge.f32.partialorder %v5688_v24, 0.5 }
 0x446   : > { %v5692_v35 = vpop.eup %5691  ;;  %5717 = vrcp.f32 %v4559_v16  ;;  %vm4641_vm2 = vcmp.ge.f32.partialorder %v5690_v58, 0.5  ;;  %v11440_v20 = vsel %vm4640_vm1, %v11292_v4, 0.0  ;;  %v11443_v0 = vsel %vm4640_vm1, 0.0, %v11292_v4 }
 0x447   : > { %v5694_v51 = vpop.eup %5693  ;;  %5719 = vrcp.f32 %v4560_v52  ;;  %vm4642_vm13 = vcmp.ge.f32.partialorder %v5692_v35, 0.5  ;;  %v11446_v56 = vsel %vm4641_vm2, %v11294_v54, 0.0  ;;  %v11449_v21 = vsel %vm4641_vm2, 0.0, %v11294_v54 }
 0x448   : > { %v5696_v3 = vpop.eup %5695  ;;  %5721 = vrcp.f32 %v4561_v45  ;;  %vm4643_vm5 = vcmp.ge.f32.partialorder %v5694_v51, 0.5  ;;  %v11452_v12 = vsel %vm4642_vm13, %v11296_v8, 0.0  ;;  %v11455_v9 = vsel %vm4642_vm13, 0.0, %v11296_v8 }
 0x449   : > { %v5698_v4 = vpop.eup %5697  ;;  %5723 = vrcp.f32 %v4562_v22  ;;  %vm4644_vm4 = vcmp.ge.f32.partialorder %v5696_v3, 0.5  ;;  %v11458_v11 = vsel %vm4643_vm5, %v11298_v44, 0.0  ;;  %v11461_v47 = vsel %vm4643_vm5, 0.0, %v11298_v44 }
 0x44a   : > { %v5700_v54 = vpop.eup %5699  ;;  %5725 = vrcp.f32 %v4563_v50  ;;  %vm4645_vm11 = vcmp.ge.f32.partialorder %v5698_v4, 0.5  ;;  %v11464_v31 = vsel %vm4644_vm4, %v11302_v7, 0.0  ;;  %v11467_v48 = vsel %vm4644_vm4, 0.0, %v11302_v7 }
 0x44b   : > { %v5702_v8 = vpop.eup %5701  ;;  %5727 = vrcp.f32 %v4564_v41  ;;  %vm4646_vm6 = vcmp.ge.f32.partialorder %v5700_v54, 0.5  ;;  %v11470_v49 = vsel %vm4645_vm11, %v11304_v60, 0.0  ;;  %v11473_v16 = vsel %vm4645_vm11, 0.0, %v11304_v60 }
 0x44c   : > { %v5704_v44 = vpop.eup %5703  ;;  %5729 = vrcp.f32 %v4565_v37  ;;  %vm4647_vm15 = vcmp.ge.f32.partialorder %v5702_v8, 0.5  ;;  %v11476_v52 = vsel %vm4646_vm6, %v11306_v1, 0.0  ;;  %v11479_v45 = vsel %vm4646_vm6, 0.0, %v11306_v1 }
 0x44d   : > { %v5706_v7 = vpop.eup %5705  ;;  %5731 = vrcp.f32 %v4566_v2  ;;  %vm4648_vm12 = vcmp.ge.f32.partialorder %v5704_v44, 0.5  ;;  %v11482_v53 = vsel %vm4647_vm15, %v11308_v13, 0.0  ;;  %v11485_v22 = vsel %vm4647_vm15, 0.0, %v11308_v13 }
 0x44e   : > { %v5708_v60 = vpop.eup %5707  ;;  %5733 = vrcp.f32 %v4567_v61  ;;  %vm4649_vm8 = vcmp.ge.f32.partialorder %v5706_v7, 0.5  ;;  %v11488_v50 = vsel %vm4648_vm12, %v11310_v34, 0.0  ;;  %v11491_v41 = vsel %vm4648_vm12, 0.0, %v11310_v34 }
 0x44f   : > { %v5710_v1 = vpop.eup %5709  ;;  %5735 = vrcp.f32 %v4568_v6  ;;  %vm4650_vm3 = vcmp.ge.f32.partialorder %v5708_v60, 0.5  ;;  %v11494_v2 = vsel %vm4649_vm8, %v11312_v18, 0.0  ;;  %v11497_v17 = vsel %vm4649_vm8, 0.0, %v11312_v18 }
 0x450   : > { %v5712_v13 = vpop.eup %5711  ;;  %5737 = vrcp.f32 %v11425_v40  ;;  %vm4651_vm10 = vcmp.ge.f32.partialorder %v5710_v1, 0.5  ;;  %v11501_v37 = vsel %vm4650_vm3, %v11314_v30, 0.0  ;;  %v11504_v61 = vsel %vm4650_vm3, 0.0, %v11314_v30 }
 0x451   : > { %v5714_v34 = vpop.eup %5713  ;;  %5739 = vrcp.f32 %v11427_v42  ;;  %vm4652_vm9 = vcmp.ge.f32.partialorder %v5712_v13, 0.5  ;;  %v11508_v26 = vsel %vm4651_vm10, %v11316_v46, 0.0  ;;  %v11511_v18 = vsel %vm4651_vm10, 0.0, %v11316_v46 }
 0x452   : > { %v5716_v6 = vpop.eup %5715  ;;  %5741 = vrcp.f32 %v11429_v63  ;;  %vm4653_vm14 = vcmp.ge.f32.partialorder %v5714_v34, 0.5  ;;  %v11515_v40 = vsel %vm4652_vm9, %v11318_v55, 0.0  ;;  %v11518_v30 = vsel %vm4652_vm9, 0.0, %v11318_v55 }
 0x453   : > { %v5718_v24 = vpop.eup %5717  ;;  %5743 = vrcp.f32 %v11431_v62  ;;  %vm4654_vm0 = vcmp.ge.f32.partialorder %v5716_v6, 0.5  ;;  %v11522_v42 = vsel %vm4653_vm14, %v11320_v33, 0.0  ;;  %v11525_v46 = vsel %vm4653_vm14, 0.0, %v11320_v33 }
 0x454   : > { %v5720_v58 = vpop.eup %5719  ;;  %5745 = vrcp.f32 %v11433_v5  ;;  %vm4655_vm7 = vcmp.ge.f32.partialorder %v5718_v24, 0.5  ;;  %v11529_v63 = vsel %vm4654_vm0, %v11322_v29, 0.0  ;;  %v11532_v55 = vsel %vm4654_vm0, 0.0, %v11322_v29 }
 0x455   : > { %v5722_v35 = vpop.eup %5721  ;;  %5747 = vrcp.f32 %v11435_v59  ;;  %vm4656_vm1 = vcmp.ge.f32.partialorder %v5720_v58, 0.5  ;;  %v11536_v62 = vsel %vm4655_vm7, %v11324_v19, 0.0  ;;  %v11539_v33 = vsel %vm4655_vm7, 0.0, %v11324_v19 }
 0x456   : > { %v5724_v51 = vpop.eup %5723  ;;  %5749 = vrcp.f32 %v11437_v32  ;;  %vm4657_vm2 = vcmp.ge.f32.partialorder %v5722_v35, 0.5  ;;  %v11543_v5 = vsel %vm4656_vm1, %v11326_v36, 0.0  ;;  %v11546_v29 = vsel %vm4656_vm1, 0.0, %v11326_v36 }
 0x457   : > { %v5726_v3 = vpop.eup %5725  ;;  %vm4658_vm13 = vcmp.ge.f32.partialorder %v5724_v51, 0.5  ;;  %v11549_v59 = vsel %vm4657_vm2, %v11328_v14, 0.0  ;;  %v11552_v4 = vsel %vm4657_vm2, 0.0, %v11328_v14 }
 0x458   : > { %v5728_v54 = vpop.eup %5727  ;;  %vm4659_vm5 = vcmp.ge.f32.partialorder %v5726_v3, 0.5  ;;  %v11556_v32 = vsel %vm4658_vm13, %v11330_v38, 0.0  ;;  %v11559_v8 = vsel %vm4658_vm13, 0.0, %v11330_v38  ;;  %v4775_v3 = vrot.slane %v11485_v22, 4 }
 0x459   : > { %v5730_v44 = vpop.eup %5729  ;;  %vm4660_vm4 = vcmp.ge.f32.partialorder %v5728_v54, 0.5  ;;  %v11563_v7 = vsel %vm4659_vm5, %v11334_v27, 0.0  ;;  %v11566_v14 = vsel %vm4659_vm5, 0.0, %v11334_v27  ;;  %v4777_v22 = vrot.slane %v11497_v17, 4 }
 0x45a   : > { %v5732_v1 = vpop.eup %5731  ;;  %vm4661_vm11 = vcmp.ge.f32.partialorder %v5730_v44, 0.5  ;;  %v11570_v13 = vsel %vm4660_vm4, %v11342_v39, 0.0  ;;  %v11573_v38 = vsel %vm4660_vm4, 0.0, %v11342_v39  ;;  %v4779_v17 = vrot.slane %v11511_v18, 4  ;;  %v13221_v18 = vld [vmem:[#allocation103_spill] sm:$0xff] }
 0x45b   : > { %v5734_v6 = vpop.eup %5733  ;;  %vm4662_vm6 = vcmp.ge.f32.partialorder %v5732_v1, 0.5  ;;  %v11577_v24 = vsel %vm4661_vm11, %v11344_v15, 0.0  ;;  %v11580_v27 = vsel %vm4661_vm11, 0.0, %v11344_v15  ;;  %v4774_v1 = vrot.slane %v11479_v45, 4 }
 0x45c   : > { %v5736_v35 = vpop.eup %5735  ;;  %vm4663_vm15 = vcmp.ge.f32.partialorder %v5734_v6, 0.5  ;;  %v11584_v51 = vsel %vm4662_vm6, %v11346_v25, 0.0  ;;  %v11587_v39 = vsel %vm4662_vm6, 0.0, %v11346_v25  ;;  %v4776_v45 = vrot.slane %v11491_v41, 4 }
 0x45d   : > { %13209 = vst [vmem:[#allocation71_spill] sm:$0xff] %v11584_v51  ;;  %v5738_v54 = vpop.eup %5737  ;;  %vm4664_vm12 = vcmp.ge.f32.partialorder %v5736_v35, 0.5  ;;  %v11591_v44 = vsel %vm4663_vm15, %v11350_v10, 0.0  ;;  %v11594_v15 = vsel %vm4663_vm15, 0.0, %v11350_v10  ;;  %v4778_v41 = vrot.slane %v11504_v61, 4 }
 0x45e   : > { %13210 = vst [vmem:[#allocation72_spill] sm:$0xff] %v11591_v44  ;;  %v5740_v58 = vpop.eup %5739  ;;  %vm4665_vm8 = vcmp.ge.f32.partialorder %v5738_v54, 0.5  ;;  %v11598_v6 = vsel %vm4664_vm12, %v11352_v28, 0.0  ;;  %v11601_v25 = vsel %vm4664_vm12, 0.0, %v11352_v28  ;;  %v4780_v61 = vrot.slane %v11518_v30, 4 }
 0x45f   : > { %13211 = vst [vmem:[#allocation8_spill] sm:$0xff] %v11598_v6  ;;  %v5742_v34 = vpop.eup %5741  ;;  %vm4666_vm3 = vcmp.ge.f32.partialorder %v5740_v58, 0.5  ;;  %v11605_v35 = vsel %vm4665_vm8, %v11354_v23, 0.0  ;;  %v11608_v10 = vsel %vm4665_vm8, 0.0, %v11354_v23  ;;  %v4784_v30 = vrot.slane %v11546_v29, 4 }
 0x460   : > { %13212 = vst [vmem:[#allocation38_spill] sm:$0xff] %v11605_v35  ;;  %v5744_v60 = vpop.eup %5743  ;;  %vm4667_vm10 = vcmp.ge.f32.partialorder %v5742_v34, 0.5  ;;  %v11612_v54 = vsel %vm4666_vm3, %v11358_v43, 0.0  ;;  %v11615_v28 = vsel %vm4666_vm3, 0.0, %v11358_v43  ;;  %v13215_v34 = vld [vmem:[#allocation133_spill] sm:$0xff]  ;;  %v4789_v51 = vrot.slane %v11580_v27, 4 }
 0x461   : > { %13213 = vst [vmem:[#allocation9_spill] sm:$0xff] %v11612_v54  ;;  %v5746_v36 = vpop.eup %5745  ;;  %vm4668_vm9 = vcmp.ge.f32.partialorder %v5744_v60, 0.5  ;;  %v11619_v58 = vsel %vm4667_vm10, %v11364_v57, 0.0  ;;  %v11622_v23 = vsel %vm4667_vm10, 0.0, %v11364_v57  ;;  %v13217_v60 = vld [vmem:[#allocation101_spill] sm:$0xff]  ;;  %v4794_v29 = vrot.slane %v11615_v28, 4 }
 0x462   : > { %13214 = vst [vmem:[#allocation39_spill] sm:$0xff] %v11619_v58  ;;  %v5748_v19 = vpop.eup %5747  ;;  %vm4669_vm14 = vcmp.ge.f32.partialorder %v5746_v36, 0.5  ;;  %v11626_v35 = vsel %vm4668_vm9, %v13215_v34, 0.0  ;;  %v11629_v43 = vsel %vm4668_vm9, 0.0, %v13215_v34  ;;  %v13219_v36 = vld [vmem:[#allocation70_spill] sm:$0xff]  ;;  %v4781_v34 = vrot.slane %v11525_v46, 4 }
 0x463   : > { %13216 = vst [vmem:[#allocation10_spill] sm:$0xff] %v11626_v35  ;;  %v5750_v54 = vpop.eup %5749  ;;  %vm4670_vm0 = vcmp.ge.f32.partialorder %v5748_v19, 0.5  ;;  %v11633_v6 = vsel %vm4669_vm14, %v13217_v60, 0.0  ;;  %v11636_v57 = vsel %vm4669_vm14, 0.0, %v13217_v60  ;;  %v4782_v60 = vrot.slane %v11532_v55, 4 }
 0x464   : > { %13218 = vst [vmem:[#allocation40_spill] sm:$0xff] %v11633_v6  ;;  %vm4671_vm7 = vcmp.ge.f32.partialorder %v5750_v54, 0.5  ;;  %v11640_v58 = vsel %vm4670_vm0, %v13219_v36, 0.0  ;;  %v11643_v35 = vsel %vm4670_vm0, 0.0, %v13219_v36  ;;  %v4783_v6 = vrot.slane %v11539_v33, 4 }
 0x465   : > { %13220 = vst [vmem:[#allocation11_spill] sm:$0xff] %v11640_v58  ;;  %v11647_v44 = vsel %vm4671_vm7, %v13221_v18, 0.0  ;;  %v11650_v19 = vsel %vm4671_vm7, 0.0, %v13221_v18  ;;  %v4785_v54 = vrot.slane %v11552_v4, 4  ;;  %v4786_v58 = vrot.slane %v11559_v8, 4 }
 0x466   : > { %13222 = vst [vmem:[#allocation41_spill] sm:$0xff] %v11647_v44  ;;  %v4787_v36 = vrot.slane %v11566_v14, 4  ;;  %v4788_v46 = vrot.slane %v11573_v38, 4  ;;  %v4790_v44 = vrot.slane %v11587_v39, 4  ;;  %v4791_v18 = vrot.slane %v11594_v15, 4 }
 0x467   : > { %v4792_v55 = vrot.slane %v11601_v25, 4  ;;  %v4793_v33 = vrot.slane %v11608_v10, 4  ;;  %v4795_v4 = vrot.slane %v11622_v23, 4  ;;  %v4796_v8 = vrot.slane %v11629_v43, 4 }
 0x468   : > { %v4797_v14 = vrot.slane %v11636_v57, 4  ;;  %v4798_v38 = vrot.slane %v11643_v35, 4  ;;  %v4799_v27 = vrot.slane %v11650_v19, 4  ;;  %v13223_v39 = vrot.slane %v11443_v0, 4 }
 0x469   : > { %v13224_v25 = vrot.slane %v11449_v21, 4  ;;  %v13225_v28 = vrot.slane %v11455_v9, 4  ;;  %v13226_v43 = vrot.slane %v11461_v47, 4  ;;  %v13227_v35 = vrot.slane %v11467_v48, 4 }
 0x46a   : > { %v4864_v15 = vadd.f32 %v13223_v39, %v11440_v20  ;;  %v13228_v0 = vrot.slane %v11473_v16, 4  ;;  %v4870_v39 = vadd.f32 %v4774_v1, %v11476_v52  ;;  %v4872_v21 = vadd.f32 %v4776_v45, %v11488_v50 }
 0x46b   : > { %v4865_v10 = vadd.f32 %v13224_v25, %v11446_v56  ;;  %v4866_v23 = vadd.f32 %v13225_v28, %v11452_v12  ;;  %v4867_v57 = vadd.f32 %v13226_v43, %v11458_v11  ;;  %v4868_v19 = vadd.f32 %v13227_v35, %v11464_v31  ;;  %v13236_v1 = vld [vmem:[#allocation40_spill] sm:$0xff] }
 0x46c   : > { %v4869_v20 = vadd.f32 %v13228_v0, %v11470_v49  ;;  %v4871_v56 = vadd.f32 %v4775_v3, %v11482_v53  ;;  %v4873_v12 = vadd.f32 %v4777_v22, %v11494_v2  ;;  %v4874_v9 = vadd.f32 %v4778_v41, %v11501_v37  ;;  %4896 = vst [vmem:[%s11696_s13] sm:$0xff] %v4864_v15  ;;  %v13234_v3 = vld [vmem:[#allocation39_spill] sm:$0xff] }
 0x46d   : > { %v4875_v11 = vadd.f32 %v4779_v17, %v11508_v26  ;;  %4897 = vst [vmem:[%s11696_s13 + $0x8] sm:$0xff] %v4865_v10  ;;  %4898 = vst [vmem:[%s11696_s13 + $0x10] sm:$0xff] %v4866_v23  ;;  %v4876_v47 = vadd.f32 %v4780_v61, %v11515_v40  ;;  %v4877_v31 = vadd.f32 %v4781_v34, %v11522_v42  ;;  %v13229_v26 = vld [vmem:[#allocation71_spill] sm:$0xff]  ;;  %v13230_v42 = vld [vmem:[#allocation72_spill] sm:$0xff] }
 0x46e   : > { %4899 = vst [vmem:[%s11696_s13 + $0x18] sm:$0xff] %v4867_v57  ;;  %v4878_v48 = vadd.f32 %v4782_v60, %v11529_v63  ;;  %v4879_v49 = vadd.f32 %v4783_v6, %v11536_v62  ;;  %4900 = vst [vmem:[%s11696_s13 + $0x20] sm:$0xff] %v4868_v19  ;;  %v4880_v16 = vadd.f32 %v4784_v30, %v11543_v5  ;;  %v13231_v62 = vld [vmem:[#allocation8_spill] sm:$0xff]  ;;  %v13237_v45 = vld [vmem:[#allocation11_spill] sm:$0xff] }
 0x46f   : > { %4901 = vst [vmem:[%s11696_s13 + $0x28] sm:$0xff] %v4869_v20  ;;  %4902 = vst [vmem:[%s11696_s13 + $0x30] sm:$0xff] %v4870_v39  ;;  %v4881_v52 = vadd.f32 %v4785_v54, %v11549_v59  ;;  %v4882_v53 = vadd.f32 %v4786_v58, %v11556_v32  ;;  %v4883_v50 = vadd.f32 %v4787_v36, %v11563_v7  ;;  %v13232_v59 = vld [vmem:[#allocation38_spill] sm:$0xff]  ;;  %v13233_v7 = vld [vmem:[#allocation9_spill] sm:$0xff] }
 0x470   : > { %4903 = vst [vmem:[%s11696_s13 + $0x38] sm:$0xff] %v4871_v56  ;;  %4904 = vst [vmem:[%s11696_s13 + $0x40] sm:$0xff] %v4872_v21  ;;  %v4884_v2 = vadd.f32 %v4788_v46, %v11570_v13  ;;  %v4885_v37 = vadd.f32 %v4789_v51, %v11577_v24  ;;  %v4886_v40 = vadd.f32 %v4790_v44, %v13229_v26  ;;  %v13235_v51 = vld [vmem:[#allocation10_spill] sm:$0xff]  ;;  %v13238_v58 = vld [vmem:[#allocation41_spill] sm:$0xff] }
 0x471   : > { %4905 = vst [vmem:[%s11696_s13 + $0x48] sm:$0xff] %v4873_v12  ;;  %4906 = vst [vmem:[%s11696_s13 + $0x50] sm:$0xff] %v4874_v9  ;;  %v4887_v63 = vadd.f32 %v4791_v18, %v13230_v42  ;;  %v4888_v5 = vadd.f32 %v4792_v55, %v13231_v62  ;;  %v4889_v32 = vadd.f32 %v4793_v33, %v13232_v59 }
 0x472   : > { %4907 = vst [vmem:[%s11696_s13 + $0x58] sm:$0xff] %v4875_v11  ;;  %4908 = vst [vmem:[%s11696_s13 + $0x60] sm:$0xff] %v4876_v47  ;;  %v4890_v13 = vadd.f32 %v4794_v29, %v13233_v7  ;;  %v4891_v24 = vadd.f32 %v4795_v4, %v13234_v3  ;;  %v4892_v44 = vadd.f32 %v4796_v8, %v13235_v51 }
 0x473   : > { %4909 = vst [vmem:[%s11696_s13 + $0x68] sm:$0xff] %v4877_v31  ;;  %4910 = vst [vmem:[%s11696_s13 + $0x70] sm:$0xff] %v4878_v48  ;;  %v4893_v6 = vadd.f32 %v4797_v14, %v13236_v1  ;;  %v4894_v22 = vadd.f32 %v4798_v38, %v13237_v45  ;;  %v4895_v41 = vadd.f32 %v4799_v27, %v13238_v58 }
 0x474   : > { %4911 = vst [vmem:[%s11696_s13 + $0x78] sm:$0xff] %v4879_v49  ;;  %4912 = vst [vmem:[%s11696_s13 + $0x80] sm:$0xff] %v4880_v16 }
 0x475   : > { %4913 = vst [vmem:[%s11696_s13 + $0x88] sm:$0xff] %v4881_v52  ;;  %4914 = vst [vmem:[%s11696_s13 + $0x90] sm:$0xff] %v4882_v53 }
 0x476   : > { %4915 = vst [vmem:[%s11696_s13 + $0x98] sm:$0xff] %v4883_v50  ;;  %4916 = vst [vmem:[%s11696_s13 + $0xa0] sm:$0xff] %v4884_v2 }
 0x477   : > { %4917 = vst [vmem:[%s11696_s13 + $0xa8] sm:$0xff] %v4885_v37  ;;  %4918 = vst [vmem:[%s11696_s13 + $0xb0] sm:$0xff] %v4886_v40 }
 0x478   : > { %4919 = vst [vmem:[%s11696_s13 + $0xb8] sm:$0xff] %v4887_v63  ;;  %4920 = vst [vmem:[%s11696_s13 + $0xc0] sm:$0xff] %v4888_v5 }
 0x479   : > { %4921 = vst [vmem:[%s11696_s13 + $0xc8] sm:$0xff] %v4889_v32  ;;  %4922 = vst [vmem:[%s11696_s13 + $0xd0] sm:$0xff] %v4890_v13 }
 0x47a   : > { %4923 = vst [vmem:[%s11696_s13 + $0xd8] sm:$0xff] %v4891_v24  ;;  %4924 = vst [vmem:[%s11696_s13 + $0xe0] sm:$0xff] %v4892_v44 }
 0x47b   : > { %4925 = vst [vmem:[%s11696_s13 + $0xe8] sm:$0xff] %v4893_v6  ;;  %4926 = vst [vmem:[%s11696_s13 + $0xf0] sm:$0xff] %v4894_v22 }
 0x47c   : > { %4927 = vst [vmem:[%s11696_s13 + $0xf8] sm:$0xff] %v4895_v41 }
 0x47d   : > { %5888 = shalt.err (!%p5885_p3)
}
 0x47e   : > { %s5889_s9 = scalar_lea.hbm %s11747_s24, 4096  ;;  %s5893_s11 = scalar_lea.hbm %s11807_s4, 8192 }
 0x47f   : > { %p5890_p5 = scmp.ne.s32.totalorder %s11747_s24, %s5889_s9  ;;  %p5894_p10 = scmp.lt.s32.totalorder %s11747_s24, %s11807_s4 }
 0x480   : > { %p5895_p4 = scmp.lt.s32.totalorder %s5893_s11, %s5889_s9 }
 0x481   : > { %p5891_p6 = pnand %p5890_p5, %p6036_p9 }
 0x482   : > { %p5896_p13 = por %p5895_p4, %p5894_p10 }
 0x483   : > { %p5892_p7 = pneg %p5891_p6 }
 0x485   : > { %p5897_p8 = pnand %p5896_p13, %p5892_p7 }
 0x487   : > { %5900 = shalt.err (!%p5897_p8)
}
 0x488   : > { %5048 = dma.vmem_to_hbm [thread:$0]  (%p6036_p9), %s11749_s21, 4096, %s11747_s24, %s4929_s26  }
 0x489 PF: > { %s4957_s13 = sand.u32 1, %s5935_s15   ;;  %p13239_p11 = scmp.ne.s32.totalorder %s12084_s30, 0 }
 0x48a   : > { %p13240_p12 = scmp.ge.s32.totalorder %s5955_s20, 2  ;;  %s4958_s14 = scalar_lea.sflag [#allocation4], %s4957_s13 }
 0x48c   : > { %p5055_p0 = pnand %p13240_p12, %p13239_p11 }
 0x48e   : > { %p5056_p1 = pneg %p5055_p0 }
 0x490   : > { %5930 = dma.done.wait (%p5056_p1), %s4958_s14, 4096  }
 0x491   : > { %5932 = vsyncadd (%p5056_p1), %s4958_s14, 4294963200  ;;  %s20_s20 = sadd.s32 1, %s5955_s20   ;;  %s13241_s15 = smov %s5939_s16 }
 0x492   : > { %p17_p2 = scmp.ge.s32.totalorder %s20_s20, 4   ;;  %s13242_s16 = smov %s5943_s17 }
 0x493   : > { %s13243_s17 = smov %s6041_s29  ;;  %s13244_s18 = smov %s5951_s19 }
 0x494   : > { %s13245_s19 = smov %s13247_s23  ;;  %19 = sbr.rel (!%p17_p2) target bundleno = 6 (0x6), region = 81 }
 0x499   :  { %4963 = vsyncpa [#allocation3], 1 }
 0x49a   :  { %4965 = vsyncpa [#allocation3 + $0x1], 1 }
 0x49b   :  { %4966 = vsyncpa [#allocation4], 1 }
 0x49c   :  { %4968 = vsyncpa [#allocation4 + $0x1], 1 }

</bundles_post_ra>
